<compile_context>
chip_gen: v5e
topology: v5e:2x2
jax: 0.10.0
libtpu: 0.0.40
codegen_flags: <defaults>
</compile_context>

<pallas_src>
import functools
import numpy as np

import jax
import jax.numpy as jnp
from jax.experimental import pallas as pl
from jax.experimental.pallas import tpu as pltpu

EPS = 1e-8
NEG_FILL = float(np.finfo(np.float32).max)   # torch.finfo(float32).max


# ----------------------------------------------------------------------------
# Hardware-aware sizing helpers
# ----------------------------------------------------------------------------
def _vmem_cap():
    try:
        return int(pltpu.get_tpu_info().vmem_capacity_bytes)
    except Exception:
        return 64 * 1024 * 1024           # conservative (v7x per-TC VMEM)


def _vmem_limit(est_bytes):
    cap = _vmem_cap()
    return int(min(int(0.75 * cap), max(32 << 20, 2 * int(est_bytes))))


def _row_tile(M, bytes_per_row):
    """Row tile: multiple of 8, >=2 grid steps when possible, VMEM-bounded."""
    if M <= 16:
        return M
    cap = _vmem_cap()
    max_tile = 2048 if cap >= (100 << 20) else 1024
    budget_rows = max(8, int(0.4 * cap) // (3 * max(int(bytes_per_row), 1)))
    t = min(M, max_tile, budget_rows, -(-M // 2))
    return max(8, (t // 8) * 8)


def _pad128(x):
    return ((int(x) + 127) // 128) * 128


# ----------------------------------------------------------------------------
# Row-level math helpers (traced inside kernels; channel-major vectors)
# ----------------------------------------------------------------------------
def _bf(x):
    return x.astype(jnp.bfloat16)


def _mm(a, b):
    """MXU matmul: bf16 operands, f32 accumulation."""
    return jnp.dot(_bf(a), _bf(b), preferred_element_type=jnp.float32)


def _leaky(x):
    return jnp.where(x >= 0.0, x, 0.01 * x)


def _sigmoid(x):
    return pl.reciprocal(1.0 + jnp.exp(-x), approx=True)


def _gvl_rows(sca, vec_cs, w_vec1, w_sca_v, w_sca_s, b_sca, w_gate, b_gate, w_vec2):
    """GVL on row-major features; vec_cs = [x, y, z] channel arrays (M, Vin)."""
    vec1 = [_mm(vc, w_vec1) for vc in vec_cs]
    norm = jnp.sqrt(vec1[0] * vec1[0] + vec1[1] * vec1[1] + vec1[2] * vec1[2])
    sca_out = _mm(norm, w_sca_v) + _mm(sca, w_sca_s) + b_sca
    gate = _sigmoid(_mm(sca_out, w_gate) + b_gate)
    vec_out = [gate * _mm(v1, w_vec2) for v1 in vec1]
    return sca_out, vec_out


def _vnl_leaky_rows(vec_cs, w_act):
    v3 = [_mm(vc, w_act) for vc in vec_cs]
    vdot = v3[0] * vec_cs[0] + v3[1] * vec_cs[1] + v3[2] * vec_cs[2]
    nsq = v3[0] * v3[0] + v3[1] * v3[1] + v3[2] * v3[2]
    out = []
    for vc, b in zip(vec_cs, v3):
        adj = vc - b * vdot / (nsq + EPS)
        out.append(0.01 * vc + 0.99 * jnp.where(vdot >= 0.0, vc, adj))
    return out


# ----------------------------------------------------------------------------
# Fused GVL / GVP: one pallas_call each (node-level tensors)
# ----------------------------------------------------------------------------
def fused_gvl(sca, vec_cm, p, gvp=False):
    """sca: (..., Sin) f32; vec_cm: (..., 3, Vin) channel-major.
    Returns (sca_out (..., Sout), vec_out_cm (..., 3, Vout))."""
    lead = sca.shape[:-1]
    Sin = int(sca.shape[-1])
    Vin = int(vec_cm.shape[-1])
    M = int(np.prod(lead)) if lead else 1
    dh = int(p["w_vec1"].shape[-1])
    Sout = int(p["w_sca"].shape[-1])
    Vout = int(p["w_vec2"].shape[-1])
    Wout = Sout + 3 * Vout

    xs = sca.reshape(M, Sin)
    xv = vec_cm.reshape(M, 3 * Vin)

    consts = [p["w_vec1"], p["w_sca"][:dh], p["w_sca"][dh:],
              p["b_sca"].reshape(1, Sout), p["w_gate"],
              p["b_gate"].reshape(1, Vout), p["w_vec2"]]
    if gvp:
        consts.append(p["w_act_vec"])
    nconst = len(consts)

    def kernel(xs_ref, xv_ref, *rest):
        crefs = rest[:nconst]
        out_ref = rest[nconst]
        sca_r = xs_ref[...]
        vec_cs = [xv_ref[:, c * Vin:(c + 1) * Vin] for c in range(3)]
        sca_o, vec_o = _gvl_rows(sca_r, vec_cs, *(c[...] for c in crefs[:7]))
        if gvp:
            sca_o = _leaky(sca_o)
            vec_o = _vnl_leaky_rows(vec_o, crefs[7][...])
        out_ref[...] = jnp.concatenate([sca_o] + vec_o, axis=-1)

    bytes_per_row = 4 * (Sin + 3 * Vin + Wout + 4 * dh + Sout + 2 * Vout)
    TM = _row_tile(M, bytes_per_row)
    grid = (pl.cdiv(M, TM),)
    in_specs = ([pl.BlockSpec((TM, Sin), lambda i: (i, 0)),
                 pl.BlockSpec((TM, 3 * Vin), lambda i: (i, 0))]
                + [pl.BlockSpec(tuple(c.shape), lambda i: (0, 0)) for c in consts])
    out_specs = pl.BlockSpec((TM, Wout), lambda i: (i, 0))
    const_bytes = sum(int(np.prod(c.shape)) * 4 for c in consts)
    flops = 2 * M * (3 * Vin * dh + (dh + Sin) * Sout + Sout * Vout
                     + 3 * dh * Vout + (3 * Vout * Vout if gvp else 0))
    cost = pl.CostEstimate(
        flops=int(flops), transcendentals=int(M * Vout),
        bytes_accessed=int(4 * M * (Sin + 3 * Vin + Wout) + const_bytes))

    out = pl.pallas_call(
        kernel,
        grid=grid,
        in_specs=in_specs,
        out_specs=out_specs,
        out_shape=jax.ShapeDtypeStruct((M, Wout), jnp.float32),
        compiler_params=pltpu.CompilerParams(
            dimension_semantics=("parallel",),
            vmem_limit_bytes=_vmem_limit(3 * TM * bytes_per_row + const_bytes)),
        cost_estimate=cost,
    )(xs, xv, *consts)

    sca_out = out[:, :Sout].reshape(lead + (Sout,))
    vec_out = out[:, Sout:].reshape(lead + (3, Vout))
    return sca_out, vec_out


# ----------------------------------------------------------------------------
# Fused DistGMM + VecExpansion + GVL(lin_edge_b):  (B,N,N,S+3V) bf16 slab.
# ----------------------------------------------------------------------------
def edge_b_fused(edge_sca, edge_vec_cm, coor, params, S, V):
    B, N, _, Es = edge_sca.shape
    Ev3 = int(edge_vec_cm.shape[-1])
    Ev = Ev3 // 3
    p = params["lin_edge_b"]
    dh = int(p["w_vec1"].shape[-1])          # = Ev + V
    W = S + 3 * V

    # tiny host-side weight prep (new_vec folded analytically into VNL1)
    w_vec1_ev = p["w_vec1"][:Ev]
    u_new = jnp.dot(params["vec_embed_w"], p["w_vec1"][Ev:])          # (1, dh)
    w_sca = p["w_sca"]
    w_sca_v = w_sca[:dh]
    w_sca_es = w_sca[dh:dh + Es]
    w_sca_d = params["dist_scale"].reshape(1, 1) * w_sca[dh + Es:dh + Es + 1]
    w_sca_rbf = w_sca[dh + Es + 1:]
    b_sca = p["b_sca"].reshape(1, S)
    w_gate = p["w_gate"]
    b_gate = p["b_gate"].reshape(1, V)
    w_vec2 = p["w_vec2"]
    offset = params["dist_offset"].reshape(1, S - 1)
    coeff = params["dist_coeff"].reshape(1, 1)

    consts = [w_vec1_ev, u_new, w_sca_v, w_sca_es, w_sca_d, w_sca_rbf, b_sca,
              w_gate, b_gate, w_vec2, offset, coeff]
    nconst = len(consts)

    cap = _vmem_cap()
    row_bytes = (4 * (Es + Ev3 + _pad128(S - 1) + 2 * 128 + 4 * _pad128(dh)
                      + 2 * _pad128(S) + _pad128(3 * V)) + 2 * W)
    per_i = N * row_bytes
    fixed = 4 * (2 * N * 3 + sum(int(np.prod(c.shape)) for c in consts))
    budget = int(0.45 * cap)
    ti_cap = max(16, (max(budget - fixed, 0) // max(per_i, 1)) // 16 * 16)
    TI = N if N <= ti_cap else ti_cap
    if B == 1 and N > 16 and TI >= N:
        TI = max(16, (-(-N // 2) // 16) * 16)
    nti = pl.cdiv(N, TI)

    def kernel(es_ref, ev_ref, ci_ref, cj_ref, *rest):
        crefs = rest[:nconst]
        out_ref = rest[nconst]
        (wv1, un, wsv, wses, wsd, wsr, bs, wg, bg, wv2, off, cf) = \
            [c[...] for c in crefs]

        es2 = es_ref[0].reshape(TI * N, Es)
        ev2 = ev_ref[0].reshape(TI * N, Ev3)
        ci = ci_ref[0]                               # (TI, 3)
        cj = cj_ref[0]                               # (N, 3)

        rel = ci[:, None, :] - cj[None, :, :]        # (TI, N, 3)
        rel2 = rel.reshape(TI * N, 3)
        dist = jnp.sqrt(jnp.sum(rel2 * rel2, axis=-1, keepdims=True))   # (TI*N,1)
        d_cl = jnp.minimum(dist, 2.0)
        rbf = jnp.exp(cf * (d_cl - off) ** 2)                            # (TI*N,S-1)

        vec1 = []
        for c in range(3):
            v1 = _mm(ev2[:, c * Ev:(c + 1) * Ev], wv1) + rel2[:, c:c + 1] * un
            vec1.append(v1)
        norm = jnp.sqrt(vec1[0] ** 2 + vec1[1] ** 2 + vec1[2] ** 2)
        sca = (_mm(norm, wsv) + _mm(es2, wses) + dist * wsd
               + _mm(rbf, wsr) + bs)
        gate = _sigmoid(_mm(sca, wg) + bg)
        vec_out = [gate * _mm(v1, wv2) for v1 in vec1]
        out = jnp.concatenate([sca] + vec_out, axis=-1).astype(jnp.bfloat16)
        out_ref[0] = out.reshape(TI, N, W)

    grid = (B, nti)
    in_specs = ([pl.BlockSpec((1, TI, N, Es), lambda b, i: (b, i, 0, 0)),
                 pl.BlockSpec((1, TI, N, Ev3), lambda b, i: (b, i, 0, 0)),
                 pl.BlockSpec((1, TI, 3), lambda b, i: (b, i, 0)),
                 pl.BlockSpec((1, N, 3), lambda b, i: (b, 0, 0))]
                + [pl.BlockSpec(tuple(c.shape), lambda b, i: (0, 0)) for c in consts])
    out_specs = pl.BlockSpec((1, TI, N, W), lambda b, i: (b, i, 0, 0))
    const_bytes = sum(int(np.prod(c.shape)) * 4 for c in consts)
    flops = int(2 * B * N * N * (3 * Ev * dh + (dh + Es + S) * S + S * V
                                 + 3 * dh * V + 3 * (S - 1)))
    cost = pl.CostEstimate(
        flops=flops, transcendentals=int(B * N * N * (S + V)),
        bytes_accessed=int(4 * B * N * N * (Es + Ev3) + 2 * B * N * N * W
                           + const_bytes))

    return pl.pallas_call(
        kernel,
        grid=grid,
        in_specs=in_specs,
        out_specs=out_specs,
        out_shape=jax.ShapeDtypeStruct((B, N, N, W), jnp.bfloat16),
        compiler_params=pltpu.CompilerParams(
            dimension_semantics=("parallel", "parallel"),
            vmem_limit_bytes=_vmem_limit(fixed + 2 * TI * per_i)),
        cost_estimate=cost,
    )(edge_sca, edge_vec_cm, coor, coor, *consts)


# ----------------------------------------------------------------------------
# Fused attention core + raw-att coordinate MLP + lin_edge_out GVP.
# ----------------------------------------------------------------------------
def attention_core(sq, sk, sv, sc, vq, vk, vv_hm, vc_hm, efeat, coor, maskf,
                   params, H, Ds, Dv, Es, Ev):
    B, N, S = sq.shape
    V = H * Dv
    V3 = 3 * V
    F = Ds + Dv
    Wn = 2 * S + 2 * V3 + 3 * H
    We = Es + 3 * Ev
    Wef = S + V3

    # block-diagonal all-head raw-attention MLP weights (tiny, host-side)
    eyeH = jnp.eye(H, dtype=jnp.float32)
    w1_blk = jnp.kron(eyeH, params["att_w1"])                    # (H*F, H*F)
    b1_all = jnp.tile(params["att_b1"].reshape(1, F), (1, H))    # (1, H*F)
    w2_blk = jnp.kron(eyeH, params["att_w2"])                    # (H*F, H)
    b2 = params["att_b2"].reshape(1, 1)
    cscale = params["coor_scale"].reshape(1, 1)

    pe = params["lin_edge_out"]
    dh_e = int(pe["w_vec1"].shape[-1])                           # = V
    consts = [w1_blk, b1_all, w2_blk, b2, cscale,
              pe["w_vec1"], pe["w_sca"][:dh_e], pe["w_sca"][dh_e:],
              pe["b_sca"].reshape(1, Es), pe["w_gate"],
              pe["b_gate"].reshape(1, Ev), pe["w_vec2"], pe["w_act_vec"]]
    nconst = len(consts)

    mrow = maskf.reshape(B, 1, N)
    mcol = maskf.reshape(B, N, 1)

    inv_s = 1.0 / float(np.sqrt(Ds))
    inv_v = 1.0 / float(np.sqrt(Dv * 3))

    # --- i-tile sizing (includes padded geometry columns & edge-GVP temps) ---
    cap = _vmem_cap()
    row_bytes = (2 * Wef
                 + 4 * (_pad128(Wef) + _pad128(Wef) // 2 + 2 * _pad128(H * F)
                        + 5 * 128 + 5 * _pad128(max(dh_e, V))
                        + 2 * _pad128(We))
                 + 4 * We)
    per_i = N * row_bytes
    fixed = (4 * N * (4 * S + 4 * V3 + 3 + 2)
             + 4 * sum(int(np.prod(c.shape)) for c in consts))
    budget = int(0.45 * cap)
    ti_cap = max(16, (max(budget - fixed, 0) // max(per_i, 1)) // 16 * 16)
    TI = N if N <= ti_cap else ti_cap
    if B == 1 and N > 16 and TI >= N:
        TI = max(16, (-(-N // 2) // 16) * 16)
    nti = pl.cdiv(N, TI)

    def kernel(sq_ref, sk_ref, sv_ref, sc_ref, vq_ref, vk_ref, vv_ref, vc_ref,
               ef_ref, ci_ref, cj_ref, mrow_ref, mcol_ref, *rest):
        crefs = rest[:nconst]
        node_ref, edge_ref = rest[nconst], rest[nconst + 1]
        (w1m, b1m, w2m, b2m, csm,
         wv1, wsv, wss, bse, wg, bg, wv2, wact) = [c[...] for c in crefs]

        q_s = sq_ref[0]; k_s = sk_ref[0]; v_s = sv_ref[0]; c_s = sc_ref[0]
        q_v = vq_ref[0]; k_v = vk_ref[0]; v_v = vv_ref[0]; c_v = vc_ref[0]
        ef = ef_ref[0]                            # (TI, N, Wef) bf16
        ci = ci_ref[0]; cj = cj_ref[0]
        keep = mrow_ref[0] > 0.0                  # (1, N)
        mcolb = mcol_ref[0]                       # (N, 1)

        e_s = ef[:, :, :S]
        e_v = ef[:, :, S:]

        # raw attention products, native layouts (sca: (h d), vec: [c,(h d)])
        ras = q_s[:, None, :] * k_s[None, :, :] * e_s          # (TI, N, S)
        rav = q_v[:, None, :] * k_v[None, :, :] * e_v          # (TI, N, 3V)
        ras2 = ras.reshape(TI * N, S)
        rav2 = rav.reshape(TI * N, V3)

        def softmax_j(x):
            m = jnp.max(x, axis=-1, keepdims=True)
            e = jnp.exp(x - m)
            return e * pl.reciprocal(jnp.sum(e, axis=-1, keepdims=True),
                                     approx=True)

        xsc_p, xso_p, xvc_p, xvo_p, feat_p = [], [], [], [], []
        for h in range(H):
            s0, s1 = h * Ds, (h + 1) * Ds
            hv0, hv1 = h * 3 * Dv, (h + 1) * 3 * Dv

            logit_s = jnp.sum(ras[:, :, s0:s1], axis=-1) * inv_s
            logit_v = (jnp.sum(rav[:, :, h * Dv:(h + 1) * Dv], axis=-1)
                       + jnp.sum(rav[:, :, V + h * Dv:V + (h + 1) * Dv], axis=-1)
                       + jnp.sum(rav[:, :, 2 * V + h * Dv:2 * V + (h + 1) * Dv],
                                 axis=-1)) * inv_v
            att_s = softmax_j(jnp.where(keep, logit_s, -NEG_FILL))
            att_v = softmax_j(jnp.where(keep, logit_v, -NEG_FILL))

            # combined coor/value aggregation dots (one MXU push per stream)
            agg_s = _mm(att_s, jnp.concatenate(
                [c_s[:, s0:s1], v_s[:, s0:s1]], axis=-1))       # (TI, 2Ds)
            xsc_p.append(agg_s[:, :Ds]); xso_p.append(agg_s[:, Ds:])
            agg_v = _mm(att_v, jnp.concatenate(
                [c_v[:, hv0:hv1], v_v[:, hv0:hv1]], axis=-1))   # (TI, 6Dv)
            xvc_p.append(agg_v[:, :3 * Dv]); xvo_p.append(agg_v[:, 3 * Dv:])

            # per-head features for the raw-attention coordinate MLP
            ravn_h = jnp.sqrt(
                rav2[:, h * Dv:(h + 1) * Dv] ** 2
                + rav2[:, V + h * Dv:V + (h + 1) * Dv] ** 2
                + rav2[:, 2 * V + h * Dv:2 * V + (h + 1) * Dv] ** 2)
            feat_p.append(ras2[:, s0:s1])
            feat_p.append(ravn_h)

        # all-head raw-attention coordinate MLP (block-diagonal weights)
        feat_all = jnp.concatenate(feat_p, axis=-1)             # (TI*N, H*F)
        hdn = _leaky(_mm(feat_all, w1m) + b1m)
        score = _mm(hdn, w2m) + b2m                              # (TI*N, H)

        # CoorNorm built in-kernel from node coordinates (no edge-sized input)
        rel = ci[:, None, :] - cj[None, :, :]                    # (TI, N, 3)
        rnorm = jnp.sqrt(jnp.sum(rel * rel, axis=-1, keepdims=True))
        rnorm = jnp.where(rnorm == 0.0, rnorm + 1e8, rnorm)
        rvn = rel / jnp.maximum(rnorm, 1e-8) * csm * mcolb[None, :, :]
        rvn2 = rvn.reshape(TI * N, 3)

        aco_p = []
        for h in range(H):
            contrib = score[:, h:h + 1] * rvn2                   # (TI*N, 3)
            aco_p.append(jnp.sum(contrib.reshape(TI, N, 3), axis=1))  # (TI, 3)

        # one lane-dense node output slab
        node_ref[0] = jnp.concatenate(xsc_p + xso_p + xvc_p + xvo_p + aco_p,
                                      axis=-1)

        # fused lin_edge_out GVP on the VMEM-resident raw attention
        rav_cs = [rav2[:, c * V:(c + 1) * V] for c in range(3)]
        sca_eo, vec_eo = _gvl_rows(ras2, rav_cs, wv1, wsv, wss, bse, wg, bg, wv2)
        sca_eo = _leaky(sca_eo)
        vec_eo = _vnl_leaky_rows(vec_eo, wact)
        edge_ref[0] = jnp.concatenate([sca_eo] + vec_eo,
                                      axis=-1).reshape(TI, N, We)

    def nspec_i(w):
        return pl.BlockSpec((1, TI, w), lambda b, i: (b, i, 0))

    def nspec_f(w):
        return pl.BlockSpec((1, N, w), lambda b, i: (b, 0, 0))

    in_specs = ([nspec_i(S), nspec_f(S), nspec_f(S), nspec_f(S),
                 nspec_i(V3), nspec_f(V3), nspec_f(V3), nspec_f(V3),
                 pl.BlockSpec((1, TI, N, Wef), lambda b, i: (b, i, 0, 0)),
                 nspec_i(3), nspec_f(3),
                 pl.BlockSpec((1, 1, N), lambda b, i: (b, 0, 0)),
                 pl.BlockSpec((1, N, 1), lambda b, i: (b, 0, 0))]
                + [pl.BlockSpec(tuple(c.shape), lambda b, i: (0, 0))
                   for c in consts])
    out_specs = (pl.BlockSpec((1, TI, Wn), lambda b, i: (b, i, 0)),
                 pl.BlockSpec((1, TI, N, We), lambda b, i: (b, i, 0, 0)))
    out_shape = (jax.ShapeDtypeStruct((B, N, Wn), jnp.float32),
                 jax.ShapeDtypeStruct((B, N, N, We), jnp.float32))

    flops = int(B * N * N * (
        4 * (S + V3) + 2 * H * (Ds + 3 * Dv)
        + 2 * H * F * (H * F + H)
        + 2 * (3 * V * dh_e + (dh_e + S) * Es + Es * Ev + 3 * dh_e * Ev
               + 3 * Ev * Ev)
        + 2 * H * (2 * Ds + 6 * Dv) + 12))
    cost = pl.CostEstimate(
        flops=flops, transcendentals=int(B * N * N * (2 * H + 1)),
        bytes_accessed=int(2 * B * N * N * Wef + 4 * B * N * N * We
                           + 4 * B * N * (4 * S + 4 * V3 + Wn + 8)
                           + 4 * sum(int(np.prod(c.shape)) for c in consts)))

    return pl.pallas_call(
        kernel,
        grid=(B, nti),
        in_specs=in_specs,
        out_specs=out_specs,
        out_shape=out_shape,
        compiler_params=pltpu.CompilerParams(
            dimension_semantics=("parallel", "parallel"),
            vmem_limit_bytes=_vmem_limit(fixed + 2 * TI * per_i)),
        cost_estimate=cost,
    )(sq, sk, sv, sc, vq, vk, vv_hm, vc_hm, efeat, coor, coor, mrow, mcol,
      *consts)


# ----------------------------------------------------------------------------
# Parameter init (deterministic, synthetic)
# ----------------------------------------------------------------------------
def _init(key, shape, scale=0.1):
    return jax.random.normal(key, shape, dtype=jnp.float32) * scale


def init_gvl(key, in_sca, in_vec, out_sca, out_vec):
    dh = max(in_vec, out_vec)
    ks = jax.random.split(key, 6)
    return dict(
        w_vec1=_init(ks[0], (in_vec, dh)),
        w_vec2=_init(ks[1], (dh, out_vec)),
        w_sca=_init(ks[2], (dh + in_sca, out_sca)),   # rows: [vec1_norm | sca]
        b_sca=_init(ks[3], (out_sca,)),
        w_gate=_init(ks[4], (out_sca, out_vec)),
        b_gate=_init(ks[5], (out_vec,)),
    )


def init_gvp(key, in_sca, in_vec, out_sca, out_vec):
    k1, k2 = jax.random.split(key)
    d = init_gvl(k1, in_sca, in_vec, out_sca, out_vec)
    d["w_act_vec"] = _init(k2, (out_vec, out_vec))
    return d


def init_params(key, S, V, Es, Ev, H):
    Ds, Dv = S // H, V // H
    ks = jax.random.split(key, 12)
    num_g = S - 1
    offset = jnp.linspace(0.0, 2.0, num_g).astype(jnp.float32)
    spacing = 2.0 / (num_g - 1)
    return dict(
        lin_x_qkv=init_gvl(ks[0], S, V, 4 * S, 4 * V),
        dist_offset=offset,
        dist_coeff=jnp.asarray(-0.5 / spacing ** 2, dtype=jnp.float32),
        dist_scale=jnp.ones((1,), jnp.float32),
        vec_embed_w=_init(ks[1], (1, V)),
        lin_edge_b=init_gvl(ks[2], Es + S, Ev + V, S, V),
        lin_x_out=init_gvp(ks[3], S, V, S, V),
        lin_edge_out=init_gvp(ks[4], S, V, Es, Ev),
        coor_gvp=init_gvp(ks[5], Ds, Dv, Ds, Dv),
        coor_gvl=init_gvl(ks[6], Ds, Dv, Ds, 1),
        att_w1=_init(ks[7], (Ds + Dv, Ds + Dv)),
        att_b1=_init(ks[8], (Ds + Dv,)),
        att_w2=_init(ks[9], (Ds + Dv, 1)),
        att_b2=_init(ks[10], (1,)),
        coor_scale=jnp.ones((1,), jnp.float32),
        coor_head_combine=_init(ks[11], (2 * H,), scale=0.01),
    )


# ----------------------------------------------------------------------------
# UpdateCoor forward (only_update_coor=False, use_raw_att=True)
# ----------------------------------------------------------------------------
def update_coor_forward(params, x_sca, x_vec, edge_sca, edge_vec, mask, coor,
                        update_mask=None, n_head=2):
    B, N, S = x_sca.shape
    V = x_vec.shape[-2]
    H = n_head
    Ds, Dv = S // H, V // H
    Es = edge_sca.shape[-1]
    Ev = edge_vec.shape[-2]
    V3 = 3 * V

    # --- lin_x_qkv (GVL, one fused kernel) ---
    x_vec_cm = jnp.swapaxes(x_vec, -1, -2)                        # (B,N,3,V)
    sca_qkv, vec_qkv_cm = fused_gvl(x_sca, x_vec_cm, params["lin_x_qkv"])
    sq, sk, sv, sc = jnp.split(sca_qkv, 4, axis=-1)
    vq_cm, vk_cm, vv_cm, vc_cm = [vec_qkv_cm[..., t * V:(t + 1) * V]
                                  for t in range(4)]
    vq = vq_cm.reshape(B, N, V3)
    vk = vk_cm.reshape(B, N, V3)

    def to_head_major(v_cm):                                       # [c,h,d]->[h,c,d]
        return (v_cm.reshape(B, N, 3, H, Dv)
                .transpose(0, 1, 3, 2, 4).reshape(B, N, V3))
    vv_hm = to_head_major(vv_cm)
    vc_hm = to_head_major(vc_cm)

    # --- fused DistGMM + VecExpansion + lin_edge_b (bf16 edge slab) ---
    edge_vec_cm = jnp.swapaxes(edge_vec, -1, -2).reshape(B, N, N, 3 * Ev)
    efeat = edge_b_fused(edge_sca, edge_vec_cm, coor, params, S, V)

    # --- fused attention core (+ raw-att coord MLP + lin_edge_out GVP) ---
    maskf = mask.astype(jnp.float32)
    node_slab, edge_out = attention_core(sq, sk, sv, sc, vq, vk, vv_hm, vc_hm,
                                         efeat, coor, maskf, params,
                                         H, Ds, Dv, Es, Ev)

    o = 0
    xsc = node_slab[..., o:o + S]; o += S
    xso = node_slab[..., o:o + S]; o += S
    xvc_hm = node_slab[..., o:o + V3]; o += V3
    xvo_hm = node_slab[..., o:o + V3]; o += V3
    aco = node_slab[..., o:o + 3 * H]

    # --- lin_coor_out: Sequential(GVP, GVL) on per-head node features ---
    xsc_h = xsc.reshape(B, N, H, Ds)
    xvc_h_cm = xvc_hm.reshape(B, N, H, 3, Dv)
    sc1, vc1_cm = fused_gvl(xsc_h, xvc_h_cm, params["coor_gvp"], gvp=True)
    _, vfin_cm = fused_gvl(sc1, vc1_cm, params["coor_gvl"])
    x_vec_coor_fin = vfin_cm[..., 0]                               # (B,N,H,3)

    att_coor_out = aco.reshape(B, N, H, 3)
    coor_all = jnp.concatenate([x_vec_coor_fin, att_coor_out], axis=-2)
    coor_out = jnp.einsum("bihc,h->bic", coor_all, params["coor_head_combine"])
    if update_mask is not None:
        coor_out = coor_out * update_mask[..., None]
    # NB: reference calls coor_out.clamp(...) without assignment -> no-op; mirrored.
    new_coor = coor + coor_out

    # --- lin_x_out GVP (node-level, one fused kernel) ---
    xvo_cm = (xvo_hm.reshape(B, N, H, 3, Dv)
              .transpose(0, 1, 3, 2, 4).reshape(B, N, 3, V))
    x_sca_out, x_vec_out_cm = fused_gvl(xso, xvo_cm, params["lin_x_out"], gvp=True)
    x_vec_out = jnp.swapaxes(x_vec_out_cm, -1, -2)                 # (B,N,V,3)

    # --- edge outputs (lin_edge_out already fused into attention_core) ---
    edge_sca_out = edge_out[..., :Es]
    edge_vec_out = jnp.swapaxes(edge_out[..., Es:].reshape(B, N, N, 3, Ev),
                                -1, -2)                            # (B,N,N,Ev,3)

    # TODO(synk): torch.nn.Dropout treated as identity (inference / p=0).
    return (x_sca_out, x_vec_out), (edge_sca_out, edge_vec_out), new_coor


# ----------------------------------------------------------------------------
if __name__ == "__main__":
    B, N = 2, 8
    S, V = 16, 8      # x_sca_hidden, x_vec_hidden
    Es, Ev = 8, 4     # edge_sca_hidden, edge_vec_hidden
    H = 2             # n_head

    key = jax.random.PRNGKey(0)
    kp, k1, k2, k3, k4, k5 = jax.random.split(key, 6)
    params = init_params(kp, S, V, Es, Ev, H)

    x_sca = jax.random.normal(k1, (B, N, S), jnp.float32)
    x_vec = jax.random.normal(k2, (B, N, V, 3), jnp.float32)
    edge_sca = jax.random.normal(k3, (B, N, N, Es), jnp.float32)
    edge_vec = jax.random.normal(k4, (B, N, N, Ev, 3), jnp.float32)
    coor = jax.random.normal(k5, (B, N, 3), jnp.float32)
    mask = jnp.ones((B, N), dtype=bool).at[1, -2:].set(False)

    fwd = jax.jit(functools.partial(update_coor_forward, n_head=H))
    (xs_o, xv_o), (es_o, ev_o), new_coor = fwd(
        params, x_sca, x_vec, edge_sca, edge_vec, mask, coor)
    jax.block_until_ready((xs_o, xv_o, es_o, ev_o, new_coor))
    print("KERNEL_OK")
</pallas_src>

<mosaic_0001>
module attributes {stable_mosaic.version = 11 : i64} {
  func.func @kernel(%arg0: i32, %arg1: i32, %arg2: memref<1x8x8x8xf32, #tpu.memory_space<vmem>>, %arg3: memref<1x8x8x12xf32, #tpu.memory_space<vmem>>, %arg4: memref<1x8x3xf32, #tpu.memory_space<vmem>>, %arg5: memref<1x8x3xf32, #tpu.memory_space<vmem>>, %arg6: memref<4x12xf32, #tpu.memory_space<vmem>>, %arg7: memref<1x12xf32, #tpu.memory_space<vmem>>, %arg8: memref<12x16xf32, #tpu.memory_space<vmem>>, %arg9: memref<8x16xf32, #tpu.memory_space<vmem>>, %arg10: memref<1x16xf32, #tpu.memory_space<vmem>>, %arg11: memref<15x16xf32, #tpu.memory_space<vmem>>, %arg12: memref<1x16xf32, #tpu.memory_space<vmem>>, %arg13: memref<16x8xf32, #tpu.memory_space<vmem>>, %arg14: memref<1x8xf32, #tpu.memory_space<vmem>>, %arg15: memref<12x8xf32, #tpu.memory_space<vmem>>, %arg16: memref<1x15xf32, #tpu.memory_space<vmem>>, %arg17: memref<1x1xf32, #tpu.memory_space<vmem>>, %arg18: memref<1x8x8x40xbf16, #tpu.memory_space<vmem>>) attributes {dimension_semantics = [#tpu.dimension_semantics<parallel>, #tpu.dimension_semantics<parallel>], iteration_bounds = array<i64: 2, 1>, scalar_prefetch = 0 : i64, scratch_operands = 0 : i64, tpu.core_type = #tpu.core_type<tc>, window_params = [{transform_indices = @transform_0, window_bounds = array<i64: 1, 8, 8, 8>}, {transform_indices = @transform_1, window_bounds = array<i64: 1, 8, 8, 12>}, {transform_indices = @transform_2, window_bounds = array<i64: 1, 8, 3>}, {transform_indices = @transform_3, window_bounds = array<i64: 1, 8, 3>}, {pipeline_mode = #tpu.pipeline_mode<synchronous>, transform_indices = @transform_4, window_bounds = array<i64: 4, 12>}, {pipeline_mode = #tpu.pipeline_mode<synchronous>, transform_indices = @transform_5, window_bounds = array<i64: 1, 12>}, {pipeline_mode = #tpu.pipeline_mode<synchronous>, transform_indices = @transform_6, window_bounds = array<i64: 12, 16>}, {pipeline_mode = #tpu.pipeline_mode<synchronous>, transform_indices = @transform_7, window_bounds = array<i64: 8, 16>}, {pipeline_mode = #tpu.pipeline_mode<synchronous>, transform_indices = @transform_8, window_bounds = array<i64: 1, 16>}, {pipeline_mode = #tpu.pipeline_mode<synchronous>, transform_indices = @transform_9, window_bounds = array<i64: 15, 16>}, {pipeline_mode = #tpu.pipeline_mode<synchronous>, transform_indices = @transform_10, window_bounds = array<i64: 1, 16>}, {pipeline_mode = #tpu.pipeline_mode<synchronous>, transform_indices = @transform_11, window_bounds = array<i64: 16, 8>}, {pipeline_mode = #tpu.pipeline_mode<synchronous>, transform_indices = @transform_12, window_bounds = array<i64: 1, 8>}, {pipeline_mode = #tpu.pipeline_mode<synchronous>, transform_indices = @transform_13, window_bounds = array<i64: 12, 8>}, {pipeline_mode = #tpu.pipeline_mode<synchronous>, transform_indices = @transform_14, window_bounds = array<i64: 1, 15>}, {pipeline_mode = #tpu.pipeline_mode<synchronous>, transform_indices = @transform_15, window_bounds = array<i64: 1, 1>}, {transform_indices = @transform_16, window_bounds = array<i64: 1, 8, 8, 40>}]} {
    %c0 = arith.constant 0 : index
    %c0_0 = arith.constant 0 : index
    %0 = vector.load %arg6[%c0, %c0_0] : memref<4x12xf32, #tpu.memory_space<vmem>>, vector<4x12xf32>
    %c0_1 = arith.constant 0 : index
    %c0_2 = arith.constant 0 : index
    %1 = vector.load %arg7[%c0_1, %c0_2] : memref<1x12xf32, #tpu.memory_space<vmem>>, vector<1x12xf32>
    %c0_3 = arith.constant 0 : index
    %c0_4 = arith.constant 0 : index
    %2 = vector.load %arg8[%c0_3, %c0_4] : memref<12x16xf32, #tpu.memory_space<vmem>>, vector<12x16xf32>
    %c0_5 = arith.constant 0 : index
    %c0_6 = arith.constant 0 : index
    %3 = vector.load %arg9[%c0_5, %c0_6] : memref<8x16xf32, #tpu.memory_space<vmem>>, vector<8x16xf32>
    %c0_7 = arith.constant 0 : index
    %c0_8 = arith.constant 0 : index
    %4 = vector.load %arg10[%c0_7, %c0_8] : memref<1x16xf32, #tpu.memory_space<vmem>>, vector<1x16xf32>
    %c0_9 = arith.constant 0 : index
    %c0_10 = arith.constant 0 : index
    %5 = vector.load %arg11[%c0_9, %c0_10] : memref<15x16xf32, #tpu.memory_space<vmem>>, vector<15x16xf32>
    %c0_11 = arith.constant 0 : index
    %c0_12 = arith.constant 0 : index
    %6 = vector.load %arg12[%c0_11, %c0_12] : memref<1x16xf32, #tpu.memory_space<vmem>>, vector<1x16xf32>
    %c0_13 = arith.constant 0 : index
    %c0_14 = arith.constant 0 : index
    %7 = vector.load %arg13[%c0_13, %c0_14] : memref<16x8xf32, #tpu.memory_space<vmem>>, vector<16x8xf32>
    %c0_15 = arith.constant 0 : index
    %c0_16 = arith.constant 0 : index
    %8 = vector.load %arg14[%c0_15, %c0_16] : memref<1x8xf32, #tpu.memory_space<vmem>>, vector<1x8xf32>
    %c0_17 = arith.constant 0 : index
    %c0_18 = arith.constant 0 : index
    %9 = vector.load %arg15[%c0_17, %c0_18] : memref<12x8xf32, #tpu.memory_space<vmem>>, vector<12x8xf32>
    %c0_19 = arith.constant 0 : index
    %c0_20 = arith.constant 0 : index
    %10 = vector.load %arg16[%c0_19, %c0_20] : memref<1x15xf32, #tpu.memory_space<vmem>>, vector<1x15xf32>
    %c0_21 = arith.constant 0 : index
    %c0_22 = arith.constant 0 : index
    %11 = vector.load %arg17[%c0_21, %c0_22] : memref<1x1xf32, #tpu.memory_space<vmem>>, vector<1x1xf32>
    %c0_23 = arith.constant 0 : index
    %c0_24 = arith.constant 0 : index
    %c0_25 = arith.constant 0 : index
    %c0_26 = arith.constant 0 : index
    %12 = vector.load %arg2[%c0_23, %c0_24, %c0_25, %c0_26] : memref<1x8x8x8xf32, #tpu.memory_space<vmem>>, vector<1x8x8x8xf32>
    %13 = vector.shape_cast %12 : vector<1x8x8x8xf32> to vector<8x8x8xf32>
    %14 = vector.shape_cast %13 : vector<8x8x8xf32> to vector<64x8xf32>
    %c0_27 = arith.constant 0 : index
    %c0_28 = arith.constant 0 : index
    %c0_29 = arith.constant 0 : index
    %c0_30 = arith.constant 0 : index
    %15 = vector.load %arg3[%c0_27, %c0_28, %c0_29, %c0_30] : memref<1x8x8x12xf32, #tpu.memory_space<vmem>>, vector<1x8x8x12xf32>
    %16 = vector.shape_cast %15 : vector<1x8x8x12xf32> to vector<8x8x12xf32>
    %17 = vector.shape_cast %16 : vector<8x8x12xf32> to vector<64x12xf32>
    %c0_31 = arith.constant 0 : index
    %c0_32 = arith.constant 0 : index
    %c0_33 = arith.constant 0 : index
    %18 = vector.load %arg4[%c0_31, %c0_32, %c0_33] : memref<1x8x3xf32, #tpu.memory_space<vmem>>, vector<1x8x3xf32>
    %19 = vector.shape_cast %18 : vector<1x8x3xf32> to vector<8x3xf32>
    %c0_34 = arith.constant 0 : index
    %c0_35 = arith.constant 0 : index
    %c0_36 = arith.constant 0 : index
    %20 = vector.load %arg5[%c0_34, %c0_35, %c0_36] : memref<1x8x3xf32, #tpu.memory_space<vmem>>, vector<1x8x3xf32>
    %21 = vector.shape_cast %20 : vector<1x8x3xf32> to vector<8x3xf32>
    %22 = vector.shape_cast %19 : vector<8x3xf32> to vector<8x1x3xf32>
    %23 = vector.shape_cast %21 : vector<8x3xf32> to vector<1x8x3xf32>
    %24 = vector.broadcast %22 : vector<8x1x3xf32> to vector<8x8x3xf32>
    %25 = vector.broadcast %23 : vector<1x8x3xf32> to vector<8x8x3xf32>
    %26 = arith.subf %24, %25 : vector<8x8x3xf32>
    %27 = vector.shape_cast %26 : vector<8x8x3xf32> to vector<64x3xf32>
    %28 = arith.mulf %27, %27 : vector<64x3xf32>
    %cst = arith.constant dense<0.000000e+00> : vector<64xf32>
    %29 = vector.multi_reduction <add>, %28, %cst [1] : vector<64x3xf32> to vector<64xf32>
    %30 = vector.shape_cast %29 : vector<64xf32> to vector<64x1xf32>
    %31 = math.sqrt %30 : vector<64x1xf32>
    %cst_37 = arith.constant 2.000000e+00 : f32
    %32 = vector.broadcast %cst_37 : f32 to vector<64x1xf32>
    %33 = arith.minimumf %31, %32 : vector<64x1xf32>
    %34 = vector.broadcast %33 : vector<64x1xf32> to vector<64x15xf32>
    %35 = vector.broadcast %10 : vector<1x15xf32> to vector<64x15xf32>
    %36 = arith.subf %34, %35 : vector<64x15xf32>
    %37 = arith.mulf %36, %36 : vector<64x15xf32>
    %38 = vector.broadcast %11 : vector<1x1xf32> to vector<64x15xf32>
    %39 = arith.mulf %38, %37 : vector<64x15xf32>
    %40 = math.exp %39 : vector<64x15xf32>
    %41 = vector.extract_strided_slice %17 {offsets = [0, 0], sizes = [64, 4], strides = [1, 1]} : vector<64x12xf32> to vector<64x4xf32>
    %42 = arith.truncf %41 : vector<64x4xf32> to vector<64x4xbf16>
    %43 = arith.truncf %0 : vector<4x12xf32> to vector<4x12xbf16>
    %cst_38 = arith.constant dense<0.000000e+00> : vector<64x12xf32>
    %44 = tpu.matmul %42, %43, %cst_38 {dimension_numbers = #tpu.dot_dimension_numbers<[1], [0], [0], [1], [0, 0, 1, 1], [], []>} : vector<64x4xbf16>, vector<4x12xbf16>, vector<64x12xf32> -> vector<64x12xf32>
    %45 = vector.extract_strided_slice %27 {offsets = [0, 0], sizes = [64, 1], strides = [1, 1]} : vector<64x3xf32> to vector<64x1xf32>
    %46 = vector.broadcast %45 : vector<64x1xf32> to vector<64x12xf32>
    %47 = vector.broadcast %1 : vector<1x12xf32> to vector<64x12xf32>
    %48 = arith.mulf %46, %47 : vector<64x12xf32>
    %49 = arith.addf %44, %48 : vector<64x12xf32>
    %50 = vector.extract_strided_slice %17 {offsets = [0, 4], sizes = [64, 4], strides = [1, 1]} : vector<64x12xf32> to vector<64x4xf32>
    %51 = arith.truncf %50 : vector<64x4xf32> to vector<64x4xbf16>
    %52 = arith.truncf %0 : vector<4x12xf32> to vector<4x12xbf16>
    %cst_39 = arith.constant dense<0.000000e+00> : vector<64x12xf32>
    %53 = tpu.matmul %51, %52, %cst_39 {dimension_numbers = #tpu.dot_dimension_numbers<[1], [0], [0], [1], [0, 0, 1, 1], [], []>} : vector<64x4xbf16>, vector<4x12xbf16>, vector<64x12xf32> -> vector<64x12xf32>
    %54 = vector.extract_strided_slice %27 {offsets = [0, 1], sizes = [64, 1], strides = [1, 1]} : vector<64x3xf32> to vector<64x1xf32>
    %55 = vector.broadcast %54 : vector<64x1xf32> to vector<64x12xf32>
    %56 = vector.broadcast %1 : vector<1x12xf32> to vector<64x12xf32>
    %57 = arith.mulf %55, %56 : vector<64x12xf32>
    %58 = arith.addf %53, %57 : vector<64x12xf32>
    %59 = vector.extract_strided_slice %17 {offsets = [0, 8], sizes = [64, 4], strides = [1, 1]} : vector<64x12xf32> to vector<64x4xf32>
    %60 = arith.truncf %59 : vector<64x4xf32> to vector<64x4xbf16>
    %61 = arith.truncf %0 : vector<4x12xf32> to vector<4x12xbf16>
    %cst_40 = arith.constant dense<0.000000e+00> : vector<64x12xf32>
    %62 = tpu.matmul %60, %61, %cst_40 {dimension_numbers = #tpu.dot_dimension_numbers<[1], [0], [0], [1], [0, 0, 1, 1], [], []>} : vector<64x4xbf16>, vector<4x12xbf16>, vector<64x12xf32> -> vector<64x12xf32>
    %63 = vector.extract_strided_slice %27 {offsets = [0, 2], sizes = [64, 1], strides = [1, 1]} : vector<64x3xf32> to vector<64x1xf32>
    %64 = vector.broadcast %63 : vector<64x1xf32> to vector<64x12xf32>
    %65 = vector.broadcast %1 : vector<1x12xf32> to vector<64x12xf32>
    %66 = arith.mulf %64, %65 : vector<64x12xf32>
    %67 = arith.addf %62, %66 : vector<64x12xf32>
    %68 = arith.mulf %49, %49 : vector<64x12xf32>
    %69 = arith.mulf %58, %58 : vector<64x12xf32>
    %70 = arith.addf %68, %69 : vector<64x12xf32>
    %71 = arith.mulf %67, %67 : vector<64x12xf32>
    %72 = arith.addf %70, %71 : vector<64x12xf32>
    %73 = math.sqrt %72 : vector<64x12xf32>
    %74 = arith.truncf %73 : vector<64x12xf32> to vector<64x12xbf16>
    %75 = arith.truncf %2 : vector<12x16xf32> to vector<12x16xbf16>
    %cst_41 = arith.constant dense<0.000000e+00> : vector<64x16xf32>
    %76 = tpu.matmul %74, %75, %cst_41 {dimension_numbers = #tpu.dot_dimension_numbers<[1], [0], [0], [1], [0, 0, 1, 1], [], []>} : vector<64x12xbf16>, vector<12x16xbf16>, vector<64x16xf32> -> vector<64x16xf32>
    %77 = arith.truncf %14 : vector<64x8xf32> to vector<64x8xbf16>
    %78 = arith.truncf %3 : vector<8x16xf32> to vector<8x16xbf16>
    %cst_42 = arith.constant dense<0.000000e+00> : vector<64x16xf32>
    %79 = tpu.matmul %77, %78, %cst_42 {dimension_numbers = #tpu.dot_dimension_numbers<[1], [0], [0], [1], [0, 0, 1, 1], [], []>} : vector<64x8xbf16>, vector<8x16xbf16>, vector<64x16xf32> -> vector<64x16xf32>
    %80 = arith.addf %76, %79 : vector<64x16xf32>
    %81 = vector.broadcast %31 : vector<64x1xf32> to vector<64x16xf32>
    %82 = vector.broadcast %4 : vector<1x16xf32> to vector<64x16xf32>
    %83 = arith.mulf %81, %82 : vector<64x16xf32>
    %84 = arith.addf %80, %83 : vector<64x16xf32>
    %85 = arith.truncf %40 : vector<64x15xf32> to vector<64x15xbf16>
    %86 = arith.truncf %5 : vector<15x16xf32> to vector<15x16xbf16>
    %cst_43 = arith.constant dense<0.000000e+00> : vector<64x16xf32>
    %87 = tpu.matmul %85, %86, %cst_43 {dimension_numbers = #tpu.dot_dimension_numbers<[1], [0], [0], [1], [0, 0, 1, 1], [], []>} : vector<64x15xbf16>, vector<15x16xbf16>, vector<64x16xf32> -> vector<64x16xf32>
    %88 = arith.addf %84, %87 : vector<64x16xf32>
    %89 = vector.broadcast %6 : vector<1x16xf32> to vector<64x16xf32>
    %90 = arith.addf %88, %89 : vector<64x16xf32>
    %91 = arith.truncf %90 : vector<64x16xf32> to vector<64x16xbf16>
    %92 = arith.truncf %7 : vector<16x8xf32> to vector<16x8xbf16>
    %cst_44 = arith.constant dense<0.000000e+00> : vector<64x8xf32>
    %93 = tpu.matmul %91, %92, %cst_44 {dimension_numbers = #tpu.dot_dimension_numbers<[1], [0], [0], [1], [0, 0, 1, 1], [], []>} : vector<64x16xbf16>, vector<16x8xbf16>, vector<64x8xf32> -> vector<64x8xf32>
    %94 = vector.broadcast %8 : vector<1x8xf32> to vector<64x8xf32>
    %95 = arith.addf %93, %94 : vector<64x8xf32>
    %cst_45 = arith.constant 0.000000e+00 : f32
    %96 = vector.broadcast %cst_45 : f32 to vector<64x8xf32>
    %97 = arith.subf %96, %95 : vector<64x8xf32>
    %98 = math.exp %97 : vector<64x8xf32>
    %cst_46 = arith.constant 1.000000e+00 : f32
    %99 = vector.broadcast %cst_46 : f32 to vector<64x8xf32>
    %100 = arith.addf %99, %98 : vector<64x8xf32>
    %101 = tpu.reciprocal %100 {approx = true} : vector<64x8xf32> -> vector<64x8xf32>
    %102 = arith.truncf %49 : vector<64x12xf32> to vector<64x12xbf16>
    %103 = arith.truncf %9 : vector<12x8xf32> to vector<12x8xbf16>
    %cst_47 = arith.constant dense<0.000000e+00> : vector<64x8xf32>
    %104 = tpu.matmul %102, %103, %cst_47 {dimension_numbers = #tpu.dot_dimension_numbers<[1], [0], [0], [1], [0, 0, 1, 1], [], []>} : vector<64x12xbf16>, vector<12x8xbf16>, vector<64x8xf32> -> vector<64x8xf32>
    %105 = arith.mulf %101, %104 : vector<64x8xf32>
    %106 = arith.truncf %58 : vector<64x12xf32> to vector<64x12xbf16>
    %107 = arith.truncf %9 : vector<12x8xf32> to vector<12x8xbf16>
    %cst_48 = arith.constant dense<0.000000e+00> : vector<64x8xf32>
    %108 = tpu.matmul %106, %107, %cst_48 {dimension_numbers = #tpu.dot_dimension_numbers<[1], [0], [0], [1], [0, 0, 1, 1], [], []>} : vector<64x12xbf16>, vector<12x8xbf16>, vector<64x8xf32> -> vector<64x8xf32>
    %109 = arith.mulf %101, %108 : vector<64x8xf32>
    %110 = arith.truncf %67 : vector<64x12xf32> to vector<64x12xbf16>
    %111 = arith.truncf %9 : vector<12x8xf32> to vector<12x8xbf16>
    %cst_49 = arith.constant dense<0.000000e+00> : vector<64x8xf32>
    %112 = tpu.matmul %110, %111, %cst_49 {dimension_numbers = #tpu.dot_dimension_numbers<[1], [0], [0], [1], [0, 0, 1, 1], [], []>} : vector<64x12xbf16>, vector<12x8xbf16>, vector<64x8xf32> -> vector<64x8xf32>
    %113 = arith.mulf %101, %112 : vector<64x8xf32>
    %114 = tpu.concatenate %90, %105, %109, %113 in 1 : vector<64x16xf32>, vector<64x8xf32>, vector<64x8xf32>, vector<64x8xf32> -> vector<64x40xf32>
    %115 = arith.truncf %114 : vector<64x40xf32> to vector<64x40xbf16>
    %116 = vector.shape_cast %115 : vector<64x40xbf16> to vector<8x8x40xbf16>
    %c0_50 = arith.constant 0 : index
    %c0_51 = arith.constant 0 : index
    %c0_52 = arith.constant 0 : index
    %c0_53 = arith.constant 0 : index
    %117 = vector.load %arg18[%c0_50, %c0_51, %c0_52, %c0_53] : memref<1x8x8x40xbf16, #tpu.memory_space<vmem>>, vector<1x8x8x40xbf16>
    %118 = vector.shape_cast %117 : vector<1x8x8x40xbf16> to vector<8x8x40xbf16>
    %119 = vector.shape_cast %116 : vector<8x8x40xbf16> to vector<1x8x8x40xbf16>
    tpu.vector_store %arg18[%c0_50, %c0_51, %c0_52, %c0_53], %119 {strides = array<i32>} : memref<1x8x8x40xbf16, #tpu.memory_space<vmem>>, vector<1x8x8x40xbf16>,
    return
  }
  func.func @transform_0(%arg0: i32, %arg1: i32) -> (i32, i32, i32, i32) {
    %c0_i32 = arith.constant 0 : i32
    %c0_i32_0 = arith.constant 0 : i32
    %c0_i32_1 = arith.constant 0 : i32
    return %arg0, %arg1, %c0_i32, %c0_i32_0 : i32, i32, i32, i32
  }
  func.func @transform_1(%arg0: i32, %arg1: i32) -> (i32, i32, i32, i32) {
    %c0_i32 = arith.constant 0 : i32
    %c0_i32_0 = arith.constant 0 : i32
    %c0_i32_1 = arith.constant 0 : i32
    return %arg0, %arg1, %c0_i32, %c0_i32_0 : i32, i32, i32, i32
  }
  func.func @transform_2(%arg0: i32, %arg1: i32) -> (i32, i32, i32) {
    %c0_i32 = arith.constant 0 : i32
    %c0_i32_0 = arith.constant 0 : i32
    return %arg0, %arg1, %c0_i32 : i32, i32, i32
  }
  func.func @transform_3(%arg0: i32, %arg1: i32) -> (i32, i32, i32) {
    %c0_i32 = arith.constant 0 : i32
    %c0_i32_0 = arith.constant 0 : i32
    %c0_i32_1 = arith.constant 0 : i32
    return %arg0, %c0_i32, %c0_i32_0 : i32, i32, i32
  }
  func.func @transform_4(%arg0: i32, %arg1: i32) -> (i32, i32) {
    %c0_i32 = arith.constant 0 : i32
    %c0_i32_0 = arith.constant 0 : i32
    %c0_i32_1 = arith.constant 0 : i32
    return %c0_i32, %c0_i32_0 : i32, i32
  }
  func.func @transform_5(%arg0: i32, %arg1: i32) -> (i32, i32) {
    %c0_i32 = arith.constant 0 : i32
    %c0_i32_0 = arith.constant 0 : i32
    %c0_i32_1 = arith.constant 0 : i32
    return %c0_i32, %c0_i32_0 : i32, i32
  }
  func.func @transform_6(%arg0: i32, %arg1: i32) -> (i32, i32) {
    %c0_i32 = arith.constant 0 : i32
    %c0_i32_0 = arith.constant 0 : i32
    %c0_i32_1 = arith.constant 0 : i32
    return %c0_i32, %c0_i32_0 : i32, i32
  }
  func.func @transform_7(%arg0: i32, %arg1: i32) -> (i32, i32) {
    %c0_i32 = arith.constant 0 : i32
    %c0_i32_0 = arith.constant 0 : i32
    %c0_i32_1 = arith.constant 0 : i32
    return %c0_i32, %c0_i32_0 : i32, i32
  }
  func.func @transform_8(%arg0: i32, %arg1: i32) -> (i32, i32) {
    %c0_i32 = arith.constant 0 : i32
    %c0_i32_0 = arith.constant 0 : i32
    %c0_i32_1 = arith.constant 0 : i32
    return %c0_i32, %c0_i32_0 : i32, i32
  }
  func.func @transform_9(%arg0: i32, %arg1: i32) -> (i32, i32) {
    %c0_i32 = arith.constant 0 : i32
    %c0_i32_0 = arith.constant 0 : i32
    %c0_i32_1 = arith.constant 0 : i32
    return %c0_i32, %c0_i32_0 : i32, i32
  }
  func.func @transform_10(%arg0: i32, %arg1: i32) -> (i32, i32) {
    %c0_i32 = arith.constant 0 : i32
    %c0_i32_0 = arith.constant 0 : i32
    %c0_i32_1 = arith.constant 0 : i32
    return %c0_i32, %c0_i32_0 : i32, i32
  }
  func.func @transform_11(%arg0: i32, %arg1: i32) -> (i32, i32) {
    %c0_i32 = arith.constant 0 : i32
    %c0_i32_0 = arith.constant 0 : i32
    %c0_i32_1 = arith.constant 0 : i32
    return %c0_i32, %c0_i32_0 : i32, i32
  }
  func.func @transform_12(%arg0: i32, %arg1: i32) -> (i32, i32) {
    %c0_i32 = arith.constant 0 : i32
    %c0_i32_0 = arith.constant 0 : i32
    %c0_i32_1 = arith.constant 0 : i32
    return %c0_i32, %c0_i32_0 : i32, i32
  }
  func.func @transform_13(%arg0: i32, %arg1: i32) -> (i32, i32) {
    %c0_i32 = arith.constant 0 : i32
    %c0_i32_0 = arith.constant 0 : i32
    %c0_i32_1 = arith.constant 0 : i32
    return %c0_i32, %c0_i32_0 : i32, i32
  }
  func.func @transform_14(%arg0: i32, %arg1: i32) -> (i32, i32) {
    %c0_i32 = arith.constant 0 : i32
    %c0_i32_0 = arith.constant 0 : i32
    %c0_i32_1 = arith.constant 0 : i32
    return %c0_i32, %c0_i32_0 : i32, i32
  }
  func.func @transform_15(%arg0: i32, %arg1: i32) -> (i32, i32) {
    %c0_i32 = arith.constant 0 : i32
    %c0_i32_0 = arith.constant 0 : i32
    %c0_i32_1 = arith.constant 0 : i32
    return %c0_i32, %c0_i32_0 : i32, i32
  }
  func.func @transform_16(%arg0: i32, %arg1: i32) -> (i32, i32, i32, i32) {
    %c0_i32 = arith.constant 0 : i32
    %c0_i32_0 = arith.constant 0 : i32
    %c0_i32_1 = arith.constant 0 : i32
    return %arg0, %arg1, %c0_i32, %c0_i32_0 : i32, i32, i32, i32
  }
}

module attributes {stable_mosaic.version = 11 : i64} {
  func.func @kernel(%arg0: i32, %arg1: memref<16x16xf32, #tpu.memory_space<vmem>>, %arg2: memref<16x24xf32, #tpu.memory_space<vmem>>, %arg3: memref<8x32xf32, #tpu.memory_space<vmem>>, %arg4: memref<32x64xf32, #tpu.memory_space<vmem>>, %arg5: memref<16x64xf32, #tpu.memory_space<vmem>>, %arg6: memref<1x64xf32, #tpu.memory_space<vmem>>, %arg7: memref<64x32xf32, #tpu.memory_space<vmem>>, %arg8: memref<1x32xf32, #tpu.memory_space<vmem>>, %arg9: memref<32x32xf32, #tpu.memory_space<vmem>>, %arg10: memref<16x160xf32, #tpu.memory_space<vmem>>) attributes {dimension_semantics = [#tpu.dimension_semantics<parallel>], iteration_bounds = array<i64: 1>, scalar_prefetch = 0 : i64, scratch_operands = 0 : i64, tpu.core_type = #tpu.core_type<tc>, window_params = [{transform_indices = @transform_0, window_bounds = array<i64: 16, 16>}, {transform_indices = @transform_1, window_bounds = array<i64: 16, 24>}, {pipeline_mode = #tpu.pipeline_mode<synchronous>, transform_indices = @transform_2, window_bounds = array<i64: 8, 32>}, {pipeline_mode = #tpu.pipeline_mode<synchronous>, transform_indices = @transform_3, window_bounds = array<i64: 32, 64>}, {pipeline_mode = #tpu.pipeline_mode<synchronous>, transform_indices = @transform_4, window_bounds = array<i64: 16, 64>}, {pipeline_mode = #tpu.pipeline_mode<synchronous>, transform_indices = @transform_5, window_bounds = array<i64: 1, 64>}, {pipeline_mode = #tpu.pipeline_mode<synchronous>, transform_indices = @transform_6, window_bounds = array<i64: 64, 32>}, {pipeline_mode = #tpu.pipeline_mode<synchronous>, transform_indices = @transform_7, window_bounds = array<i64: 1, 32>}, {pipeline_mode = #tpu.pipeline_mode<synchronous>, transform_indices = @transform_8, window_bounds = array<i64: 32, 32>}, {transform_indices = @transform_9, window_bounds = array<i64: 16, 160>}]} {
    %c0 = arith.constant 0 : index
    %c0_0 = arith.constant 0 : index
    %0 = vector.load %arg1[%c0, %c0_0] : memref<16x16xf32, #tpu.memory_space<vmem>>, vector<16x16xf32>
    %c0_1 = arith.constant 0 : index
    %c0_2 = arith.constant 0 : index
    %1 = vector.load %arg2[%c0_1, %c0_2] : memref<16x24xf32, #tpu.memory_space<vmem>>, vector<16x8xf32>
    %c0_3 = arith.constant 0 : index
    %c8 = arith.constant 8 : index
    %2 = vector.load %arg2[%c0_3, %c8] : memref<16x24xf32, #tpu.memory_space<vmem>>, vector<16x8xf32>
    %c0_4 = arith.constant 0 : index
    %c16 = arith.constant 16 : index
    %3 = vector.load %arg2[%c0_4, %c16] : memref<16x24xf32, #tpu.memory_space<vmem>>, vector<16x8xf32>
    %c0_5 = arith.constant 0 : index
    %c0_6 = arith.constant 0 : index
    %4 = vector.load %arg3[%c0_5, %c0_6] : memref<8x32xf32, #tpu.memory_space<vmem>>, vector<8x32xf32>
    %c0_7 = arith.constant 0 : index
    %c0_8 = arith.constant 0 : index
    %5 = vector.load %arg4[%c0_7, %c0_8] : memref<32x64xf32, #tpu.memory_space<vmem>>, vector<32x64xf32>
    %c0_9 = arith.constant 0 : index
    %c0_10 = arith.constant 0 : index
    %6 = vector.load %arg5[%c0_9, %c0_10] : memref<16x64xf32, #tpu.memory_space<vmem>>, vector<16x64xf32>
    %c0_11 = arith.constant 0 : index
    %c0_12 = arith.constant 0 : index
    %7 = vector.load %arg6[%c0_11, %c0_12] : memref<1x64xf32, #tpu.memory_space<vmem>>, vector<1x64xf32>
    %c0_13 = arith.constant 0 : index
    %c0_14 = arith.constant 0 : index
    %8 = vector.load %arg7[%c0_13, %c0_14] : memref<64x32xf32, #tpu.memory_space<vmem>>, vector<64x32xf32>
    %c0_15 = arith.constant 0 : index
    %c0_16 = arith.constant 0 : index
    %9 = vector.load %arg8[%c0_15, %c0_16] : memref<1x32xf32, #tpu.memory_space<vmem>>, vector<1x32xf32>
    %c0_17 = arith.constant 0 : index
    %c0_18 = arith.constant 0 : index
    %10 = vector.load %arg9[%c0_17, %c0_18] : memref<32x32xf32, #tpu.memory_space<vmem>>, vector<32x32xf32>
    %11 = arith.truncf %1 : vector<16x8xf32> to vector<16x8xbf16>
    %12 = arith.truncf %4 : vector<8x32xf32> to vector<8x32xbf16>
    %cst = arith.constant dense<0.000000e+00> : vector<16x32xf32>
    %13 = tpu.matmul %11, %12, %cst {dimension_numbers = #tpu.dot_dimension_numbers<[1], [0], [0], [1], [0, 0, 1, 1], [], []>} : vector<16x8xbf16>, vector<8x32xbf16>, vector<16x32xf32> -> vector<16x32xf32>
    %14 = arith.truncf %2 : vector<16x8xf32> to vector<16x8xbf16>
    %15 = arith.truncf %4 : vector<8x32xf32> to vector<8x32xbf16>
    %cst_19 = arith.constant dense<0.000000e+00> : vector<16x32xf32>
    %16 = tpu.matmul %14, %15, %cst_19 {dimension_numbers = #tpu.dot_dimension_numbers<[1], [0], [0], [1], [0, 0, 1, 1], [], []>} : vector<16x8xbf16>, vector<8x32xbf16>, vector<16x32xf32> -> vector<16x32xf32>
    %17 = arith.truncf %3 : vector<16x8xf32> to vector<16x8xbf16>
    %18 = arith.truncf %4 : vector<8x32xf32> to vector<8x32xbf16>
    %cst_20 = arith.constant dense<0.000000e+00> : vector<16x32xf32>
    %19 = tpu.matmul %17, %18, %cst_20 {dimension_numbers = #tpu.dot_dimension_numbers<[1], [0], [0], [1], [0, 0, 1, 1], [], []>} : vector<16x8xbf16>, vector<8x32xbf16>, vector<16x32xf32> -> vector<16x32xf32>
    %20 = arith.mulf %13, %13 : vector<16x32xf32>
    %21 = arith.mulf %16, %16 : vector<16x32xf32>
    %22 = arith.addf %20, %21 : vector<16x32xf32>
    %23 = arith.mulf %19, %19 : vector<16x32xf32>
    %24 = arith.addf %22, %23 : vector<16x32xf32>
    %25 = math.sqrt %24 : vector<16x32xf32>
    %26 = arith.truncf %25 : vector<16x32xf32> to vector<16x32xbf16>
    %27 = arith.truncf %5 : vector<32x64xf32> to vector<32x64xbf16>
    %cst_21 = arith.constant dense<0.000000e+00> : vector<16x64xf32>
    %28 = tpu.matmul %26, %27, %cst_21 {dimension_numbers = #tpu.dot_dimension_numbers<[1], [0], [0], [1], [0, 0, 1, 1], [], []>} : vector<16x32xbf16>, vector<32x64xbf16>, vector<16x64xf32> -> vector<16x64xf32>
    %29 = arith.truncf %0 : vector<16x16xf32> to vector<16x16xbf16>
    %30 = arith.truncf %6 : vector<16x64xf32> to vector<16x64xbf16>
    %cst_22 = arith.constant dense<0.000000e+00> : vector<16x64xf32>
    %31 = tpu.matmul %29, %30, %cst_22 {dimension_numbers = #tpu.dot_dimension_numbers<[1], [0], [0], [1], [0, 0, 1, 1], [], []>} : vector<16x16xbf16>, vector<16x64xbf16>, vector<16x64xf32> -> vector<16x64xf32>
    %32 = arith.addf %28, %31 : vector<16x64xf32>
    %33 = vector.broadcast %7 : vector<1x64xf32> to vector<16x64xf32>
    %34 = arith.addf %32, %33 : vector<16x64xf32>
    %35 = arith.truncf %34 : vector<16x64xf32> to vector<16x64xbf16>
    %36 = arith.truncf %8 : vector<64x32xf32> to vector<64x32xbf16>
    %cst_23 = arith.constant dense<0.000000e+00> : vector<16x32xf32>
    %37 = tpu.matmul %35, %36, %cst_23 {dimension_numbers = #tpu.dot_dimension_numbers<[1], [0], [0], [1], [0, 0, 1, 1], [], []>} : vector<16x64xbf16>, vector<64x32xbf16>, vector<16x32xf32> -> vector<16x32xf32>
    %38 = vector.broadcast %9 : vector<1x32xf32> to vector<16x32xf32>
    %39 = arith.addf %37, %38 : vector<16x32xf32>
    %cst_24 = arith.constant 0.000000e+00 : f32
    %40 = vector.broadcast %cst_24 : f32 to vector<16x32xf32>
    %41 = arith.subf %40, %39 : vector<16x32xf32>
    %42 = math.exp %41 : vector<16x32xf32>
    %cst_25 = arith.constant 1.000000e+00 : f32
    %43 = vector.broadcast %cst_25 : f32 to vector<16x32xf32>
    %44 = arith.addf %43, %42 : vector<16x32xf32>
    %45 = tpu.reciprocal %44 {approx = true} : vector<16x32xf32> -> vector<16x32xf32>
    %46 = arith.truncf %13 : vector<16x32xf32> to vector<16x32xbf16>
    %47 = arith.truncf %10 : vector<32x32xf32> to vector<32x32xbf16>
    %cst_26 = arith.constant dense<0.000000e+00> : vector<16x32xf32>
    %48 = tpu.matmul %46, %47, %cst_26 {dimension_numbers = #tpu.dot_dimension_numbers<[1], [0], [0], [1], [0, 0, 1, 1], [], []>} : vector<16x32xbf16>, vector<32x32xbf16>, vector<16x32xf32> -> vector<16x32xf32>
    %49 = arith.mulf %45, %48 : vector<16x32xf32>
    %50 = arith.truncf %16 : vector<16x32xf32> to vector<16x32xbf16>
    %51 = arith.truncf %10 : vector<32x32xf32> to vector<32x32xbf16>
    %cst_27 = arith.constant dense<0.000000e+00> : vector<16x32xf32>
    %52 = tpu.matmul %50, %51, %cst_27 {dimension_numbers = #tpu.dot_dimension_numbers<[1], [0], [0], [1], [0, 0, 1, 1], [], []>} : vector<16x32xbf16>, vector<32x32xbf16>, vector<16x32xf32> -> vector<16x32xf32>
    %53 = arith.mulf %45, %52 : vector<16x32xf32>
    %54 = arith.truncf %19 : vector<16x32xf32> to vector<16x32xbf16>
    %55 = arith.truncf %10 : vector<32x32xf32> to vector<32x32xbf16>
    %cst_28 = arith.constant dense<0.000000e+00> : vector<16x32xf32>
    %56 = tpu.matmul %54, %55, %cst_28 {dimension_numbers = #tpu.dot_dimension_numbers<[1], [0], [0], [1], [0, 0, 1, 1], [], []>} : vector<16x32xbf16>, vector<32x32xbf16>, vector<16x32xf32> -> vector<16x32xf32>
    %57 = arith.mulf %45, %56 : vector<16x32xf32>
    %58 = tpu.concatenate %34, %49, %53, %57 in 1 : vector<16x64xf32>, vector<16x32xf32>, vector<16x32xf32>, vector<16x32xf32> -> vector<16x160xf32>
    %c0_29 = arith.constant 0 : index
    %c0_30 = arith.constant 0 : index
    %59 = vector.load %arg10[%c0_29, %c0_30] : memref<16x160xf32, #tpu.memory_space<vmem>>, vector<16x160xf32>
    tpu.vector_store %arg10[%c0_29, %c0_30], %58 {strides = array<i32>} : memref<16x160xf32, #tpu.memory_space<vmem>>, vector<16x160xf32>,
    return
  }
  func.func @transform_0(%arg0: i32) -> (i32, i32) {
    %c0_i32 = arith.constant 0 : i32
    %c0_i32_0 = arith.constant 0 : i32
    return %arg0, %c0_i32 : i32, i32
  }
  func.func @transform_1(%arg0: i32) -> (i32, i32) {
    %c0_i32 = arith.constant 0 : i32
    %c0_i32_0 = arith.constant 0 : i32
    return %arg0, %c0_i32 : i32, i32
  }
  func.func @transform_2(%arg0: i32) -> (i32, i32) {
    %c0_i32 = arith.constant 0 : i32
    %c0_i32_0 = arith.constant 0 : i32
    %c0_i32_1 = arith.constant 0 : i32
    return %c0_i32, %c0_i32_0 : i32, i32
  }
  func.func @transform_3(%arg0: i32) -> (i32, i32) {
    %c0_i32 = arith.constant 0 : i32
    %c0_i32_0 = arith.constant 0 : i32
    %c0_i32_1 = arith.constant 0 : i32
    return %c0_i32, %c0_i32_0 : i32, i32
  }
  func.func @transform_4(%arg0: i32) -> (i32, i32) {
    %c0_i32 = arith.constant 0 : i32
    %c0_i32_0 = arith.constant 0 : i32
    %c0_i32_1 = arith.constant 0 : i32
    return %c0_i32, %c0_i32_0 : i32, i32
  }
  func.func @transform_5(%arg0: i32) -> (i32, i32) {
    %c0_i32 = arith.constant 0 : i32
    %c0_i32_0 = arith.constant 0 : i32
    %c0_i32_1 = arith.constant 0 : i32
    return %c0_i32, %c0_i32_0 : i32, i32
  }
  func.func @transform_6(%arg0: i32) -> (i32, i32) {
    %c0_i32 = arith.constant 0 : i32
    %c0_i32_0 = arith.constant 0 : i32
    %c0_i32_1 = arith.constant 0 : i32
    return %c0_i32, %c0_i32_0 : i32, i32
  }
  func.func @transform_7(%arg0: i32) -> (i32, i32) {
    %c0_i32 = arith.constant 0 : i32
    %c0_i32_0 = arith.constant 0 : i32
    %c0_i32_1 = arith.constant 0 : i32
    return %c0_i32, %c0_i32_0 : i32, i32
  }
  func.func @transform_8(%arg0: i32) -> (i32, i32) {
    %c0_i32 = arith.constant 0 : i32
    %c0_i32_0 = arith.constant 0 : i32
    %c0_i32_1 = arith.constant 0 : i32
    return %c0_i32, %c0_i32_0 : i32, i32
  }
  func.func @transform_9(%arg0: i32) -> (i32, i32) {
    %c0_i32 = arith.constant 0 : i32
    %c0_i32_0 = arith.constant 0 : i32
    return %arg0, %c0_i32 : i32, i32
  }
}

module attributes {stable_mosaic.version = 11 : i64} {
  func.func @kernel(%arg0: i32, %arg1: i32, %arg2: memref<1x8x16xf32, #tpu.memory_space<vmem>>, %arg3: memref<1x8x16xf32, #tpu.memory_space<vmem>>, %arg4: memref<1x8x16xf32, #tpu.memory_space<vmem>>, %arg5: memref<1x8x16xf32, #tpu.memory_space<vmem>>, %arg6: memref<1x8x24xf32, #tpu.memory_space<vmem>>, %arg7: memref<1x8x24xf32, #tpu.memory_space<vmem>>, %arg8: memref<1x8x24xf32, #tpu.memory_space<vmem>>, %arg9: memref<1x8x24xf32, #tpu.memory_space<vmem>>, %arg10: memref<1x8x8x40xbf16, #tpu.memory_space<vmem>>, %arg11: memref<1x8x3xf32, #tpu.memory_space<vmem>>, %arg12: memref<1x8x3xf32, #tpu.memory_space<vmem>>, %arg13: memref<1x1x8xf32, #tpu.memory_space<vmem>>, %arg14: memref<1x8x1xf32, #tpu.memory_space<vmem>>, %arg15: memref<24x24xf32, #tpu.memory_space<vmem>>, %arg16: memref<1x24xf32, #tpu.memory_space<vmem>>, %arg17: memref<24x2xf32, #tpu.memory_space<vmem>>, %arg18: memref<1x1xf32, #tpu.memory_space<vmem>>, %arg19: memref<1x1xf32, #tpu.memory_space<vmem>>, %arg20: memref<8x8xf32, #tpu.memory_space<vmem>>, %arg21: memref<8x8xf32, #tpu.memory_space<vmem>>, %arg22: memref<16x8xf32, #tpu.memory_space<vmem>>, %arg23: memref<1x8xf32, #tpu.memory_space<vmem>>, %arg24: memref<8x4xf32, #tpu.memory_space<vmem>>, %arg25: memref<1x4xf32, #tpu.memory_space<vmem>>, %arg26: memref<8x4xf32, #tpu.memory_space<vmem>>, %arg27: memref<4x4xf32, #tpu.memory_space<vmem>>, %arg28: memref<1x8x86xf32, #tpu.memory_space<vmem>>, %arg29: memref<1x8x8x20xf32, #tpu.memory_space<vmem>>) attributes {dimension_semantics = [#tpu.dimension_semantics<parallel>, #tpu.dimension_semantics<parallel>], iteration_bounds = array<i64: 2, 1>, scalar_prefetch = 0 : i64, scratch_operands = 0 : i64, tpu.core_type = #tpu.core_type<tc>, window_params = [{transform_indices = @transform_0, window_bounds = array<i64: 1, 8, 16>}, {transform_indices = @transform_1, window_bounds = array<i64: 1, 8, 16>}, {transform_indices = @transform_2, window_bounds = array<i64: 1, 8, 16>}, {transform_indices = @transform_3, window_bounds = array<i64: 1, 8, 16>}, {transform_indices = @transform_4, window_bounds = array<i64: 1, 8, 24>}, {transform_indices = @transform_5, window_bounds = array<i64: 1, 8, 24>}, {transform_indices = @transform_6, window_bounds = array<i64: 1, 8, 24>}, {transform_indices = @transform_7, window_bounds = array<i64: 1, 8, 24>}, {transform_indices = @transform_8, window_bounds = array<i64: 1, 8, 8, 40>}, {transform_indices = @transform_9, window_bounds = array<i64: 1, 8, 3>}, {transform_indices = @transform_10, window_bounds = array<i64: 1, 8, 3>}, {transform_indices = @transform_11, window_bounds = array<i64: 1, 1, 8>}, {transform_indices = @transform_12, window_bounds = array<i64: 1, 8, 1>}, {pipeline_mode = #tpu.pipeline_mode<synchronous>, transform_indices = @transform_13, window_bounds = array<i64: 24, 24>}, {pipeline_mode = #tpu.pipeline_mode<synchronous>, transform_indices = @transform_14, window_bounds = array<i64: 1, 24>}, {pipeline_mode = #tpu.pipeline_mode<synchronous>, transform_indices = @transform_15, window_bounds = array<i64: 24, 2>}, {pipeline_mode = #tpu.pipeline_mode<synchronous>, transform_indices = @transform_16, window_bounds = array<i64: 1, 1>}, {pipeline_mode = #tpu.pipeline_mode<synchronous>, transform_indices = @transform_17, window_bounds = array<i64: 1, 1>}, {pipeline_mode = #tpu.pipeline_mode<synchronous>, transform_indices = @transform_18, window_bounds = array<i64: 8, 8>}, {pipeline_mode = #tpu.pipeline_mode<synchronous>, transform_indices = @transform_19, window_bounds = array<i64: 8, 8>}, {pipeline_mode = #tpu.pipeline_mode<synchronous>, transform_indices = @transform_20, window_bounds = array<i64: 16, 8>}, {pipeline_mode = #tpu.pipeline_mode<synchronous>, transform_indices = @transform_21, window_bounds = array<i64: 1, 8>}, {pipeline_mode = #tpu.pipeline_mode<synchronous>, transform_indices = @transform_22, window_bounds = array<i64: 8, 4>}, {pipeline_mode = #tpu.pipeline_mode<synchronous>, transform_indices = @transform_23, window_bounds = array<i64: 1, 4>}, {pipeline_mode = #tpu.pipeline_mode<synchronous>, transform_indices = @transform_24, window_bounds = array<i64: 8, 4>}, {pipeline_mode = #tpu.pipeline_mode<synchronous>, transform_indices = @transform_25, window_bounds = array<i64: 4, 4>}, {transform_indices = @transform_26, window_bounds = array<i64: 1, 8, 86>}, {transform_indices = @transform_27, window_bounds = array<i64: 1, 8, 8, 20>}]} {
    %c0 = arith.constant 0 : index
    %c0_0 = arith.constant 0 : index
    %0 = vector.load %arg15[%c0, %c0_0] : memref<24x24xf32, #tpu.memory_space<vmem>>, vector<24x24xf32>
    %c0_1 = arith.constant 0 : index
    %c0_2 = arith.constant 0 : index
    %1 = vector.load %arg16[%c0_1, %c0_2] : memref<1x24xf32, #tpu.memory_space<vmem>>, vector<1x24xf32>
    %c0_3 = arith.constant 0 : index
    %c0_4 = arith.constant 0 : index
    %2 = vector.load %arg17[%c0_3, %c0_4] : memref<24x2xf32, #tpu.memory_space<vmem>>, vector<24x2xf32>
    %c0_5 = arith.constant 0 : index
    %c0_6 = arith.constant 0 : index
    %3 = vector.load %arg18[%c0_5, %c0_6] : memref<1x1xf32, #tpu.memory_space<vmem>>, vector<1x1xf32>
    %c0_7 = arith.constant 0 : index
    %c0_8 = arith.constant 0 : index
    %4 = vector.load %arg19[%c0_7, %c0_8] : memref<1x1xf32, #tpu.memory_space<vmem>>, vector<1x1xf32>
    %c0_9 = arith.constant 0 : index
    %c0_10 = arith.constant 0 : index
    %5 = vector.load %arg20[%c0_9, %c0_10] : memref<8x8xf32, #tpu.memory_space<vmem>>, vector<8x8xf32>
    %c0_11 = arith.constant 0 : index
    %c0_12 = arith.constant 0 : index
    %6 = vector.load %arg21[%c0_11, %c0_12] : memref<8x8xf32, #tpu.memory_space<vmem>>, vector<8x8xf32>
    %c0_13 = arith.constant 0 : index
    %c0_14 = arith.constant 0 : index
    %7 = vector.load %arg22[%c0_13, %c0_14] : memref<16x8xf32, #tpu.memory_space<vmem>>, vector<16x8xf32>
    %c0_15 = arith.constant 0 : index
    %c0_16 = arith.constant 0 : index
    %8 = vector.load %arg23[%c0_15, %c0_16] : memref<1x8xf32, #tpu.memory_space<vmem>>, vector<1x8xf32>
    %c0_17 = arith.constant 0 : index
    %c0_18 = arith.constant 0 : index
    %9 = vector.load %arg24[%c0_17, %c0_18] : memref<8x4xf32, #tpu.memory_space<vmem>>, vector<8x4xf32>
    %c0_19 = arith.constant 0 : index
    %c0_20 = arith.constant 0 : index
    %10 = vector.load %arg25[%c0_19, %c0_20] : memref<1x4xf32, #tpu.memory_space<vmem>>, vector<1x4xf32>
    %c0_21 = arith.constant 0 : index
    %c0_22 = arith.constant 0 : index
    %11 = vector.load %arg26[%c0_21, %c0_22] : memref<8x4xf32, #tpu.memory_space<vmem>>, vector<8x4xf32>
    %c0_23 = arith.constant 0 : index
    %c0_24 = arith.constant 0 : index
    %12 = vector.load %arg27[%c0_23, %c0_24] : memref<4x4xf32, #tpu.memory_space<vmem>>, vector<4x4xf32>
    %c0_25 = arith.constant 0 : index
    %c0_26 = arith.constant 0 : index
    %c0_27 = arith.constant 0 : index
    %13 = vector.load %arg2[%c0_25, %c0_26, %c0_27] : memref<1x8x16xf32, #tpu.memory_space<vmem>>, vector<1x8x16xf32>
    %14 = vector.shape_cast %13 : vector<1x8x16xf32> to vector<8x16xf32>
    %c0_28 = arith.constant 0 : index
    %c0_29 = arith.constant 0 : index
    %c0_30 = arith.constant 0 : index
    %15 = vector.load %arg3[%c0_28, %c0_29, %c0_30] : memref<1x8x16xf32, #tpu.memory_space<vmem>>, vector<1x8x16xf32>
    %16 = vector.shape_cast %15 : vector<1x8x16xf32> to vector<8x16xf32>
    %c0_31 = arith.constant 0 : index
    %c0_32 = arith.constant 0 : index
    %c0_33 = arith.constant 0 : index
    %17 = vector.load %arg4[%c0_31, %c0_32, %c0_33] : memref<1x8x16xf32, #tpu.memory_space<vmem>>, vector<1x8x16xf32>
    %18 = vector.shape_cast %17 : vector<1x8x16xf32> to vector<8x16xf32>
    %c0_34 = arith.constant 0 : index
    %c0_35 = arith.constant 0 : index
    %c0_36 = arith.constant 0 : index
    %19 = vector.load %arg5[%c0_34, %c0_35, %c0_36] : memref<1x8x16xf32, #tpu.memory_space<vmem>>, vector<1x8x16xf32>
    %20 = vector.shape_cast %19 : vector<1x8x16xf32> to vector<8x16xf32>
    %c0_37 = arith.constant 0 : index
    %c0_38 = arith.constant 0 : index
    %c0_39 = arith.constant 0 : index
    %21 = vector.load %arg6[%c0_37, %c0_38, %c0_39] : memref<1x8x24xf32, #tpu.memory_space<vmem>>, vector<1x8x24xf32>
    %22 = vector.shape_cast %21 : vector<1x8x24xf32> to vector<8x24xf32>
    %c0_40 = arith.constant 0 : index
    %c0_41 = arith.constant 0 : index
    %c0_42 = arith.constant 0 : index
    %23 = vector.load %arg7[%c0_40, %c0_41, %c0_42] : memref<1x8x24xf32, #tpu.memory_space<vmem>>, vector<1x8x24xf32>
    %24 = vector.shape_cast %23 : vector<1x8x24xf32> to vector<8x24xf32>
    %c0_43 = arith.constant 0 : index
    %c0_44 = arith.constant 0 : index
    %c0_45 = arith.constant 0 : index
    %25 = vector.load %arg8[%c0_43, %c0_44, %c0_45] : memref<1x8x24xf32, #tpu.memory_space<vmem>>, vector<1x8x24xf32>
    %26 = vector.shape_cast %25 : vector<1x8x24xf32> to vector<8x24xf32>
    %c0_46 = arith.constant 0 : index
    %c0_47 = arith.constant 0 : index
    %c0_48 = arith.constant 0 : index
    %27 = vector.load %arg9[%c0_46, %c0_47, %c0_48] : memref<1x8x24xf32, #tpu.memory_space<vmem>>, vector<1x8x24xf32>
    %28 = vector.shape_cast %27 : vector<1x8x24xf32> to vector<8x24xf32>
    %c0_49 = arith.constant 0 : index
    %c0_50 = arith.constant 0 : index
    %c0_51 = arith.constant 0 : index
    %c0_52 = arith.constant 0 : index
    %29 = vector.load %arg10[%c0_49, %c0_50, %c0_51, %c0_52] : memref<1x8x8x40xbf16, #tpu.memory_space<vmem>>, vector<1x8x8x40xbf16>
    %30 = vector.shape_cast %29 : vector<1x8x8x40xbf16> to vector<8x8x40xbf16>
    %c0_53 = arith.constant 0 : index
    %c0_54 = arith.constant 0 : index
    %c0_55 = arith.constant 0 : index
    %31 = vector.load %arg11[%c0_53, %c0_54, %c0_55] : memref<1x8x3xf32, #tpu.memory_space<vmem>>, vector<1x8x3xf32>
    %32 = vector.shape_cast %31 : vector<1x8x3xf32> to vector<8x3xf32>
    %c0_56 = arith.constant 0 : index
    %c0_57 = arith.constant 0 : index
    %c0_58 = arith.constant 0 : index
    %33 = vector.load %arg12[%c0_56, %c0_57, %c0_58] : memref<1x8x3xf32, #tpu.memory_space<vmem>>, vector<1x8x3xf32>
    %34 = vector.shape_cast %33 : vector<1x8x3xf32> to vector<8x3xf32>
    %c0_59 = arith.constant 0 : index
    %c0_60 = arith.constant 0 : index
    %c0_61 = arith.constant 0 : index
    %35 = vector.load %arg13[%c0_59, %c0_60, %c0_61] : memref<1x1x8xf32, #tpu.memory_space<vmem>>, vector<1x1x8xf32>
    %36 = vector.shape_cast %35 : vector<1x1x8xf32> to vector<1x8xf32>
    %cst = arith.constant 0.000000e+00 : f32
    %37 = vector.broadcast %cst : f32 to vector<1x8xf32>
    %38 = arith.cmpf ogt, %36, %37 : vector<1x8xf32>
    %c0_62 = arith.constant 0 : index
    %c0_63 = arith.constant 0 : index
    %c0_64 = arith.constant 0 : index
    %39 = vector.load %arg14[%c0_62, %c0_63, %c0_64] : memref<1x8x1xf32, #tpu.memory_space<vmem>>, vector<1x8x1xf32>
    %40 = vector.shape_cast %39 : vector<1x8x1xf32> to vector<8x1xf32>
    %41 = vector.extract_strided_slice %30 {offsets = [0, 0, 0], sizes = [8, 8, 16], strides = [1, 1, 1]} : vector<8x8x40xbf16> to vector<8x8x16xbf16>
    %42 = vector.extract_strided_slice %30 {offsets = [0, 0, 16], sizes = [8, 8, 24], strides = [1, 1, 1]} : vector<8x8x40xbf16> to vector<8x8x24xbf16>
    %43 = vector.shape_cast %14 : vector<8x16xf32> to vector<8x1x16xf32>
    %44 = vector.shape_cast %16 : vector<8x16xf32> to vector<1x8x16xf32>
    %45 = vector.broadcast %43 : vector<8x1x16xf32> to vector<8x8x16xf32>
    %46 = vector.broadcast %44 : vector<1x8x16xf32> to vector<8x8x16xf32>
    %47 = arith.mulf %45, %46 : vector<8x8x16xf32>
    %48 = arith.extf %41 : vector<8x8x16xbf16> to vector<8x8x16xf32>
    %49 = arith.mulf %47, %48 : vector<8x8x16xf32>
    %50 = vector.shape_cast %22 : vector<8x24xf32> to vector<8x1x24xf32>
    %51 = vector.shape_cast %24 : vector<8x24xf32> to vector<1x8x24xf32>
    %52 = vector.broadcast %50 : vector<8x1x24xf32> to vector<8x8x24xf32>
    %53 = vector.broadcast %51 : vector<1x8x24xf32> to vector<8x8x24xf32>
    %54 = arith.mulf %52, %53 : vector<8x8x24xf32>
    %55 = arith.extf %42 : vector<8x8x24xbf16> to vector<8x8x24xf32>
    %56 = arith.mulf %54, %55 : vector<8x8x24xf32>
    %57 = vector.shape_cast %49 : vector<8x8x16xf32> to vector<64x16xf32>
    %58 = vector.shape_cast %56 : vector<8x8x24xf32> to vector<64x24xf32>
    %59 = vector.extract_strided_slice %49 {offsets = [0, 0, 0], sizes = [8, 8, 8], strides = [1, 1, 1]} : vector<8x8x16xf32> to vector<8x8x8xf32>
    %cst_65 = arith.constant dense<0.000000e+00> : vector<8x8xf32>
    %60 = vector.multi_reduction <add>, %59, %cst_65 [2] : vector<8x8x8xf32> to vector<8x8xf32>
    %cst_66 = arith.constant 0.353553385 : f32
    %61 = vector.broadcast %cst_66 : f32 to vector<8x8xf32>
    %62 = arith.mulf %60, %61 : vector<8x8xf32>
    %63 = vector.extract_strided_slice %56 {offsets = [0, 0, 0], sizes = [8, 8, 4], strides = [1, 1, 1]} : vector<8x8x24xf32> to vector<8x8x4xf32>
    %cst_67 = arith.constant dense<0.000000e+00> : vector<8x8xf32>
    %64 = vector.multi_reduction <add>, %63, %cst_67 [2] : vector<8x8x4xf32> to vector<8x8xf32>
    %65 = vector.extract_strided_slice %56 {offsets = [0, 0, 8], sizes = [8, 8, 4], strides = [1, 1, 1]} : vector<8x8x24xf32> to vector<8x8x4xf32>
    %cst_68 = arith.constant dense<0.000000e+00> : vector<8x8xf32>
    %66 = vector.multi_reduction <add>, %65, %cst_68 [2] : vector<8x8x4xf32> to vector<8x8xf32>
    %67 = arith.addf %64, %66 : vector<8x8xf32>
    %68 = vector.extract_strided_slice %56 {offsets = [0, 0, 16], sizes = [8, 8, 4], strides = [1, 1, 1]} : vector<8x8x24xf32> to vector<8x8x4xf32>
    %cst_69 = arith.constant dense<0.000000e+00> : vector<8x8xf32>
    %69 = vector.multi_reduction <add>, %68, %cst_69 [2] : vector<8x8x4xf32> to vector<8x8xf32>
    %70 = arith.addf %67, %69 : vector<8x8xf32>
    %cst_70 = arith.constant 0.288675129 : f32
    %71 = vector.broadcast %cst_70 : f32 to vector<8x8xf32>
    %72 = arith.mulf %70, %71 : vector<8x8xf32>
    %cst_71 = arith.constant -3.40282347E+38 : f32
    %73 = vector.shape_cast %38 : vector<1x8xi1> to vector<1x8xi1>
    %74 = vector.broadcast %73 : vector<1x8xi1> to vector<8x8xi1>
    %75 = vector.broadcast %cst_71 : f32 to vector<8x8xf32>
    %76 = arith.select %74, %62, %75 : vector<8x8xi1>, vector<8x8xf32>
    %cst_72 = arith.constant dense<0xFF800000> : vector<8xf32>
    %77 = vector.multi_reduction <maximumf>, %76, %cst_72 [1] : vector<8x8xf32> to vector<8xf32>
    %78 = vector.shape_cast %77 : vector<8xf32> to vector<8x1xf32>
    %79 = vector.broadcast %78 : vector<8x1xf32> to vector<8x8xf32>
    %80 = arith.subf %76, %79 : vector<8x8xf32>
    %81 = math.exp %80 : vector<8x8xf32>
    %cst_73 = arith.constant dense<0.000000e+00> : vector<8xf32>
    %82 = vector.multi_reduction <add>, %81, %cst_73 [1] : vector<8x8xf32> to vector<8xf32>
    %83 = vector.shape_cast %82 : vector<8xf32> to vector<8x1xf32>
    %84 = tpu.reciprocal %83 {approx = true} : vector<8x1xf32> -> vector<8x1xf32>
    %85 = vector.broadcast %84 : vector<8x1xf32> to vector<8x8xf32>
    %86 = arith.mulf %81, %85 : vector<8x8xf32>
    %cst_74 = arith.constant -3.40282347E+38 : f32
    %87 = vector.shape_cast %38 : vector<1x8xi1> to vector<1x8xi1>
    %88 = vector.broadcast %87 : vector<1x8xi1> to vector<8x8xi1>
    %89 = vector.broadcast %cst_74 : f32 to vector<8x8xf32>
    %90 = arith.select %88, %72, %89 : vector<8x8xi1>, vector<8x8xf32>
    %cst_75 = arith.constant dense<0xFF800000> : vector<8xf32>
    %91 = vector.multi_reduction <maximumf>, %90, %cst_75 [1] : vector<8x8xf32> to vector<8xf32>
    %92 = vector.shape_cast %91 : vector<8xf32> to vector<8x1xf32>
    %93 = vector.broadcast %92 : vector<8x1xf32> to vector<8x8xf32>
    %94 = arith.subf %90, %93 : vector<8x8xf32>
    %95 = math.exp %94 : vector<8x8xf32>
    %cst_76 = arith.constant dense<0.000000e+00> : vector<8xf32>
    %96 = vector.multi_reduction <add>, %95, %cst_76 [1] : vector<8x8xf32> to vector<8xf32>
    %97 = vector.shape_cast %96 : vector<8xf32> to vector<8x1xf32>
    %98 = tpu.reciprocal %97 {approx = true} : vector<8x1xf32> -> vector<8x1xf32>
    %99 = vector.broadcast %98 : vector<8x1xf32> to vector<8x8xf32>
    %100 = arith.mulf %95, %99 : vector<8x8xf32>
    %101 = vector.extract_strided_slice %20 {offsets = [0, 0], sizes = [8, 8], strides = [1, 1]} : vector<8x16xf32> to vector<8x8xf32>
    %102 = vector.extract_strided_slice %18 {offsets = [0, 0], sizes = [8, 8], strides = [1, 1]} : vector<8x16xf32> to vector<8x8xf32>
    %103 = tpu.concatenate %101, %102 in 1 : vector<8x8xf32>, vector<8x8xf32> -> vector<8x16xf32>
    %104 = arith.truncf %86 : vector<8x8xf32> to vector<8x8xbf16>
    %105 = arith.truncf %103 : vector<8x16xf32> to vector<8x16xbf16>
    %cst_77 = arith.constant dense<0.000000e+00> : vector<8x16xf32>
    %106 = tpu.matmul %104, %105, %cst_77 {dimension_numbers = #tpu.dot_dimension_numbers<[1], [0], [0], [1], [0, 0, 1, 1], [], []>} : vector<8x8xbf16>, vector<8x16xbf16>, vector<8x16xf32> -> vector<8x16xf32>
    %107 = vector.extract_strided_slice %106 {offsets = [0, 0], sizes = [8, 8], strides = [1, 1]} : vector<8x16xf32> to vector<8x8xf32>
    %108 = vector.extract_strided_slice %106 {offsets = [0, 8], sizes = [8, 8], strides = [1, 1]} : vector<8x16xf32> to vector<8x8xf32>
    %109 = vector.extract_strided_slice %28 {offsets = [0, 0], sizes = [8, 12], strides = [1, 1]} : vector<8x24xf32> to vector<8x12xf32>
    %110 = vector.extract_strided_slice %26 {offsets = [0, 0], sizes = [8, 12], strides = [1, 1]} : vector<8x24xf32> to vector<8x12xf32>
    %111 = tpu.concatenate %109, %110 in 1 : vector<8x12xf32>, vector<8x12xf32> -> vector<8x24xf32>
    %112 = arith.truncf %100 : vector<8x8xf32> to vector<8x8xbf16>
    %113 = arith.truncf %111 : vector<8x24xf32> to vector<8x24xbf16>
    %cst_78 = arith.constant dense<0.000000e+00> : vector<8x24xf32>
    %114 = tpu.matmul %112, %113, %cst_78 {dimension_numbers = #tpu.dot_dimension_numbers<[1], [0], [0], [1], [0, 0, 1, 1], [], []>} : vector<8x8xbf16>, vector<8x24xbf16>, vector<8x24xf32> -> vector<8x24xf32>
    %115 = vector.extract_strided_slice %114 {offsets = [0, 0], sizes = [8, 12], strides = [1, 1]} : vector<8x24xf32> to vector<8x12xf32>
    %116 = vector.extract_strided_slice %114 {offsets = [0, 12], sizes = [8, 12], strides = [1, 1]} : vector<8x24xf32> to vector<8x12xf32>
    %117 = vector.extract_strided_slice %58 {offsets = [0, 0], sizes = [64, 4], strides = [1, 1]} : vector<64x24xf32> to vector<64x4xf32>
    %118 = arith.mulf %117, %117 : vector<64x4xf32>
    %119 = vector.extract_strided_slice %58 {offsets = [0, 8], sizes = [64, 4], strides = [1, 1]} : vector<64x24xf32> to vector<64x4xf32>
    %120 = arith.mulf %119, %119 : vector<64x4xf32>
    %121 = arith.addf %118, %120 : vector<64x4xf32>
    %122 = vector.extract_strided_slice %58 {offsets = [0, 16], sizes = [64, 4], strides = [1, 1]} : vector<64x24xf32> to vector<64x4xf32>
    %123 = arith.mulf %122, %122 : vector<64x4xf32>
    %124 = arith.addf %121, %123 : vector<64x4xf32>
    %125 = math.sqrt %124 : vector<64x4xf32>
    %126 = vector.extract_strided_slice %57 {offsets = [0, 0], sizes = [64, 8], strides = [1, 1]} : vector<64x16xf32> to vector<64x8xf32>
    %127 = vector.extract_strided_slice %49 {offsets = [0, 0, 8], sizes = [8, 8, 8], strides = [1, 1, 1]} : vector<8x8x16xf32> to vector<8x8x8xf32>
    %cst_79 = arith.constant dense<0.000000e+00> : vector<8x8xf32>
    %128 = vector.multi_reduction <add>, %127, %cst_79 [2] : vector<8x8x8xf32> to vector<8x8xf32>
    %cst_80 = arith.constant 0.353553385 : f32
    %129 = vector.broadcast %cst_80 : f32 to vector<8x8xf32>
    %130 = arith.mulf %128, %129 : vector<8x8xf32>
    %131 = vector.extract_strided_slice %56 {offsets = [0, 0, 4], sizes = [8, 8, 4], strides = [1, 1, 1]} : vector<8x8x24xf32> to vector<8x8x4xf32>
    %cst_81 = arith.constant dense<0.000000e+00> : vector<8x8xf32>
    %132 = vector.multi_reduction <add>, %131, %cst_81 [2] : vector<8x8x4xf32> to vector<8x8xf32>
    %133 = vector.extract_strided_slice %56 {offsets = [0, 0, 12], sizes = [8, 8, 4], strides = [1, 1, 1]} : vector<8x8x24xf32> to vector<8x8x4xf32>
    %cst_82 = arith.constant dense<0.000000e+00> : vector<8x8xf32>
    %134 = vector.multi_reduction <add>, %133, %cst_82 [2] : vector<8x8x4xf32> to vector<8x8xf32>
    %135 = arith.addf %132, %134 : vector<8x8xf32>
    %136 = vector.extract_strided_slice %56 {offsets = [0, 0, 20], sizes = [8, 8, 4], strides = [1, 1, 1]} : vector<8x8x24xf32> to vector<8x8x4xf32>
    %cst_83 = arith.constant dense<0.000000e+00> : vector<8x8xf32>
    %137 = vector.multi_reduction <add>, %136, %cst_83 [2] : vector<8x8x4xf32> to vector<8x8xf32>
    %138 = arith.addf %135, %137 : vector<8x8xf32>
    %cst_84 = arith.constant 0.288675129 : f32
    %139 = vector.broadcast %cst_84 : f32 to vector<8x8xf32>
    %140 = arith.mulf %138, %139 : vector<8x8xf32>
    %cst_85 = arith.constant -3.40282347E+38 : f32
    %141 = vector.shape_cast %38 : vector<1x8xi1> to vector<1x8xi1>
    %142 = vector.broadcast %141 : vector<1x8xi1> to vector<8x8xi1>
    %143 = vector.broadcast %cst_85 : f32 to vector<8x8xf32>
    %144 = arith.select %142, %130, %143 : vector<8x8xi1>, vector<8x8xf32>
    %cst_86 = arith.constant dense<0xFF800000> : vector<8xf32>
    %145 = vector.multi_reduction <maximumf>, %144, %cst_86 [1] : vector<8x8xf32> to vector<8xf32>
    %146 = vector.shape_cast %145 : vector<8xf32> to vector<8x1xf32>
    %147 = vector.broadcast %146 : vector<8x1xf32> to vector<8x8xf32>
    %148 = arith.subf %144, %147 : vector<8x8xf32>
    %149 = math.exp %148 : vector<8x8xf32>
    %cst_87 = arith.constant dense<0.000000e+00> : vector<8xf32>
    %150 = vector.multi_reduction <add>, %149, %cst_87 [1] : vector<8x8xf32> to vector<8xf32>
    %151 = vector.shape_cast %150 : vector<8xf32> to vector<8x1xf32>
    %152 = tpu.reciprocal %151 {approx = true} : vector<8x1xf32> -> vector<8x1xf32>
    %153 = vector.broadcast %152 : vector<8x1xf32> to vector<8x8xf32>
    %154 = arith.mulf %149, %153 : vector<8x8xf32>
    %cst_88 = arith.constant -3.40282347E+38 : f32
    %155 = vector.shape_cast %38 : vector<1x8xi1> to vector<1x8xi1>
    %156 = vector.broadcast %155 : vector<1x8xi1> to vector<8x8xi1>
    %157 = vector.broadcast %cst_88 : f32 to vector<8x8xf32>
    %158 = arith.select %156, %140, %157 : vector<8x8xi1>, vector<8x8xf32>
    %cst_89 = arith.constant dense<0xFF800000> : vector<8xf32>
    %159 = vector.multi_reduction <maximumf>, %158, %cst_89 [1] : vector<8x8xf32> to vector<8xf32>
    %160 = vector.shape_cast %159 : vector<8xf32> to vector<8x1xf32>
    %161 = vector.broadcast %160 : vector<8x1xf32> to vector<8x8xf32>
    %162 = arith.subf %158, %161 : vector<8x8xf32>
    %163 = math.exp %162 : vector<8x8xf32>
    %cst_90 = arith.constant dense<0.000000e+00> : vector<8xf32>
    %164 = vector.multi_reduction <add>, %163, %cst_90 [1] : vector<8x8xf32> to vector<8xf32>
    %165 = vector.shape_cast %164 : vector<8xf32> to vector<8x1xf32>
    %166 = tpu.reciprocal %165 {approx = true} : vector<8x1xf32> -> vector<8x1xf32>
    %167 = vector.broadcast %166 : vector<8x1xf32> to vector<8x8xf32>
    %168 = arith.mulf %163, %167 : vector<8x8xf32>
    %169 = vector.extract_strided_slice %20 {offsets = [0, 8], sizes = [8, 8], strides = [1, 1]} : vector<8x16xf32> to vector<8x8xf32>
    %170 = vector.extract_strided_slice %18 {offsets = [0, 8], sizes = [8, 8], strides = [1, 1]} : vector<8x16xf32> to vector<8x8xf32>
    %171 = tpu.concatenate %169, %170 in 1 : vector<8x8xf32>, vector<8x8xf32> -> vector<8x16xf32>
    %172 = arith.truncf %154 : vector<8x8xf32> to vector<8x8xbf16>
    %173 = arith.truncf %171 : vector<8x16xf32> to vector<8x16xbf16>
    %cst_91 = arith.constant dense<0.000000e+00> : vector<8x16xf32>
    %174 = tpu.matmul %172, %173, %cst_91 {dimension_numbers = #tpu.dot_dimension_numbers<[1], [0], [0], [1], [0, 0, 1, 1], [], []>} : vector<8x8xbf16>, vector<8x16xbf16>, vector<8x16xf32> -> vector<8x16xf32>
    %175 = vector.extract_strided_slice %174 {offsets = [0, 0], sizes = [8, 8], strides = [1, 1]} : vector<8x16xf32> to vector<8x8xf32>
    %176 = vector.extract_strided_slice %174 {offsets = [0, 8], sizes = [8, 8], strides = [1, 1]} : vector<8x16xf32> to vector<8x8xf32>
    %177 = vector.extract_strided_slice %28 {offsets = [0, 12], sizes = [8, 12], strides = [1, 1]} : vector<8x24xf32> to vector<8x12xf32>
    %178 = vector.extract_strided_slice %26 {offsets = [0, 12], sizes = [8, 12], strides = [1, 1]} : vector<8x24xf32> to vector<8x12xf32>
    %179 = tpu.concatenate %177, %178 in 1 : vector<8x12xf32>, vector<8x12xf32> -> vector<8x24xf32>
    %180 = arith.truncf %168 : vector<8x8xf32> to vector<8x8xbf16>
    %181 = arith.truncf %179 : vector<8x24xf32> to vector<8x24xbf16>
    %cst_92 = arith.constant dense<0.000000e+00> : vector<8x24xf32>
    %182 = tpu.matmul %180, %181, %cst_92 {dimension_numbers = #tpu.dot_dimension_numbers<[1], [0], [0], [1], [0, 0, 1, 1], [], []>} : vector<8x8xbf16>, vector<8x24xbf16>, vector<8x24xf32> -> vector<8x24xf32>
    %183 = vector.extract_strided_slice %182 {offsets = [0, 0], sizes = [8, 12], strides = [1, 1]} : vector<8x24xf32> to vector<8x12xf32>
    %184 = vector.extract_strided_slice %182 {offsets = [0, 12], sizes = [8, 12], strides = [1, 1]} : vector<8x24xf32> to vector<8x12xf32>
    %185 = vector.extract_strided_slice %58 {offsets = [0, 4], sizes = [64, 4], strides = [1, 1]} : vector<64x24xf32> to vector<64x4xf32>
    %186 = arith.mulf %185, %185 : vector<64x4xf32>
    %187 = vector.extract_strided_slice %58 {offsets = [0, 12], sizes = [64, 4], strides = [1, 1]} : vector<64x24xf32> to vector<64x4xf32>
    %188 = arith.mulf %187, %187 : vector<64x4xf32>
    %189 = arith.addf %186, %188 : vector<64x4xf32>
    %190 = vector.extract_strided_slice %58 {offsets = [0, 20], sizes = [64, 4], strides = [1, 1]} : vector<64x24xf32> to vector<64x4xf32>
    %191 = arith.mulf %190, %190 : vector<64x4xf32>
    %192 = arith.addf %189, %191 : vector<64x4xf32>
    %193 = math.sqrt %192 : vector<64x4xf32>
    %194 = vector.extract_strided_slice %57 {offsets = [0, 8], sizes = [64, 8], strides = [1, 1]} : vector<64x16xf32> to vector<64x8xf32>
    %195 = tpu.concatenate %126, %125, %194, %193 in 1 : vector<64x8xf32>, vector<64x4xf32>, vector<64x8xf32>, vector<64x4xf32> -> vector<64x24xf32>
    %196 = arith.truncf %195 : vector<64x24xf32> to vector<64x24xbf16>
    %197 = arith.truncf %0 : vector<24x24xf32> to vector<24x24xbf16>
    %cst_93 = arith.constant dense<0.000000e+00> : vector<64x24xf32>
    %198 = tpu.matmul %196, %197, %cst_93 {dimension_numbers = #tpu.dot_dimension_numbers<[1], [0], [0], [1], [0, 0, 1, 1], [], []>} : vector<64x24xbf16>, vector<24x24xbf16>, vector<64x24xf32> -> vector<64x24xf32>
    %199 = vector.broadcast %1 : vector<1x24xf32> to vector<64x24xf32>
    %200 = arith.addf %198, %199 : vector<64x24xf32>
    %cst_94 = arith.constant 0.000000e+00 : f32
    %201 = vector.broadcast %cst_94 : f32 to vector<64x24xf32>
    %202 = arith.cmpf oge, %200, %201 : vector<64x24xf32>
    %cst_95 = arith.constant 0.00999999977 : f32
    %203 = vector.broadcast %cst_95 : f32 to vector<64x24xf32>
    %204 = arith.mulf %203, %200 : vector<64x24xf32>
    %205 = arith.select %202, %200, %204 : vector<64x24xi1>, vector<64x24xf32>
    %206 = arith.truncf %205 : vector<64x24xf32> to vector<64x24xbf16>
    %207 = arith.truncf %2 : vector<24x2xf32> to vector<24x2xbf16>
    %cst_96 = arith.constant dense<0.000000e+00> : vector<64x2xf32>
    %208 = tpu.matmul %206, %207, %cst_96 {dimension_numbers = #tpu.dot_dimension_numbers<[1], [0], [0], [1], [0, 0, 1, 1], [], []>} : vector<64x24xbf16>, vector<24x2xbf16>, vector<64x2xf32> -> vector<64x2xf32>
    %209 = vector.broadcast %3 : vector<1x1xf32> to vector<64x2xf32>
    %210 = arith.addf %208, %209 : vector<64x2xf32>
    %211 = vector.shape_cast %32 : vector<8x3xf32> to vector<8x1x3xf32>
    %212 = vector.shape_cast %34 : vector<8x3xf32> to vector<1x8x3xf32>
    %213 = vector.broadcast %211 : vector<8x1x3xf32> to vector<8x8x3xf32>
    %214 = vector.broadcast %212 : vector<1x8x3xf32> to vector<8x8x3xf32>
    %215 = arith.subf %213, %214 : vector<8x8x3xf32>
    %216 = arith.mulf %215, %215 : vector<8x8x3xf32>
    %cst_97 = arith.constant dense<0.000000e+00> : vector<8x8xf32>
    %217 = vector.multi_reduction <add>, %216, %cst_97 [2] : vector<8x8x3xf32> to vector<8x8xf32>
    %218 = vector.shape_cast %217 : vector<8x8xf32> to vector<8x8x1xf32>
    %219 = math.sqrt %218 : vector<8x8x1xf32>
    %cst_98 = arith.constant 0.000000e+00 : f32
    %220 = vector.broadcast %cst_98 : f32 to vector<8x8x1xf32>
    %221 = arith.cmpf oeq, %219, %220 : vector<8x8x1xf32>
    %cst_99 = arith.constant 1.000000e+08 : f32
    %222 = vector.broadcast %cst_99 : f32 to vector<8x8x1xf32>
    %223 = arith.addf %219, %222 : vector<8x8x1xf32>
    %224 = arith.select %221, %223, %219 : vector<8x8x1xi1>, vector<8x8x1xf32>
    %cst_100 = arith.constant 9.99999993E-9 : f32
    %225 = vector.broadcast %cst_100 : f32 to vector<8x8x1xf32>
    %226 = arith.maximumf %224, %225 : vector<8x8x1xf32>
    %227 = vector.broadcast %226 : vector<8x8x1xf32> to vector<8x8x3xf32>
    %228 = arith.divf %215, %227 : vector<8x8x3xf32>
    %229 = vector.shape_cast %4 : vector<1x1xf32> to vector<1x1x1xf32>
    %230 = vector.broadcast %229 : vector<1x1x1xf32> to vector<8x8x3xf32>
    %231 = arith.mulf %228, %230 : vector<8x8x3xf32>
    %232 = vector.shape_cast %40 : vector<8x1xf32> to vector<1x8x1xf32>
    %233 = vector.broadcast %232 : vector<1x8x1xf32> to vector<8x8x3xf32>
    %234 = arith.mulf %231, %233 : vector<8x8x3xf32>
    %235 = vector.shape_cast %234 : vector<8x8x3xf32> to vector<64x3xf32>
    %236 = vector.extract_strided_slice %210 {offsets = [0, 0], sizes = [64, 1], strides = [1, 1]} : vector<64x2xf32> to vector<64x1xf32>
    %237 = vector.broadcast %236 : vector<64x1xf32> to vector<64x3xf32>
    %238 = arith.mulf %237, %235 : vector<64x3xf32>
    %239 = vector.shape_cast %238 : vector<64x3xf32> to vector<8x8x3xf32>
    %cst_101 = arith.constant dense<0.000000e+00> : vector<8x3xf32>
    %240 = vector.multi_reduction <add>, %239, %cst_101 [1] : vector<8x8x3xf32> to vector<8x3xf32>
    %241 = vector.extract_strided_slice %210 {offsets = [0, 1], sizes = [64, 1], strides = [1, 1]} : vector<64x2xf32> to vector<64x1xf32>
    %242 = vector.broadcast %241 : vector<64x1xf32> to vector<64x3xf32>
    %243 = arith.mulf %242, %235 : vector<64x3xf32>
    %244 = vector.shape_cast %243 : vector<64x3xf32> to vector<8x8x3xf32>
    %cst_102 = arith.constant dense<0.000000e+00> : vector<8x3xf32>
    %245 = vector.multi_reduction <add>, %244, %cst_102 [1] : vector<8x8x3xf32> to vector<8x3xf32>
    %246 = tpu.concatenate %107, %175, %108, %176, %115, %183, %116, %184, %240, %245 in 1 : vector<8x8xf32>, vector<8x8xf32>, vector<8x8xf32>, vector<8x8xf32>, vector<8x12xf32>, vector<8x12xf32>, vector<8x12xf32>, vector<8x12xf32>, vector<8x3xf32>, vector<8x3xf32> -> vector<8x86xf32>
    %c0_103 = arith.constant 0 : index
    %c0_104 = arith.constant 0 : index
    %c0_105 = arith.constant 0 : index
    %247 = vector.load %arg28[%c0_103, %c0_104, %c0_105] : memref<1x8x86xf32, #tpu.memory_space<vmem>>, vector<1x8x86xf32>
    %248 = vector.shape_cast %247 : vector<1x8x86xf32> to vector<8x86xf32>
    %249 = vector.shape_cast %246 : vector<8x86xf32> to vector<1x8x86xf32>
    tpu.vector_store %arg28[%c0_103, %c0_104, %c0_105], %249 {strides = array<i32>} : memref<1x8x86xf32, #tpu.memory_space<vmem>>, vector<1x8x86xf32>,
    %250 = vector.extract_strided_slice %58 {offsets = [0, 0], sizes = [64, 8], strides = [1, 1]} : vector<64x24xf32> to vector<64x8xf32>
    %251 = vector.extract_strided_slice %58 {offsets = [0, 8], sizes = [64, 8], strides = [1, 1]} : vector<64x24xf32> to vector<64x8xf32>
    %252 = vector.extract_strided_slice %58 {offsets = [0, 16], sizes = [64, 8], strides = [1, 1]} : vector<64x24xf32> to vector<64x8xf32>
    %253 = arith.truncf %250 : vector<64x8xf32> to vector<64x8xbf16>
    %254 = arith.truncf %5 : vector<8x8xf32> to vector<8x8xbf16>
    %cst_106 = arith.constant dense<0.000000e+00> : vector<64x8xf32>
    %255 = tpu.matmul %253, %254, %cst_106 {dimension_numbers = #tpu.dot_dimension_numbers<[1], [0], [0], [1], [0, 0, 1, 1], [], []>} : vector<64x8xbf16>, vector<8x8xbf16>, vector<64x8xf32> -> vector<64x8xf32>
    %256 = arith.truncf %251 : vector<64x8xf32> to vector<64x8xbf16>
    %257 = arith.truncf %5 : vector<8x8xf32> to vector<8x8xbf16>
    %cst_107 = arith.constant dense<0.000000e+00> : vector<64x8xf32>
    %258 = tpu.matmul %256, %257, %cst_107 {dimension_numbers = #tpu.dot_dimension_numbers<[1], [0], [0], [1], [0, 0, 1, 1], [], []>} : vector<64x8xbf16>, vector<8x8xbf16>, vector<64x8xf32> -> vector<64x8xf32>
    %259 = arith.truncf %252 : vector<64x8xf32> to vector<64x8xbf16>
    %260 = arith.truncf %5 : vector<8x8xf32> to vector<8x8xbf16>
    %cst_108 = arith.constant dense<0.000000e+00> : vector<64x8xf32>
    %261 = tpu.matmul %259, %260, %cst_108 {dimension_numbers = #tpu.dot_dimension_numbers<[1], [0], [0], [1], [0, 0, 1, 1], [], []>} : vector<64x8xbf16>, vector<8x8xbf16>, vector<64x8xf32> -> vector<64x8xf32>
    %262 = arith.mulf %255, %255 : vector<64x8xf32>
    %263 = arith.mulf %258, %258 : vector<64x8xf32>
    %264 = arith.addf %262, %263 : vector<64x8xf32>
    %265 = arith.mulf %261, %261 : vector<64x8xf32>
    %266 = arith.addf %264, %265 : vector<64x8xf32>
    %267 = math.sqrt %266 : vector<64x8xf32>
    %268 = arith.truncf %267 : vector<64x8xf32> to vector<64x8xbf16>
    %269 = arith.truncf %6 : vector<8x8xf32> to vector<8x8xbf16>
    %cst_109 = arith.constant dense<0.000000e+00> : vector<64x8xf32>
    %270 = tpu.matmul %268, %269, %cst_109 {dimension_numbers = #tpu.dot_dimension_numbers<[1], [0], [0], [1], [0, 0, 1, 1], [], []>} : vector<64x8xbf16>, vector<8x8xbf16>, vector<64x8xf32> -> vector<64x8xf32>
    %271 = arith.truncf %57 : vector<64x16xf32> to vector<64x16xbf16>
    %272 = arith.truncf %7 : vector<16x8xf32> to vector<16x8xbf16>
    %cst_110 = arith.constant dense<0.000000e+00> : vector<64x8xf32>
    %273 = tpu.matmul %271, %272, %cst_110 {dimension_numbers = #tpu.dot_dimension_numbers<[1], [0], [0], [1], [0, 0, 1, 1], [], []>} : vector<64x16xbf16>, vector<16x8xbf16>, vector<64x8xf32> -> vector<64x8xf32>
    %274 = arith.addf %270, %273 : vector<64x8xf32>
    %275 = vector.broadcast %8 : vector<1x8xf32> to vector<64x8xf32>
    %276 = arith.addf %274, %275 : vector<64x8xf32>
    %277 = arith.truncf %276 : vector<64x8xf32> to vector<64x8xbf16>
    %278 = arith.truncf %9 : vector<8x4xf32> to vector<8x4xbf16>
    %cst_111 = arith.constant dense<0.000000e+00> : vector<64x4xf32>
    %279 = tpu.matmul %277, %278, %cst_111 {dimension_numbers = #tpu.dot_dimension_numbers<[1], [0], [0], [1], [0, 0, 1, 1], [], []>} : vector<64x8xbf16>, vector<8x4xbf16>, vector<64x4xf32> -> vector<64x4xf32>
    %280 = vector.broadcast %10 : vector<1x4xf32> to vector<64x4xf32>
    %281 = arith.addf %279, %280 : vector<64x4xf32>
    %cst_112 = arith.constant 0.000000e+00 : f32
    %282 = vector.broadcast %cst_112 : f32 to vector<64x4xf32>
    %283 = arith.subf %282, %281 : vector<64x4xf32>
    %284 = math.exp %283 : vector<64x4xf32>
    %cst_113 = arith.constant 1.000000e+00 : f32
    %285 = vector.broadcast %cst_113 : f32 to vector<64x4xf32>
    %286 = arith.addf %285, %284 : vector<64x4xf32>
    %287 = tpu.reciprocal %286 {approx = true} : vector<64x4xf32> -> vector<64x4xf32>
    %288 = arith.truncf %255 : vector<64x8xf32> to vector<64x8xbf16>
    %289 = arith.truncf %11 : vector<8x4xf32> to vector<8x4xbf16>
    %cst_114 = arith.constant dense<0.000000e+00> : vector<64x4xf32>
    %290 = tpu.matmul %288, %289, %cst_114 {dimension_numbers = #tpu.dot_dimension_numbers<[1], [0], [0], [1], [0, 0, 1, 1], [], []>} : vector<64x8xbf16>, vector<8x4xbf16>, vector<64x4xf32> -> vector<64x4xf32>
    %291 = arith.mulf %287, %290 : vector<64x4xf32>
    %292 = arith.truncf %258 : vector<64x8xf32> to vector<64x8xbf16>
    %293 = arith.truncf %11 : vector<8x4xf32> to vector<8x4xbf16>
    %cst_115 = arith.constant dense<0.000000e+00> : vector<64x4xf32>
    %294 = tpu.matmul %292, %293, %cst_115 {dimension_numbers = #tpu.dot_dimension_numbers<[1], [0], [0], [1], [0, 0, 1, 1], [], []>} : vector<64x8xbf16>, vector<8x4xbf16>, vector<64x4xf32> -> vector<64x4xf32>
    %295 = arith.mulf %287, %294 : vector<64x4xf32>
    %296 = arith.truncf %261 : vector<64x8xf32> to vector<64x8xbf16>
    %297 = arith.truncf %11 : vector<8x4xf32> to vector<8x4xbf16>
    %cst_116 = arith.constant dense<0.000000e+00> : vector<64x4xf32>
    %298 = tpu.matmul %296, %297, %cst_116 {dimension_numbers = #tpu.dot_dimension_numbers<[1], [0], [0], [1], [0, 0, 1, 1], [], []>} : vector<64x8xbf16>, vector<8x4xbf16>, vector<64x4xf32> -> vector<64x4xf32>
    %299 = arith.mulf %287, %298 : vector<64x4xf32>
    %cst_117 = arith.constant 0.000000e+00 : f32
    %300 = vector.broadcast %cst_117 : f32 to vector<64x8xf32>
    %301 = arith.cmpf oge, %276, %300 : vector<64x8xf32>
    %cst_118 = arith.constant 0.00999999977 : f32
    %302 = vector.broadcast %cst_118 : f32 to vector<64x8xf32>
    %303 = arith.mulf %302, %276 : vector<64x8xf32>
    %304 = arith.select %301, %276, %303 : vector<64x8xi1>, vector<64x8xf32>
    %305 = arith.truncf %291 : vector<64x4xf32> to vector<64x4xbf16>
    %306 = arith.truncf %12 : vector<4x4xf32> to vector<4x4xbf16>
    %cst_119 = arith.constant dense<0.000000e+00> : vector<64x4xf32>
    %307 = tpu.matmul %305, %306, %cst_119 {dimension_numbers = #tpu.dot_dimension_numbers<[1], [0], [0], [1], [0, 0, 1, 1], [], []>} : vector<64x4xbf16>, vector<4x4xbf16>, vector<64x4xf32> -> vector<64x4xf32>
    %308 = arith.truncf %295 : vector<64x4xf32> to vector<64x4xbf16>
    %309 = arith.truncf %12 : vector<4x4xf32> to vector<4x4xbf16>
    %cst_120 = arith.constant dense<0.000000e+00> : vector<64x4xf32>
    %310 = tpu.matmul %308, %309, %cst_120 {dimension_numbers = #tpu.dot_dimension_numbers<[1], [0], [0], [1], [0, 0, 1, 1], [], []>} : vector<64x4xbf16>, vector<4x4xbf16>, vector<64x4xf32> -> vector<64x4xf32>
    %311 = arith.truncf %299 : vector<64x4xf32> to vector<64x4xbf16>
    %312 = arith.truncf %12 : vector<4x4xf32> to vector<4x4xbf16>
    %cst_121 = arith.constant dense<0.000000e+00> : vector<64x4xf32>
    %313 = tpu.matmul %311, %312, %cst_121 {dimension_numbers = #tpu.dot_dimension_numbers<[1], [0], [0], [1], [0, 0, 1, 1], [], []>} : vector<64x4xbf16>, vector<4x4xbf16>, vector<64x4xf32> -> vector<64x4xf32>
    %314 = arith.mulf %307, %291 : vector<64x4xf32>
    %315 = arith.mulf %310, %295 : vector<64x4xf32>
    %316 = arith.addf %314, %315 : vector<64x4xf32>
    %317 = arith.mulf %313, %299 : vector<64x4xf32>
    %318 = arith.addf %316, %317 : vector<64x4xf32>
    %319 = arith.mulf %307, %307 : vector<64x4xf32>
    %320 = arith.mulf %310, %310 : vector<64x4xf32>
    %321 = arith.addf %319, %320 : vector<64x4xf32>
    %322 = arith.mulf %313, %313 : vector<64x4xf32>
    %323 = arith.addf %321, %322 : vector<64x4xf32>
    %324 = arith.mulf %307, %318 : vector<64x4xf32>
    %cst_122 = arith.constant 9.99999993E-9 : f32
    %325 = vector.broadcast %cst_122 : f32 to vector<64x4xf32>
    %326 = arith.addf %323, %325 : vector<64x4xf32>
    %327 = arith.divf %324, %326 : vector<64x4xf32>
    %328 = arith.subf %291, %327 : vector<64x4xf32>
    %cst_123 = arith.constant 0.00999999977 : f32
    %329 = vector.broadcast %cst_123 : f32 to vector<64x4xf32>
    %330 = arith.mulf %329, %291 : vector<64x4xf32>
    %cst_124 = arith.constant 0.000000e+00 : f32
    %331 = vector.broadcast %cst_124 : f32 to vector<64x4xf32>
    %332 = arith.cmpf oge, %318, %331 : vector<64x4xf32>
    %333 = arith.select %332, %291, %328 : vector<64x4xi1>, vector<64x4xf32>
    %cst_125 = arith.constant 9.900000e-01 : f32
    %334 = vector.broadcast %cst_125 : f32 to vector<64x4xf32>
    %335 = arith.mulf %334, %333 : vector<64x4xf32>
    %336 = arith.addf %330, %335 : vector<64x4xf32>
    %337 = arith.mulf %310, %318 : vector<64x4xf32>
    %cst_126 = arith.constant 9.99999993E-9 : f32
    %338 = vector.broadcast %cst_126 : f32 to vector<64x4xf32>
    %339 = arith.addf %323, %338 : vector<64x4xf32>
    %340 = arith.divf %337, %339 : vector<64x4xf32>
    %341 = arith.subf %295, %340 : vector<64x4xf32>
    %cst_127 = arith.constant 0.00999999977 : f32
    %342 = vector.broadcast %cst_127 : f32 to vector<64x4xf32>
    %343 = arith.mulf %342, %295 : vector<64x4xf32>
    %cst_128 = arith.constant 0.000000e+00 : f32
    %344 = vector.broadcast %cst_128 : f32 to vector<64x4xf32>
    %345 = arith.cmpf oge, %318, %344 : vector<64x4xf32>
    %346 = arith.select %345, %295, %341 : vector<64x4xi1>, vector<64x4xf32>
    %cst_129 = arith.constant 9.900000e-01 : f32
    %347 = vector.broadcast %cst_129 : f32 to vector<64x4xf32>
    %348 = arith.mulf %347, %346 : vector<64x4xf32>
    %349 = arith.addf %343, %348 : vector<64x4xf32>
    %350 = arith.mulf %313, %318 : vector<64x4xf32>
    %cst_130 = arith.constant 9.99999993E-9 : f32
    %351 = vector.broadcast %cst_130 : f32 to vector<64x4xf32>
    %352 = arith.addf %323, %351 : vector<64x4xf32>
    %353 = arith.divf %350, %352 : vector<64x4xf32>
    %354 = arith.subf %299, %353 : vector<64x4xf32>
    %cst_131 = arith.constant 0.00999999977 : f32
    %355 = vector.broadcast %cst_131 : f32 to vector<64x4xf32>
    %356 = arith.mulf %355, %299 : vector<64x4xf32>
    %cst_132 = arith.constant 0.000000e+00 : f32
    %357 = vector.broadcast %cst_132 : f32 to vector<64x4xf32>
    %358 = arith.cmpf oge, %318, %357 : vector<64x4xf32>
    %359 = arith.select %358, %299, %354 : vector<64x4xi1>, vector<64x4xf32>
    %cst_133 = arith.constant 9.900000e-01 : f32
    %360 = vector.broadcast %cst_133 : f32 to vector<64x4xf32>
    %361 = arith.mulf %360, %359 : vector<64x4xf32>
    %362 = arith.addf %356, %361 : vector<64x4xf32>
    %363 = tpu.concatenate %304, %336, %349, %362 in 1 : vector<64x8xf32>, vector<64x4xf32>, vector<64x4xf32>, vector<64x4xf32> -> vector<64x20xf32>
    %364 = vector.shape_cast %363 : vector<64x20xf32> to vector<8x8x20xf32>
    %c0_134 = arith.constant 0 : index
    %c0_135 = arith.constant 0 : index
    %c0_136 = arith.constant 0 : index
    %c0_137 = arith.constant 0 : index
    %365 = vector.load %arg29[%c0_134, %c0_135, %c0_136, %c0_137] : memref<1x8x8x20xf32, #tpu.memory_space<vmem>>, vector<1x8x8x20xf32>
    %366 = vector.shape_cast %365 : vector<1x8x8x20xf32> to vector<8x8x20xf32>
    %367 = vector.shape_cast %364 : vector<8x8x20xf32> to vector<1x8x8x20xf32>
    tpu.vector_store %arg29[%c0_134, %c0_135, %c0_136, %c0_137], %367 {strides = array<i32>} : memref<1x8x8x20xf32, #tpu.memory_space<vmem>>, vector<1x8x8x20xf32>,
    return
  }
  func.func @transform_0(%arg0: i32, %arg1: i32) -> (i32, i32, i32) {
    %c0_i32 = arith.constant 0 : i32
    %c0_i32_0 = arith.constant 0 : i32
    return %arg0, %arg1, %c0_i32 : i32, i32, i32
  }
  func.func @transform_1(%arg0: i32, %arg1: i32) -> (i32, i32, i32) {
    %c0_i32 = arith.constant 0 : i32
    %c0_i32_0 = arith.constant 0 : i32
    %c0_i32_1 = arith.constant 0 : i32
    return %arg0, %c0_i32, %c0_i32_0 : i32, i32, i32
  }
  func.func @transform_2(%arg0: i32, %arg1: i32) -> (i32, i32, i32) {
    %c0_i32 = arith.constant 0 : i32
    %c0_i32_0 = arith.constant 0 : i32
    %c0_i32_1 = arith.constant 0 : i32
    return %arg0, %c0_i32, %c0_i32_0 : i32, i32, i32
  }
  func.func @transform_3(%arg0: i32, %arg1: i32) -> (i32, i32, i32) {
    %c0_i32 = arith.constant 0 : i32
    %c0_i32_0 = arith.constant 0 : i32
    %c0_i32_1 = arith.constant 0 : i32
    return %arg0, %c0_i32, %c0_i32_0 : i32, i32, i32
  }
  func.func @transform_4(%arg0: i32, %arg1: i32) -> (i32, i32, i32) {
    %c0_i32 = arith.constant 0 : i32
    %c0_i32_0 = arith.constant 0 : i32
    return %arg0, %arg1, %c0_i32 : i32, i32, i32
  }
  func.func @transform_5(%arg0: i32, %arg1: i32) -> (i32, i32, i32) {
    %c0_i32 = arith.constant 0 : i32
    %c0_i32_0 = arith.constant 0 : i32
    %c0_i32_1 = arith.constant 0 : i32
    return %arg0, %c0_i32, %c0_i32_0 : i32, i32, i32
  }
  func.func @transform_6(%arg0: i32, %arg1: i32) -> (i32, i32, i32) {
    %c0_i32 = arith.constant 0 : i32
    %c0_i32_0 = arith.constant 0 : i32
    %c0_i32_1 = arith.constant 0 : i32
    return %arg0, %c0_i32, %c0_i32_0 : i32, i32, i32
  }
  func.func @transform_7(%arg0: i32, %arg1: i32) -> (i32, i32, i32) {
    %c0_i32 = arith.constant 0 : i32
    %c0_i32_0 = arith.constant 0 : i32
    %c0_i32_1 = arith.constant 0 : i32
    return %arg0, %c0_i32, %c0_i32_0 : i32, i32, i32
  }
  func.func @transform_8(%arg0: i32, %arg1: i32) -> (i32, i32, i32, i32) {
    %c0_i32 = arith.constant 0 : i32
    %c0_i32_0 = arith.constant 0 : i32
    %c0_i32_1 = arith.constant 0 : i32
    return %arg0, %arg1, %c0_i32, %c0_i32_0 : i32, i32, i32, i32
  }
  func.func @transform_9(%arg0: i32, %arg1: i32) -> (i32, i32, i32) {
    %c0_i32 = arith.constant 0 : i32
    %c0_i32_0 = arith.constant 0 : i32
    return %arg0, %arg1, %c0_i32 : i32, i32, i32
  }
  func.func @transform_10(%arg0: i32, %arg1: i32) -> (i32, i32, i32) {
    %c0_i32 = arith.constant 0 : i32
    %c0_i32_0 = arith.constant 0 : i32
    %c0_i32_1 = arith.constant 0 : i32
    return %arg0, %c0_i32, %c0_i32_0 : i32, i32, i32
  }
  func.func @transform_11(%arg0: i32, %arg1: i32) -> (i32, i32, i32) {
    %c0_i32 = arith.constant 0 : i32
    %c0_i32_0 = arith.constant 0 : i32
    %c0_i32_1 = arith.constant 0 : i32
    return %arg0, %c0_i32, %c0_i32_0 : i32, i32, i32
  }
  func.func @transform_12(%arg0: i32, %arg1: i32) -> (i32, i32, i32) {
    %c0_i32 = arith.constant 0 : i32
    %c0_i32_0 = arith.constant 0 : i32
    %c0_i32_1 = arith.constant 0 : i32
    return %arg0, %c0_i32, %c0_i32_0 : i32, i32, i32
  }
  func.func @transform_13(%arg0: i32, %arg1: i32) -> (i32, i32) {
    %c0_i32 = arith.constant 0 : i32
    %c0_i32_0 = arith.constant 0 : i32
    %c0_i32_1 = arith.constant 0 : i32
    return %c0_i32, %c0_i32_0 : i32, i32
  }
  func.func @transform_14(%arg0: i32, %arg1: i32) -> (i32, i32) {
    %c0_i32 = arith.constant 0 : i32
    %c0_i32_0 = arith.constant 0 : i32
    %c0_i32_1 = arith.constant 0 : i32
    return %c0_i32, %c0_i32_0 : i32, i32
  }
  func.func @transform_15(%arg0: i32, %arg1: i32) -> (i32, i32) {
    %c0_i32 = arith.constant 0 : i32
    %c0_i32_0 = arith.constant 0 : i32
    %c0_i32_1 = arith.constant 0 : i32
    return %c0_i32, %c0_i32_0 : i32, i32
  }
  func.func @transform_16(%arg0: i32, %arg1: i32) -> (i32, i32) {
    %c0_i32 = arith.constant 0 : i32
    %c0_i32_0 = arith.constant 0 : i32
    %c0_i32_1 = arith.constant 0 : i32
    return %c0_i32, %c0_i32_0 : i32, i32
  }
  func.func @transform_17(%arg0: i32, %arg1: i32) -> (i32, i32) {
    %c0_i32 = arith.constant 0 : i32
    %c0_i32_0 = arith.constant 0 : i32
    %c0_i32_1 = arith.constant 0 : i32
    return %c0_i32, %c0_i32_0 : i32, i32
  }
  func.func @transform_18(%arg0: i32, %arg1: i32) -> (i32, i32) {
    %c0_i32 = arith.constant 0 : i32
    %c0_i32_0 = arith.constant 0 : i32
    %c0_i32_1 = arith.constant 0 : i32
    return %c0_i32, %c0_i32_0 : i32, i32
  }
  func.func @transform_19(%arg0: i32, %arg1: i32) -> (i32, i32) {
    %c0_i32 = arith.constant 0 : i32
    %c0_i32_0 = arith.constant 0 : i32
    %c0_i32_1 = arith.constant 0 : i32
    return %c0_i32, %c0_i32_0 : i32, i32
  }
  func.func @transform_20(%arg0: i32, %arg1: i32) -> (i32, i32) {
    %c0_i32 = arith.constant 0 : i32
    %c0_i32_0 = arith.constant 0 : i32
    %c0_i32_1 = arith.constant 0 : i32
    return %c0_i32, %c0_i32_0 : i32, i32
  }
  func.func @transform_21(%arg0: i32, %arg1: i32) -> (i32, i32) {
    %c0_i32 = arith.constant 0 : i32
    %c0_i32_0 = arith.constant 0 : i32
    %c0_i32_1 = arith.constant 0 : i32
    return %c0_i32, %c0_i32_0 : i32, i32
  }
  func.func @transform_22(%arg0: i32, %arg1: i32) -> (i32, i32) {
    %c0_i32 = arith.constant 0 : i32
    %c0_i32_0 = arith.constant 0 : i32
    %c0_i32_1 = arith.constant 0 : i32
    return %c0_i32, %c0_i32_0 : i32, i32
  }
  func.func @transform_23(%arg0: i32, %arg1: i32) -> (i32, i32) {
    %c0_i32 = arith.constant 0 : i32
    %c0_i32_0 = arith.constant 0 : i32
    %c0_i32_1 = arith.constant 0 : i32
    return %c0_i32, %c0_i32_0 : i32, i32
  }
  func.func @transform_24(%arg0: i32, %arg1: i32) -> (i32, i32) {
    %c0_i32 = arith.constant 0 : i32
    %c0_i32_0 = arith.constant 0 : i32
    %c0_i32_1 = arith.constant 0 : i32
    return %c0_i32, %c0_i32_0 : i32, i32
  }
  func.func @transform_25(%arg0: i32, %arg1: i32) -> (i32, i32) {
    %c0_i32 = arith.constant 0 : i32
    %c0_i32_0 = arith.constant 0 : i32
    %c0_i32_1 = arith.constant 0 : i32
    return %c0_i32, %c0_i32_0 : i32, i32
  }
  func.func @transform_26(%arg0: i32, %arg1: i32) -> (i32, i32, i32) {
    %c0_i32 = arith.constant 0 : i32
    %c0_i32_0 = arith.constant 0 : i32
    return %arg0, %arg1, %c0_i32 : i32, i32, i32
  }
  func.func @transform_27(%arg0: i32, %arg1: i32) -> (i32, i32, i32, i32) {
    %c0_i32 = arith.constant 0 : i32
    %c0_i32_0 = arith.constant 0 : i32
    %c0_i32_1 = arith.constant 0 : i32
    return %arg0, %arg1, %c0_i32, %c0_i32_0 : i32, i32, i32, i32
  }
}

module attributes {stable_mosaic.version = 11 : i64} {
  func.func @kernel(%arg0: i32, %arg1: memref<16x8xf32, #tpu.memory_space<vmem>>, %arg2: memref<16x12xf32, #tpu.memory_space<vmem>>, %arg3: memref<4x4xf32, #tpu.memory_space<vmem>>, %arg4: memref<4x8xf32, #tpu.memory_space<vmem>>, %arg5: memref<8x8xf32, #tpu.memory_space<vmem>>, %arg6: memref<1x8xf32, #tpu.memory_space<vmem>>, %arg7: memref<8x1xf32, #tpu.memory_space<vmem>>, %arg8: memref<1x1xf32, #tpu.memory_space<vmem>>, %arg9: memref<4x1xf32, #tpu.memory_space<vmem>>, %arg10: memref<16x11xf32, #tpu.memory_space<vmem>>) attributes {dimension_semantics = [#tpu.dimension_semantics<parallel>], iteration_bounds = array<i64: 2>, scalar_prefetch = 0 : i64, scratch_operands = 0 : i64, tpu.core_type = #tpu.core_type<tc>, window_params = [{transform_indices = @transform_0, window_bounds = array<i64: 16, 8>}, {transform_indices = @transform_1, window_bounds = array<i64: 16, 12>}, {pipeline_mode = #tpu.pipeline_mode<synchronous>, transform_indices = @transform_2, window_bounds = array<i64: 4, 4>}, {pipeline_mode = #tpu.pipeline_mode<synchronous>, transform_indices = @transform_3, window_bounds = array<i64: 4, 8>}, {pipeline_mode = #tpu.pipeline_mode<synchronous>, transform_indices = @transform_4, window_bounds = array<i64: 8, 8>}, {pipeline_mode = #tpu.pipeline_mode<synchronous>, transform_indices = @transform_5, window_bounds = array<i64: 1, 8>}, {pipeline_mode = #tpu.pipeline_mode<synchronous>, transform_indices = @transform_6, window_bounds = array<i64: 8, 1>}, {pipeline_mode = #tpu.pipeline_mode<synchronous>, transform_indices = @transform_7, window_bounds = array<i64: 1, 1>}, {pipeline_mode = #tpu.pipeline_mode<synchronous>, transform_indices = @transform_8, window_bounds = array<i64: 4, 1>}, {transform_indices = @transform_9, window_bounds = array<i64: 16, 11>}]} {
    %c0 = arith.constant 0 : index
    %c0_0 = arith.constant 0 : index
    %0 = vector.load %arg1[%c0, %c0_0] : memref<16x8xf32, #tpu.memory_space<vmem>>, vector<16x8xf32>
    %c0_1 = arith.constant 0 : index
    %c0_2 = arith.constant 0 : index
    %1 = vector.load %arg2[%c0_1, %c0_2] : memref<16x12xf32, #tpu.memory_space<vmem>>, vector<16x4xf32>
    %c0_3 = arith.constant 0 : index
    %c4 = arith.constant 4 : index
    %2 = vector.load %arg2[%c0_3, %c4] : memref<16x12xf32, #tpu.memory_space<vmem>>, vector<16x4xf32>
    %c0_4 = arith.constant 0 : index
    %c8 = arith.constant 8 : index
    %3 = vector.load %arg2[%c0_4, %c8] : memref<16x12xf32, #tpu.memory_space<vmem>>, vector<16x4xf32>
    %c0_5 = arith.constant 0 : index
    %c0_6 = arith.constant 0 : index
    %4 = vector.load %arg3[%c0_5, %c0_6] : memref<4x4xf32, #tpu.memory_space<vmem>>, vector<4x4xf32>
    %c0_7 = arith.constant 0 : index
    %c0_8 = arith.constant 0 : index
    %5 = vector.load %arg4[%c0_7, %c0_8] : memref<4x8xf32, #tpu.memory_space<vmem>>, vector<4x8xf32>
    %c0_9 = arith.constant 0 : index
    %c0_10 = arith.constant 0 : index
    %6 = vector.load %arg5[%c0_9, %c0_10] : memref<8x8xf32, #tpu.memory_space<vmem>>, vector<8x8xf32>
    %c0_11 = arith.constant 0 : index
    %c0_12 = arith.constant 0 : index
    %7 = vector.load %arg6[%c0_11, %c0_12] : memref<1x8xf32, #tpu.memory_space<vmem>>, vector<1x8xf32>
    %c0_13 = arith.constant 0 : index
    %c0_14 = arith.constant 0 : index
    %8 = vector.load %arg7[%c0_13, %c0_14] : memref<8x1xf32, #tpu.memory_space<vmem>>, vector<8x1xf32>
    %c0_15 = arith.constant 0 : index
    %c0_16 = arith.constant 0 : index
    %9 = vector.load %arg8[%c0_15, %c0_16] : memref<1x1xf32, #tpu.memory_space<vmem>>, vector<1x1xf32>
    %c0_17 = arith.constant 0 : index
    %c0_18 = arith.constant 0 : index
    %10 = vector.load %arg9[%c0_17, %c0_18] : memref<4x1xf32, #tpu.memory_space<vmem>>, vector<4x1xf32>
    %11 = arith.truncf %1 : vector<16x4xf32> to vector<16x4xbf16>
    %12 = arith.truncf %4 : vector<4x4xf32> to vector<4x4xbf16>
    %cst = arith.constant dense<0.000000e+00> : vector<16x4xf32>
    %13 = tpu.matmul %11, %12, %cst {dimension_numbers = #tpu.dot_dimension_numbers<[1], [0], [0], [1], [0, 0, 1, 1], [], []>} : vector<16x4xbf16>, vector<4x4xbf16>, vector<16x4xf32> -> vector<16x4xf32>
    %14 = arith.truncf %2 : vector<16x4xf32> to vector<16x4xbf16>
    %15 = arith.truncf %4 : vector<4x4xf32> to vector<4x4xbf16>
    %cst_19 = arith.constant dense<0.000000e+00> : vector<16x4xf32>
    %16 = tpu.matmul %14, %15, %cst_19 {dimension_numbers = #tpu.dot_dimension_numbers<[1], [0], [0], [1], [0, 0, 1, 1], [], []>} : vector<16x4xbf16>, vector<4x4xbf16>, vector<16x4xf32> -> vector<16x4xf32>
    %17 = arith.truncf %3 : vector<16x4xf32> to vector<16x4xbf16>
    %18 = arith.truncf %4 : vector<4x4xf32> to vector<4x4xbf16>
    %cst_20 = arith.constant dense<0.000000e+00> : vector<16x4xf32>
    %19 = tpu.matmul %17, %18, %cst_20 {dimension_numbers = #tpu.dot_dimension_numbers<[1], [0], [0], [1], [0, 0, 1, 1], [], []>} : vector<16x4xbf16>, vector<4x4xbf16>, vector<16x4xf32> -> vector<16x4xf32>
    %20 = arith.mulf %13, %13 : vector<16x4xf32>
    %21 = arith.mulf %16, %16 : vector<16x4xf32>
    %22 = arith.addf %20, %21 : vector<16x4xf32>
    %23 = arith.mulf %19, %19 : vector<16x4xf32>
    %24 = arith.addf %22, %23 : vector<16x4xf32>
    %25 = math.sqrt %24 : vector<16x4xf32>
    %26 = arith.truncf %25 : vector<16x4xf32> to vector<16x4xbf16>
    %27 = arith.truncf %5 : vector<4x8xf32> to vector<4x8xbf16>
    %cst_21 = arith.constant dense<0.000000e+00> : vector<16x8xf32>
    %28 = tpu.matmul %26, %27, %cst_21 {dimension_numbers = #tpu.dot_dimension_numbers<[1], [0], [0], [1], [0, 0, 1, 1], [], []>} : vector<16x4xbf16>, vector<4x8xbf16>, vector<16x8xf32> -> vector<16x8xf32>
    %29 = arith.truncf %0 : vector<16x8xf32> to vector<16x8xbf16>
    %30 = arith.truncf %6 : vector<8x8xf32> to vector<8x8xbf16>
    %cst_22 = arith.constant dense<0.000000e+00> : vector<16x8xf32>
    %31 = tpu.matmul %29, %30, %cst_22 {dimension_numbers = #tpu.dot_dimension_numbers<[1], [0], [0], [1], [0, 0, 1, 1], [], []>} : vector<16x8xbf16>, vector<8x8xbf16>, vector<16x8xf32> -> vector<16x8xf32>
    %32 = arith.addf %28, %31 : vector<16x8xf32>
    %33 = vector.broadcast %7 : vector<1x8xf32> to vector<16x8xf32>
    %34 = arith.addf %32, %33 : vector<16x8xf32>
    %35 = arith.truncf %34 : vector<16x8xf32> to vector<16x8xbf16>
    %36 = arith.truncf %8 : vector<8x1xf32> to vector<8x1xbf16>
    %cst_23 = arith.constant dense<0.000000e+00> : vector<16x1xf32>
    %37 = tpu.matmul %35, %36, %cst_23 {dimension_numbers = #tpu.dot_dimension_numbers<[1], [0], [0], [1], [0, 0, 1, 1], [], []>} : vector<16x8xbf16>, vector<8x1xbf16>, vector<16x1xf32> -> vector<16x1xf32>
    %38 = vector.broadcast %9 : vector<1x1xf32> to vector<16x1xf32>
    %39 = arith.addf %37, %38 : vector<16x1xf32>
    %cst_24 = arith.constant 0.000000e+00 : f32
    %40 = vector.broadcast %cst_24 : f32 to vector<16x1xf32>
    %41 = arith.subf %40, %39 : vector<16x1xf32>
    %42 = math.exp %41 : vector<16x1xf32>
    %cst_25 = arith.constant 1.000000e+00 : f32
    %43 = vector.broadcast %cst_25 : f32 to vector<16x1xf32>
    %44 = arith.addf %43, %42 : vector<16x1xf32>
    %45 = tpu.reciprocal %44 {approx = true} : vector<16x1xf32> -> vector<16x1xf32>
    %46 = arith.truncf %13 : vector<16x4xf32> to vector<16x4xbf16>
    %47 = arith.truncf %10 : vector<4x1xf32> to vector<4x1xbf16>
    %cst_26 = arith.constant dense<0.000000e+00> : vector<16x1xf32>
    %48 = tpu.matmul %46, %47, %cst_26 {dimension_numbers = #tpu.dot_dimension_numbers<[1], [0], [0], [1], [0, 0, 1, 1], [], []>} : vector<16x4xbf16>, vector<4x1xbf16>, vector<16x1xf32> -> vector<16x1xf32>
    %49 = arith.mulf %45, %48 : vector<16x1xf32>
    %50 = arith.truncf %16 : vector<16x4xf32> to vector<16x4xbf16>
    %51 = arith.truncf %10 : vector<4x1xf32> to vector<4x1xbf16>
    %cst_27 = arith.constant dense<0.000000e+00> : vector<16x1xf32>
    %52 = tpu.matmul %50, %51, %cst_27 {dimension_numbers = #tpu.dot_dimension_numbers<[1], [0], [0], [1], [0, 0, 1, 1], [], []>} : vector<16x4xbf16>, vector<4x1xbf16>, vector<16x1xf32> -> vector<16x1xf32>
    %53 = arith.mulf %45, %52 : vector<16x1xf32>
    %54 = arith.truncf %19 : vector<16x4xf32> to vector<16x4xbf16>
    %55 = arith.truncf %10 : vector<4x1xf32> to vector<4x1xbf16>
    %cst_28 = arith.constant dense<0.000000e+00> : vector<16x1xf32>
    %56 = tpu.matmul %54, %55, %cst_28 {dimension_numbers = #tpu.dot_dimension_numbers<[1], [0], [0], [1], [0, 0, 1, 1], [], []>} : vector<16x4xbf16>, vector<4x1xbf16>, vector<16x1xf32> -> vector<16x1xf32>
    %57 = arith.mulf %45, %56 : vector<16x1xf32>
    %58 = tpu.concatenate %34, %49, %53, %57 in 1 : vector<16x8xf32>, vector<16x1xf32>, vector<16x1xf32>, vector<16x1xf32> -> vector<16x11xf32>
    %c0_29 = arith.constant 0 : index
    %c0_30 = arith.constant 0 : index
    %59 = vector.load %arg10[%c0_29, %c0_30] : memref<16x11xf32, #tpu.memory_space<vmem>>, vector<16x11xf32>
    tpu.vector_store %arg10[%c0_29, %c0_30], %58 {strides = array<i32>} : memref<16x11xf32, #tpu.memory_space<vmem>>, vector<16x11xf32>,
    return
  }
  func.func @transform_0(%arg0: i32) -> (i32, i32) {
    %c0_i32 = arith.constant 0 : i32
    %c0_i32_0 = arith.constant 0 : i32
    return %arg0, %c0_i32 : i32, i32
  }
  func.func @transform_1(%arg0: i32) -> (i32, i32) {
    %c0_i32 = arith.constant 0 : i32
    %c0_i32_0 = arith.constant 0 : i32
    return %arg0, %c0_i32 : i32, i32
  }
  func.func @transform_2(%arg0: i32) -> (i32, i32) {
    %c0_i32 = arith.constant 0 : i32
    %c0_i32_0 = arith.constant 0 : i32
    %c0_i32_1 = arith.constant 0 : i32
    return %c0_i32, %c0_i32_0 : i32, i32
  }
  func.func @transform_3(%arg0: i32) -> (i32, i32) {
    %c0_i32 = arith.constant 0 : i32
    %c0_i32_0 = arith.constant 0 : i32
    %c0_i32_1 = arith.constant 0 : i32
    return %c0_i32, %c0_i32_0 : i32, i32
  }
  func.func @transform_4(%arg0: i32) -> (i32, i32) {
    %c0_i32 = arith.constant 0 : i32
    %c0_i32_0 = arith.constant 0 : i32
    %c0_i32_1 = arith.constant 0 : i32
    return %c0_i32, %c0_i32_0 : i32, i32
  }
  func.func @transform_5(%arg0: i32) -> (i32, i32) {
    %c0_i32 = arith.constant 0 : i32
    %c0_i32_0 = arith.constant 0 : i32
    %c0_i32_1 = arith.constant 0 : i32
    return %c0_i32, %c0_i32_0 : i32, i32
  }
  func.func @transform_6(%arg0: i32) -> (i32, i32) {
    %c0_i32 = arith.constant 0 : i32
    %c0_i32_0 = arith.constant 0 : i32
    %c0_i32_1 = arith.constant 0 : i32
    return %c0_i32, %c0_i32_0 : i32, i32
  }
  func.func @transform_7(%arg0: i32) -> (i32, i32) {
    %c0_i32 = arith.constant 0 : i32
    %c0_i32_0 = arith.constant 0 : i32
    %c0_i32_1 = arith.constant 0 : i32
    return %c0_i32, %c0_i32_0 : i32, i32
  }
  func.func @transform_8(%arg0: i32) -> (i32, i32) {
    %c0_i32 = arith.constant 0 : i32
    %c0_i32_0 = arith.constant 0 : i32
    %c0_i32_1 = arith.constant 0 : i32
    return %c0_i32, %c0_i32_0 : i32, i32
  }
  func.func @transform_9(%arg0: i32) -> (i32, i32) {
    %c0_i32 = arith.constant 0 : i32
    %c0_i32_0 = arith.constant 0 : i32
    return %arg0, %c0_i32 : i32, i32
  }
}

module attributes {stable_mosaic.version = 11 : i64} {
  func.func @kernel(%arg0: i32, %arg1: memref<16x8xf32, #tpu.memory_space<vmem>>, %arg2: memref<16x12xf32, #tpu.memory_space<vmem>>, %arg3: memref<4x4xf32, #tpu.memory_space<vmem>>, %arg4: memref<4x8xf32, #tpu.memory_space<vmem>>, %arg5: memref<8x8xf32, #tpu.memory_space<vmem>>, %arg6: memref<1x8xf32, #tpu.memory_space<vmem>>, %arg7: memref<8x4xf32, #tpu.memory_space<vmem>>, %arg8: memref<1x4xf32, #tpu.memory_space<vmem>>, %arg9: memref<4x4xf32, #tpu.memory_space<vmem>>, %arg10: memref<4x4xf32, #tpu.memory_space<vmem>>, %arg11: memref<16x20xf32, #tpu.memory_space<vmem>>) attributes {dimension_semantics = [#tpu.dimension_semantics<parallel>], iteration_bounds = array<i64: 2>, scalar_prefetch = 0 : i64, scratch_operands = 0 : i64, tpu.core_type = #tpu.core_type<tc>, window_params = [{transform_indices = @transform_0, window_bounds = array<i64: 16, 8>}, {transform_indices = @transform_1, window_bounds = array<i64: 16, 12>}, {pipeline_mode = #tpu.pipeline_mode<synchronous>, transform_indices = @transform_2, window_bounds = array<i64: 4, 4>}, {pipeline_mode = #tpu.pipeline_mode<synchronous>, transform_indices = @transform_3, window_bounds = array<i64: 4, 8>}, {pipeline_mode = #tpu.pipeline_mode<synchronous>, transform_indices = @transform_4, window_bounds = array<i64: 8, 8>}, {pipeline_mode = #tpu.pipeline_mode<synchronous>, transform_indices = @transform_5, window_bounds = array<i64: 1, 8>}, {pipeline_mode = #tpu.pipeline_mode<synchronous>, transform_indices = @transform_6, window_bounds = array<i64: 8, 4>}, {pipeline_mode = #tpu.pipeline_mode<synchronous>, transform_indices = @transform_7, window_bounds = array<i64: 1, 4>}, {pipeline_mode = #tpu.pipeline_mode<synchronous>, transform_indices = @transform_8, window_bounds = array<i64: 4, 4>}, {pipeline_mode = #tpu.pipeline_mode<synchronous>, transform_indices = @transform_9, window_bounds = array<i64: 4, 4>}, {transform_indices = @transform_10, window_bounds = array<i64: 16, 20>}]} {
    %c0 = arith.constant 0 : index
    %c0_0 = arith.constant 0 : index
    %0 = vector.load %arg1[%c0, %c0_0] : memref<16x8xf32, #tpu.memory_space<vmem>>, vector<16x8xf32>
    %c0_1 = arith.constant 0 : index
    %c0_2 = arith.constant 0 : index
    %1 = vector.load %arg2[%c0_1, %c0_2] : memref<16x12xf32, #tpu.memory_space<vmem>>, vector<16x4xf32>
    %c0_3 = arith.constant 0 : index
    %c4 = arith.constant 4 : index
    %2 = vector.load %arg2[%c0_3, %c4] : memref<16x12xf32, #tpu.memory_space<vmem>>, vector<16x4xf32>
    %c0_4 = arith.constant 0 : index
    %c8 = arith.constant 8 : index
    %3 = vector.load %arg2[%c0_4, %c8] : memref<16x12xf32, #tpu.memory_space<vmem>>, vector<16x4xf32>
    %c0_5 = arith.constant 0 : index
    %c0_6 = arith.constant 0 : index
    %4 = vector.load %arg3[%c0_5, %c0_6] : memref<4x4xf32, #tpu.memory_space<vmem>>, vector<4x4xf32>
    %c0_7 = arith.constant 0 : index
    %c0_8 = arith.constant 0 : index
    %5 = vector.load %arg4[%c0_7, %c0_8] : memref<4x8xf32, #tpu.memory_space<vmem>>, vector<4x8xf32>
    %c0_9 = arith.constant 0 : index
    %c0_10 = arith.constant 0 : index
    %6 = vector.load %arg5[%c0_9, %c0_10] : memref<8x8xf32, #tpu.memory_space<vmem>>, vector<8x8xf32>
    %c0_11 = arith.constant 0 : index
    %c0_12 = arith.constant 0 : index
    %7 = vector.load %arg6[%c0_11, %c0_12] : memref<1x8xf32, #tpu.memory_space<vmem>>, vector<1x8xf32>
    %c0_13 = arith.constant 0 : index
    %c0_14 = arith.constant 0 : index
    %8 = vector.load %arg7[%c0_13, %c0_14] : memref<8x4xf32, #tpu.memory_space<vmem>>, vector<8x4xf32>
    %c0_15 = arith.constant 0 : index
    %c0_16 = arith.constant 0 : index
    %9 = vector.load %arg8[%c0_15, %c0_16] : memref<1x4xf32, #tpu.memory_space<vmem>>, vector<1x4xf32>
    %c0_17 = arith.constant 0 : index
    %c0_18 = arith.constant 0 : index
    %10 = vector.load %arg9[%c0_17, %c0_18] : memref<4x4xf32, #tpu.memory_space<vmem>>, vector<4x4xf32>
    %11 = arith.truncf %1 : vector<16x4xf32> to vector<16x4xbf16>
    %12 = arith.truncf %4 : vector<4x4xf32> to vector<4x4xbf16>
    %cst = arith.constant dense<0.000000e+00> : vector<16x4xf32>
    %13 = tpu.matmul %11, %12, %cst {dimension_numbers = #tpu.dot_dimension_numbers<[1], [0], [0], [1], [0, 0, 1, 1], [], []>} : vector<16x4xbf16>, vector<4x4xbf16>, vector<16x4xf32> -> vector<16x4xf32>
    %14 = arith.truncf %2 : vector<16x4xf32> to vector<16x4xbf16>
    %15 = arith.truncf %4 : vector<4x4xf32> to vector<4x4xbf16>
    %cst_19 = arith.constant dense<0.000000e+00> : vector<16x4xf32>
    %16 = tpu.matmul %14, %15, %cst_19 {dimension_numbers = #tpu.dot_dimension_numbers<[1], [0], [0], [1], [0, 0, 1, 1], [], []>} : vector<16x4xbf16>, vector<4x4xbf16>, vector<16x4xf32> -> vector<16x4xf32>
    %17 = arith.truncf %3 : vector<16x4xf32> to vector<16x4xbf16>
    %18 = arith.truncf %4 : vector<4x4xf32> to vector<4x4xbf16>
    %cst_20 = arith.constant dense<0.000000e+00> : vector<16x4xf32>
    %19 = tpu.matmul %17, %18, %cst_20 {dimension_numbers = #tpu.dot_dimension_numbers<[1], [0], [0], [1], [0, 0, 1, 1], [], []>} : vector<16x4xbf16>, vector<4x4xbf16>, vector<16x4xf32> -> vector<16x4xf32>
    %20 = arith.mulf %13, %13 : vector<16x4xf32>
    %21 = arith.mulf %16, %16 : vector<16x4xf32>
    %22 = arith.addf %20, %21 : vector<16x4xf32>
    %23 = arith.mulf %19, %19 : vector<16x4xf32>
    %24 = arith.addf %22, %23 : vector<16x4xf32>
    %25 = math.sqrt %24 : vector<16x4xf32>
    %26 = arith.truncf %25 : vector<16x4xf32> to vector<16x4xbf16>
    %27 = arith.truncf %5 : vector<4x8xf32> to vector<4x8xbf16>
    %cst_21 = arith.constant dense<0.000000e+00> : vector<16x8xf32>
    %28 = tpu.matmul %26, %27, %cst_21 {dimension_numbers = #tpu.dot_dimension_numbers<[1], [0], [0], [1], [0, 0, 1, 1], [], []>} : vector<16x4xbf16>, vector<4x8xbf16>, vector<16x8xf32> -> vector<16x8xf32>
    %29 = arith.truncf %0 : vector<16x8xf32> to vector<16x8xbf16>
    %30 = arith.truncf %6 : vector<8x8xf32> to vector<8x8xbf16>
    %cst_22 = arith.constant dense<0.000000e+00> : vector<16x8xf32>
    %31 = tpu.matmul %29, %30, %cst_22 {dimension_numbers = #tpu.dot_dimension_numbers<[1], [0], [0], [1], [0, 0, 1, 1], [], []>} : vector<16x8xbf16>, vector<8x8xbf16>, vector<16x8xf32> -> vector<16x8xf32>
    %32 = arith.addf %28, %31 : vector<16x8xf32>
    %33 = vector.broadcast %7 : vector<1x8xf32> to vector<16x8xf32>
    %34 = arith.addf %32, %33 : vector<16x8xf32>
    %35 = arith.truncf %34 : vector<16x8xf32> to vector<16x8xbf16>
    %36 = arith.truncf %8 : vector<8x4xf32> to vector<8x4xbf16>
    %cst_23 = arith.constant dense<0.000000e+00> : vector<16x4xf32>
    %37 = tpu.matmul %35, %36, %cst_23 {dimension_numbers = #tpu.dot_dimension_numbers<[1], [0], [0], [1], [0, 0, 1, 1], [], []>} : vector<16x8xbf16>, vector<8x4xbf16>, vector<16x4xf32> -> vector<16x4xf32>
    %38 = vector.broadcast %9 : vector<1x4xf32> to vector<16x4xf32>
    %39 = arith.addf %37, %38 : vector<16x4xf32>
    %cst_24 = arith.constant 0.000000e+00 : f32
    %40 = vector.broadcast %cst_24 : f32 to vector<16x4xf32>
    %41 = arith.subf %40, %39 : vector<16x4xf32>
    %42 = math.exp %41 : vector<16x4xf32>
    %cst_25 = arith.constant 1.000000e+00 : f32
    %43 = vector.broadcast %cst_25 : f32 to vector<16x4xf32>
    %44 = arith.addf %43, %42 : vector<16x4xf32>
    %45 = tpu.reciprocal %44 {approx = true} : vector<16x4xf32> -> vector<16x4xf32>
    %46 = arith.truncf %13 : vector<16x4xf32> to vector<16x4xbf16>
    %47 = arith.truncf %10 : vector<4x4xf32> to vector<4x4xbf16>
    %cst_26 = arith.constant dense<0.000000e+00> : vector<16x4xf32>
    %48 = tpu.matmul %46, %47, %cst_26 {dimension_numbers = #tpu.dot_dimension_numbers<[1], [0], [0], [1], [0, 0, 1, 1], [], []>} : vector<16x4xbf16>, vector<4x4xbf16>, vector<16x4xf32> -> vector<16x4xf32>
    %49 = arith.mulf %45, %48 : vector<16x4xf32>
    %50 = arith.truncf %16 : vector<16x4xf32> to vector<16x4xbf16>
    %51 = arith.truncf %10 : vector<4x4xf32> to vector<4x4xbf16>
    %cst_27 = arith.constant dense<0.000000e+00> : vector<16x4xf32>
    %52 = tpu.matmul %50, %51, %cst_27 {dimension_numbers = #tpu.dot_dimension_numbers<[1], [0], [0], [1], [0, 0, 1, 1], [], []>} : vector<16x4xbf16>, vector<4x4xbf16>, vector<16x4xf32> -> vector<16x4xf32>
    %53 = arith.mulf %45, %52 : vector<16x4xf32>
    %54 = arith.truncf %19 : vector<16x4xf32> to vector<16x4xbf16>
    %55 = arith.truncf %10 : vector<4x4xf32> to vector<4x4xbf16>
    %cst_28 = arith.constant dense<0.000000e+00> : vector<16x4xf32>
    %56 = tpu.matmul %54, %55, %cst_28 {dimension_numbers = #tpu.dot_dimension_numbers<[1], [0], [0], [1], [0, 0, 1, 1], [], []>} : vector<16x4xbf16>, vector<4x4xbf16>, vector<16x4xf32> -> vector<16x4xf32>
    %57 = arith.mulf %45, %56 : vector<16x4xf32>
    %cst_29 = arith.constant 0.000000e+00 : f32
    %58 = vector.broadcast %cst_29 : f32 to vector<16x8xf32>
    %59 = arith.cmpf oge, %34, %58 : vector<16x8xf32>
    %cst_30 = arith.constant 0.00999999977 : f32
    %60 = vector.broadcast %cst_30 : f32 to vector<16x8xf32>
    %61 = arith.mulf %60, %34 : vector<16x8xf32>
    %62 = arith.select %59, %34, %61 : vector<16x8xi1>, vector<16x8xf32>
    %c0_31 = arith.constant 0 : index
    %c0_32 = arith.constant 0 : index
    %63 = vector.load %arg10[%c0_31, %c0_32] : memref<4x4xf32, #tpu.memory_space<vmem>>, vector<4x4xf32>
    %64 = arith.truncf %49 : vector<16x4xf32> to vector<16x4xbf16>
    %65 = arith.truncf %63 : vector<4x4xf32> to vector<4x4xbf16>
    %cst_33 = arith.constant dense<0.000000e+00> : vector<16x4xf32>
    %66 = tpu.matmul %64, %65, %cst_33 {dimension_numbers = #tpu.dot_dimension_numbers<[1], [0], [0], [1], [0, 0, 1, 1], [], []>} : vector<16x4xbf16>, vector<4x4xbf16>, vector<16x4xf32> -> vector<16x4xf32>
    %67 = arith.truncf %53 : vector<16x4xf32> to vector<16x4xbf16>
    %68 = arith.truncf %63 : vector<4x4xf32> to vector<4x4xbf16>
    %cst_34 = arith.constant dense<0.000000e+00> : vector<16x4xf32>
    %69 = tpu.matmul %67, %68, %cst_34 {dimension_numbers = #tpu.dot_dimension_numbers<[1], [0], [0], [1], [0, 0, 1, 1], [], []>} : vector<16x4xbf16>, vector<4x4xbf16>, vector<16x4xf32> -> vector<16x4xf32>
    %70 = arith.truncf %57 : vector<16x4xf32> to vector<16x4xbf16>
    %71 = arith.truncf %63 : vector<4x4xf32> to vector<4x4xbf16>
    %cst_35 = arith.constant dense<0.000000e+00> : vector<16x4xf32>
    %72 = tpu.matmul %70, %71, %cst_35 {dimension_numbers = #tpu.dot_dimension_numbers<[1], [0], [0], [1], [0, 0, 1, 1], [], []>} : vector<16x4xbf16>, vector<4x4xbf16>, vector<16x4xf32> -> vector<16x4xf32>
    %73 = arith.mulf %66, %49 : vector<16x4xf32>
    %74 = arith.mulf %69, %53 : vector<16x4xf32>
    %75 = arith.addf %73, %74 : vector<16x4xf32>
    %76 = arith.mulf %72, %57 : vector<16x4xf32>
    %77 = arith.addf %75, %76 : vector<16x4xf32>
    %78 = arith.mulf %66, %66 : vector<16x4xf32>
    %79 = arith.mulf %69, %69 : vector<16x4xf32>
    %80 = arith.addf %78, %79 : vector<16x4xf32>
    %81 = arith.mulf %72, %72 : vector<16x4xf32>
    %82 = arith.addf %80, %81 : vector<16x4xf32>
    %83 = arith.mulf %66, %77 : vector<16x4xf32>
    %cst_36 = arith.constant 9.99999993E-9 : f32
    %84 = vector.broadcast %cst_36 : f32 to vector<16x4xf32>
    %85 = arith.addf %82, %84 : vector<16x4xf32>
    %86 = arith.divf %83, %85 : vector<16x4xf32>
    %87 = arith.subf %49, %86 : vector<16x4xf32>
    %cst_37 = arith.constant 0.00999999977 : f32
    %88 = vector.broadcast %cst_37 : f32 to vector<16x4xf32>
    %89 = arith.mulf %88, %49 : vector<16x4xf32>
    %cst_38 = arith.constant 0.000000e+00 : f32
    %90 = vector.broadcast %cst_38 : f32 to vector<16x4xf32>
    %91 = arith.cmpf oge, %77, %90 : vector<16x4xf32>
    %92 = arith.select %91, %49, %87 : vector<16x4xi1>, vector<16x4xf32>
    %cst_39 = arith.constant 9.900000e-01 : f32
    %93 = vector.broadcast %cst_39 : f32 to vector<16x4xf32>
    %94 = arith.mulf %93, %92 : vector<16x4xf32>
    %95 = arith.addf %89, %94 : vector<16x4xf32>
    %96 = arith.mulf %69, %77 : vector<16x4xf32>
    %cst_40 = arith.constant 9.99999993E-9 : f32
    %97 = vector.broadcast %cst_40 : f32 to vector<16x4xf32>
    %98 = arith.addf %82, %97 : vector<16x4xf32>
    %99 = arith.divf %96, %98 : vector<16x4xf32>
    %100 = arith.subf %53, %99 : vector<16x4xf32>
    %cst_41 = arith.constant 0.00999999977 : f32
    %101 = vector.broadcast %cst_41 : f32 to vector<16x4xf32>
    %102 = arith.mulf %101, %53 : vector<16x4xf32>
    %cst_42 = arith.constant 0.000000e+00 : f32
    %103 = vector.broadcast %cst_42 : f32 to vector<16x4xf32>
    %104 = arith.cmpf oge, %77, %103 : vector<16x4xf32>
    %105 = arith.select %104, %53, %100 : vector<16x4xi1>, vector<16x4xf32>
    %cst_43 = arith.constant 9.900000e-01 : f32
    %106 = vector.broadcast %cst_43 : f32 to vector<16x4xf32>
    %107 = arith.mulf %106, %105 : vector<16x4xf32>
    %108 = arith.addf %102, %107 : vector<16x4xf32>
    %109 = arith.mulf %72, %77 : vector<16x4xf32>
    %cst_44 = arith.constant 9.99999993E-9 : f32
    %110 = vector.broadcast %cst_44 : f32 to vector<16x4xf32>
    %111 = arith.addf %82, %110 : vector<16x4xf32>
    %112 = arith.divf %109, %111 : vector<16x4xf32>
    %113 = arith.subf %57, %112 : vector<16x4xf32>
    %cst_45 = arith.constant 0.00999999977 : f32
    %114 = vector.broadcast %cst_45 : f32 to vector<16x4xf32>
    %115 = arith.mulf %114, %57 : vector<16x4xf32>
    %cst_46 = arith.constant 0.000000e+00 : f32
    %116 = vector.broadcast %cst_46 : f32 to vector<16x4xf32>
    %117 = arith.cmpf oge, %77, %116 : vector<16x4xf32>
    %118 = arith.select %117, %57, %113 : vector<16x4xi1>, vector<16x4xf32>
    %cst_47 = arith.constant 9.900000e-01 : f32
    %119 = vector.broadcast %cst_47 : f32 to vector<16x4xf32>
    %120 = arith.mulf %119, %118 : vector<16x4xf32>
    %121 = arith.addf %115, %120 : vector<16x4xf32>
    %122 = tpu.concatenate %62, %95, %108, %121 in 1 : vector<16x8xf32>, vector<16x4xf32>, vector<16x4xf32>, vector<16x4xf32> -> vector<16x20xf32>
    %c0_48 = arith.constant 0 : index
    %c0_49 = arith.constant 0 : index
    %123 = vector.load %arg11[%c0_48, %c0_49] : memref<16x20xf32, #tpu.memory_space<vmem>>, vector<16x20xf32>
    tpu.vector_store %arg11[%c0_48, %c0_49], %122 {strides = array<i32>} : memref<16x20xf32, #tpu.memory_space<vmem>>, vector<16x20xf32>,
    return
  }
  func.func @transform_0(%arg0: i32) -> (i32, i32) {
    %c0_i32 = arith.constant 0 : i32
    %c0_i32_0 = arith.constant 0 : i32
    return %arg0, %c0_i32 : i32, i32
  }
  func.func @transform_1(%arg0: i32) -> (i32, i32) {
    %c0_i32 = arith.constant 0 : i32
    %c0_i32_0 = arith.constant 0 : i32
    return %arg0, %c0_i32 : i32, i32
  }
  func.func @transform_2(%arg0: i32) -> (i32, i32) {
    %c0_i32 = arith.constant 0 : i32
    %c0_i32_0 = arith.constant 0 : i32
    %c0_i32_1 = arith.constant 0 : i32
    return %c0_i32, %c0_i32_0 : i32, i32
  }
  func.func @transform_3(%arg0: i32) -> (i32, i32) {
    %c0_i32 = arith.constant 0 : i32
    %c0_i32_0 = arith.constant 0 : i32
    %c0_i32_1 = arith.constant 0 : i32
    return %c0_i32, %c0_i32_0 : i32, i32
  }
  func.func @transform_4(%arg0: i32) -> (i32, i32) {
    %c0_i32 = arith.constant 0 : i32
    %c0_i32_0 = arith.constant 0 : i32
    %c0_i32_1 = arith.constant 0 : i32
    return %c0_i32, %c0_i32_0 : i32, i32
  }
  func.func @transform_5(%arg0: i32) -> (i32, i32) {
    %c0_i32 = arith.constant 0 : i32
    %c0_i32_0 = arith.constant 0 : i32
    %c0_i32_1 = arith.constant 0 : i32
    return %c0_i32, %c0_i32_0 : i32, i32
  }
  func.func @transform_6(%arg0: i32) -> (i32, i32) {
    %c0_i32 = arith.constant 0 : i32
    %c0_i32_0 = arith.constant 0 : i32
    %c0_i32_1 = arith.constant 0 : i32
    return %c0_i32, %c0_i32_0 : i32, i32
  }
  func.func @transform_7(%arg0: i32) -> (i32, i32) {
    %c0_i32 = arith.constant 0 : i32
    %c0_i32_0 = arith.constant 0 : i32
    %c0_i32_1 = arith.constant 0 : i32
    return %c0_i32, %c0_i32_0 : i32, i32
  }
  func.func @transform_8(%arg0: i32) -> (i32, i32) {
    %c0_i32 = arith.constant 0 : i32
    %c0_i32_0 = arith.constant 0 : i32
    %c0_i32_1 = arith.constant 0 : i32
    return %c0_i32, %c0_i32_0 : i32, i32
  }
  func.func @transform_9(%arg0: i32) -> (i32, i32) {
    %c0_i32 = arith.constant 0 : i32
    %c0_i32_0 = arith.constant 0 : i32
    %c0_i32_1 = arith.constant 0 : i32
    return %c0_i32, %c0_i32_0 : i32, i32
  }
  func.func @transform_10(%arg0: i32) -> (i32, i32) {
    %c0_i32 = arith.constant 0 : i32
    %c0_i32_0 = arith.constant 0 : i32
    return %arg0, %c0_i32 : i32, i32
  }
}

module attributes {stable_mosaic.version = 11 : i64} {
  func.func @kernel(%arg0: i32, %arg1: memref<16x16xf32, #tpu.memory_space<vmem>>, %arg2: memref<16x24xf32, #tpu.memory_space<vmem>>, %arg3: memref<8x8xf32, #tpu.memory_space<vmem>>, %arg4: memref<8x16xf32, #tpu.memory_space<vmem>>, %arg5: memref<16x16xf32, #tpu.memory_space<vmem>>, %arg6: memref<1x16xf32, #tpu.memory_space<vmem>>, %arg7: memref<16x8xf32, #tpu.memory_space<vmem>>, %arg8: memref<1x8xf32, #tpu.memory_space<vmem>>, %arg9: memref<8x8xf32, #tpu.memory_space<vmem>>, %arg10: memref<8x8xf32, #tpu.memory_space<vmem>>, %arg11: memref<16x40xf32, #tpu.memory_space<vmem>>) attributes {dimension_semantics = [#tpu.dimension_semantics<parallel>], iteration_bounds = array<i64: 1>, scalar_prefetch = 0 : i64, scratch_operands = 0 : i64, tpu.core_type = #tpu.core_type<tc>, window_params = [{transform_indices = @transform_0, window_bounds = array<i64: 16, 16>}, {transform_indices = @transform_1, window_bounds = array<i64: 16, 24>}, {pipeline_mode = #tpu.pipeline_mode<synchronous>, transform_indices = @transform_2, window_bounds = array<i64: 8, 8>}, {pipeline_mode = #tpu.pipeline_mode<synchronous>, transform_indices = @transform_3, window_bounds = array<i64: 8, 16>}, {pipeline_mode = #tpu.pipeline_mode<synchronous>, transform_indices = @transform_4, window_bounds = array<i64: 16, 16>}, {pipeline_mode = #tpu.pipeline_mode<synchronous>, transform_indices = @transform_5, window_bounds = array<i64: 1, 16>}, {pipeline_mode = #tpu.pipeline_mode<synchronous>, transform_indices = @transform_6, window_bounds = array<i64: 16, 8>}, {pipeline_mode = #tpu.pipeline_mode<synchronous>, transform_indices = @transform_7, window_bounds = array<i64: 1, 8>}, {pipeline_mode = #tpu.pipeline_mode<synchronous>, transform_indices = @transform_8, window_bounds = array<i64: 8, 8>}, {pipeline_mode = #tpu.pipeline_mode<synchronous>, transform_indices = @transform_9, window_bounds = array<i64: 8, 8>}, {transform_indices = @transform_10, window_bounds = array<i64: 16, 40>}]} {
    %c0 = arith.constant 0 : index
    %c0_0 = arith.constant 0 : index
    %0 = vector.load %arg1[%c0, %c0_0] : memref<16x16xf32, #tpu.memory_space<vmem>>, vector<16x16xf32>
    %c0_1 = arith.constant 0 : index
    %c0_2 = arith.constant 0 : index
    %1 = vector.load %arg2[%c0_1, %c0_2] : memref<16x24xf32, #tpu.memory_space<vmem>>, vector<16x8xf32>
    %c0_3 = arith.constant 0 : index
    %c8 = arith.constant 8 : index
    %2 = vector.load %arg2[%c0_3, %c8] : memref<16x24xf32, #tpu.memory_space<vmem>>, vector<16x8xf32>
    %c0_4 = arith.constant 0 : index
    %c16 = arith.constant 16 : index
    %3 = vector.load %arg2[%c0_4, %c16] : memref<16x24xf32, #tpu.memory_space<vmem>>, vector<16x8xf32>
    %c0_5 = arith.constant 0 : index
    %c0_6 = arith.constant 0 : index
    %4 = vector.load %arg3[%c0_5, %c0_6] : memref<8x8xf32, #tpu.memory_space<vmem>>, vector<8x8xf32>
    %c0_7 = arith.constant 0 : index
    %c0_8 = arith.constant 0 : index
    %5 = vector.load %arg4[%c0_7, %c0_8] : memref<8x16xf32, #tpu.memory_space<vmem>>, vector<8x16xf32>
    %c0_9 = arith.constant 0 : index
    %c0_10 = arith.constant 0 : index
    %6 = vector.load %arg5[%c0_9, %c0_10] : memref<16x16xf32, #tpu.memory_space<vmem>>, vector<16x16xf32>
    %c0_11 = arith.constant 0 : index
    %c0_12 = arith.constant 0 : index
    %7 = vector.load %arg6[%c0_11, %c0_12] : memref<1x16xf32, #tpu.memory_space<vmem>>, vector<1x16xf32>
    %c0_13 = arith.constant 0 : index
    %c0_14 = arith.constant 0 : index
    %8 = vector.load %arg7[%c0_13, %c0_14] : memref<16x8xf32, #tpu.memory_space<vmem>>, vector<16x8xf32>
    %c0_15 = arith.constant 0 : index
    %c0_16 = arith.constant 0 : index
    %9 = vector.load %arg8[%c0_15, %c0_16] : memref<1x8xf32, #tpu.memory_space<vmem>>, vector<1x8xf32>
    %c0_17 = arith.constant 0 : index
    %c0_18 = arith.constant 0 : index
    %10 = vector.load %arg9[%c0_17, %c0_18] : memref<8x8xf32, #tpu.memory_space<vmem>>, vector<8x8xf32>
    %11 = arith.truncf %1 : vector<16x8xf32> to vector<16x8xbf16>
    %12 = arith.truncf %4 : vector<8x8xf32> to vector<8x8xbf16>
    %cst = arith.constant dense<0.000000e+00> : vector<16x8xf32>
    %13 = tpu.matmul %11, %12, %cst {dimension_numbers = #tpu.dot_dimension_numbers<[1], [0], [0], [1], [0, 0, 1, 1], [], []>} : vector<16x8xbf16>, vector<8x8xbf16>, vector<16x8xf32> -> vector<16x8xf32>
    %14 = arith.truncf %2 : vector<16x8xf32> to vector<16x8xbf16>
    %15 = arith.truncf %4 : vector<8x8xf32> to vector<8x8xbf16>
    %cst_19 = arith.constant dense<0.000000e+00> : vector<16x8xf32>
    %16 = tpu.matmul %14, %15, %cst_19 {dimension_numbers = #tpu.dot_dimension_numbers<[1], [0], [0], [1], [0, 0, 1, 1], [], []>} : vector<16x8xbf16>, vector<8x8xbf16>, vector<16x8xf32> -> vector<16x8xf32>
    %17 = arith.truncf %3 : vector<16x8xf32> to vector<16x8xbf16>
    %18 = arith.truncf %4 : vector<8x8xf32> to vector<8x8xbf16>
    %cst_20 = arith.constant dense<0.000000e+00> : vector<16x8xf32>
    %19 = tpu.matmul %17, %18, %cst_20 {dimension_numbers = #tpu.dot_dimension_numbers<[1], [0], [0], [1], [0, 0, 1, 1], [], []>} : vector<16x8xbf16>, vector<8x8xbf16>, vector<16x8xf32> -> vector<16x8xf32>
    %20 = arith.mulf %13, %13 : vector<16x8xf32>
    %21 = arith.mulf %16, %16 : vector<16x8xf32>
    %22 = arith.addf %20, %21 : vector<16x8xf32>
    %23 = arith.mulf %19, %19 : vector<16x8xf32>
    %24 = arith.addf %22, %23 : vector<16x8xf32>
    %25 = math.sqrt %24 : vector<16x8xf32>
    %26 = arith.truncf %25 : vector<16x8xf32> to vector<16x8xbf16>
    %27 = arith.truncf %5 : vector<8x16xf32> to vector<8x16xbf16>
    %cst_21 = arith.constant dense<0.000000e+00> : vector<16x16xf32>
    %28 = tpu.matmul %26, %27, %cst_21 {dimension_numbers = #tpu.dot_dimension_numbers<[1], [0], [0], [1], [0, 0, 1, 1], [], []>} : vector<16x8xbf16>, vector<8x16xbf16>, vector<16x16xf32> -> vector<16x16xf32>
    %29 = arith.truncf %0 : vector<16x16xf32> to vector<16x16xbf16>
    %30 = arith.truncf %6 : vector<16x16xf32> to vector<16x16xbf16>
    %cst_22 = arith.constant dense<0.000000e+00> : vector<16x16xf32>
    %31 = tpu.matmul %29, %30, %cst_22 {dimension_numbers = #tpu.dot_dimension_numbers<[1], [0], [0], [1], [0, 0, 1, 1], [], []>} : vector<16x16xbf16>, vector<16x16xbf16>, vector<16x16xf32> -> vector<16x16xf32>
    %32 = arith.addf %28, %31 : vector<16x16xf32>
    %33 = vector.broadcast %7 : vector<1x16xf32> to vector<16x16xf32>
    %34 = arith.addf %32, %33 : vector<16x16xf32>
    %35 = arith.truncf %34 : vector<16x16xf32> to vector<16x16xbf16>
    %36 = arith.truncf %8 : vector<16x8xf32> to vector<16x8xbf16>
    %cst_23 = arith.constant dense<0.000000e+00> : vector<16x8xf32>
    %37 = tpu.matmul %35, %36, %cst_23 {dimension_numbers = #tpu.dot_dimension_numbers<[1], [0], [0], [1], [0, 0, 1, 1], [], []>} : vector<16x16xbf16>, vector<16x8xbf16>, vector<16x8xf32> -> vector<16x8xf32>
    %38 = vector.broadcast %9 : vector<1x8xf32> to vector<16x8xf32>
    %39 = arith.addf %37, %38 : vector<16x8xf32>
    %cst_24 = arith.constant 0.000000e+00 : f32
    %40 = vector.broadcast %cst_24 : f32 to vector<16x8xf32>
    %41 = arith.subf %40, %39 : vector<16x8xf32>
    %42 = math.exp %41 : vector<16x8xf32>
    %cst_25 = arith.constant 1.000000e+00 : f32
    %43 = vector.broadcast %cst_25 : f32 to vector<16x8xf32>
    %44 = arith.addf %43, %42 : vector<16x8xf32>
    %45 = tpu.reciprocal %44 {approx = true} : vector<16x8xf32> -> vector<16x8xf32>
    %46 = arith.truncf %13 : vector<16x8xf32> to vector<16x8xbf16>
    %47 = arith.truncf %10 : vector<8x8xf32> to vector<8x8xbf16>
    %cst_26 = arith.constant dense<0.000000e+00> : vector<16x8xf32>
    %48 = tpu.matmul %46, %47, %cst_26 {dimension_numbers = #tpu.dot_dimension_numbers<[1], [0], [0], [1], [0, 0, 1, 1], [], []>} : vector<16x8xbf16>, vector<8x8xbf16>, vector<16x8xf32> -> vector<16x8xf32>
    %49 = arith.mulf %45, %48 : vector<16x8xf32>
    %50 = arith.truncf %16 : vector<16x8xf32> to vector<16x8xbf16>
    %51 = arith.truncf %10 : vector<8x8xf32> to vector<8x8xbf16>
    %cst_27 = arith.constant dense<0.000000e+00> : vector<16x8xf32>
    %52 = tpu.matmul %50, %51, %cst_27 {dimension_numbers = #tpu.dot_dimension_numbers<[1], [0], [0], [1], [0, 0, 1, 1], [], []>} : vector<16x8xbf16>, vector<8x8xbf16>, vector<16x8xf32> -> vector<16x8xf32>
    %53 = arith.mulf %45, %52 : vector<16x8xf32>
    %54 = arith.truncf %19 : vector<16x8xf32> to vector<16x8xbf16>
    %55 = arith.truncf %10 : vector<8x8xf32> to vector<8x8xbf16>
    %cst_28 = arith.constant dense<0.000000e+00> : vector<16x8xf32>
    %56 = tpu.matmul %54, %55, %cst_28 {dimension_numbers = #tpu.dot_dimension_numbers<[1], [0], [0], [1], [0, 0, 1, 1], [], []>} : vector<16x8xbf16>, vector<8x8xbf16>, vector<16x8xf32> -> vector<16x8xf32>
    %57 = arith.mulf %45, %56 : vector<16x8xf32>
    %cst_29 = arith.constant 0.000000e+00 : f32
    %58 = vector.broadcast %cst_29 : f32 to vector<16x16xf32>
    %59 = arith.cmpf oge, %34, %58 : vector<16x16xf32>
    %cst_30 = arith.constant 0.00999999977 : f32
    %60 = vector.broadcast %cst_30 : f32 to vector<16x16xf32>
    %61 = arith.mulf %60, %34 : vector<16x16xf32>
    %62 = arith.select %59, %34, %61 : vector<16x16xi1>, vector<16x16xf32>
    %c0_31 = arith.constant 0 : index
    %c0_32 = arith.constant 0 : index
    %63 = vector.load %arg10[%c0_31, %c0_32] : memref<8x8xf32, #tpu.memory_space<vmem>>, vector<8x8xf32>
    %64 = arith.truncf %49 : vector<16x8xf32> to vector<16x8xbf16>
    %65 = arith.truncf %63 : vector<8x8xf32> to vector<8x8xbf16>
    %cst_33 = arith.constant dense<0.000000e+00> : vector<16x8xf32>
    %66 = tpu.matmul %64, %65, %cst_33 {dimension_numbers = #tpu.dot_dimension_numbers<[1], [0], [0], [1], [0, 0, 1, 1], [], []>} : vector<16x8xbf16>, vector<8x8xbf16>, vector<16x8xf32> -> vector<16x8xf32>
    %67 = arith.truncf %53 : vector<16x8xf32> to vector<16x8xbf16>
    %68 = arith.truncf %63 : vector<8x8xf32> to vector<8x8xbf16>
    %cst_34 = arith.constant dense<0.000000e+00> : vector<16x8xf32>
    %69 = tpu.matmul %67, %68, %cst_34 {dimension_numbers = #tpu.dot_dimension_numbers<[1], [0], [0], [1], [0, 0, 1, 1], [], []>} : vector<16x8xbf16>, vector<8x8xbf16>, vector<16x8xf32> -> vector<16x8xf32>
    %70 = arith.truncf %57 : vector<16x8xf32> to vector<16x8xbf16>
    %71 = arith.truncf %63 : vector<8x8xf32> to vector<8x8xbf16>
    %cst_35 = arith.constant dense<0.000000e+00> : vector<16x8xf32>
    %72 = tpu.matmul %70, %71, %cst_35 {dimension_numbers = #tpu.dot_dimension_numbers<[1], [0], [0], [1], [0, 0, 1, 1], [], []>} : vector<16x8xbf16>, vector<8x8xbf16>, vector<16x8xf32> -> vector<16x8xf32>
    %73 = arith.mulf %66, %49 : vector<16x8xf32>
    %74 = arith.mulf %69, %53 : vector<16x8xf32>
    %75 = arith.addf %73, %74 : vector<16x8xf32>
    %76 = arith.mulf %72, %57 : vector<16x8xf32>
    %77 = arith.addf %75, %76 : vector<16x8xf32>
    %78 = arith.mulf %66, %66 : vector<16x8xf32>
    %79 = arith.mulf %69, %69 : vector<16x8xf32>
    %80 = arith.addf %78, %79 : vector<16x8xf32>
    %81 = arith.mulf %72, %72 : vector<16x8xf32>
    %82 = arith.addf %80, %81 : vector<16x8xf32>
    %83 = arith.mulf %66, %77 : vector<16x8xf32>
    %cst_36 = arith.constant 9.99999993E-9 : f32
    %84 = vector.broadcast %cst_36 : f32 to vector<16x8xf32>
    %85 = arith.addf %82, %84 : vector<16x8xf32>
    %86 = arith.divf %83, %85 : vector<16x8xf32>
    %87 = arith.subf %49, %86 : vector<16x8xf32>
    %cst_37 = arith.constant 0.00999999977 : f32
    %88 = vector.broadcast %cst_37 : f32 to vector<16x8xf32>
    %89 = arith.mulf %88, %49 : vector<16x8xf32>
    %cst_38 = arith.constant 0.000000e+00 : f32
    %90 = vector.broadcast %cst_38 : f32 to vector<16x8xf32>
    %91 = arith.cmpf oge, %77, %90 : vector<16x8xf32>
    %92 = arith.select %91, %49, %87 : vector<16x8xi1>, vector<16x8xf32>
    %cst_39 = arith.constant 9.900000e-01 : f32
    %93 = vector.broadcast %cst_39 : f32 to vector<16x8xf32>
    %94 = arith.mulf %93, %92 : vector<16x8xf32>
    %95 = arith.addf %89, %94 : vector<16x8xf32>
    %96 = arith.mulf %69, %77 : vector<16x8xf32>
    %cst_40 = arith.constant 9.99999993E-9 : f32
    %97 = vector.broadcast %cst_40 : f32 to vector<16x8xf32>
    %98 = arith.addf %82, %97 : vector<16x8xf32>
    %99 = arith.divf %96, %98 : vector<16x8xf32>
    %100 = arith.subf %53, %99 : vector<16x8xf32>
    %cst_41 = arith.constant 0.00999999977 : f32
    %101 = vector.broadcast %cst_41 : f32 to vector<16x8xf32>
    %102 = arith.mulf %101, %53 : vector<16x8xf32>
    %cst_42 = arith.constant 0.000000e+00 : f32
    %103 = vector.broadcast %cst_42 : f32 to vector<16x8xf32>
    %104 = arith.cmpf oge, %77, %103 : vector<16x8xf32>
    %105 = arith.select %104, %53, %100 : vector<16x8xi1>, vector<16x8xf32>
    %cst_43 = arith.constant 9.900000e-01 : f32
    %106 = vector.broadcast %cst_43 : f32 to vector<16x8xf32>
    %107 = arith.mulf %106, %105 : vector<16x8xf32>
    %108 = arith.addf %102, %107 : vector<16x8xf32>
    %109 = arith.mulf %72, %77 : vector<16x8xf32>
    %cst_44 = arith.constant 9.99999993E-9 : f32
    %110 = vector.broadcast %cst_44 : f32 to vector<16x8xf32>
    %111 = arith.addf %82, %110 : vector<16x8xf32>
    %112 = arith.divf %109, %111 : vector<16x8xf32>
    %113 = arith.subf %57, %112 : vector<16x8xf32>
    %cst_45 = arith.constant 0.00999999977 : f32
    %114 = vector.broadcast %cst_45 : f32 to vector<16x8xf32>
    %115 = arith.mulf %114, %57 : vector<16x8xf32>
    %cst_46 = arith.constant 0.000000e+00 : f32
    %116 = vector.broadcast %cst_46 : f32 to vector<16x8xf32>
    %117 = arith.cmpf oge, %77, %116 : vector<16x8xf32>
    %118 = arith.select %117, %57, %113 : vector<16x8xi1>, vector<16x8xf32>
    %cst_47 = arith.constant 9.900000e-01 : f32
    %119 = vector.broadcast %cst_47 : f32 to vector<16x8xf32>
    %120 = arith.mulf %119, %118 : vector<16x8xf32>
    %121 = arith.addf %115, %120 : vector<16x8xf32>
    %122 = tpu.concatenate %62, %95, %108, %121 in 1 : vector<16x16xf32>, vector<16x8xf32>, vector<16x8xf32>, vector<16x8xf32> -> vector<16x40xf32>
    %c0_48 = arith.constant 0 : index
    %c0_49 = arith.constant 0 : index
    %123 = vector.load %arg11[%c0_48, %c0_49] : memref<16x40xf32, #tpu.memory_space<vmem>>, vector<16x40xf32>
    tpu.vector_store %arg11[%c0_48, %c0_49], %122 {strides = array<i32>} : memref<16x40xf32, #tpu.memory_space<vmem>>, vector<16x40xf32>,
    return
  }
  func.func @transform_0(%arg0: i32) -> (i32, i32) {
    %c0_i32 = arith.constant 0 : i32
    %c0_i32_0 = arith.constant 0 : i32
    return %arg0, %c0_i32 : i32, i32
  }
  func.func @transform_1(%arg0: i32) -> (i32, i32) {
    %c0_i32 = arith.constant 0 : i32
    %c0_i32_0 = arith.constant 0 : i32
    return %arg0, %c0_i32 : i32, i32
  }
  func.func @transform_2(%arg0: i32) -> (i32, i32) {
    %c0_i32 = arith.constant 0 : i32
    %c0_i32_0 = arith.constant 0 : i32
    %c0_i32_1 = arith.constant 0 : i32
    return %c0_i32, %c0_i32_0 : i32, i32
  }
  func.func @transform_3(%arg0: i32) -> (i32, i32) {
    %c0_i32 = arith.constant 0 : i32
    %c0_i32_0 = arith.constant 0 : i32
    %c0_i32_1 = arith.constant 0 : i32
    return %c0_i32, %c0_i32_0 : i32, i32
  }
  func.func @transform_4(%arg0: i32) -> (i32, i32) {
    %c0_i32 = arith.constant 0 : i32
    %c0_i32_0 = arith.constant 0 : i32
    %c0_i32_1 = arith.constant 0 : i32
    return %c0_i32, %c0_i32_0 : i32, i32
  }
  func.func @transform_5(%arg0: i32) -> (i32, i32) {
    %c0_i32 = arith.constant 0 : i32
    %c0_i32_0 = arith.constant 0 : i32
    %c0_i32_1 = arith.constant 0 : i32
    return %c0_i32, %c0_i32_0 : i32, i32
  }
  func.func @transform_6(%arg0: i32) -> (i32, i32) {
    %c0_i32 = arith.constant 0 : i32
    %c0_i32_0 = arith.constant 0 : i32
    %c0_i32_1 = arith.constant 0 : i32
    return %c0_i32, %c0_i32_0 : i32, i32
  }
  func.func @transform_7(%arg0: i32) -> (i32, i32) {
    %c0_i32 = arith.constant 0 : i32
    %c0_i32_0 = arith.constant 0 : i32
    %c0_i32_1 = arith.constant 0 : i32
    return %c0_i32, %c0_i32_0 : i32, i32
  }
  func.func @transform_8(%arg0: i32) -> (i32, i32) {
    %c0_i32 = arith.constant 0 : i32
    %c0_i32_0 = arith.constant 0 : i32
    %c0_i32_1 = arith.constant 0 : i32
    return %c0_i32, %c0_i32_0 : i32, i32
  }
  func.func @transform_9(%arg0: i32) -> (i32, i32) {
    %c0_i32 = arith.constant 0 : i32
    %c0_i32_0 = arith.constant 0 : i32
    %c0_i32_1 = arith.constant 0 : i32
    return %c0_i32, %c0_i32_0 : i32, i32
  }
  func.func @transform_10(%arg0: i32) -> (i32, i32) {
    %c0_i32 = arith.constant 0 : i32
    %c0_i32_0 = arith.constant 0 : i32
    return %arg0, %c0_i32 : i32, i32
  }
}

</mosaic_0001>

<bundles_post_ra>
// kernel: update_coor_forward.6
= control target key start
LH: loop header
LB: loop body
LE: loop exit
PB: predicated region body
PF: predicated region fallthrough
CT: control target
= control target key end

     0   :  { %vm64_vm0 = vcmask 1043456   ;;  %s355_s15 = smov 112   ;;  %vm60_vm1 = vcmask 64512   ;;  %s356_s16 = smov 120   ;;  %vm160_vm2 = vcmask 130048   ;;  %vm178_vm3 = vcmask 261120   ;;  %s508_s1 = inlined_call_operand.vmem [shape: f32[16,24], index: 1, kind: input, shape index: {}]   ;;  %s509_s2 = inlined_call_operand.vmem [shape: f32[8,32], index: 2, kind: input, shape index: {}]   ;;  %s510_s8 = inlined_call_operand.vmem [shape: f32[32,32], index: 8, kind: input, shape index: {}]   ;;  %s511_s4 = inlined_call_operand.vmem [shape: f32[16,64], index: 4, kind: input, shape index: {}]   ;;  %s512_s0 = inlined_call_operand.vmem [shape: f32[16,16], index: 0, kind: input, shape index: {}]   ;;  %s513_s3 = inlined_call_operand.vmem [shape: f32[32,64], index: 3, kind: input, shape index: {}]   ;;  %s514_s5 = inlined_call_operand.vmem [shape: f32[1,64], index: 5, kind: input, shape index: {}]   ;;  %s515_s7 = inlined_call_operand.vmem [shape: f32[1,32], index: 7, kind: input, shape index: {}]   ;;  %s516_s6 = inlined_call_operand.vmem [shape: f32[64,32], index: 6, kind: input, shape index: {}]   ;;  %s517_s9 = inlined_call_operand.vmem [shape: f32[16,160], index: 9, kind: output, shape index: {}]  }
   0x1   :  { %v35_v0 = vld [vmem:[%s508_s1] sm:$0xff]  ;;  %v36_v1 = vld [vmem:[%s508_s1 + $0x8] sm:$0xff]  ;;  %v56_v6 = vld [vmem:[%s510_s8 + $0x10] sm:$0xff]  ;;  %vm209_vm8 = vcmask 523264   ;;  %vm317_vm9 = vcmask 785408  }
   0x2   :  { %v37_v2 = vld [vmem:[%s509_s2] sm:$0xff]  ;;  %v58_v3 = vpack.c.bf16 %v36_v1, %v35_v0  ;;  %v57_v7 = vld [vmem:[%s510_s8 + $0x18] sm:$0xff]  ;;  %v43_v10 = vld [vmem:[%s511_s4 + $0x8] sm:$0xff] }
   0x3   :  { %v59_v4 = vpack.c.bf16 %v37_v2, %v37_v2  ;;  %v239_v8 = vpack.c.bf16 %v57_v7, %v56_v6  ;;  %v42_v9 = vld [vmem:[%s511_s4] sm:$0xff]  ;;  %v55_v13 = vld [vmem:[%s510_s8 + $0x8] sm:$0xff]  ;;  %v40_v23 = vld [vmem:[%s513_s3 + $0x10] sm:$0xff] }
   0x4   :  { %102 = vrot.lane.b32.xlu0 %v58_v3, %s355_s15  ;;  %v54_v11 = vld [vmem:[%s510_s8] sm:$0xff]  ;;  %v159_v12 = vpack.c.bf16 %v43_v10, %v42_v9  ;;  %v34_v15 = vld [vmem:[%s512_s0 + $0x8] sm:$0xff]  ;;  %v41_v24 = vld [vmem:[%s513_s3 + $0x18] sm:$0xff] }
   0x5   :  { %v66_v5 = vsel %vm64_vm0, %v59_v4, 0  ;;  %v33_v14 = vld [vmem:[%s512_s0] sm:$0xff]  ;;  %v238_v16 = vpack.c.bf16 %v55_v13, %v54_v11  ;;  %v157_v26 = vpack.c.bf16 %v41_v24, %v40_v23  ;;  %v39_v27 = vld [vmem:[%s513_s3 + $0x8] sm:$0xff]  ;;  %v51_v2 = vld [vmem:[%s516_s6 + $0x30] sm:$0xff] }
   0x6   :  { %75 = vmatpush.bf16.msra.mxu0 %v66_v5  ;;  %114 = vmatpush.bf16.msra.mxu2 %v66_v5  ;;  %v158_v17 = vpack.c.bf16 %v34_v15, %v33_v14  ;;  %v38_v25 = vld [vmem:[%s513_s3] sm:$0xff]  ;;  %v50_v6 = vld [vmem:[%s516_s6 + $0x28] sm:$0xff]  ;;  %v48_v9 = vld [vmem:[%s516_s6 + $0x18] sm:$0xff] }
   0x7   :  { %95 = vmatpush.bf16.msra.mxu1 %v66_v5  ;;  %171 = vmatpush.bf16.msra.mxu3 %v159_v12  ;;  %v156_v28 = vpack.c.bf16 %v39_v27, %v38_v25  ;;  %v49_v5 = vld [vmem:[%s516_s6 + $0x20] sm:$0xff]  ;;  %v46_v12 = vld [vmem:[%s516_s6 + $0x8] sm:$0xff] }
   0x8   :  { %v204_v7 = vpack.c.bf16 %v50_v6, %v49_v5  ;;  %v45_v11 = vld [vmem:[%s516_s6] sm:$0xff] }
   0x9   :  { %328 = vmatmul.msk.bf16.vlgmr.msra.gmra.mxu0 %vm60_vm1, %v58_v3  ;;  %v202_v13 = vpack.c.bf16 %v46_v12, %v45_v11  ;;  %v342_v24 = vld [vmem:[%s515_s7] ss:$0 sm:$0xff]  ;;  %s358_s7 = smov 64  }
   0xa   :  { %249 = vmatpush.bf16.msrb.mxu2 %v239_v8  ;;  %331 = vmatmul.msk.bf16.vlgmr.msra.gmra.mxu3 %vm160_vm2, %v158_v17  ;;  %v341_v17 = vld [vmem:[%s514_s5] ss:$0 sm:$0xff]  ;;  %s357_s5 = smov 96  }
   0xb   :  { %269 = vmatpush.bf16.msrb.mxu3 %v239_v8  ;;  %188 = vmatpush.bf16.msrb.mxu0 %v157_v26 }
   0xc   :  { %83 = vrot.lane.b32.xlu0 %v58_v3, %s356_s16  ;;  %v52_v3 = vld [vmem:[%s516_s6 + $0x38] sm:$0xff] }
   0xd   :  { %v205_v4 = vpack.c.bf16 %v52_v3, %v51_v2 }
   0xe   :  { %250 = vmatpush.bf16.msrb.mxu2 %v238_v16 }
   0xf   :  { %270 = vmatpush.bf16.msrb.mxu3 %v238_v16  ;;  %189 = vmatpush.bf16.msrb.mxu0 %v156_v28 }
  0x10   :  { %217 = vmatpush.bf16.msrb.mxu1 %v205_v4 }
  0x13   :  { %289 = vmatpush.bf16.msra.mxu0 %v239_v8  ;;  %v47_v8 = vld [vmem:[%s516_s6 + $0x10] sm:$0xff] }
  0x14   :  { %218 = vmatpush.bf16.msrb.mxu1 %v204_v7  ;;  %v203_v10 = vpack.c.bf16 %v48_v9, %v47_v8 }
  0x17   :  { %290 = vmatpush.bf16.msra.mxu0 %v238_v16 }
  0x18   :  { %219 = vmatpush.bf16.msrb.mxu1 %v203_v10 }
  0x1c   :  { %220 = vmatpush.bf16.msrb.mxu1 %v202_v13 }
  0x76   :  { %v103_v18 = vpop.permute.xlu0 %102 }
  0x77   :  { %330 = vmatmul.msk.bf16.vlgmr.msra.gmra.mxu2 %vm60_vm1, %v103_v18 }
  0x7e   :  { %v84_v19 = vpop.permute.xlu0 %83 }
  0x7f   :  { %329 = vmatmul.msk.bf16.vlgmr.msra.gmra.mxu1 %vm60_vm1, %v84_v19 }
  0x86   :  { %v77_v20 = vpop.f32.mrf.mxu0 }
  0x87   :  { %v121_v30 = vmul.f32 %v77_v20, %v77_v20 }
  0x8d   :  { %v173_v14 = vpop.f32.mrf.mxu3 }
  0x8e   :  { %v79_v21 = vpop.f32.mrf.mxu0 }
  0x8f   :  { %v237_v22 = vpack.c.bf16 %v79_v21, %v77_v20  ;;  %v122_v38 = vmul.f32 %v79_v21, %v79_v21 }
  0x91   :  { %334 = vmatmul.msk.bf16.vlgmr.msrb.gmra.mxu2 %vm178_vm3, %v237_v22 }
  0x95   :  { %v175_v18 = vpop.f32.mrf.mxu3 }
  0xfa   :  { %v116_v29 = vpop.f32.mrf.mxu2 }
  0xfb   :  { %v127_v33 = vmul.f32 %v116_v29, %v116_v29 }
  0xfc   :  { %v97_v31 = vpop.f32.mrf.mxu1 }
  0xfd   :  { %v123_v32 = vmul.f32 %v97_v31, %v97_v31 }
  0xff   :  { %v125_v34 = vadd.f32 %v123_v32, %v121_v30 }
 0x101   :  { %v129_v35 = vadd.f32 %v127_v33, %v125_v34 }
 0x102   :  { %v118_v36 = vpop.f32.mrf.mxu2 }
 0x103   :  { %343 = vrsqrt.f32 %v129_v35  ;;  %v128_v41 = vmul.f32 %v118_v36, %v118_v36  ;;  %vm138_vm4 = vcmp.eq.f32.partialorder %v129_v35, inf  ;;  %v141_v59 = vand.u32 2147483648, %v129_v35 }
 0x104   :  { %v99_v37 = vpop.f32.mrf.mxu1  ;;  %vm140_vm6 = vcmp.eq.f32.partialorder %v129_v35, 0.0  ;;  %v279_v1 = vpack.c.bf16 %v118_v36, %v116_v29 }
 0x105   :  { %v124_v39 = vmul.f32 %v99_v37, %v99_v37  ;;  %v259_v40 = vpack.c.bf16 %v99_v37, %v97_v31 }
 0x107   :  { %v126_v42 = vadd.f32 %v124_v39, %v122_v38  ;;  %335 = vmatmul.msk.bf16.vlgmr.msrb.gmra.mxu3 %vm178_vm3, %v259_v40 }
 0x109   :  { %v344_v43 = vpop.eup %343  ;;  %v130_v44 = vadd.f32 %v128_v41, %v126_v42 }
 0x10a   :  { %v132_v45 = vmul.f32 %v344_v43, %v129_v35 }
 0x10b   :  { %345 = vrsqrt.f32 %v130_v44  ;;  %vm150_vm5 = vcmp.eq.f32.partialorder %v130_v44, inf  ;;  %v153_v60 = vand.u32 2147483648, %v130_v44  ;;  %vm152_vm7 = vcmp.eq.f32.partialorder %v130_v44, 0.0 }
 0x10c   :  { %v133_v46 = vmul.f32 %v344_v43, %v132_v45 }
 0x10e   :  { %v134_v47 = vmul.f32 0.5, %v133_v46 }
 0x110   :  { %v135_v48 = vsub.f32 1.5, %v134_v47 }
 0x111   :  { %v346_v49 = vpop.eup %345 }
 0x112   :  { %v144_v50 = vmul.f32 %v346_v49, %v130_v44  ;;  %v136_v51 = vmul.f32 %v344_v43, %v135_v48 }
 0x114   :  { %v145_v52 = vmul.f32 %v346_v49, %v144_v50  ;;  %v137_v54 = vmul.f32 %v136_v51, %v129_v35 }
 0x116   :  { %v146_v53 = vmul.f32 0.5, %v145_v52  ;;  %v139_v57 = vsel %vm138_vm4, %v129_v35, %v137_v54  ;;  %v252_v35 = vpop.f32.mrf.mxu2 }
 0x117   :  { %v142_v62 = vsel %vm140_vm6, %v141_v59, %v139_v57 }
 0x118   :  { %v147_v55 = vsub.f32 1.5, %v146_v53 }
 0x11a   :  { %v148_v56 = vmul.f32 %v346_v49, %v147_v55 }
 0x11c   :  { %v149_v58 = vmul.f32 %v148_v56, %v130_v44 }
 0x11e   :  { %v151_v61 = vsel %vm150_vm5, %v130_v44, %v149_v58  ;;  %v254_v44 = vpop.f32.mrf.mxu2 }
 0x11f   :  { %v154_v63 = vsel %vm152_vm7, %v153_v60, %v151_v61 }
 0x120   :  { %v155_v0 = vpack.c.bf16 %v154_v63, %v142_v62 }
 0x122   :  { %332 = vmatmul.msk.bf16.vlgmr.msrb.gmra.mxu0 %vm178_vm3, %v155_v0 }
 0x132   :  { %336 = vmatmul.msk.bf16.vlgmr.msra.gmra.mxu0 %vm178_vm3, %v279_v1 }
 0x18a   :  { %v272_v36 = vpop.f32.mrf.mxu3 }
 0x192   :  { %v274_v46 = vpop.f32.mrf.mxu3 }
 0x19f   :  { %v191_v15 = vpop.f32.mrf.mxu0 }
 0x1a0   :  { %v192_v16 = vadd.f32 %v191_v15, %v173_v14 }
 0x1a2   :  { %v199_v21 = vadd.f32 %v341_v17, %v192_v16 }
 0x1a7   :  { %v193_v19 = vpop.f32.mrf.mxu0 }
 0x1a8   :  { %v194_v20 = vadd.f32 %v193_v19, %v175_v18 }
 0x1aa   :  { %v200_v22 = vadd.f32 %v341_v17, %v194_v20 }
 0x1ac   :  { %v201_v23 = vpack.c.bf16 %v200_v22, %v199_v21 }
 0x1ae   :  { %333 = vmatmul.msk.bf16.vlgmr.msrb.gmra.mxu1 %vm209_vm8, %v201_v23 }
 0x1af   :  { %v292_v37 = vpop.f32.mrf.mxu0 }
 0x1b7   :  { %v294_v47 = vpop.f32.mrf.mxu0 }
 0x22b   :  { %v222_v25 = vpop.f32.mrf.mxu1 }
 0x22c   :  { %v223_v26 = vadd.f32 %v342_v24, %v222_v25 }
 0x22e   :  { %v227_v27 = vsub.f32 0.0, %v223_v26 }
 0x230   :  { %v229_v28 = vmul.f32 1.442695, %v227_v27 }
 0x232   :  { %347 = vpow2.f32 %v229_v28 }
 0x233   :  { %v224_v29 = vpop.f32.mrf.mxu1 }
 0x234   :  { %v225_v30 = vadd.f32 %v342_v24, %v224_v29 }
 0x236   :  { %v228_v31 = vsub.f32 0.0, %v225_v30 }
 0x238   :  { %v348_v32 = vpop.eup %347  ;;  %v231_v33 = vmul.f32 1.442695, %v228_v31 }
 0x239   :  { %v233_v34 = vadd.f32 1.0, %v348_v32 }
 0x23a   :  { %349 = vpow2.f32 %v231_v33 }
 0x23b   :  { %351 = vrcp.f32 %v233_v34 }
 0x240   :  { %v350_v38 = vpop.eup %349 }
 0x241   :  { %v352_v39 = vpop.eup %351  ;;  %v234_v40 = vadd.f32 1.0, %v350_v38 }
 0x242   :  { %v277_v41 = vmul.f32 %v352_v39, %v272_v36  ;;  %v257_v42 = vmul.f32 %v352_v39, %v252_v35  ;;  %v297_v43 = vmul.f32 %v352_v39, %v292_v37 }
 0x243   :  { %353 = vrcp.f32 %v234_v40 }
 0x244   :  { %309 = vrot.lane.b32.xlu2 %v277_v41, %s357_s5  ;;  %301 = vrot.lane.b32.xlu1 %v257_v42, %s358_s7  ;;  %321 = vst.msk [vmem:[%s517_s9 + $0x8] sm:$0xff] %vm178_vm3, %v297_v43 }
 0x249   :  { %v354_v45 = vpop.eup %353 }
 0x24a   :  { %v278_v48 = vmul.f32 %v354_v45, %v274_v46  ;;  %v258_v49 = vmul.f32 %v354_v45, %v254_v44  ;;  %v298_v50 = vmul.f32 %v354_v45, %v294_v47 }
 0x24c   :  { %311 = vrot.lane.b32.xlu2 %v278_v48, %s357_s5  ;;  %303 = vrot.lane.b32.xlu1 %v258_v49, %s358_s7  ;;  %323 = vst.msk [vmem:[%s517_s9 + $0x18] sm:$0xff] %vm178_vm3, %v298_v50 }
 0x29e   :  { %v310_v51 = vpop.permute.xlu2 %309 }
 0x2a6   :  { %v312_v56 = vpop.permute.xlu2 %311 }
 0x2b6   :  { %v302_v52 = vpop.permute.xlu1 %301 }
 0x2b7   :  { %v315_v53 = vsel %vm209_vm8, %v199_v21, %v302_v52 }
 0x2b8   :  { %v318_v54 = vsel %vm317_vm9, %v315_v53, %v310_v51 }
 0x2b9   :  { %320 = vst [vmem:[%s517_s9] sm:$0xff] %v318_v54 }
 0x2be   :  { %v304_v55 = vpop.permute.xlu1 %303 }
 0x2bf   :  { %v316_v57 = vsel %vm209_vm8, %v200_v22, %v304_v55 }
 0x2c0   :  { %v319_v58 = vsel %vm317_vm9, %v316_v57, %v312_v56 }
 0x2c1   :  { %322 = vst [vmem:[%s517_s9 + $0x10] sm:$0xff] %v319_v58 }

// kernel: update_coor_forward.7
= control target key start
LH: loop header
LB: loop body
LE: loop exit
PB: predicated region body
PF: predicated region fallthrough
CT: control target
= control target key end

     0   :  { %s2411_s23 = smov 0   ;;  %s2413_s24 = smov 0   ;;  %s3086_s0 = inlined_call_operand.vmem [shape: f32[2,8,8,8], index: 0, kind: input, shape index: {}]   ;;  %s3087_s1 = inlined_call_operand.vmem [shape: f32[2,8,8,12], index: 1, kind: input, shape index: {}]   ;;  %s3088_s2 = inlined_call_operand.vmem [shape: f32[2,8,3], index: 2, kind: input, shape index: {}, may-alias: {2,3}]   ;;  %s3089_s3 = inlined_call_operand.vmem [shape: f32[2,8,3], index: 3, kind: input, shape index: {}, may-alias: {2,3}]   ;;  %s3090_s4 = inlined_call_operand.vmem [shape: f32[4,12], index: 4, kind: input, shape index: {}]   ;;  %s3091_s5 = inlined_call_operand.vmem [shape: f32[1,12], index: 5, kind: input, shape index: {}]   ;;  %s3092_s6 = inlined_call_operand.vmem [shape: f32[12,16], index: 6, kind: input, shape index: {}]   ;;  %s3093_s7 = inlined_call_operand.vmem [shape: f32[8,16], index: 7, kind: input, shape index: {}]   ;;  %s3094_s8 = inlined_call_operand.vmem [shape: f32[1,16], index: 8, kind: input, shape index: {}]   ;;  %s3095_s9 = inlined_call_operand.vmem [shape: f32[15,16], index: 9, kind: input, shape index: {}]   ;;  %s3096_s10 = inlined_call_operand.vmem [shape: f32[1,16], index: 10, kind: input, shape index: {}]   ;;  %s3097_s11 = inlined_call_operand.vmem [shape: f32[16,8], index: 11, kind: input, shape index: {}]   ;;  %s3098_s12 = inlined_call_operand.vmem [shape: f32[1,8], index: 12, kind: input, shape index: {}]   ;;  %s3099_s13 = inlined_call_operand.vmem [shape: f32[12,8], index: 13, kind: input, shape index: {}]   ;;  %s3100_s14 = inlined_call_operand.vmem [shape: f32[1,15], index: 14, kind: input, shape index: {}]   ;;  %s3101_s15 = inlined_call_operand.<no memory space> [shape: f32[1,1], index: 15, kind: input, shape index: {}]   ;;  %s3102_s16 = inlined_call_operand.vmem [shape: bf16[2,8,8,40], index: 16, kind: output, shape index: {}]  }
   0x1   :  { %3103 = sst [smem:[#allocation3_spill]] %s3086_s0  ;;  %v21_v0 = vstv %s3101_s15  ;;  %s2415_s25 = smov 0  }
   0x2   :  { %22 = vst [vmem:[#allocation2] sm:$0x1] %v21_v0 }
   0x3 LB: > { %s40_s15 = sadd.s32 1, %s2308_s24  ;;  %p2039_p0 = scmp.ge.s32.totalorder %s2312_s25, 1  ;;  %s2312_s25 = sphi %s2415_s25, %s28_s25   ;;  %s2308_s24 = sphi %s2413_s24, %s3106_s24   ;;  %s2304_s23 = sphi %s2411_s23, %s3105_s23  }
   0x4   : > { %p42_p1 = scmp.ge.s32.totalorder %s40_s15, 2  ;;  %p525_p2 = scmp.lt.s32.totalorder %s2312_s25, 3 }
   0x6   : > { %s3108_s15 = smov (%p42_p1, %s40_s15), 0  ;;  %p526_p3 = pnand %p2039_p0, %p525_p2 }
   0x7   : > { %p604_p4 = scmp.lt.s32.totalorder (!%p526_p3), %s2304_s23, 1  ;;  %s2315_s17 = smov (!%p526_p3), 124  }
   0x8   : > { %529 = sbr.rel (%p526_p3) target bundleno = 841 (0x349), region = 84  ;;  %s2316_s18 = smov (!%p526_p3), 120  }
   0x9   : > { %s2321_s26 = smov (!%p526_p3), 16   ;;  %s2322_s27 = smov (!%p526_p3), 32  }
   0xd   : > { %v645_v1 = vld [vmem:[%s3090_s4] sm:$0xf]  ;;  %vm966_vm0 = vcmask 1041408   ;;  %s3110_s23 = smov (!%p604_p4, %s2304_s23), 1  ;;  %v2314_v3 = vmov 0   ;;  %vm953_vm1 = vcmask 31744  }
   0xe   : > { %v901_v2 = vpack.c.bf16 %v645_v1, %v645_v1  ;;  %2128 = vset.pattern.permute.xlu1 %v2314_v3  ;;  %2131 = vset.pattern.permute.xlu2 %v2314_v3  ;;  %s2090_s28 = sshll.u32 %s3110_s23, 6  ;;  %s2044_s19 = sshll.u32 %s3110_s23, 3  ;;  %v2317_v24 = vmov 1   ;;  %vm719_vm2 = vcmask 23552   ;;  %v2318_v35 = vmov 2   ;;  %v649_v47 = vld [vmem:[%s3093_s7] sm:$0xff] }
   0xf   : > { %s621_s0 = scalar_lea.vmem %s3087_s1, %s2090_s28  ;;  %s629_s22 = scalar_lea.vmem %s3088_s2, %s2044_s19  ;;  %2137 = vset.pattern.permute.xlu0 %v2318_v35  ;;  %v2204_v46 = vld [vmem:[#allocation2] ss:$0 sm:$0xff]  ;;  %v1326_v48 = vpack.c.bf16 %v649_v47, %v649_v47  ;;  %vm1340_vm3 = vcmask 1043456   ;;  %vm1327_vm4 = vcmask 64512   ;;  %vm1386_vm5 = vcmask 1045504  }
  0x10   : > { %v968_v4 = vsel %vm966_vm0, %v901_v2, 0  ;;  %v673_v5 = vld [vmem:[%s621_s0 + $0x20] sm:$0xff]  ;;  %v674_v6 = vld [vmem:[%s621_s0 + $0x28] sm:$0xff]  ;;  %v671_v7 = vld [vmem:[%s621_s0 + $0x10] sm:$0xff]  ;;  %s633_s29 = scalar_lea.vmem %s3089_s3, %s2044_s19  ;;  %s3104_s19 = sld [smem:[#allocation3_spill]]  ;;  %vm1456_vm6 = vcmask 1046528  }
  0x11   : > { %977 = vmatpush.bf16.msra.mxu0 %v968_v4  ;;  %2093 = vmatpush.bf16.msra.mxu2 %v968_v4  ;;  %v899_v8 = vpack.c.bf16 %v674_v6, %v673_v5  ;;  %v672_v9 = vld [vmem:[%s621_s0 + $0x18] sm:$0xff]  ;;  %v669_v10 = vld [vmem:[%s621_s0] sm:$0xff]  ;;  %v670_v11 = vld [vmem:[%s621_s0 + $0x8] sm:$0xff]  ;;  %v1342_v49 = vsel %vm1340_vm3, %v1326_v48, 0  ;;  %vm1457_vm7 = vcmask 1047552   ;;  %vm1373_vm13 = vcmask 97280  }
  0x12   : > { %2094 = vmatpush.bf16.msra.mxu3 %v968_v4  ;;  %1070 = vmatpush.bf16.msra.mxu1 %v968_v4  ;;  %v898_v12 = vpack.c.bf16 %v672_v9, %v671_v7  ;;  %v897_v13 = vpack.c.bf16 %v670_v11, %v669_v10  ;;  %v675_v14 = vld [vmem:[%s621_s0 + $0x30] sm:$0xff]  ;;  %v676_v15 = vld [vmem:[%s621_s0 + $0x38] sm:$0xff]  ;;  %v2448_v17 = vld [vmem:[%s629_s22] sm:$0xff]  ;;  %vm1443_vm15 = vcmask 121856   ;;  %s2320_s22 = smov 24  }
  0x13   : > { %1047 = vrot.lane.b32.xlu2 %v899_v8, %s2315_s17  ;;  %v900_v16 = vpack.c.bf16 %v676_v15, %v675_v14  ;;  %v687_v18 = vperm.slane %v2448_v17, 0  ;;  %v2455_v19 = vld [vmem:[%s633_s29] sm:$0xff]  ;;  %v680_v21 = vrot.slane %v2448_v17, 1  ;;  %v682_v27 = vrot.slane %v2448_v17, 3  ;;  %s2092_s29 = sshll.u32 %s3110_s23, 5 }
  0x14   : > { %2050 = vmatmul.msk.bf16.vlgmr.msra.gmra.mxu2 %vm953_vm1, %v899_v8  ;;  %1134 = vrot.lane.b32.xlu1 %v898_v12, %s2316_s18  ;;  %v683_v32 = vrot.slane %v2448_v17, 4  ;;  %v681_v39 = vrot.slane %v2448_v17, 2  ;;  %v685_v51 = vrot.slane %v2448_v17, 6  ;;  %v684_v54 = vrot.slane %v2448_v17, 5  ;;  %v2581_v47 = vld [vmem:[%s3100_s14] ss:$0 sm:$0xff] }
  0x15   : > { %1159 = vmatpush.bf16.msrb.mxu2 %v968_v4  ;;  %1132 = vrot.lane.b32.xlu0 %v897_v13, %s2316_s18  ;;  %v703_v20 = vsub.f32 %v687_v18, %v2455_v19  ;;  %v688_v22 = vperm.slane %v680_v21, 0  ;;  %v690_v29 = vperm.slane %v682_v27, 0  ;;  %v657_v18 = vld [vmem:[%s3099_s13] sm:$0xff] }
  0x16   : > { %2048 = vmatmul.msk.bf16.vlgmr.msra.gmra.mxu0 %vm953_vm1, %v897_v13  ;;  %v691_v34 = vperm.slane %v683_v32, 0  ;;  %v689_v41 = vperm.slane %v681_v39, 0  ;;  %1351 = vmatpush.bf16.msrb.mxu3 %v1342_v49  ;;  %v693_v52 = vperm.slane %v685_v51, 0  ;;  %v692_v56 = vperm.slane %v684_v54, 0  ;;  %s2525_s20 = scalar_lea.vmem %s3104_s19, %s2090_s28 }
  0x17   : > { %v2461_v23 = vsub.f32 %v688_v22, %v2455_v19  ;;  %v711_v25 = vmul.f32 %v703_v20, %v703_v20  ;;  %v706_v31 = vsub.f32 %v690_v29, %v2455_v19  ;;  %v661_v63 = vld [vmem:[%s2525_s20] sm:$0xff]  ;;  %v662_v0 = vld [vmem:[%s2525_s20 + $0x8] sm:$0xff]  ;;  %v663_v4 = vld [vmem:[%s2525_s20 + $0x10] sm:$0xff]  ;;  %v2319_v29 = vmov 65535  }
  0x18   : > { %v2477_v37 = vsub.f32 %v691_v34, %v2455_v19  ;;  %v2484_v42 = vsub.f32 %v689_v41, %v2455_v19  ;;  %v2503_v53 = vsub.f32 %v693_v52, %v2455_v19  ;;  %v2509_v58 = vsub.f32 %v692_v56, %v2455_v19  ;;  %v664_v5 = vld [vmem:[%s2525_s20 + $0x18] sm:$0xff]  ;;  %v666_v14 = vld [vmem:[%s2525_s20 + $0x28] sm:$0xff]  ;;  %v667_v52 = vld [vmem:[%s2525_s20 + $0x30] sm:$0xff] }
  0x19   : > { %v720_v26 = vsel %vm719_vm2, %v711_v25, 0.0  ;;  %v712_v28 = vmul.f32 %v2461_v23, %v2461_v23  ;;  %v714_v33 = vmul.f32 %v706_v31, %v706_v31  ;;  %v1322_v1 = vpack.c.bf16 %v662_v0, %v661_v63  ;;  %v652_v25 = vld [vmem:[%s3095_s9 + $0x8] sm:$0x7f]  ;;  %v668_v54 = vld [vmem:[%s2525_s20 + $0x38] sm:$0xff] }
  0x1a   : > { %v715_v38 = vmul.f32 %v2477_v37, %v2477_v37  ;;  %v713_v43 = vmul.f32 %v2484_v42, %v2484_v42  ;;  %v716_v60 = vmul.f32 %v2509_v58, %v2509_v58  ;;  %v1323_v7 = vpack.c.bf16 %v664_v5, %v663_v4 }
  0x1b   : > { %1136 = vrot.lane.b32.xlu2 %v899_v8, %s2316_s18  ;;  %v723_v30 = vsel %vm719_vm2, %v712_v28, 0.0  ;;  %v729_v36 = vsel %vm719_vm2, %v714_v33, 0.0  ;;  %v717_v0 = vmul.f32 %v2503_v53, %v2503_v53 }
  0x1c   : > { %1045 = vrot.lane.b32.xlu1 %v898_v12, %s2315_s17  ;;  %v732_v40 = vsel %vm719_vm2, %v715_v38, 0.0  ;;  %v726_v44 = vsel %vm719_vm2, %v713_v43, 0.0  ;;  %v735_v61 = vsel %vm719_vm2, %v716_v60, 0.0 }
  0x1d   : > { %1043 = vrot.lane.b32.xlu0 %v897_v13, %s2315_s17  ;;  %v665_v13 = vld [vmem:[%s2525_s20 + $0x20] sm:$0xff] }
  0x1e   : > { %v1324_v21 = vpack.c.bf16 %v666_v14, %v665_v13 }
  0x24   : > { %2051 = vmatmul.msk.bf16.gmra.mxu2 %vm953_vm1, %v900_v16  ;;  %1138 = vrot.lane.b32.xlu1 %v900_v16, %s2316_s18 }
  0x25   : > { %1049 = vrot.lane.b32.xlu0 %v900_v16, %s2315_s17  ;;  %s3033_s17 = scalar_lea.vmem %s3102_s16, %s2092_s29 }
  0x26   : > { %2049 = vmatmul.msk.bf16.gmra.mxu0 %vm953_vm1, %v898_v12 }
  0x2c   : > { %904 = vperm.xlu1 %2128, %v703_v20  }
  0x34   : > { %909 = vperm.xlu1 %2128, %v2461_v23  }
  0x3c   : > { %2129 = vset.pattern.permute.xlu1 %v2317_v24 }
  0x3d   : > { %1000 = vperm.xlu1 %2129, %v703_v20  }
  0x44   : > { %721 = vadd.xlane.f32.xlu2 %v720_v26 }
  0x45   : > { %1004 = vperm.xlu1 %2129, %v2461_v23  }
  0x4d   : > { %2130 = vset.pattern.permute.xlu1 %v2318_v35 }
  0x4f   : > { %724 = vadd.xlane.f32.xlu0 %v723_v30  ;;  %v1458_v30 = vsel %vm1456_vm6, 4294967295, %v2319_v29 }
  0x50   : > { %v1459_v32 = vsel %vm1457_vm7, %v1458_v30, 0 }
  0x57   : > { %730 = vadd.xlane.f32.xlu0 %v729_v36 }
  0x5c   : > { %919 = vperm.xlu2 %2131, %v706_v31  }
  0x5f   : > { %733 = vadd.xlane.f32.xlu0 %v732_v40 }
  0x64   : > { %2132 = vset.pattern.permute.xlu2 %v2317_v24 }
  0x65   : > { %1008 = vperm.xlu2 %2132, %v2484_v42  }
  0x6d   : > { %1012 = vperm.xlu2 %2132, %v706_v31   ;;  %v1048_v45 = vpop.permute.xlu2 %1047 }
  0x6e   : > { %2054 = vmatmul.msk.bf16.vlgmr.msra.gmra.mxu3 %vm953_vm1, %v1048_v45 }
  0x6f   : > { %727 = vadd.xlane.f32.xlu1 %v726_v44 }
  0x73   : > { %1109 = vperm.xlu0 %2137, %v2477_v37  }
  0x75   : > { %2133 = vset.pattern.permute.xlu2 %v2314_v3  ;;  %v1137_v2 = vpop.permute.xlu2 %1136 }
  0x76   : > { %870 = vperm.xlu2 %2133, %v2204_v46  }
  0x7b   : > { %2138 = vset.pattern.permute.xlu0 %v2314_v3 }
  0x7c   : > { %914 = vperm.xlu0 %2138, %v2484_v42  }
  0x7e   : > { %2134 = vset.pattern.permute.xlu2 %v2318_v35 }
  0x84   : > { %934 = vperm.xlu0 %2138, %v2503_v53  }
  0x86   : > { %v1135_v57 = vpop.permute.xlu1 %1134 }
  0x87   : > { %v1133_v50 = vpop.permute.xlu0 %1132 }
  0x88   : > { %2056 = vmatmul.msk.bf16.vlgmr.msrb.gmra.mxu2 %vm953_vm1, %v1133_v50  ;;  %1093 = vperm.xlu1 %2130, %v703_v20  }
  0x8c   : > { %2140 = vset.pattern.permute.xlu0 %v2317_v24 }
  0x8d   : > { %1024 = vperm.xlu0 %2140, %v2503_v53  }
  0x8e   : > { %v1046_v62 = vpop.permute.xlu1 %1045 }
  0x8f   : > { %v1044_v55 = vpop.permute.xlu0 %1043 }
  0x90   : > { %2052 = vmatmul.msk.bf16.vlgmr.msra.gmra.mxu1 %vm953_vm1, %v1044_v55  ;;  %1105 = vperm.xlu1 %2130, %v706_v31  }
  0x95   : > { %2142 = vset.pattern.permute.xlu0 %v2318_v35 }
  0x96   : > { %1117 = vperm.xlu0 %2142, %v2503_v53   ;;  %v1139_v6 = vpop.permute.xlu1 %1138  ;;  %v2608_v53 = vld [vmem:[%s3091_s5] ss:$0 sm:$0xff] }
  0x97   : > { %v1050_v59 = vpop.permute.xlu0 %1049 }
  0x98   : > { %2055 = vmatmul.msk.bf16.gmra.mxu3 %vm953_vm1, %v1050_v59  ;;  %2057 = vmatmul.msk.bf16.gmra.mxu2 %vm953_vm1, %v1135_v57 }
  0x99   : > { %2135 = vset.pattern.permute.xlu1 %v2314_v3 }
  0x9a   : > { %924 = vperm.xlu1 %2135, %v2477_v37  }
  0x9e   : > { %v2544_v9 = vpop.permute.xlu1 %904 }
  0x9f   : > { %736 = vadd.xlane.f32.xlu2 %v735_v61  ;;  %v1325_v61 = vpack.c.bf16 %v668_v54, %v667_v52 }
  0xa0   : > { %2053 = vmatmul.msk.bf16.gmra.mxu1 %vm953_vm1, %v1046_v62  ;;  %v979_v62 = vpop.f32.mrf.mxu0 }
  0xa2   : > { %929 = vperm.xlu1 %2135, %v2509_v58  }
  0xa6   : > { %v910_v31 = vpop.permute.xlu1 %909 }
  0xa8   : > { %2058 = vmatmul.msk.bf16.gmra.mxu2 %vm953_vm1, %v1137_v2  ;;  %2060 = vmatmul.msk.bf16.vlgmr.msrb.gmra.mxu3 %vm1327_vm4, %v1322_v1 }
  0xaa   : > { %2136 = vset.pattern.permute.xlu1 %v2317_v24 }
  0xab   : > { %1016 = vperm.xlu1 %2136, %v2477_v37  }
  0xaf   : > { %v2585_v51 = vpop.permute.xlu1 %1000 }
  0xb3   : > { %1020 = vperm.xlu1 %2136, %v2509_v58  }
  0xb7   : > { %v722_v8 = vpop.xlane.xlu2 %721  ;;  %1097 = vperm.xlu2 %2134, %v2461_v23   ;;  %v651_v23 = vld [vmem:[%s3095_s9] sm:$0xff] }
  0xb8   : > { %2059 = vmatmul.msk.bf16.gmra.mxu2 %vm953_vm1, %v1139_v6  ;;  %2061 = vmatmul.msk.bf16.gmra.mxu3 %vm1327_vm4, %v1323_v7  ;;  %2210 = vrsqrt.f32 %v722_v8  ;;  %v1442_v26 = vpack.c.bf16 %v652_v25, %v651_v23  ;;  %vm751_vm8 = vcmp.eq.f32.partialorder %v722_v8, inf  ;;  %v754_v41 = vand.u32 2147483648, %v722_v8 }
  0xb9   : > { %vm753_vm9 = vcmp.eq.f32.partialorder %v722_v8, 0.0  ;;  %v738_v7 = vsel %vm719_vm2, %v717_v0, 0.0 }
  0xba   : > { %v1461_v36 = vand.u32 %v1459_v32, %v1442_v26 }
  0xbb   : > { %2139 = vset.pattern.permute.xlu1 %v2314_v3  ;;  %v658_v3 = vld [vmem:[%s3099_s13 + $0x8] sm:$0xf] }
  0xbc   : > { %v1605_v22 = vpack.c.bf16 %v658_v3, %v657_v18  ;;  %1470 = vmatpush.bf16.msrb.mxu1 %v1461_v36  ;;  %v981_v3 = vpop.f32.mrf.mxu0 }
  0xbe   : > { %v2211_v10 = vpop.eup %2210  ;;  %v2564_v28 = vsel %vm1386_vm5, %v1605_v22, 0 }
  0xbf   : > { %v745_v11 = vmul.f32 %v2211_v10, %v722_v8  ;;  %v2546_v12 = vpop.permute.xlu2 %919  ;;  %1101 = vperm.xlu2 %2134, %v2484_v42   ;;  %1628 = vmatpush.bf16.msra.mxu3 %v2564_v28 }
  0xc0   : > { %1734 = vmatpush.bf16.msra.mxu1 %v2564_v28 }
  0xc1   : > { %v746_v15 = vmul.f32 %v2211_v10, %v745_v11 }
  0xc2   : > { %v725_v16 = vpop.xlane.xlu0 %724 }
  0xc3   : > { %2212 = vrsqrt.f32 %v725_v16  ;;  %v747_v20 = vmul.f32 0.5, %v746_v15  ;;  %vm763_vm10 = vcmp.eq.f32.partialorder %v725_v16, inf  ;;  %v766_v57 = vand.u32 2147483648, %v725_v16 }
  0xc4   : > { %vm765_vm11 = vcmp.eq.f32.partialorder %v725_v16, 0.0 }
  0xc5   : > { %v748_v27 = vsub.f32 1.5, %v747_v20  ;;  %v686_v20 = vrot.slane %v2448_v17, 7 }
  0xc7   : > { %v749_v33 = vmul.f32 %v2211_v10, %v748_v27  ;;  %v2568_v34 = vpop.permute.xlu2 %1008  ;;  %1113 = vperm.xlu2 %2134, %v2509_v58   ;;  %v2603_v10 = vpop.permute.xlu1 %1004  ;;  %v694_v29 = vperm.slane %v686_v20, 0 }
  0xc8   : > { %2062 = vmatmul.msk.bf16.gmra.mxu3 %vm1327_vm4, %v1324_v21  ;;  %v945_v21 = vmul.f32 %v2608_v53, %v2544_v9  ;;  %v2619_v27 = vpop.f32.mrf.mxu2 }
  0xc9   : > { %v2213_v37 = vpop.eup %2212  ;;  %v750_v38 = vmul.f32 %v749_v33, %v722_v8  ;;  %v984_v33 = vpop.f32.mrf.mxu0 }
  0xca   : > { %v757_v39 = vmul.f32 %v2213_v37, %v725_v16  ;;  %v2571_v40 = vpop.xlane.xlu0 %730  ;;  %v2621_v30 = vadd.f32 %v979_v62, %v945_v21 }
  0xcb   : > { %2214 = vrsqrt.f32 %v2571_v40  ;;  %v752_v42 = vsel %vm751_vm8, %v722_v8, %v750_v38  ;;  %vm787_vm12 = vcmp.eq.f32.partialorder %v2571_v40, inf  ;;  %v790_v36 = vand.u32 2147483648, %v2571_v40 }
  0xcc   : > { %v758_v43 = vmul.f32 %v2213_v37, %v757_v39  ;;  %v2575_v44 = vsel %vm753_vm9, %v754_v41, %v752_v42  ;;  %vm789_vm14 = vcmp.eq.f32.partialorder %v2571_v40, 0.0 }
  0xcd   : > { %v840_v46 = vmin.f32 %v2575_v44, 2.0 }
  0xce   : > { %v759_v45 = vmul.f32 0.5, %v758_v43 }
  0xcf   : > { %v2583_v49 = vpop.permute.xlu2 %1012  ;;  %2141 = vset.pattern.permute.xlu2 %v2317_v24  ;;  %v851_v58 = vsub.f32 %v840_v46, %v2581_v47 }
  0xd0   : > { %v760_v48 = vsub.f32 1.5, %v759_v45 }
  0xd1   : > { %v2215_v50 = vpop.eup %2214  ;;  %v859_v2 = vmul.f32 %v851_v58, %v851_v58 }
  0xd2   : > { %v761_v55 = vmul.f32 %v2213_v37, %v760_v48  ;;  %v781_v56 = vmul.f32 %v2215_v50, %v2571_v40  ;;  %v2610_v14 = vpop.xlane.xlu0 %733  ;;  %v710_v37 = vsub.f32 %v694_v29, %v2455_v19 }
  0xd3   : > { %vm801_vm3 = vcmp.eq.f32.partialorder %v2610_v14, 0.0 }
  0xd4   : > { %v762_v59 = vmul.f32 %v761_v55, %v725_v16  ;;  %v782_v60 = vmul.f32 %v2215_v50, %v781_v56  ;;  %v718_v45 = vmul.f32 %v710_v37, %v710_v37  ;;  %v948_v56 = vmul.f32 %v2608_v53, %v2546_v12 }
  0xd6   : > { %v764_v63 = vsel %vm763_vm10, %v725_v16, %v762_v59  ;;  %v783_v4 = vmul.f32 0.5, %v782_v60  ;;  %v946_v16 = vmul.f32 %v2608_v53, %v910_v31  ;;  %v741_v55 = vsel %vm719_vm2, %v718_v45, 0.0 }
  0xd7   : > { %v2594_v1 = vsel %vm765_vm11, %v766_v57, %v764_v63  ;;  %v2598_v5 = vpop.permute.xlu2 %870  ;;  %v986_v57 = vpop.f32.mrf.mxu0  ;;  %vm799_vm2 = vcmp.eq.f32.partialorder %v2610_v14, inf }
  0xd8   : > { %v841_v24 = vmin.f32 %v2594_v1, 2.0  ;;  %2063 = vmatmul.msk.bf16.gmra.mxu3 %vm1327_vm4, %v1325_v61  ;;  %v873_v6 = vmul.f32 %v2598_v5, %v859_v2  ;;  %v784_v11 = vsub.f32 1.5, %v783_v4  ;;  %v2617_v25 = vadd.f32 %v981_v3, %v946_v16 }
  0xd9   : > { %v2647_v62 = vadd.f32 %v986_v57, %v948_v56  ;;  %v1032_v56 = vmul.f32 %v2608_v53, %v2603_v10  ;;  %v647_v10 = vld [vmem:[%s3092_s6] sm:$0xff] }
  0xda   : > { %v852_v8 = vsub.f32 %v841_v24, %v2581_v47  ;;  %v881_v15 = vmul.f32 1.442695, %v873_v6  ;;  %v785_v22 = vmul.f32 %v2215_v50, %v784_v11  ;;  %v1601_v9 = vpack.c.bf16 %v2617_v25, %v2621_v30  ;;  %v2637_v50 = vpop.f32.mrf.mxu2 }
  0xdc   : > { %v860_v13 = vmul.f32 %v852_v8, %v852_v8  ;;  %2216 = vpow2.f32 %v881_v15  ;;  %v786_v31 = vmul.f32 %v785_v22, %v2571_v40 }
  0xdd   : > { %739 = vadd.xlane.f32.xlu1 %v738_v7 }
  0xde   : > { %v874_v18 = vmul.f32 %v2598_v5, %v860_v13  ;;  %v788_v39 = vsel %vm787_vm12, %v2571_v40, %v786_v31 }
  0xdf   : > { %v2635_v46 = vsel %vm789_vm14, %v790_v36, %v788_v39 }
  0xe0   : > { %v883_v23 = vmul.f32 1.442695, %v874_v18  ;;  %v843_v52 = vmin.f32 %v2635_v46, 2.0 }
  0xe2   : > { %2218 = vpow2.f32 %v883_v23  ;;  %v728_v26 = vpop.xlane.xlu1 %727  ;;  %v2217_v32 = vpop.eup %2216  ;;  %v854_v60 = vsub.f32 %v843_v52, %v2581_v47 }
  0xe3   : > { %2220 = vrsqrt.f32 %v728_v26  ;;  %vm775_vm0 = vcmp.eq.f32.partialorder %v728_v26, inf  ;;  %v778_v0 = vand.u32 2147483648, %v728_v26  ;;  %vm777_vm1 = vcmp.eq.f32.partialorder %v728_v26, 0.0  ;;  %v2652_v4 = vpop.f32.mrf.mxu2 }
  0xe4   : > { %2222 = vrsqrt.f32 %v2610_v14  ;;  %v862_v12 = vmul.f32 %v854_v60, %v854_v60 }
  0xe5   : > { %v2625_v17 = vpop.permute.xlu0 %1109 }
  0xe6   : > { %v876_v11 = vmul.f32 %v2598_v5, %v862_v12 }
  0xe8   : > { %v2219_v38 = vpop.eup %2218  ;;  %2076 = vmatmul.msk.bf16.vlgmr.msra.gmra.mxu3 %vm1373_vm13, %v1601_v9  ;;  %v887_v3 = vmul.f32 1.442695, %v876_v11 }
  0xe9   : > { %v1438_v41 = vpack.c.bf16 %v2219_v38, %v2217_v32  ;;  %v2221_v42 = vpop.eup %2220 }
  0xea   : > { %v769_v43 = vmul.f32 %v2221_v42, %v728_v26  ;;  %v2223_v8 = vpop.eup %2222  ;;  %2224 = vpow2.f32 %v887_v3 }
  0xeb   : > { %2068 = vmatmul.msk.bf16.vlgmr.msrb.gmra.mxu1 %vm1443_vm15, %v1438_v41  ;;  %v793_v16 = vmul.f32 %v2223_v8, %v2610_v14  ;;  %v2663_v22 = vpop.f32.mrf.mxu2 }
  0xec   : > { %v770_v48 = vmul.f32 %v2221_v42, %v769_v43 }
  0xed   : > { %v794_v21 = vmul.f32 %v2223_v8, %v793_v16 }
  0xee   : > { %v915_v19 = vpop.permute.xlu0 %914  ;;  %v771_v54 = vmul.f32 0.5, %v770_v48  ;;  %v1181_v48 = vmul.f32 %v2621_v30, %v2621_v30  ;;  %v802_v30 = vand.u32 2147483648, %v2610_v14 }
  0xef   : > { %v947_v40 = vmul.f32 %v2608_v53, %v915_v19  ;;  %v795_v29 = vmul.f32 0.5, %v794_v21 }
  0xf0   : > { %v772_v58 = vsub.f32 1.5, %v771_v54  ;;  %742 = vadd.xlane.f32.xlu2 %v741_v55  ;;  %v2225_v31 = vpop.eup %2224 }
  0xf1   : > { %v2644_v59 = vadd.f32 %v984_v33, %v947_v40  ;;  %v796_v32 = vsub.f32 1.5, %v795_v29  ;;  %v1082_v3 = vpop.f32.mrf.mxu3 }
  0xf2   : > { %v773_v61 = vmul.f32 %v2221_v42, %v772_v58 }
  0xf3   : > { %v1602_v2 = vpack.c.bf16 %v2647_v62, %v2644_v59  ;;  %v797_v41 = vmul.f32 %v2223_v8, %v796_v32 }
  0xf4   : > { %v774_v63 = vmul.f32 %v773_v61, %v728_v26 }
  0xf5   : > { %v798_v19 = vmul.f32 %v797_v41, %v2610_v14 }
  0xf6   : > { %939 = vperm.xlu1 %2139, %v710_v37   ;;  %v776_v24 = vsel %vm775_vm0, %v728_v26, %v774_v63 }
  0xf7   : > { %v2655_v6 = vsel %vm777_vm1, %v778_v0, %v776_v24  ;;  %v800_v60 = vsel %vm799_vm2, %v2610_v14, %v798_v19  ;;  %v1034_v19 = vmul.f32 %v2608_v53, %v2583_v49 }
  0xf8   : > { %2077 = vmatmul.msk.bf16.gmra.mxu3 %vm1373_vm13, %v1602_v2  ;;  %v842_v7 = vmin.f32 %v2655_v6, 2.0  ;;  %v648_v2 = vld [vmem:[%s3092_s6 + $0x8] sm:$0xf]  ;;  %v2712_v8 = vsel %vm801_vm3, %v802_v30, %v800_v60 }
  0xf9   : > { %v1321_v24 = vpack.c.bf16 %v648_v2, %v647_v10 }
  0xfa   : > { %v1094_v13 = vpop.permute.xlu1 %1093  ;;  %v853_v15 = vsub.f32 %v842_v7, %v2581_v47 }
  0xfb   : > { %v1124_v38 = vmul.f32 %v2608_v53, %v1094_v13  ;;  %v1388_v13 = vsel %vm1386_vm5, %v1321_v24, 0 }
  0xfc   : > { %v861_v18 = vmul.f32 %v853_v15, %v853_v15  ;;  %1397 = vmatpush.bf16.msrb.mxu0 %v1388_v13  ;;  %v1084_v13 = vpop.f32.mrf.mxu3 }
  0xfe   : > { %2143 = vset.pattern.permute.xlu1 %v2318_v35  ;;  %v875_v20 = vmul.f32 %v2598_v5, %v861_v18  ;;  %v1031_v35 = vmul.f32 %v2608_v53, %v2585_v51 }
  0xff   : > { %1121 = vperm.xlu1 %2143, %v710_v37  }
 0x100   : > { %v885_v23 = vmul.f32 1.442695, %v875_v20  ;;  %1681 = vmatpush.bf16.msra.mxu0 %v2564_v28  ;;  %v1033_v28 = vmul.f32 %v2608_v53, %v2568_v34  ;;  %v1184_v34 = vmul.f32 %v2647_v62, %v2647_v62 }
 0x102   : > { %v2665_v26 = vpop.permute.xlu1 %1105  ;;  %2226 = vpow2.f32 %v885_v23 }
 0x103   : > { %v1127_v60 = vmul.f32 %v2608_v53, %v2665_v26 }
 0x108   : > { %v2227_v9 = vpop.eup %2226  ;;  %1028 = vperm.xlu2 %2141, %v710_v37  }
 0x109   : > { %v1439_v33 = vpack.c.bf16 %v2225_v31, %v2227_v9 }
 0x10b   : > { %v1161_v36 = vpop.f32.mrf.mxu2  ;;  %2069 = vmatmul.msk.bf16.gmra.mxu1 %vm1443_vm15, %v1439_v33  ;;  %v1182_v33 = vmul.f32 %v2617_v25, %v2617_v25 }
 0x10c   : > { %v925_v39 = vpop.permute.xlu1 %924  ;;  %v2671_v43 = vadd.f32 %v1161_v36, %v1124_v38 }
 0x10d   : > { %v1072_v42 = vpop.f32.mrf.mxu1  ;;  %v949_v54 = vmul.f32 %v2608_v53, %v925_v39 }
 0x10e   : > { %v2673_v45 = vadd.f32 %v1072_v42, %v1031_v35  ;;  %v1205_v51 = vmul.f32 %v2671_v43, %v2671_v43 }
 0x10f   : > { %v2705_v12 = vadd.f32 %v2619_v27, %v949_v54 }
 0x110   : > { %v1189_v37 = vmul.f32 %v2673_v45, %v2673_v45 }
 0x112   : > { %v1197_v52 = vadd.f32 %v1189_v37, %v1181_v48  ;;  %v2684_v55 = vpop.xlane.xlu2 %736 }
 0x113   : > { %v1163_v40 = vpop.f32.mrf.mxu2  ;;  %2228 = vrsqrt.f32 %v2684_v55  ;;  %vm811_vm4 = vcmp.eq.f32.partialorder %v2684_v55, inf  ;;  %vm813_vm5 = vcmp.eq.f32.partialorder %v2684_v55, 0.0 }
 0x114   : > { %v2689_v57 = vadd.f32 %v1205_v51, %v1197_v52  ;;  %v930_v58 = vpop.permute.xlu1 %929  ;;  %v1128_v52 = vmul.f32 %v2608_v53, %v2625_v17 }
 0x115   : > { %v950_v61 = vmul.f32 %v2608_v53, %v930_v58  ;;  %v1074_v63 = vpop.f32.mrf.mxu1  ;;  %v1183_v58 = vmul.f32 %v2644_v59, %v2644_v59 }
 0x116   : > { %2230 = vrsqrt.f32 %v2689_v57  ;;  %v2696_v0 = vadd.f32 %v1074_v63, %v1032_v56  ;;  %vm1228_vm6 = vcmp.eq.f32.partialorder %v2689_v57, inf  ;;  %vm1230_vm7 = vcmp.eq.f32.partialorder %v2689_v57, 0.0 }
 0x117   : > { %v2708_v14 = vadd.f32 %v2637_v50, %v950_v61  ;;  %v844_v50 = vmin.f32 %v2712_v8, 2.0 }
 0x118   : > { %v1658_v7 = vpack.c.bf16 %v2696_v0, %v2673_v45  ;;  %v1190_v20 = vmul.f32 %v2696_v0, %v2696_v0  ;;  %v2928_v45 = vld [vmem:[%s3094_s8] ss:$0 sm:$0xff] }
 0x119   : > { %v1603_v11 = vpack.c.bf16 %v2708_v14, %v2705_v12  ;;  %v2229_v15 = vpop.eup %2228  ;;  %v855_v38 = vsub.f32 %v844_v50, %v2581_v47 }
 0x11a   : > { %v805_v16 = vmul.f32 %v2229_v15, %v2684_v55  ;;  %v1098_v21 = vpop.permute.xlu2 %1097  ;;  %v1198_v39 = vadd.f32 %v1190_v20, %v1182_v33 }
 0x11b   : > { %v1166_v27 = vpop.f32.mrf.mxu2  ;;  %2078 = vmatmul.msk.bf16.gmra.mxu3 %vm1373_vm13, %v1603_v11  ;;  %v1125_v29 = vmul.f32 %v2608_v53, %v1098_v21  ;;  %v863_v30 = vmul.f32 %v855_v38, %v855_v38 }
 0x11c   : > { %v2721_v18 = vpop.eup %2230  ;;  %v806_v23 = vmul.f32 %v2229_v15, %v805_v16  ;;  %v814_v16 = vand.u32 2147483648, %v2684_v55 }
 0x11d   : > { %v1017_v31 = vpop.permute.xlu1 %1016  ;;  %v1077_v9 = vpop.f32.mrf.mxu1  ;;  %v1222_v32 = vmul.f32 %v2721_v18, %v2689_v57  ;;  %v2732_v35 = vadd.f32 %v1163_v40, %v1125_v29 }
 0x11e   : > { %v807_v36 = vmul.f32 0.5, %v806_v23  ;;  %v2735_v41 = vadd.f32 %v1077_v9, %v1033_v28  ;;  %v1035_v51 = vmul.f32 %v2608_v53, %v1017_v31 }
 0x11f   : > { %v1206_v48 = vmul.f32 %v2732_v35, %v2732_v35  ;;  %v1711_v37 = vpack.c.bf16 %v2732_v35, %v2671_v43  ;;  %v1223_v25 = vmul.f32 %v2721_v18, %v1222_v32 }
 0x120   : > { %v808_v42 = vsub.f32 1.5, %v807_v36  ;;  %v1191_v49 = vmul.f32 %v2735_v41, %v2735_v41  ;;  %v2761_v24 = vadd.f32 %v1082_v3, %v1035_v51 }
 0x121   : > { %v2749_v40 = vadd.f32 %v1206_v48, %v1198_v39  ;;  %v1224_v2 = vmul.f32 0.5, %v1223_v25  ;;  %v1185_v25 = vmul.f32 %v2705_v12, %v2705_v12 }
 0x122   : > { %v809_v54 = vmul.f32 %v2229_v15, %v808_v42  ;;  %v1102_v62 = vpop.permute.xlu2 %1101  ;;  %v1199_v20 = vadd.f32 %v1191_v49, %v1183_v58  ;;  %v877_v42 = vmul.f32 %v2598_v5, %v863_v30 }
 0x123   : > { %v1168_v56 = vpop.f32.mrf.mxu2  ;;  %2232 = vrsqrt.f32 %v2749_v40  ;;  %v1126_v17 = vmul.f32 %v2608_v53, %v1102_v62  ;;  %v1225_v31 = vsub.f32 1.5, %v1224_v2  ;;  %vm1240_vm8 = vcmp.eq.f32.partialorder %v2749_v40, inf }
 0x124   : > { %v810_v61 = vmul.f32 %v809_v54, %v2684_v55  ;;  %v2763_v59 = vadd.f32 %v1168_v56, %v1127_v60  ;;  %v889_v12 = vmul.f32 1.442695, %v877_v42  ;;  %v1243_v42 = vand.u32 2147483648, %v2749_v40 }
 0x125   : > { %v1021_v63 = vpop.permute.xlu1 %1020  ;;  %v1079_v10 = vpop.f32.mrf.mxu1  ;;  %v2771_v50 = vadd.f32 %v1166_v27, %v1126_v17  ;;  %v1193_v27 = vmul.f32 %v2761_v24, %v2761_v24  ;;  %v1226_v54 = vmul.f32 %v2721_v18, %v1225_v31  ;;  %vm1242_vm9 = vcmp.eq.f32.partialorder %v2749_v40, 0.0 }
 0x126   : > { %v1036_v26 = vmul.f32 %v2608_v53, %v1021_v63  ;;  %v2766_v11 = vadd.f32 %v1079_v10, %v1034_v19  ;;  %v812_v15 = vsel %vm811_vm4, %v2684_v55, %v810_v61  ;;  %v1208_v32 = vmul.f32 %v2763_v59, %v2763_v59 }
 0x127   : > { %v1207_v29 = vmul.f32 %v2771_v50, %v2771_v50  ;;  %v2781_v9 = vsel %vm813_vm5, %v814_v16, %v812_v15  ;;  %v1712_v55 = vpack.c.bf16 %v2763_v59, %v2771_v50  ;;  %v1201_v58 = vadd.f32 %v1193_v27, %v1185_v25 }
 0x128   : > { %v2773_v21 = vadd.f32 %v1084_v13, %v1036_v26  ;;  %v1192_v3 = vmul.f32 %v2766_v11, %v2766_v11  ;;  %v1659_v23 = vpack.c.bf16 %v2766_v11, %v2735_v41  ;;  %v845_v28 = vmin.f32 %v2781_v9, 2.0 }
 0x129   : > { %v2233_v36 = vpop.eup %2232  ;;  %v2790_v38 = vadd.f32 %v1207_v29, %v1199_v20  ;;  %v1227_v17 = vmul.f32 %v1226_v54, %v2689_v57  ;;  %v1186_v13 = vmul.f32 %v2708_v14, %v2708_v14  ;;  %v1423_v50 = vmul.f32 %v2928_v45, %v2594_v1 }
 0x12a   : > { %v1200_v33 = vadd.f32 %v1192_v3, %v1184_v34  ;;  %v1660_v48 = vpack.c.bf16 %v2773_v21, %v2761_v24  ;;  %v1234_v34 = vmul.f32 %v2233_v36, %v2749_v40  ;;  %v856_v56 = vsub.f32 %v845_v28, %v2581_v47  ;;  %v1114_v49 = vpop.permute.xlu2 %1113 }
 0x12b   : > { %v1171_v39 = vpop.f32.mrf.mxu2  ;;  %2234 = vrsqrt.f32 %v2790_v38  ;;  %v1194_v18 = vmul.f32 %v2773_v21, %v2773_v21  ;;  %v1129_v10 = vmul.f32 %v2608_v53, %v1114_v49  ;;  %vm1252_vm10 = vcmp.eq.f32.partialorder %v2790_v38, inf }
 0x12c   : > { %v2797_v19 = vadd.f32 %v1208_v32, %v1200_v33  ;;  %v2799_v51 = vadd.f32 %v1171_v39, %v1128_v52  ;;  %v1235_v60 = vmul.f32 %v2233_v36, %v1234_v34  ;;  %v864_v62 = vmul.f32 %v856_v56, %v856_v56 }
 0x12d   : > { %v1202_v27 = vadd.f32 %v1194_v18, %v1186_v13  ;;  %v1229_v32 = vsel %vm1228_vm6, %v2689_v57, %v1227_v17  ;;  %vm1254_vm11 = vcmp.eq.f32.partialorder %v2790_v38, 0.0 }
 0x12e   : > { %v1209_v30 = vmul.f32 %v2799_v51, %v2799_v51  ;;  %2236 = vrsqrt.f32 %v2797_v19  ;;  %v1236_v61 = vmul.f32 0.5, %v1235_v60  ;;  %v878_v63 = vmul.f32 %v2598_v5, %v864_v62 }
 0x12f   : > { %2238 = vpow2.f32 %v889_v12  ;;  %vm1264_vm12 = vcmp.eq.f32.partialorder %v2797_v19, inf  ;;  %vm1266_vm14 = vcmp.eq.f32.partialorder %v2797_v19, 0.0 }
 0x130   : > { %v2808_v52 = vadd.f32 %v1209_v30, %v1201_v58  ;;  %v1237_v2 = vsub.f32 1.5, %v1236_v61  ;;  %v891_v16 = vmul.f32 1.442695, %v878_v63 }
 0x131   : > { %v2235_v26 = vpop.eup %2234 }
 0x132   : > { %2240 = vrsqrt.f32 %v2808_v52  ;;  %v1238_v3 = vmul.f32 %v2233_v36, %v1237_v2  ;;  %v1246_v29 = vmul.f32 %v2235_v26, %v2790_v38  ;;  %v1231_v36 = vand.u32 2147483648, %v2689_v57 }
 0x133   : > { %v1173_v15 = vpop.f32.mrf.mxu2  ;;  %2242 = vpow2.f32 %v891_v16  ;;  %vm1276_vm1 = vcmp.eq.f32.partialorder %v2808_v52, inf  ;;  %vm1278_vm3 = vcmp.eq.f32.partialorder %v2808_v52, 0.0 }
 0x134   : > { %v2819_v20 = vadd.f32 %v1173_v15, %v1129_v10  ;;  %v2237_v31 = vpop.eup %2236  ;;  %v1239_v28 = vmul.f32 %v1238_v3, %v2749_v40  ;;  %v1247_v39 = vmul.f32 %v2235_v26, %v1246_v29  ;;  %v1232_v30 = vsel %vm1230_vm7, %v1231_v36, %v1229_v32  ;;  %v935_v36 = vpop.permute.xlu0 %934 }
 0x135   : > { %v1258_v25 = vmul.f32 %v2237_v31, %v2797_v19  ;;  %v2239_v58 = vpop.eup %2238  ;;  %v1255_v3 = vand.u32 2147483648, %v2790_v38  ;;  %v1267_v32 = vand.u32 2147483648, %v2797_v19 }
 0x136   : > { %v1210_v14 = vmul.f32 %v2819_v20, %v2819_v20  ;;  %v1713_v33 = vpack.c.bf16 %v2819_v20, %v2799_v51  ;;  %v1241_v54 = vsel %vm1240_vm8, %v2749_v40, %v1239_v28  ;;  %v1248_v56 = vmul.f32 0.5, %v1247_v39 }
 0x137   : > { %v1244_v60 = vsel %vm1242_vm9, %v1243_v42, %v1241_v54  ;;  %v1259_v49 = vmul.f32 %v2237_v31, %v1258_v25 }
 0x138   : > { %v1218_v34 = vadd.f32 %v1210_v14, %v1202_v27  ;;  %v2241_v62 = vpop.eup %2240  ;;  %v1317_v12 = vpack.c.bf16 %v1244_v60, %v1232_v30  ;;  %v1249_v57 = vsub.f32 1.5, %v1248_v56 }
 0x139   : > { %v2243_v61 = vpop.eup %2242  ;;  %v1260_v18 = vmul.f32 0.5, %v1259_v49  ;;  %v1270_v2 = vmul.f32 %v2241_v62, %v2808_v52 }
 0x13a   : > { %2244 = vrsqrt.f32 %v1218_v34  ;;  %2064 = vmatmul.msk.bf16.vlgmr.msrb.gmra.mxu0 %vm1373_vm13, %v1317_v12  ;;  %v1440_v17 = vpack.c.bf16 %v2243_v61, %v2239_v58  ;;  %v1250_v63 = vmul.f32 %v2235_v26, %v1249_v57  ;;  %vm1288_vm0 = vcmp.eq.f32.partialorder %v1218_v34, inf }
 0x13b   : > { %v1261_v10 = vsub.f32 1.5, %v1260_v18  ;;  %v1271_v14 = vmul.f32 %v2241_v62, %v1270_v2  ;;  %v1291_v61 = vand.u32 2147483648, %v1218_v34  ;;  %vm1290_vm2 = vcmp.eq.f32.partialorder %v1218_v34, 0.0 }
 0x13c   : > { %2070 = vmatmul.msk.bf16.gmra.mxu1 %vm1443_vm15, %v1440_v17  ;;  %v1251_v40 = vmul.f32 %v1250_v63, %v2790_v38  ;;  %v1025_v60 = vpop.permute.xlu0 %1024 }
 0x13d   : > { %v1262_v13 = vmul.f32 %v2237_v31, %v1261_v10  ;;  %v1272_v54 = vmul.f32 0.5, %v1271_v14  ;;  %v1279_v10 = vand.u32 2147483648, %v2808_v52  ;;  %v1037_v2 = vmul.f32 %v2608_v53, %v1025_v60 }
 0x13e   : > { %v1253_v16 = vsel %vm1252_vm10, %v2790_v38, %v1251_v40 }
 0x13f   : > { %v1263_v29 = vmul.f32 %v1262_v13, %v2797_v19  ;;  %v1256_v27 = vsel %vm1254_vm11, %v1255_v3, %v1253_v16  ;;  %v1273_v56 = vsub.f32 1.5, %v1272_v54 }
 0x140   : > { %v2245_v15 = vpop.eup %2244 }
 0x141   : > { %v1282_v26 = vmul.f32 %v2245_v15, %v1218_v34  ;;  %v1265_v28 = vsel %vm1264_vm12, %v2797_v19, %v1263_v29  ;;  %v1274_v30 = vmul.f32 %v2241_v62, %v1273_v56  ;;  %v951_v62 = vmul.f32 %v2608_v53, %v935_v36 }
 0x142   : > { %v1268_v39 = vsel %vm1266_vm14, %v1267_v32, %v1265_v28  ;;  %vm1877_vm12 = vcmask 261120   ;;  %vm1894_vm14 = vcmask 322560  }
 0x143   : > { %v1283_v31 = vmul.f32 %v2245_v15, %v1282_v26  ;;  %v1318_v42 = vpack.c.bf16 %v1268_v39, %v1256_v27  ;;  %v1275_v57 = vmul.f32 %v1274_v30, %v2808_v52  ;;  %v1087_v26 = vpop.f32.mrf.mxu3  ;;  %v1176_v27 = vpop.f32.mrf.mxu2 }
 0x144   : > { %v1118_v63 = vpop.permute.xlu0 %1117  ;;  %v2858_v32 = vadd.f32 %v1087_v26, %v1037_v2 }
 0x145   : > { %v1284_v25 = vmul.f32 0.5, %v1283_v31  ;;  %v1277_v18 = vsel %vm1276_vm1, %v2808_v52, %v1275_v57  ;;  %v1130_v16 = vmul.f32 %v2608_v53, %v1118_v63 }
 0x146   : > { %v1195_v52 = vmul.f32 %v2858_v32, %v2858_v32 }
 0x147   : > { %v1285_v38 = vsub.f32 1.5, %v1284_v25  ;;  %v2861_v28 = vadd.f32 %v1176_v27, %v1130_v16 }
 0x149   : > { %v1286_v58 = vmul.f32 %v2245_v15, %v1285_v38  ;;  %v1280_v15 = vsel %vm1278_vm3, %v1279_v10, %v1277_v18  ;;  %v1211_v36 = vmul.f32 %v2861_v28, %v2861_v28 }
 0x14a   : > { %2065 = vmatmul.msk.bf16.gmra.mxu0 %vm1373_vm13, %v1318_v42 }
 0x14b   : > { %v1287_v12 = vmul.f32 %v1286_v58, %v1218_v34  ;;  %v1089_v10 = vpop.f32.mrf.mxu3 }
 0x14d   : > { %v1289_v19 = vsel %vm1288_vm0, %v1218_v34, %v1287_v12  ;;  %v995_v34 = vadd.f32 %v2652_v4, %v951_v62 }
 0x14e   : > { %v1292_v40 = vsel %vm1290_vm2, %v1291_v61, %v1289_v19 }
 0x14f   : > { %v1319_v29 = vpack.c.bf16 %v1292_v40, %v1280_v15  ;;  %v1187_v39 = vmul.f32 %v995_v34, %v995_v34 }
 0x150   : > { %v740_v49 = vpop.xlane.xlu1 %739 }
 0x151   : > { %2246 = vrsqrt.f32 %v740_v49  ;;  %v1203_v25 = vadd.f32 %v1195_v52, %v1187_v39  ;;  %vm823_vm4 = vcmp.eq.f32.partialorder %v740_v49, inf  ;;  %v826_v60 = vand.u32 2147483648, %v740_v49 }
 0x152   : > { %vm825_vm5 = vcmp.eq.f32.partialorder %v740_v49, 0.0 }
 0x153   : > { %v2867_v38 = vadd.f32 %v1211_v36, %v1203_v25 }
 0x155   : > { %vm1300_vm8 = vcmp.eq.f32.partialorder %v2867_v38, inf  ;;  %vm1302_vm10 = vcmp.eq.f32.partialorder %v2867_v38, 0.0 }
 0x157   : > { %v2247_v17 = vpop.eup %2246 }
 0x158   : > { %v817_v13 = vmul.f32 %v2247_v17, %v740_v49 }
 0x15a   : > { %v818_v3 = vmul.f32 %v2247_v17, %v817_v13  ;;  %2066 = vmatmul.msk.bf16.gmra.mxu0 %vm1373_vm13, %v1319_v29 }
 0x15c   : > { %v819_v14 = vmul.f32 0.5, %v818_v3  ;;  %v1178_v3 = vpop.f32.mrf.mxu2 }
 0x15e   : > { %v820_v31 = vsub.f32 1.5, %v819_v14 }
 0x160   : > { %v821_v42 = vmul.f32 %v2247_v17, %v820_v31 }
 0x162   : > { %v822_v4 = vmul.f32 %v821_v42, %v740_v49 }
 0x163   : > { %v743_v54 = vpop.xlane.xlu2 %742 }
 0x164   : > { %2248 = vrsqrt.f32 %v743_v54  ;;  %v824_v30 = vsel %vm823_vm4, %v740_v49, %v822_v4  ;;  %vm835_vm6 = vcmp.eq.f32.partialorder %v743_v54, inf  ;;  %vm837_vm7 = vcmp.eq.f32.partialorder %v743_v54, 0.0 }
 0x165   : > { %2250 = vrsqrt.f32 %v2867_v38  ;;  %v2872_v17 = vsel %vm825_vm5, %v826_v60, %v824_v30 }
 0x166   : > { %v846_v13 = vmin.f32 %v2872_v17, 2.0 }
 0x168   : > { %v940_v56 = vpop.permute.xlu1 %939  ;;  %v857_v14 = vsub.f32 %v846_v13, %v2581_v47 }
 0x169   : > { %v952_v58 = vmul.f32 %v2608_v53, %v940_v56 }
 0x16a   : > { %v2249_v57 = vpop.eup %2248  ;;  %v865_v56 = vmul.f32 %v857_v14, %v857_v14 }
 0x16b   : > { %v997_v12 = vadd.f32 %v2663_v22, %v952_v58  ;;  %v829_v19 = vmul.f32 %v2249_v57, %v743_v54  ;;  %v1029_v61 = vpop.permute.xlu2 %1028  ;;  %v2251_v62 = vpop.eup %2250 }
 0x16c   : > { %v1038_v63 = vmul.f32 %v2608_v53, %v1029_v61  ;;  %v1294_v26 = vmul.f32 %v2251_v62, %v2867_v38 }
 0x16d   : > { %v1604_v18 = vpack.c.bf16 %v997_v12, %v995_v34  ;;  %v830_v40 = vmul.f32 %v2249_v57, %v829_v19  ;;  %v1188_v27 = vmul.f32 %v997_v12, %v997_v12 }
 0x16e   : > { %v2876_v2 = vadd.f32 %v1089_v10, %v1038_v63  ;;  %v1295_v25 = vmul.f32 %v2251_v62, %v1294_v26 }
 0x16f   : > { %2079 = vmatmul.msk.bf16.gmra.mxu3 %vm1373_vm13, %v1604_v18  ;;  %v831_v15 = vmul.f32 0.5, %v830_v40 }
 0x170   : > { %v1196_v49 = vmul.f32 %v2876_v2, %v2876_v2  ;;  %v1296_v12 = vmul.f32 0.5, %v1295_v25  ;;  %v654_v25 = vld [vmem:[%s3097_s11] sm:$0xff] }
 0x171   : > { %v1122_v22 = vpop.permute.xlu1 %1121  ;;  %v832_v29 = vsub.f32 1.5, %v831_v15 }
 0x172   : > { %v1131_v16 = vmul.f32 %v2608_v53, %v1122_v22  ;;  %v1204_v39 = vadd.f32 %v1196_v49, %v1188_v27  ;;  %v838_v53 = vand.u32 2147483648, %v743_v54  ;;  %v1297_v18 = vsub.f32 1.5, %v1296_v12 }
 0x173   : > { %v833_v31 = vmul.f32 %v2249_v57, %v832_v29  ;;  %v879_v57 = vmul.f32 %v2598_v5, %v865_v56 }
 0x174   : > { %v2883_v34 = vadd.f32 %v1178_v3, %v1131_v16  ;;  %v1298_v22 = vmul.f32 %v2251_v62, %v1297_v18 }
 0x175   : > { %v834_v42 = vmul.f32 %v833_v31, %v743_v54  ;;  %v893_v10 = vmul.f32 1.442695, %v879_v57  ;;  %v1424_v57 = vmul.f32 %v2928_v45, %v2655_v6 }
 0x176   : > { %v1212_v52 = vmul.f32 %v2883_v34, %v2883_v34  ;;  %v1714_v36 = vpack.c.bf16 %v2883_v34, %v2861_v28  ;;  %v1299_v16 = vmul.f32 %v1298_v22, %v2867_v38 }
 0x177   : > { %v836_v58 = vsel %vm835_vm6, %v743_v54, %v834_v42 }
 0x178   : > { %v1220_v4 = vadd.f32 %v1212_v52, %v1204_v39  ;;  %v2890_v30 = vsel %vm837_vm7, %v838_v53, %v836_v58  ;;  %v1301_v27 = vsel %vm1300_vm8, %v2867_v38, %v1299_v16  ;;  %v655_v53 = vld [vmem:[%s3097_s11 + $0x8] sm:$0xff] }
 0x179   : > { %v847_v60 = vmin.f32 %v2890_v30, 2.0  ;;  %v1515_v58 = vpack.c.bf16 %v655_v53, %v654_v25 }
 0x17a   : > { %2252 = vrsqrt.f32 %v1220_v4  ;;  %vm1312_vm9 = vcmp.eq.f32.partialorder %v1220_v4, inf  ;;  %v1315_v62 = vand.u32 2147483648, %v1220_v4  ;;  %vm1314_vm11 = vcmp.eq.f32.partialorder %v1220_v4, 0.0 }
 0x17b   : > { %v858_v19 = vsub.f32 %v847_v60, %v2581_v47  ;;  %2254 = vpow2.f32 %v893_v10  ;;  %1539 = vmatpush.bf16.msra.mxu2 %v1515_v58  ;;  %v1425_v10 = vmul.f32 %v2928_v45, %v2635_v46  ;;  %v1426_v46 = vmul.f32 %v2928_v45, %v2712_v8 }
 0x17d   : > { %v866_v61 = vmul.f32 %v858_v19, %v858_v19  ;;  %v1661_v19 = vpack.c.bf16 %v2876_v2, %v2858_v32 }
 0x17f   : > { %v880_v40 = vmul.f32 %v2598_v5, %v866_v61  ;;  %v1303_v5 = vand.u32 2147483648, %v2867_v38  ;;  %v1353_v38 = vpop.f32.mrf.mxu3 }
 0x180   : > { %v2253_v63 = vpop.eup %2252 }
 0x181   : > { %v1306_v13 = vmul.f32 %v2253_v63, %v1220_v4  ;;  %v895_v15 = vmul.f32 1.442695, %v880_v40  ;;  %v2255_v26 = vpop.eup %2254  ;;  %v1304_v52 = vsel %vm1302_vm10, %v1303_v5, %v1301_v27 }
 0x183   : > { %v1307_v54 = vmul.f32 %v2253_v63, %v1306_v13  ;;  %2256 = vpow2.f32 %v895_v15 }
 0x185   : > { %v1308_v49 = vmul.f32 0.5, %v1307_v54 }
 0x187   : > { %v1309_v3 = vsub.f32 1.5, %v1308_v49  ;;  %v1355_v43 = vpop.f32.mrf.mxu3 }
 0x189   : > { %v1310_v29 = vmul.f32 %v2253_v63, %v1309_v3  ;;  %v2257_v47 = vpop.eup %2256 }
 0x18a   : > { %v1441_v31 = vpack.c.bf16 %v2257_v47, %v2255_v26  ;;  %v1427_v26 = vmul.f32 %v2928_v45, %v2781_v9  ;;  %v1428_v9 = vmul.f32 %v2928_v45, %v2872_v17  ;;  %v2995_v17 = vld [vmem:[%s3098_s12] ss:$0 sm:$0xff] }
 0x18b   : > { %v1311_v14 = vmul.f32 %v1310_v29, %v1220_v4 }
 0x18c   : > { %2071 = vmatmul.msk.bf16.gmra.mxu1 %vm1443_vm15, %v1441_v31  ;;  %vm1519_vm15 = vcmask 130048  }
 0x18d   : > { %v1313_v39 = vsel %vm1312_vm9, %v1220_v4, %v1311_v14  ;;  %v1472_v4 = vpop.f32.mrf.mxu1 }
 0x18e   : > { %v1316_v42 = vsel %vm1314_vm11, %v1315_v62, %v1313_v39 }
 0x18f   : > { %v1320_v56 = vpack.c.bf16 %v1316_v42, %v1304_v52 }
 0x191   : > { %2067 = vmatmul.msk.bf16.gmra.mxu0 %vm1373_vm13, %v1320_v56 }
 0x19c   : > { %2084 = vmatmul.msk.bf16.vlgmr.msra.gmra.mxu1 %vm1373_vm13, %v1711_v37  ;;  %v1474_v37 = vpop.f32.mrf.mxu1 }
 0x1a1   : > { %2080 = vmatmul.msk.bf16.vlgmr.msra.gmra.mxu0 %vm1373_vm13, %v1658_v7  ;;  %v1422_v7 = vmul.f32 %v2928_v45, %v2575_v44  ;;  %v2208_v44 = vld [vmem:[%s3096_s10] ss:$0 sm:$0xff] }
 0x1a4   : > { %v1477_v12 = vpop.f32.mrf.mxu1 }
 0x1ac   : > { %2085 = vmatmul.msk.bf16.gmra.mxu1 %vm1373_vm13, %v1712_v55  ;;  %v1479_v40 = vpop.f32.mrf.mxu1 }
 0x1b1   : > { %2081 = vmatmul.msk.bf16.gmra.mxu0 %vm1373_vm13, %v1659_v23  ;;  %v1358_v23 = vpop.f32.mrf.mxu3 }
 0x1b7   : > { %v1399_v35 = vpop.f32.mrf.mxu0 }
 0x1b8   : > { %v1400_v0 = vadd.f32 %v1399_v35, %v1353_v38 }
 0x1b9   : > { %v1360_v1 = vpop.f32.mrf.mxu3  ;;  %v1482_v2 = vpop.f32.mrf.mxu1 }
 0x1ba   : > { %v1430_v41 = vadd.f32 %v1422_v7, %v1400_v0 }
 0x1bc   : > { %2086 = vmatmul.msk.bf16.gmra.mxu1 %vm1373_vm13, %v1713_v33  ;;  %v1492_v55 = vadd.f32 %v1472_v4, %v1430_v41  ;;  %v1429_v4 = vmul.f32 %v2928_v45, %v2890_v30 }
 0x1be   : > { %v2945_v33 = vadd.f32 %v2208_v44, %v1492_v55 }
 0x1bf   : > { %v1401_v59 = vpop.f32.mrf.mxu0 }
 0x1c0   : > { %v1402_v11 = vadd.f32 %v1401_v59, %v1355_v43 }
 0x1c1   : > { %2082 = vmatmul.msk.bf16.gmra.mxu0 %vm1373_vm13, %v1660_v48  ;;  %v1363_v22 = vpop.f32.mrf.mxu3  ;;  %v1484_v14 = vpop.f32.mrf.mxu1 }
 0x1c2   : > { %v1431_v51 = vadd.f32 %v1423_v50, %v1402_v11 }
 0x1c4   : > { %v1493_v20 = vadd.f32 %v1474_v37, %v1431_v51 }
 0x1c6   : > { %v2947_v60 = vadd.f32 %v2208_v44, %v1493_v20 }
 0x1c7   : > { %v1404_v24 = vpop.f32.mrf.mxu0 }
 0x1c8   : > { %v1511_v21 = vpack.c.bf16 %v2947_v60, %v2945_v33  ;;  %v1405_v48 = vadd.f32 %v1404_v24, %v1358_v23 }
 0x1c9   : > { %v1365_v16 = vpop.f32.mrf.mxu3 }
 0x1ca   : > { %2072 = vmatmul.msk.bf16.vlgmr.msra.gmra.mxu2 %vm1519_vm15, %v1511_v21  ;;  %v1432_v61 = vadd.f32 %v1424_v57, %v1405_v48 }
 0x1cc   : > { %2087 = vmatmul.msk.bf16.gmra.mxu1 %vm1373_vm13, %v1714_v36  ;;  %v1494_v13 = vadd.f32 %v1477_v12, %v1432_v61 }
 0x1ce   : > { %v2963_v54 = vadd.f32 %v2208_v44, %v1494_v13 }
 0x1cf   : > { %v1406_v18 = vpop.f32.mrf.mxu0 }
 0x1d0   : > { %v1407_v63 = vadd.f32 %v1406_v18, %v1360_v1 }
 0x1d1   : > { %2083 = vmatmul.msk.bf16.gmra.mxu0 %vm1373_vm13, %v1661_v19  ;;  %v1368_v8 = vpop.f32.mrf.mxu3  ;;  %vm1868_vm13 = vcmask 195584  }
 0x1d2   : > { %v1433_v15 = vadd.f32 %v1425_v10, %v1407_v63 }
 0x1d4   : > { %v1495_v6 = vadd.f32 %v1479_v40, %v1433_v15 }
 0x1d6   : > { %v2965_v28 = vadd.f32 %v2208_v44, %v1495_v6 }
 0x1d7   : > { %v1409_v34 = vpop.f32.mrf.mxu0 }
 0x1d8   : > { %v1512_v32 = vpack.c.bf16 %v2965_v28, %v2963_v54  ;;  %v1410_v36 = vadd.f32 %v1409_v34, %v1363_v22 }
 0x1d9   : > { %v1370_v56 = vpop.f32.mrf.mxu3 }
 0x1da   : > { %2073 = vmatmul.msk.bf16.gmra.mxu2 %vm1519_vm15, %v1512_v32  ;;  %v1434_v49 = vadd.f32 %v1426_v46, %v1410_v36 }
 0x1dc   : > { %v1496_v47 = vadd.f32 %v1482_v2, %v1434_v49 }
 0x1de   : > { %v2974_v5 = vadd.f32 %v2208_v44, %v1496_v47 }
 0x1df   : > { %v1411_v3 = vpop.f32.mrf.mxu0 }
 0x1e0   : > { %v1412_v29 = vadd.f32 %v1411_v3, %v1365_v16 }
 0x1e1   : > { %v1630_v12 = vpop.f32.mrf.mxu3 }
 0x1e2   : > { %v1435_v27 = vadd.f32 %v1427_v26, %v1412_v29 }
 0x1e4   : > { %v1497_v31 = vadd.f32 %v1484_v14, %v1435_v27 }
 0x1e6   : > { %v2976_v62 = vadd.f32 %v2208_v44, %v1497_v31 }
 0x1e8   : > { %v1513_v39 = vpack.c.bf16 %v2976_v62, %v2974_v5 }
 0x1e9   : > { %v1632_v13 = vpop.f32.mrf.mxu3 }
 0x1ea   : > { %2074 = vmatmul.msk.bf16.gmra.mxu2 %vm1519_vm15, %v1513_v39 }
 0x1f1   : > { %v1635_v27 = vpop.f32.mrf.mxu3 }
 0x209   : > { %v1487_v42 = vpop.f32.mrf.mxu1 }
 0x20e   : > { %v1414_v52 = vpop.f32.mrf.mxu0 }
 0x20f   : > { %v1415_v25 = vadd.f32 %v1414_v52, %v1368_v8 }
 0x211   : > { %v1436_v53 = vadd.f32 %v1428_v9, %v1415_v25  ;;  %v1489_v0 = vpop.f32.mrf.mxu1 }
 0x213   : > { %v1498_v43 = vadd.f32 %v1487_v42, %v1436_v53 }
 0x215   : > { %v2985_v41 = vadd.f32 %v2208_v44, %v1498_v43 }
 0x216   : > { %v1416_v58 = vpop.f32.mrf.mxu0 }
 0x217   : > { %v1417_v38 = vadd.f32 %v1416_v58, %v1370_v56 }
 0x219   : > { %v1437_v35 = vadd.f32 %v1429_v4, %v1417_v38 }
 0x21b   : > { %v1499_v7 = vadd.f32 %v1489_v0, %v1437_v35 }
 0x21d   : > { %v2987_v37 = vadd.f32 %v2208_v44, %v1499_v7  ;;  %v1736_v44 = vpop.f32.mrf.mxu1  ;;  %v1637_v7 = vpop.f32.mrf.mxu3 }
 0x21e   : > { %v1683_v20 = vpop.f32.mrf.mxu0 }
 0x21f   : > { %v1514_v59 = vpack.c.bf16 %v2987_v37, %v2985_v41 }
 0x221   : > { %2075 = vmatmul.msk.bf16.gmra.mxu2 %vm1519_vm15, %v1514_v59 }
 0x225   : > { %v1738_v18 = vpop.f32.mrf.mxu1 }
 0x226   : > { %v1685_v10 = vpop.f32.mrf.mxu0 }
 0x22d   : > { %v1741_v49 = vpop.f32.mrf.mxu1 }
 0x22e   : > { %v1688_v26 = vpop.f32.mrf.mxu0 }
 0x235   : > { %v1743_v43 = vpop.f32.mrf.mxu1 }
 0x236   : > { %v1690_v35 = vpop.f32.mrf.mxu0 }
 0x24d   : > { %v1541_v11 = vpop.f32.mrf.mxu2 }
 0x24e   : > { %v1542_v30 = vadd.f32 %v2995_v17, %v1541_v11 }
 0x250   : > { %v1561_v45 = vsub.f32 0.0, %v1542_v30 }
 0x252   : > { %v1569_v50 = vmul.f32 1.442695, %v1561_v45 }
 0x254   : > { %2258 = vpow2.f32 %v1569_v50 }
 0x255   : > { %v1543_v23 = vpop.f32.mrf.mxu2 }
 0x256   : > { %v1544_v55 = vadd.f32 %v2995_v17, %v1543_v23 }
 0x258   : > { %v1562_v51 = vsub.f32 0.0, %v1544_v55 }
 0x25a   : > { %v1571_v24 = vmul.f32 1.442695, %v1562_v51  ;;  %v2259_v21 = vpop.eup %2258 }
 0x25b   : > { %v1585_v1 = vadd.f32 1.0, %v2259_v21 }
 0x25c   : > { %2260 = vpow2.f32 %v1571_v24 }
 0x25d   : > { %v1546_v48 = vpop.f32.mrf.mxu2  ;;  %2262 = vrcp.f32 %v1585_v1  ;;  %v1640_v1 = vpop.f32.mrf.mxu3 }
 0x25e   : > { %v1547_v57 = vadd.f32 %v2995_v17, %v1546_v48 }
 0x260   : > { %v1563_v19 = vsub.f32 0.0, %v1547_v57  ;;  %v1746_v57 = vpop.f32.mrf.mxu1 }
 0x262   : > { %v2261_v61 = vpop.eup %2260  ;;  %v1573_v63 = vmul.f32 1.442695, %v1563_v19  ;;  %v1693_v19 = vpop.f32.mrf.mxu0 }
 0x263   : > { %v1586_v40 = vadd.f32 1.0, %v2261_v61  ;;  %v2263_v22 = vpop.eup %2262 }
 0x264   : > { %2264 = vpow2.f32 %v1573_v63  ;;  %v1703_v46 = vmul.f32 %v2263_v22, %v1683_v20  ;;  %v1650_v3 = vmul.f32 %v2263_v22, %v1630_v12  ;;  %v1756_v56 = vmul.f32 %v2263_v22, %v1736_v44 }
 0x265   : > { %2266 = vrcp.f32 %v1586_v40  ;;  %v1548_v15 = vpop.f32.mrf.mxu2 }
 0x266   : > { %v1549_v6 = vadd.f32 %v2995_v17, %v1548_v15 }
 0x268   : > { %v1564_v34 = vsub.f32 0.0, %v1549_v6 }
 0x26a   : > { %v2265_v32 = vpop.eup %2264  ;;  %v1575_v2 = vmul.f32 1.442695, %v1564_v34  ;;  %v1695_v15 = vpop.f32.mrf.mxu0 }
 0x26b   : > { %v2267_v36 = vpop.eup %2266  ;;  %v1587_v14 = vadd.f32 1.0, %v2265_v32 }
 0x26c   : > { %2268 = vpow2.f32 %v1575_v2  ;;  %v1704_v16 = vmul.f32 %v2267_v36, %v1685_v10  ;;  %v1651_v29 = vmul.f32 %v2267_v36, %v1632_v13  ;;  %v1757_v9 = vmul.f32 %v2267_v36, %v1738_v18  ;;  %v1642_v10 = vpop.f32.mrf.mxu3  ;;  %v1748_v13 = vpop.f32.mrf.mxu1 }
 0x26d   : > { %v1551_v47 = vpop.f32.mrf.mxu2  ;;  %2270 = vrcp.f32 %v1587_v14 }
 0x26e   : > { %v1552_v31 = vadd.f32 %v2995_v17, %v1551_v47  ;;  %v2149_v39 = vpack.i.bf16 %v1704_v16, %v1703_v46  ;;  %v2144_v8 = vpack.i.bf16 %v1651_v29, %v1650_v3  ;;  %v2154_v4 = vpack.i.bf16 %v1757_v9, %v1756_v56 }
 0x270   : > { %v1565_v52 = vsub.f32 0.0, %v1552_v31  ;;  %2150 = vrot.lane.b32.xlu0 %v2149_v39, %s2320_s22  ;;  %2145 = vrot.lane.b32.xlu1 %v2144_v8, %s2321_s26 }
 0x272   : > { %v2269_v42 = vpop.eup %2268  ;;  %v1577_v25 = vmul.f32 1.442695, %v1565_v52  ;;  %v1698_v9 = vpop.f32.mrf.mxu0 }
 0x273   : > { %v1588_v53 = vadd.f32 1.0, %v2269_v42  ;;  %v2271_v0 = vpop.eup %2270 }
 0x274   : > { %2272 = vpow2.f32 %v1577_v25  ;;  %v1705_v50 = vmul.f32 %v2271_v0, %v1688_v26  ;;  %v1652_v23 = vmul.f32 %v2271_v0, %v1635_v27  ;;  %v3006_v55 = vmul.f32 %v2271_v0, %v1741_v49  ;;  %v1645_v42 = vpop.f32.mrf.mxu3  ;;  %v1751_v25 = vpop.f32.mrf.mxu1 }
 0x275   : > { %2274 = vrcp.f32 %v1588_v53  ;;  %v1553_v58 = vpop.f32.mrf.mxu2 }
 0x276   : > { %v1554_v38 = vadd.f32 %v2995_v17, %v1553_v58 }
 0x278   : > { %v1566_v59 = vsub.f32 0.0, %v1554_v38  ;;  %2155 = vrot.lane.b32.xlu1 %v2154_v4, %s2322_s27 }
 0x27a   : > { %v2273_v11 = vpop.eup %2272  ;;  %v1579_v30 = vmul.f32 1.442695, %v1566_v59 }
 0x27b   : > { %v2275_v45 = vpop.eup %2274  ;;  %v1589_v12 = vadd.f32 1.0, %v2273_v11 }
 0x27c   : > { %2276 = vpow2.f32 %v1579_v30  ;;  %v1706_v44 = vmul.f32 %v2275_v45, %v1690_v35  ;;  %v1653_v51 = vmul.f32 %v2275_v45, %v1637_v7  ;;  %v3008_v20 = vmul.f32 %v2275_v45, %v1743_v43  ;;  %v1647_v38 = vpop.f32.mrf.mxu3  ;;  %v1753_v43 = vpop.f32.mrf.mxu1 }
 0x27d   : > { %2278 = vrcp.f32 %v1589_v12  ;;  %v1700_v35 = vpop.f32.mrf.mxu0 }
 0x27e   : > { %v2164_v24 = vpack.i.bf16 %v1706_v44, %v1705_v50  ;;  %v2159_v21 = vpack.i.bf16 %v1653_v51, %v1652_v23  ;;  %v2189_v48 = vpack.i.bf16 %v3008_v20, %v3006_v55 }
 0x280   : > { %2165 = vrot.lane.b32.xlu1 %v2164_v24, %s2320_s22  ;;  %2160 = vrot.lane.b32.xlu0 %v2159_v21, %s2321_s26 }
 0x282   : > { %v2277_v61 = vpop.eup %2276 }
 0x283   : > { %v1590_v18 = vadd.f32 1.0, %v2277_v61  ;;  %v2279_v63 = vpop.eup %2278 }
 0x284   : > { %v1707_v6 = vmul.f32 %v2279_v63, %v1693_v19  ;;  %v1654_v22 = vmul.f32 %v2279_v63, %v1640_v1  ;;  %v1760_v2 = vmul.f32 %v2279_v63, %v1746_v57 }
 0x285   : > { %2280 = vrcp.f32 %v1590_v18 }
 0x28b   : > { %v2281_v40 = vpop.eup %2280 }
 0x28c   : > { %v1708_v34 = vmul.f32 %v2281_v40, %v1695_v15  ;;  %v1655_v32 = vmul.f32 %v2281_v40, %v1642_v10  ;;  %v1761_v36 = vmul.f32 %v2281_v40, %v1748_v13 }
 0x28e   : > { %v2174_v46 = vpack.i.bf16 %v1708_v34, %v1707_v6  ;;  %v2169_v49 = vpack.i.bf16 %v1655_v32, %v1654_v22  ;;  %v2194_v16 = vpack.i.bf16 %v1761_v36, %v1760_v2 }
 0x290   : > { %2175 = vrot.lane.b32.xlu2 %v2174_v46, %s2320_s22  ;;  %2170 = vrot.lane.b32.xlu1 %v2169_v49, %s2321_s26 }
 0x2a4   : > { %v1556_v3 = vpop.f32.mrf.mxu2 }
 0x2a5   : > { %v1557_v29 = vadd.f32 %v2995_v17, %v1556_v3 }
 0x2a7   : > { %v1567_v26 = vsub.f32 0.0, %v1557_v29 }
 0x2a9   : > { %v1581_v47 = vmul.f32 1.442695, %v1567_v26 }
 0x2ab   : > { %2282 = vpow2.f32 %v1581_v47 }
 0x2ac   : > { %v1558_v27 = vpop.f32.mrf.mxu2 }
 0x2ad   : > { %v1559_v14 = vadd.f32 %v2995_v17, %v1558_v27 }
 0x2af   : > { %v1568_v31 = vsub.f32 0.0, %v1559_v14 }
 0x2b1   : > { %v1583_v39 = vmul.f32 1.442695, %v1568_v31  ;;  %v2283_v8 = vpop.eup %2282 }
 0x2b2   : > { %v1591_v52 = vadd.f32 1.0, %v2283_v8 }
 0x2b3   : > { %2284 = vpow2.f32 %v1583_v39 }
 0x2b4   : > { %2286 = vrcp.f32 %v1591_v52 }
 0x2b9   : > { %v2285_v53 = vpop.eup %2284 }
 0x2ba   : > { %v1592_v56 = vadd.f32 1.0, %v2285_v53  ;;  %v2287_v58 = vpop.eup %2286 }
 0x2bb   : > { %v1762_v0 = vmul.f32 %v2287_v58, %v1751_v25  ;;  %v1709_v7 = vmul.f32 %v2287_v58, %v1698_v9  ;;  %v1656_v11 = vmul.f32 %v2287_v58, %v1645_v42 }
 0x2bc   : > { %2288 = vrcp.f32 %v1592_v56 }
 0x2c2   : > { %v2289_v4 = vpop.eup %2288 }
 0x2c3   : > { %v1763_v17 = vmul.f32 %v2289_v4, %v1753_v43  ;;  %v1710_v59 = vmul.f32 %v2289_v4, %v1700_v35  ;;  %v1657_v30 = vmul.f32 %v2289_v4, %v1647_v38 }
 0x2c5   : > { %v2199_v45 = vpack.i.bf16 %v1763_v17, %v1762_v0  ;;  %v2184_v50 = vpack.i.bf16 %v1710_v59, %v1709_v7  ;;  %v2179_v23 = vpack.i.bf16 %v1657_v30, %v1656_v11 }
 0x2c7   : > { %2200 = vrot.lane.b32.xlu1 %v2199_v45, %s2322_s27  ;;  %2185 = vrot.lane.b32.xlu0 %v2184_v50, %s2320_s22 }
 0x2c8   : > { %2180 = vrot.lane.b32.xlu2 %v2179_v23, %s2321_s26 }
 0x2cf   : > { %2195 = vrot.lane.b32.xlu0 %v2194_v16, %s2322_s27 }
 0x2d0   : > { %2190 = vrot.lane.b32.xlu2 %v2189_v48, %s2322_s27 }
 0x2e2   : > { %v2146_v55 = vpop.permute.xlu1 %2145  ;;  %v2151_v44 = vpop.permute.xlu0 %2150 }
 0x2e3   : > { %v2148_v51 = vunpack.i.h.bf16 %v2146_v55  ;;  %v2147_v20 = vunpack.i.l.bf16 %v2146_v55  ;;  %v2153_v12 = vunpack.i.h.bf16 %v2151_v44  ;;  %v2152_v24 = vunpack.i.l.bf16 %v2151_v44 }
 0x2e5   : > { %v1861_v21 = vsel %vm1519_vm15, %v2947_v60, %v2148_v51  ;;  %v1860_v1 = vsel %vm1519_vm15, %v2945_v33, %v2147_v20 }
 0x2e6   : > { %v1869_v48 = vsel %vm1868_vm13, %v1860_v1, %v2152_v24  ;;  %v1870_v18 = vsel %vm1868_vm13, %v1861_v21, %v2153_v12 }
 0x2ea   : > { %v2156_v57 = vpop.permute.xlu1 %2155  ;;  %v2176_v40 = vpop.permute.xlu2 %2175 }
 0x2eb   : > { %v2158_v19 = vunpack.i.h.bf16 %v2156_v57  ;;  %v2157_v61 = vunpack.i.l.bf16 %v2156_v57  ;;  %v2177_v30 = vunpack.i.l.bf16 %v2176_v40 }
 0x2ed   : > { %v1878_v33 = vsel %vm1877_vm12, %v1869_v48, %v2157_v61  ;;  %v1879_v60 = vsel %vm1877_vm12, %v1870_v18, %v2158_v19 }
 0x2ee   : > { %v1886_v63 = vpack.c.bf16 %v1878_v33, %v1878_v33  ;;  %v1887_v10 = vpack.c.bf16 %v1879_v60, %v1879_v60 }
 0x2f0   : > { %1895 = vst.msk [vmem:[%s3033_s17] sm:$0xf] %vm1894_vm14, %v1886_v63 }
 0x2f1   : > { %1896 = vst.msk [vmem:[%s3033_s17 + $0x4] sm:$0xf] %vm1894_vm14, %v1887_v10 }
 0x2f2   : > { %v2161_v13 = vpop.permute.xlu0 %2160  ;;  %v2166_v6 = vpop.permute.xlu1 %2165 }
 0x2f3   : > { %v2163_v22 = vunpack.i.h.bf16 %v2161_v13  ;;  %v2162_v34 = vunpack.i.l.bf16 %v2161_v13  ;;  %v2168_v32 = vunpack.i.h.bf16 %v2166_v6  ;;  %v2167_v2 = vunpack.i.l.bf16 %v2166_v6 }
 0x2f5   : > { %v1863_v36 = vsel %vm1519_vm15, %v2965_v28, %v2163_v22  ;;  %v1862_v46 = vsel %vm1519_vm15, %v2963_v54, %v2162_v34 }
 0x2f6   : > { %v1871_v29 = vsel %vm1868_vm13, %v1862_v46, %v2167_v2  ;;  %v1872_v26 = vsel %vm1868_vm13, %v1863_v36, %v2168_v32 }
 0x302   : > { %v2171_v39 = vpop.permute.xlu1 %2170 }
 0x303   : > { %v2173_v38 = vunpack.i.h.bf16 %v2171_v39  ;;  %v2172_v4 = vunpack.i.l.bf16 %v2171_v39 }
 0x305   : > { %v1865_v11 = vsel %vm1519_vm15, %v2976_v62, %v2173_v38 }
 0x322   : > { %v2181_v15 = vpop.permute.xlu2 %2180 }
 0x323   : > { %v2183_v28 = vunpack.i.h.bf16 %v2181_v15  ;;  %v2182_v54 = vunpack.i.l.bf16 %v2181_v15 }
 0x325   : > { %v1867_v56 = vsel %vm1519_vm15, %v2987_v37, %v2183_v28  ;;  %v1866_v58 = vsel %vm1519_vm15, %v2985_v41, %v2182_v54  ;;  %v1864_v41 = vsel %vm1519_vm15, %v2974_v5, %v2172_v4  ;;  %v2178_v37 = vunpack.i.h.bf16 %v2176_v40 }
 0x326   : > { %v1873_v55 = vsel %vm1868_vm13, %v1864_v41, %v2177_v30 }
 0x327   : > { %v1874_v44 = vsel %vm1868_vm13, %v1865_v11, %v2178_v37 }
 0x32a   : > { %v2191_v49 = vpop.permute.xlu2 %2190 }
 0x32b   : > { %v2193_v16 = vunpack.i.h.bf16 %v2191_v49  ;;  %v2192_v3 = vunpack.i.l.bf16 %v2191_v49 }
 0x32d   : > { %v1881_v47 = vsel %vm1877_vm12, %v1872_v26, %v2193_v16  ;;  %v1880_v27 = vsel %vm1877_vm12, %v1871_v29, %v2192_v3 }
 0x32e   : > { %v1889_v14 = vpack.c.bf16 %v1881_v47, %v1881_v47  ;;  %v1888_v31 = vpack.c.bf16 %v1880_v27, %v1880_v27 }
 0x330   : > { %1898 = vst.msk [vmem:[%s3033_s17 + $0xc] sm:$0xf] %vm1894_vm14, %v1889_v14 }
 0x331   : > { %1897 = vst.msk [vmem:[%s3033_s17 + $0x8] sm:$0xf] %vm1894_vm14, %v1888_v31 }
 0x339   : > { %v2201_v8 = vpop.permute.xlu1 %2200  ;;  %v2186_v52 = vpop.permute.xlu0 %2185 }
 0x33a   : > { %v2203_v42 = vunpack.i.h.bf16 %v2201_v8  ;;  %v2202_v25 = vunpack.i.l.bf16 %v2201_v8  ;;  %v2188_v9 = vunpack.i.h.bf16 %v2186_v52  ;;  %v2187_v53 = vunpack.i.l.bf16 %v2186_v52 }
 0x33c   : > { %v1875_v43 = vsel %vm1868_vm13, %v1866_v58, %v2187_v53  ;;  %v1876_v35 = vsel %vm1868_vm13, %v1867_v56, %v2188_v9 }
 0x33d   : > { %v1884_v0 = vsel %vm1877_vm12, %v1875_v43, %v2202_v25  ;;  %v1885_v7 = vsel %vm1877_vm12, %v1876_v35, %v2203_v42 }
 0x33e   : > { %v1892_v17 = vpack.c.bf16 %v1884_v0, %v1884_v0  ;;  %v1893_v59 = vpack.c.bf16 %v1885_v7, %v1885_v7 }
 0x340   : > { %1901 = vst.msk [vmem:[%s3033_s17 + $0x18] sm:$0xf] %vm1894_vm14, %v1892_v17 }
 0x341   : > { %1902 = vst.msk [vmem:[%s3033_s17 + $0x1c] sm:$0xf] %vm1894_vm14, %v1893_v59  ;;  %v2196_v45 = vpop.permute.xlu0 %2195 }
 0x342   : > { %v2198_v50 = vunpack.i.h.bf16 %v2196_v45  ;;  %v2197_v23 = vunpack.i.l.bf16 %v2196_v45 }
 0x344   : > { %v1883_v51 = vsel %vm1877_vm12, %v1874_v44, %v2198_v50  ;;  %v1882_v62 = vsel %vm1877_vm12, %v1873_v55, %v2197_v23 }
 0x345   : > { %v1891_v20 = vpack.c.bf16 %v1883_v51, %v1883_v51  ;;  %v1890_v12 = vpack.c.bf16 %v1882_v62, %v1882_v62 }
 0x347   : > { %1900 = vst.msk [vmem:[%s3033_s17 + $0x14] sm:$0xf] %vm1894_vm14, %v1891_v20 }
 0x348   : > { %1899 = vst.msk [vmem:[%s3033_s17 + $0x10] sm:$0xf] %vm1894_vm14, %v1890_v12 }
 0x349 PF: > { %s28_s25 = sadd.s32 1, %s2312_s25   ;;  %s3105_s23 = smov %s2308_s24 }
 0x34a   : > { %p25_p5 = scmp.ge.s32.totalorder %s28_s25, 4   ;;  %s3106_s24 = smov %s3108_s15 }
 0x34c   :  { %27 = sbr.rel (!%p25_p5) target bundleno = 3 (0x3), region = 123 }

// kernel: update_coor_forward.10
= control target key start
LH: loop header
LB: loop body
LE: loop exit
PB: predicated region body
PF: predicated region fallthrough
CT: control target
= control target key end

     0   :  { %s837_s11 = smov 0   ;;  %s896_s0 = inlined_call_operand.vmem [shape: f32[32,8], index: 0, kind: input, shape index: {}]   ;;  %s897_s1 = inlined_call_operand.vmem [shape: f32[32,12], index: 1, kind: input, shape index: {}]   ;;  %s898_s2 = inlined_call_operand.vmem [shape: f32[4,4], index: 2, kind: input, shape index: {}]   ;;  %s899_s3 = inlined_call_operand.vmem [shape: f32[4,8], index: 3, kind: input, shape index: {}]   ;;  %s900_s4 = inlined_call_operand.vmem [shape: f32[8,8], index: 4, kind: input, shape index: {}]   ;;  %s901_s5 = inlined_call_operand.vmem [shape: f32[1,8], index: 5, kind: input, shape index: {}]   ;;  %s902_s6 = inlined_call_operand.vmem [shape: f32[8,1], index: 6, kind: input, shape index: {}]   ;;  %s903_s7 = inlined_call_operand.<no memory space> [shape: f32[1,1], index: 7, kind: input, shape index: {}]   ;;  %s904_s8 = inlined_call_operand.vmem [shape: f32[4,1], index: 8, kind: input, shape index: {}]   ;;  %s905_s9 = inlined_call_operand.vmem [shape: f32[32,11], index: 9, kind: output, shape index: {}]  }
   0x1   :  { %v14_v0 = vstv %s903_s7 }
   0x2   :  { %15 = vst [vmem:[#allocation2] sm:$0x1] %v14_v0 }
   0x3 LB: > { %s722_s12 = sadd.s32 4294967295, %s777_s11   ;;  %p726_p0 = scmp.ge.s32.totalorder %s777_s11, 1  ;;  %s777_s11 = sphi %s837_s11, %s21_s11  }
   0x4   : > { %p301_p1 = scmp.lt.s32.totalorder %s777_s11, 3 }
   0x6   : > { %p302_p2 = pnand %p726_p0, %p301_p1 }
   0x7   : > { %s727_s13 = sshll.u32 (!%p302_p2), %s722_s12, 1  ;;  %s779_s19 = smov (!%p302_p2), 120  }
   0x8   : > { %305 = sbr.rel (%p302_p2) target bundleno = 729 (0x2d9), region = 56  ;;  %p343_p3 = scmp.lt.s32.totalorder (!%p302_p2), %s727_s13, 3 }
   0x9   : > { %s780_s20 = smov (!%p302_p2), 124   ;;  %s781_s14 = smov (!%p302_p2), 10  }
   0xa   : > { %s782_s15 = smov (!%p302_p2), 9   ;;  %s783_s16 = smov (!%p302_p2), 8  }
   0xd   : > { %v365_v1 = vld [vmem:[%s898_s2] sm:$0xf]  ;;  %vm378_vm0 = vcmask 1041408   ;;  %s907_s13 = smov (!%p343_p3, %s727_s13), 3  ;;  %vm374_vm1 = vcmask 31744   ;;  %vm477_vm2 = vcmask 1043456  }
   0xe   : > { %v373_v2 = vpack.c.bf16 %v365_v1, %v365_v1  ;;  %s849_s7 = sshll.u32 %s907_s13, 3  ;;  %v367_v7 = vld [vmem:[%s900_s4] sm:$0xff]  ;;  %vm473_vm3 = vcmask 64512   ;;  %vm645_vm8 = vcmask 72704   ;;  %vm648_vm9 = vcmask 80896  }
   0xf   : > { %s352_s18 = scalar_lea.vmem %s897_s1, %s849_s7  ;;  %s346_s23 = scalar_lea.vmem %s896_s0, %s849_s7  ;;  %v371_v8 = vld [vmem:[%s904_s8] sm:$0xf]  ;;  %v472_v10 = vpack.c.bf16 %v367_v7, %v367_v7  ;;  %vm651_vm10 = vcmask 89088  }
  0x10   : > { %v380_v3 = vsel %vm378_vm0, %v373_v2, 0  ;;  %v363_v4 = vld [vmem:[%s352_s18] sm:$0xff]  ;;  %v364_v5 = vld [vmem:[%s352_s18 + $0x8] sm:$0xff]  ;;  %v556_v11 = vpack.c.bf16 %v371_v8, %v371_v8 }
  0x11   : > { %389 = vmatpush.bf16.msra.mxu0 %v380_v3  ;;  %428 = vmatpush.bf16.msra.mxu2 %v380_v3  ;;  %v372_v6 = vpack.c.bf16 %v364_v5, %v363_v4  ;;  %v361_v9 = vld [vmem:[%s346_s23] sm:$0xff]  ;;  %v362_v12 = vld [vmem:[%s346_s23 + $0x8] sm:$0xff]  ;;  %v479_v13 = vsel %vm477_vm2, %v472_v10, 0 }
  0x12   : > { %409 = vmatpush.bf16.msra.mxu1 %v380_v3  ;;  %v561_v14 = vsel %vm378_vm0, %v556_v11, 0  ;;  %v471_v15 = vpack.c.bf16 %v362_v12, %v361_v9  ;;  %488 = vmatpush.bf16.msra.mxu3 %v479_v13  ;;  %v366_v21 = vld [vmem:[%s899_s3] sm:$0xf] }
  0x13   : > { %416 = vrot.lane.b32.xlu0 %v372_v6, %s779_s19  ;;  %v470_v22 = vpack.c.bf16 %v366_v21, %v366_v21  ;;  %v369_v61 = vld [vmem:[%s902_s6] sm:$0xff]  ;;  %s358_s19 = scalar_lea.vmem %s905_s9, %s849_s7 }
  0x14   : > { %733 = vmatmul.msk.bf16.vlgmr.msra.gmra.mxu0 %vm374_vm1, %v372_v6  ;;  %v521_v62 = vpack.c.bf16 %v369_v61, %v369_v61  ;;  %v757_v3 = vld [vmem:[%s901_s5] ss:$0 sm:$0xff] }
  0x15   : > { %570 = vmatpush.bf16.msrb.mxu2 %v561_v14  ;;  %736 = vmatmul.msk.bf16.vlgmr.msra.gmra.mxu3 %vm473_vm3, %v471_v15  ;;  %v499_v23 = vsel %vm378_vm0, %v470_v22, 0  ;;  %v758_v10 = vld [vmem:[#allocation2] ss:$0 sm:$0xff] }
  0x16   : > { %590 = vmatpush.bf16.msrb.mxu3 %v561_v14  ;;  %508 = vmatpush.bf16.msrb.mxu0 %v499_v23  ;;  %v529_v63 = vsel %vm477_vm2, %v521_v62, 0 }
  0x17   : > { %538 = vmatpush.bf16.msrb.mxu1 %v529_v63 }
  0x1a   : > { %610 = vmatpush.bf16.msra.mxu0 %v561_v14 }
  0x1b   : > { %397 = vrot.lane.b32.xlu0 %v372_v6, %s780_s20 }
  0x85   : > { %v417_v16 = vpop.permute.xlu0 %416 }
  0x86   : > { %735 = vmatmul.msk.bf16.vlgmr.msra.gmra.mxu2 %vm374_vm1, %v417_v16 }
  0x8d   : > { %v398_v17 = vpop.permute.xlu0 %397 }
  0x8e   : > { %734 = vmatmul.msk.bf16.vlgmr.msra.gmra.mxu1 %vm374_vm1, %v398_v17 }
  0x91   : > { %v391_v18 = vpop.f32.mrf.mxu0 }
  0x92   : > { %v435_v25 = vmul.f32 %v391_v18, %v391_v18 }
  0x98   : > { %v490_v0 = vpop.f32.mrf.mxu3 }
  0x99   : > { %v393_v19 = vpop.f32.mrf.mxu0 }
  0x9a   : > { %v555_v20 = vpack.c.bf16 %v393_v19, %v391_v18  ;;  %v436_v33 = vmul.f32 %v393_v19, %v393_v19 }
  0x9c   : > { %739 = vmatmul.msk.bf16.vlgmr.msrb.gmra.mxu2 %vm374_vm1, %v555_v20 }
  0xa0   : > { %v492_v4 = vpop.f32.mrf.mxu3 }
 0x109   : > { %v430_v24 = vpop.f32.mrf.mxu2 }
 0x10a   : > { %v441_v28 = vmul.f32 %v430_v24, %v430_v24 }
 0x10b   : > { %v411_v26 = vpop.f32.mrf.mxu1 }
 0x10c   : > { %v437_v27 = vmul.f32 %v411_v26, %v411_v26 }
 0x10e   : > { %v439_v29 = vadd.f32 %v437_v27, %v435_v25 }
 0x110   : > { %v443_v30 = vadd.f32 %v441_v28, %v439_v29 }
 0x111   : > { %v432_v31 = vpop.f32.mrf.mxu2 }
 0x112   : > { %759 = vrsqrt.f32 %v443_v30  ;;  %v442_v36 = vmul.f32 %v432_v31, %v432_v31  ;;  %vm452_vm4 = vcmp.eq.f32.partialorder %v443_v30, inf  ;;  %v455_v54 = vand.u32 2147483648, %v443_v30 }
 0x113   : > { %v413_v32 = vpop.f32.mrf.mxu1  ;;  %vm454_vm6 = vcmp.eq.f32.partialorder %v443_v30, 0.0  ;;  %v599_v60 = vpack.c.bf16 %v432_v31, %v430_v24 }
 0x114   : > { %v438_v34 = vmul.f32 %v413_v32, %v413_v32  ;;  %v579_v35 = vpack.c.bf16 %v413_v32, %v411_v26 }
 0x116   : > { %v440_v37 = vadd.f32 %v438_v34, %v436_v33  ;;  %740 = vmatmul.msk.bf16.vlgmr.msrb.gmra.mxu3 %vm374_vm1, %v579_v35 }
 0x118   : > { %v760_v38 = vpop.eup %759  ;;  %v444_v39 = vadd.f32 %v442_v36, %v440_v37 }
 0x119   : > { %v446_v40 = vmul.f32 %v760_v38, %v443_v30 }
 0x11a   : > { %761 = vrsqrt.f32 %v444_v39  ;;  %vm464_vm5 = vcmp.eq.f32.partialorder %v444_v39, inf  ;;  %v467_v55 = vand.u32 2147483648, %v444_v39  ;;  %vm466_vm7 = vcmp.eq.f32.partialorder %v444_v39, 0.0 }
 0x11b   : > { %v447_v41 = vmul.f32 %v760_v38, %v446_v40 }
 0x11d   : > { %v448_v42 = vmul.f32 0.5, %v447_v41 }
 0x11f   : > { %v449_v43 = vsub.f32 1.5, %v448_v42  ;;  %v572_v21 = vpop.f32.mrf.mxu2 }
 0x120   : > { %v762_v44 = vpop.eup %761 }
 0x121   : > { %v458_v45 = vmul.f32 %v762_v44, %v444_v39  ;;  %v450_v46 = vmul.f32 %v760_v38, %v449_v43 }
 0x123   : > { %v459_v47 = vmul.f32 %v762_v44, %v458_v45  ;;  %v451_v49 = vmul.f32 %v450_v46, %v443_v30 }
 0x125   : > { %v460_v48 = vmul.f32 0.5, %v459_v47  ;;  %v453_v52 = vsel %vm452_vm4, %v443_v30, %v451_v49 }
 0x126   : > { %v456_v57 = vsel %vm454_vm6, %v455_v54, %v453_v52 }
 0x127   : > { %v461_v50 = vsub.f32 1.5, %v460_v48  ;;  %v574_v31 = vpop.f32.mrf.mxu2 }
 0x129   : > { %v462_v51 = vmul.f32 %v762_v44, %v461_v50 }
 0x12b   : > { %v463_v53 = vmul.f32 %v462_v51, %v444_v39 }
 0x12d   : > { %v465_v56 = vsel %vm464_vm5, %v444_v39, %v463_v53 }
 0x12e   : > { %v468_v58 = vsel %vm466_vm7, %v467_v55, %v465_v56 }
 0x12f   : > { %v469_v59 = vpack.c.bf16 %v468_v58, %v456_v57 }
 0x131   : > { %737 = vmatmul.msk.bf16.vlgmr.msrb.gmra.mxu0 %vm374_vm1, %v469_v59 }
 0x141   : > { %741 = vmatmul.msk.bf16.vlgmr.msra.gmra.mxu0 %vm374_vm1, %v599_v60 }
 0x199   : > { %v592_v22 = vpop.f32.mrf.mxu3 }
 0x1a1   : > { %v594_v32 = vpop.f32.mrf.mxu3 }
 0x1ae   : > { %v510_v1 = vpop.f32.mrf.mxu0 }
 0x1af   : > { %v511_v2 = vadd.f32 %v510_v1, %v490_v0 }
 0x1b1   : > { %v518_v7 = vadd.f32 %v757_v3, %v511_v2 }
 0x1b6   : > { %v512_v5 = vpop.f32.mrf.mxu0 }
 0x1b7   : > { %v513_v6 = vadd.f32 %v512_v5, %v492_v4 }
 0x1b9   : > { %v519_v8 = vadd.f32 %v757_v3, %v513_v6 }
 0x1bb   : > { %v520_v9 = vpack.c.bf16 %v519_v8, %v518_v7 }
 0x1bd   : > { %738 = vmatmul.msk.bf16.vlgmr.msrb.gmra.mxu1 %vm473_vm3, %v520_v9 }
 0x1be   : > { %v612_v25 = vpop.f32.mrf.mxu0 }
 0x1c6   : > { %v614_v35 = vpop.f32.mrf.mxu0 }
 0x23a   : > { %v540_v11 = vpop.f32.mrf.mxu1 }
 0x23b   : > { %v541_v12 = vadd.f32 %v758_v10, %v540_v11 }
 0x23d   : > { %v545_v13 = vsub.f32 0.0, %v541_v12 }
 0x23f   : > { %v547_v14 = vmul.f32 1.442695, %v545_v13 }
 0x241   : > { %763 = vpow2.f32 %v547_v14 }
 0x242   : > { %v542_v15 = vpop.f32.mrf.mxu1 }
 0x243   : > { %v543_v16 = vadd.f32 %v758_v10, %v542_v15 }
 0x245   : > { %v546_v17 = vsub.f32 0.0, %v543_v16 }
 0x247   : > { %v764_v18 = vpop.eup %763  ;;  %v549_v19 = vmul.f32 1.442695, %v546_v17 }
 0x248   : > { %v551_v20 = vadd.f32 1.0, %v764_v18 }
 0x249   : > { %765 = vpow2.f32 %v549_v19 }
 0x24a   : > { %767 = vrcp.f32 %v551_v20 }
 0x24f   : > { %v766_v23 = vpop.eup %765 }
 0x250   : > { %v768_v24 = vpop.eup %767  ;;  %v552_v26 = vadd.f32 1.0, %v766_v23 }
 0x251   : > { %v617_v27 = vmul.f32 %v768_v24, %v612_v25  ;;  %v597_v28 = vmul.f32 %v768_v24, %v592_v22  ;;  %v577_v29 = vmul.f32 %v768_v24, %v572_v21 }
 0x252   : > { %769 = vrcp.f32 %v552_v26 }
 0x253   : > { %637 = vrot.lane.b32.xlu0 %v617_v27, %s781_s14  ;;  %629 = vrot.lane.b32.xlu2 %v597_v28, %s782_s15 }
 0x254   : > { %621 = vrot.lane.b32.xlu1 %v577_v29, %s783_s16 }
 0x258   : > { %v770_v30 = vpop.eup %769 }
 0x259   : > { %v598_v33 = vmul.f32 %v770_v30, %v594_v32  ;;  %v578_v34 = vmul.f32 %v770_v30, %v574_v31  ;;  %v618_v36 = vmul.f32 %v770_v30, %v614_v35 }
 0x25b   : > { %631 = vrot.lane.b32.xlu2 %v598_v33, %s782_s15 }
 0x25c   : > { %623 = vrot.lane.b32.xlu1 %v578_v34, %s783_s16 }
 0x264   : > { %639 = vrot.lane.b32.xlu1 %v618_v36, %s781_s14 }
 0x2ad   : > { %v630_v38 = vpop.permute.xlu2 %629 }
 0x2b5   : > { %v632_v45 = vpop.permute.xlu2 %631 }
 0x2c5   : > { %v638_v40 = vpop.permute.xlu0 %637 }
 0x2c6   : > { %v622_v37 = vpop.permute.xlu1 %621 }
 0x2c7   : > { %v643_v39 = vsel %vm473_vm3, %v518_v7, %v622_v37 }
 0x2c8   : > { %v646_v41 = vsel %vm645_vm8, %v643_v39, %v630_v38 }
 0x2c9   : > { %v649_v42 = vsel %vm648_vm9, %v646_v41, %v638_v40 }
 0x2ca   : > { %652 = vst.msk [vmem:[%s358_s19] sm:$0xff] %vm651_vm10, %v649_v42 }
 0x2ce   : > { %v624_v43 = vpop.permute.xlu1 %623 }
 0x2cf   : > { %v644_v44 = vsel %vm473_vm3, %v519_v8, %v624_v43 }
 0x2d0   : > { %v647_v46 = vsel %vm645_vm8, %v644_v44, %v632_v45 }
 0x2d6   : > { %v640_v47 = vpop.permute.xlu1 %639 }
 0x2d7   : > { %v650_v48 = vsel %vm648_vm9, %v647_v46, %v640_v47 }
 0x2d8   : > { %653 = vst.msk [vmem:[%s358_s19 + $0x8] sm:$0xff] %vm651_vm10, %v650_v48 }
 0x2d9 PF: > { %s21_s11 = sadd.s32 1, %s777_s11  }
 0x2da   : > { %p18_p4 = scmp.ge.s32.totalorder %s21_s11, 4  }
 0x2dc   :  { %20 = sbr.rel (!%p18_p4) target bundleno = 3 (0x3), region = 89 }

// kernel: update_coor_forward.9
= control target key start
LH: loop header
LB: loop body
LE: loop exit
PB: predicated region body
PF: predicated region fallthrough
CT: control target
= control target key end

     0   :  { %s1030_s13 = smov 0   ;;  %s1169_s0 = inlined_call_operand.vmem [shape: f32[32,8], index: 0, kind: input, shape index: {}]   ;;  %s1170_s1 = inlined_call_operand.vmem [shape: f32[32,12], index: 1, kind: input, shape index: {}]   ;;  %s1171_s2 = inlined_call_operand.vmem [shape: f32[4,4], index: 2, kind: input, shape index: {}]   ;;  %s1172_s3 = inlined_call_operand.vmem [shape: f32[4,8], index: 3, kind: input, shape index: {}]   ;;  %s1173_s4 = inlined_call_operand.vmem [shape: f32[8,8], index: 4, kind: input, shape index: {}]   ;;  %s1174_s5 = inlined_call_operand.vmem [shape: f32[1,8], index: 5, kind: input, shape index: {}]   ;;  %s1175_s6 = inlined_call_operand.vmem [shape: f32[8,4], index: 6, kind: input, shape index: {}]   ;;  %s1176_s7 = inlined_call_operand.vmem [shape: f32[1,4], index: 7, kind: input, shape index: {}]   ;;  %s1177_s8 = inlined_call_operand.vmem [shape: f32[4,4], index: 8, kind: input, shape index: {}]   ;;  %s1178_s9 = inlined_call_operand.vmem [shape: f32[4,4], index: 9, kind: input, shape index: {}]   ;;  %s1179_s10 = inlined_call_operand.vmem [shape: f32[32,20], index: 10, kind: output, shape index: {}]  }
   0x1 LB: > { %s906_s14 = sadd.s32 4294967295, %s968_s13   ;;  %p910_p0 = scmp.ge.s32.totalorder %s968_s13, 1  ;;  %s968_s13 = sphi %s1030_s13, %s20_s13  }
   0x2   : > { %p324_p1 = scmp.lt.s32.totalorder %s968_s13, 3 }
   0x4   : > { %p325_p2 = pnand %p910_p0, %p324_p1 }
   0x5   : > { %s911_s15 = sshll.u32 (!%p325_p2), %s906_s14, 1  ;;  %s970_s22 = smov (!%p325_p2), 120  }
   0x6   : > { %328 = sbr.rel (%p325_p2) target bundleno = 903 (0x387), region = 60  ;;  %p368_p3 = scmp.lt.s32.totalorder (!%p325_p2), %s911_s15, 3 }
   0x7   : > { %s971_s23 = smov (!%p325_p2), 124   ;;  %s973_s24 = smov (!%p325_p2), 12  }
   0x8   : > { %s974_s25 = smov (!%p325_p2), 8  }
   0xb   : > { %v390_v0 = vld [vmem:[%s1171_s2] sm:$0xf]  ;;  %vm403_vm0 = vcmask 1041408   ;;  %s1181_s15 = smov (!%p368_p3, %s911_s15), 3  ;;  %vm399_vm1 = vcmask 31744   ;;  %vm502_vm2 = vcmask 1043456  }
   0xc   : > { %v398_v1 = vpack.c.bf16 %v390_v0, %v390_v0  ;;  %s1042_s18 = sshll.u32 %s1181_s15, 3  ;;  %v392_v6 = vld [vmem:[%s1173_s4] sm:$0xff]  ;;  %vm498_vm3 = vcmask 64512  }
   0xd   : > { %s377_s21 = scalar_lea.vmem %s1170_s1, %s1042_s18  ;;  %s371_s26 = scalar_lea.vmem %s1169_s0, %s1042_s18  ;;  %v396_v7 = vld [vmem:[%s1177_s8] sm:$0xf]  ;;  %v497_v9 = vpack.c.bf16 %v392_v6, %v392_v6 }
   0xe   : > { %v405_v2 = vsel %vm403_vm0, %v398_v1, 0  ;;  %v388_v3 = vld [vmem:[%s377_s21] sm:$0xff]  ;;  %v389_v4 = vld [vmem:[%s377_s21 + $0x8] sm:$0xff]  ;;  %v581_v10 = vpack.c.bf16 %v396_v7, %v396_v7  ;;  %s383_s28 = scalar_lea.vmem %s1179_s10, %s1042_s18 }
   0xf   : > { %414 = vmatpush.bf16.msra.mxu0 %v405_v2  ;;  %453 = vmatpush.bf16.msra.mxu2 %v405_v2  ;;  %v397_v5 = vpack.c.bf16 %v389_v4, %v388_v3  ;;  %v386_v8 = vld [vmem:[%s371_s26] sm:$0xff]  ;;  %v387_v11 = vld [vmem:[%s371_s26 + $0x8] sm:$0xff]  ;;  %v504_v12 = vsel %vm502_vm2, %v497_v9, 0 }
  0x10   : > { %434 = vmatpush.bf16.msra.mxu1 %v405_v2  ;;  %v586_v13 = vsel %vm403_vm0, %v581_v10, 0  ;;  %v496_v14 = vpack.c.bf16 %v387_v11, %v386_v8  ;;  %513 = vmatpush.bf16.msra.mxu3 %v504_v12  ;;  %v391_v20 = vld [vmem:[%s1172_s3] sm:$0xf] }
  0x11   : > { %441 = vrot.lane.b32.xlu0 %v397_v5, %s970_s22  ;;  %v495_v21 = vpack.c.bf16 %v391_v20, %v391_v20  ;;  %v394_v60 = vld [vmem:[%s1175_s6] sm:$0xff] }
  0x12   : > { %917 = vmatmul.msk.bf16.vlgmr.msra.gmra.mxu0 %vm399_vm1, %v397_v5  ;;  %v546_v61 = vpack.c.bf16 %v394_v60, %v394_v60  ;;  %v944_v2 = vld [vmem:[%s1174_s5] ss:$0 sm:$0xff] }
  0x13   : > { %595 = vmatpush.bf16.msrb.mxu2 %v586_v13  ;;  %920 = vmatmul.msk.bf16.vlgmr.msra.gmra.mxu3 %vm498_vm3, %v496_v14  ;;  %v524_v22 = vsel %vm403_vm0, %v495_v21, 0  ;;  %v945_v9 = vld [vmem:[%s1176_s7] ss:$0 sm:$0xff] }
  0x14   : > { %615 = vmatpush.bf16.msrb.mxu3 %v586_v13  ;;  %533 = vmatpush.bf16.msrb.mxu0 %v524_v22  ;;  %v554_v62 = vsel %vm502_vm2, %v546_v61, 0  ;;  %v650_v10 = vld [vmem:[%s1178_s9] sm:$0xf] }
  0x15   : > { %563 = vmatpush.bf16.msrb.mxu1 %v554_v62  ;;  %v652_v11 = vpack.c.bf16 %v650_v10, %v650_v10 }
  0x18   : > { %635 = vmatpush.bf16.msra.mxu0 %v586_v13  ;;  %v657_v13 = vsel %vm403_vm0, %v652_v11, 0 }
  0x19   : > { %422 = vrot.lane.b32.xlu0 %v397_v5, %s971_s23  ;;  %702 = vmatpush.bf16.msra.mxu3 %v657_v13  ;;  %s972_s23 = smov 16  }
  0x83   : > { %v442_v15 = vpop.permute.xlu0 %441 }
  0x84   : > { %919 = vmatmul.msk.bf16.vlgmr.msra.gmra.mxu2 %vm399_vm1, %v442_v15 }
  0x85   : > { %684 = vmatpush.bf16.msra.mxu2 %v657_v13 }
  0x8b   : > { %v423_v16 = vpop.permute.xlu0 %422 }
  0x8c   : > { %918 = vmatmul.msk.bf16.vlgmr.msra.gmra.mxu1 %vm399_vm1, %v423_v16 }
  0x8d   : > { %666 = vmatpush.bf16.msra.mxu1 %v657_v13 }
  0x8f   : > { %v416_v17 = vpop.f32.mrf.mxu0 }
  0x90   : > { %v460_v24 = vmul.f32 %v416_v17, %v416_v17 }
  0x96   : > { %v515_v63 = vpop.f32.mrf.mxu3 }
  0x97   : > { %v418_v18 = vpop.f32.mrf.mxu0 }
  0x98   : > { %v580_v19 = vpack.c.bf16 %v418_v18, %v416_v17  ;;  %v461_v32 = vmul.f32 %v418_v18, %v418_v18 }
  0x9a   : > { %923 = vmatmul.msk.bf16.vlgmr.msrb.gmra.mxu2 %vm399_vm1, %v580_v19 }
  0x9e   : > { %v517_v3 = vpop.f32.mrf.mxu3 }
 0x107   : > { %v455_v23 = vpop.f32.mrf.mxu2 }
 0x108   : > { %v466_v27 = vmul.f32 %v455_v23, %v455_v23 }
 0x109   : > { %v436_v25 = vpop.f32.mrf.mxu1 }
 0x10a   : > { %v462_v26 = vmul.f32 %v436_v25, %v436_v25 }
 0x10c   : > { %v464_v28 = vadd.f32 %v462_v26, %v460_v24 }
 0x10e   : > { %v468_v29 = vadd.f32 %v466_v27, %v464_v28 }
 0x10f   : > { %v457_v30 = vpop.f32.mrf.mxu2 }
 0x110   : > { %946 = vrsqrt.f32 %v468_v29  ;;  %v467_v35 = vmul.f32 %v457_v30, %v457_v30  ;;  %vm477_vm4 = vcmp.eq.f32.partialorder %v468_v29, inf  ;;  %v480_v53 = vand.u32 2147483648, %v468_v29 }
 0x111   : > { %v438_v31 = vpop.f32.mrf.mxu1  ;;  %vm479_vm6 = vcmp.eq.f32.partialorder %v468_v29, 0.0  ;;  %v624_v59 = vpack.c.bf16 %v457_v30, %v455_v23 }
 0x112   : > { %v463_v33 = vmul.f32 %v438_v31, %v438_v31  ;;  %v604_v34 = vpack.c.bf16 %v438_v31, %v436_v25 }
 0x114   : > { %v465_v36 = vadd.f32 %v463_v33, %v461_v32  ;;  %924 = vmatmul.msk.bf16.vlgmr.msrb.gmra.mxu3 %vm399_vm1, %v604_v34 }
 0x116   : > { %v947_v37 = vpop.eup %946  ;;  %v469_v38 = vadd.f32 %v467_v35, %v465_v36 }
 0x117   : > { %v471_v39 = vmul.f32 %v947_v37, %v468_v29 }
 0x118   : > { %948 = vrsqrt.f32 %v469_v38  ;;  %vm489_vm5 = vcmp.eq.f32.partialorder %v469_v38, inf  ;;  %v492_v54 = vand.u32 2147483648, %v469_v38  ;;  %vm491_vm7 = vcmp.eq.f32.partialorder %v469_v38, 0.0 }
 0x119   : > { %v472_v40 = vmul.f32 %v947_v37, %v471_v39 }
 0x11b   : > { %v473_v41 = vmul.f32 0.5, %v472_v40 }
 0x11d   : > { %v474_v42 = vsub.f32 1.5, %v473_v41  ;;  %v597_v23 = vpop.f32.mrf.mxu2 }
 0x11e   : > { %v949_v43 = vpop.eup %948 }
 0x11f   : > { %v483_v44 = vmul.f32 %v949_v43, %v469_v38  ;;  %v475_v45 = vmul.f32 %v947_v37, %v474_v42 }
 0x121   : > { %v484_v46 = vmul.f32 %v949_v43, %v483_v44  ;;  %v476_v48 = vmul.f32 %v475_v45, %v468_v29 }
 0x123   : > { %v485_v47 = vmul.f32 0.5, %v484_v46  ;;  %v478_v51 = vsel %vm477_vm4, %v468_v29, %v476_v48  ;;  %vm829_vm4 = vcmask 97280  }
 0x124   : > { %v481_v56 = vsel %vm479_vm6, %v480_v53, %v478_v51  ;;  %vm835_vm6 = vcmask 162816  }
 0x125   : > { %v486_v49 = vsub.f32 1.5, %v485_v47  ;;  %v599_v29 = vpop.f32.mrf.mxu2 }
 0x127   : > { %v487_v50 = vmul.f32 %v949_v43, %v486_v49 }
 0x129   : > { %v488_v52 = vmul.f32 %v487_v50, %v469_v38 }
 0x12b   : > { %v490_v55 = vsel %vm489_vm5, %v469_v38, %v488_v52  ;;  %vm832_vm5 = vcmask 130048  }
 0x12c   : > { %v493_v57 = vsel %vm491_vm7, %v492_v54, %v490_v55 }
 0x12d   : > { %v494_v58 = vpack.c.bf16 %v493_v57, %v481_v56 }
 0x12f   : > { %921 = vmatmul.msk.bf16.vlgmr.msrb.gmra.mxu0 %vm399_vm1, %v494_v58 }
 0x13f   : > { %925 = vmatmul.msk.bf16.vlgmr.msra.gmra.mxu0 %vm399_vm1, %v624_v59 }
 0x197   : > { %v617_v24 = vpop.f32.mrf.mxu3 }
 0x19f   : > { %v619_v31 = vpop.f32.mrf.mxu3 }
 0x1ac   : > { %v535_v0 = vpop.f32.mrf.mxu0 }
 0x1ad   : > { %v536_v1 = vadd.f32 %v535_v0, %v515_v63 }
 0x1af   : > { %v1079_v6 = vadd.f32 %v944_v2, %v536_v1 }
 0x1b1   : > { %vm644_vm2 = vcmp.ge.f32.partialorder %v1079_v6, 0.0 }
 0x1b4   : > { %v537_v4 = vpop.f32.mrf.mxu0 }
 0x1b5   : > { %v538_v5 = vadd.f32 %v537_v4, %v517_v3 }
 0x1b7   : > { %v1081_v7 = vadd.f32 %v944_v2, %v538_v5 }
 0x1b9   : > { %v545_v8 = vpack.c.bf16 %v1081_v7, %v1079_v6  ;;  %vm645_vm7 = vcmp.ge.f32.partialorder %v1081_v7, 0.0 }
 0x1bb   : > { %922 = vmatmul.msk.bf16.vlgmr.msrb.gmra.mxu1 %vm498_vm3, %v545_v8 }
 0x1bc   : > { %v637_v25 = vpop.f32.mrf.mxu0 }
 0x1c4   : > { %v639_v32 = vpop.f32.mrf.mxu0 }
 0x238   : > { %v565_v12 = vpop.f32.mrf.mxu1 }
 0x239   : > { %v566_v14 = vadd.f32 %v945_v9, %v565_v12 }
 0x23b   : > { %v570_v15 = vsub.f32 0.0, %v566_v14 }
 0x23d   : > { %v572_v16 = vmul.f32 1.442695, %v570_v15 }
 0x23f   : > { %950 = vpow2.f32 %v572_v16 }
 0x240   : > { %v567_v17 = vpop.f32.mrf.mxu1 }
 0x241   : > { %v568_v18 = vadd.f32 %v945_v9, %v567_v17 }
 0x243   : > { %v571_v19 = vsub.f32 0.0, %v568_v18 }
 0x245   : > { %v574_v20 = vmul.f32 1.442695, %v571_v19  ;;  %v951_v21 = vpop.eup %950 }
 0x246   : > { %v576_v22 = vadd.f32 1.0, %v951_v21 }
 0x247   : > { %952 = vpow2.f32 %v574_v20 }
 0x248   : > { %954 = vrcp.f32 %v576_v22 }
 0x24d   : > { %v953_v26 = vpop.eup %952 }
 0x24e   : > { %v577_v27 = vadd.f32 1.0, %v953_v26  ;;  %v955_v28 = vpop.eup %954 }
 0x24f   : > { %v1093_v33 = vmul.f32 %v955_v28, %v597_v23  ;;  %v1095_v34 = vmul.f32 %v955_v28, %v617_v24  ;;  %v1097_v35 = vmul.f32 %v955_v28, %v637_v25 }
 0x250   : > { %956 = vrcp.f32 %v577_v27 }
 0x251   : > { %v795_v23 = vmul.f32 0.01, %v1097_v35  ;;  %v781_v27 = vmul.f32 0.01, %v1095_v34 }
 0x256   : > { %v957_v30 = vpop.eup %956 }
 0x257   : > { %v1099_v36 = vmul.f32 %v957_v30, %v599_v29  ;;  %v1101_v37 = vmul.f32 %v957_v30, %v619_v31  ;;  %v1103_v38 = vmul.f32 %v957_v30, %v639_v32  ;;  %v765_v30 = vmul.f32 0.01, %v1093_v33 }
 0x259   : > { %v651_v39 = vpack.c.bf16 %v1099_v36, %v1093_v33  ;;  %v673_v40 = vpack.c.bf16 %v1101_v37, %v1095_v34  ;;  %v691_v41 = vpack.c.bf16 %v1103_v38, %v1097_v35 }
 0x25b   : > { %926 = vmatmul.msk.bf16.vlgmr.msra.gmra.mxu1 %vm399_vm1, %v651_v39  ;;  %927 = vmatmul.msk.bf16.vlgmr.msra.gmra.mxu2 %vm399_vm1, %v673_v40 }
 0x25c   : > { %928 = vmatmul.msk.bf16.vlgmr.msra.gmra.mxu3 %vm399_vm1, %v691_v41 }
 0x2d8   : > { %v668_v42 = vpop.f32.mrf.mxu1 }
 0x2d9   : > { %v719_v44 = vmul.f32 %v668_v42, %v668_v42  ;;  %v709_v59 = vmul.f32 %v668_v42, %v1093_v33 }
 0x2de   : > { %v686_v43 = vpop.f32.mrf.mxu2 }
 0x2df   : > { %v721_v45 = vmul.f32 %v686_v43, %v686_v43  ;;  %v704_v46 = vpop.f32.mrf.mxu3  ;;  %v711_v56 = vmul.f32 %v686_v43, %v1095_v34 }
 0x2e0   : > { %v725_v48 = vmul.f32 %v704_v46, %v704_v46  ;;  %v670_v51 = vpop.f32.mrf.mxu1  ;;  %v715_v1 = vmul.f32 %v704_v46, %v1097_v35 }
 0x2e1   : > { %v723_v47 = vadd.f32 %v721_v45, %v719_v44  ;;  %v720_v54 = vmul.f32 %v670_v51, %v670_v51  ;;  %v713_v62 = vadd.f32 %v711_v56, %v709_v59  ;;  %v710_v8 = vmul.f32 %v670_v51, %v1099_v36 }
 0x2e3   : > { %v727_v49 = vadd.f32 %v725_v48, %v723_v47  ;;  %v717_v4 = vadd.f32 %v715_v1, %v713_v62  ;;  %v766_v1 = vmul.f32 0.01, %v1099_v36 }
 0x2e5   : > { %v731_v50 = vadd.f32 1e-08, %v727_v49  ;;  %v729_v13 = vmul.f32 %v717_v4, %v668_v42  ;;  %v775_v18 = vmul.f32 %v717_v4, %v686_v43  ;;  %v789_v19 = vmul.f32 %v717_v4, %v704_v46 }
 0x2e6   : > { %v1114_v52 = vpop.f32.mrf.mxu2  ;;  %vm767_vm13 = vcmp.ge.f32.partialorder %v717_v4, 0.0 }
 0x2e7   : > { %958 = vrcp.f32 %v731_v50  ;;  %v1116_v53 = vpop.f32.mrf.mxu3  ;;  %v722_v55 = vmul.f32 %v1114_v52, %v1114_v52  ;;  %v712_v2 = vmul.f32 %v1114_v52, %v1101_v37  ;;  %v744_v5 = vand.u32 2147483648, %v731_v50 }
 0x2e8   : > { %v726_v58 = vmul.f32 %v1116_v53, %v1116_v53  ;;  %v742_v10 = vand.u32 2147483647, %v731_v50  ;;  %vm738_vm9 = vweird.f32 %v731_v50  ;;  %v716_v15 = vmul.f32 %v1116_v53, %v1103_v38 }
 0x2e9   : > { %v724_v57 = vadd.f32 %v722_v55, %v720_v54  ;;  %v714_v11 = vadd.f32 %v712_v2, %v710_v8  ;;  %v745_v14 = vor.u32 1.1754944e-38, %v744_v5 }
 0x2ea   : > { %vm743_vm11 = vcmp.eq.f32.partialorder %v742_v10, 8.507059e+37 }
 0x2eb   : > { %v728_v60 = vadd.f32 %v726_v58, %v724_v57  ;;  %v718_v21 = vadd.f32 %v716_v15, %v714_v11 }
 0x2ed   : > { %v959_v61 = vpop.eup %958  ;;  %v732_v0 = vadd.f32 1e-08, %v728_v60  ;;  %v730_v41 = vmul.f32 %v718_v21, %v670_v51  ;;  %v776_v54 = vmul.f32 %v718_v21, %v1114_v52  ;;  %v790_v51 = vmul.f32 %v718_v21, %v1116_v53 }
 0x2ee   : > { %v734_v63 = vmul.f32 %v959_v61, %v731_v50  ;;  %vm739_vm8 = vweird.f32 %v959_v61  ;;  %vm768_vm1 = vcmp.ge.f32.partialorder %v718_v21, 0.0 }
 0x2ef   : > { %960 = vrcp.f32 %v732_v0  ;;  %vm740_vm10 = vmor %vm738_vm9, %vm739_vm8  ;;  %v757_v29 = vand.u32 2147483647, %v732_v0  ;;  %v759_v32 = vand.u32 2147483648, %v732_v0  ;;  %vm753_vm14 = vweird.f32 %v732_v0 }
 0x2f0   : > { %v735_v3 = vsub.f32 1.0, %v734_v63 }
 0x2f1   : > { %vm758_vm0 = vcmp.eq.f32.partialorder %v757_v29, 8.507059e+37  ;;  %v760_v50 = vor.u32 1.1754944e-38, %v759_v32 }
 0x2f2   : > { %v736_v9 = vmul.f32 %v959_v61, %v735_v3 }
 0x2f4   : > { %v737_v12 = vadd.f32 %v959_v61, %v736_v9  ;;  %v796_v9 = vmul.f32 0.01, %v1103_v38 }
 0x2f5   : > { %v961_v16 = vpop.eup %960 }
 0x2f6   : > { %v741_v17 = vsel %vm740_vm10, %v959_v61, %v737_v12  ;;  %v749_v22 = vmul.f32 %v961_v16, %v732_v0  ;;  %vm754_vm12 = vweird.f32 %v961_v16  ;;  %v782_v61 = vmul.f32 0.01, %v1101_v37 }
 0x2f7   : > { %v746_v20 = vsel %vm743_vm11, %v745_v14, %v741_v17  ;;  %vm755_vm15 = vmor %vm753_vm14, %vm754_vm12 }
 0x2f8   : > { %v747_v24 = vmul.f32 %v746_v20, %v729_v13  ;;  %v777_v25 = vmul.f32 %v775_v18, %v746_v20  ;;  %v791_v26 = vmul.f32 %v789_v19, %v746_v20  ;;  %v750_v28 = vsub.f32 1.0, %v749_v22 }
 0x2fa   : > { %v793_v31 = vsub.f32 %v1097_v35, %v791_v26  ;;  %v779_v39 = vsub.f32 %v1095_v34, %v777_v25  ;;  %v763_v40 = vsub.f32 %v1093_v33, %v747_v24  ;;  %v751_v42 = vmul.f32 %v961_v16, %v750_v28 }
 0x2fc   : > { %v797_v43 = vsel %vm767_vm13, %v1097_v35, %v793_v31  ;;  %v783_v44 = vsel %vm767_vm13, %v1095_v34, %v779_v39  ;;  %v769_v45 = vsel %vm767_vm13, %v1093_v33, %v763_v40  ;;  %v752_v46 = vadd.f32 %v961_v16, %v751_v42 }
 0x2fd   : > { %v799_v47 = vmul.f32 0.99, %v797_v43  ;;  %v785_v48 = vmul.f32 0.99, %v783_v44  ;;  %v771_v49 = vmul.f32 0.99, %v769_v45 }
 0x2fe   : > { %v756_v55 = vsel %vm755_vm15, %v961_v16, %v752_v46  ;;  %v647_v16 = vmul.f32 0.01, %v1081_v7 }
 0x2ff   : > { %v801_v56 = vadd.f32 %v799_v47, %v795_v23  ;;  %v787_v57 = vadd.f32 %v785_v48, %v781_v27  ;;  %v773_v58 = vadd.f32 %v771_v49, %v765_v30  ;;  %v761_v35 = vsel %vm758_vm0, %v760_v50, %v756_v55 }
 0x300   : > { %v762_v59 = vmul.f32 %v761_v35, %v730_v41  ;;  %v778_v34 = vmul.f32 %v776_v54, %v761_v35  ;;  %v792_v60 = vmul.f32 %v790_v51, %v761_v35 }
 0x301   : > { %821 = vrot.lane.b32.xlu0 %v801_v56, %s972_s23  ;;  %813 = vrot.lane.b32.xlu2 %v787_v57, %s973_s24 }
 0x302   : > { %805 = vrot.lane.b32.xlu1 %v773_v58, %s974_s25  ;;  %v764_v33 = vsub.f32 %v1099_v36, %v762_v59  ;;  %v780_v52 = vsub.f32 %v1101_v37, %v778_v34  ;;  %v794_v53 = vsub.f32 %v1103_v38, %v792_v60 }
 0x304   : > { %v784_v62 = vsel %vm768_vm1, %v1101_v37, %v780_v52  ;;  %v770_v63 = vsel %vm768_vm1, %v1099_v36, %v764_v33  ;;  %v798_v5 = vsel %vm768_vm1, %v1103_v38, %v794_v53  ;;  %v646_v37 = vmul.f32 0.01, %v1079_v6 }
 0x305   : > { %v786_v0 = vmul.f32 0.99, %v784_v62  ;;  %v772_v2 = vmul.f32 0.99, %v770_v63  ;;  %v800_v8 = vmul.f32 0.99, %v798_v5 }
 0x306   : > { %v648_v36 = vsel %vm644_vm2, %v1079_v6, %v646_v37  ;;  %v649_v6 = vsel %vm645_vm7, %v1081_v7, %v647_v16 }
 0x307   : > { %v788_v3 = vadd.f32 %v786_v0, %v782_v61  ;;  %v774_v4 = vadd.f32 %v772_v2, %v766_v1  ;;  %v802_v10 = vadd.f32 %v800_v8, %v796_v9 }
 0x309   : > { %815 = vrot.lane.b32.xlu2 %v788_v3, %s973_s24 }
 0x30a   : > { %807 = vrot.lane.b32.xlu1 %v774_v4, %s974_s25 }
 0x312   : > { %823 = vrot.lane.b32.xlu1 %v802_v10, %s972_s23 }
 0x35b   : > { %v814_v12 = vpop.permute.xlu2 %813 }
 0x363   : > { %v816_v19 = vpop.permute.xlu2 %815 }
 0x373   : > { %v822_v38 = vpop.permute.xlu0 %821 }
 0x374   : > { %v806_v11 = vpop.permute.xlu1 %805 }
 0x375   : > { %v827_v13 = vsel %vm498_vm3, %v648_v36, %v806_v11 }
 0x376   : > { %v830_v14 = vsel %vm829_vm4, %v827_v13, %v814_v12 }
 0x377   : > { %v833_v15 = vsel %vm832_vm5, %v830_v14, %v822_v38 }
 0x378   : > { %836 = vst.msk [vmem:[%s383_s28] sm:$0xff] %vm835_vm6, %v833_v15 }
 0x37c   : > { %v808_v17 = vpop.permute.xlu1 %807 }
 0x37d   : > { %v828_v18 = vsel %vm498_vm3, %v649_v6, %v808_v17 }
 0x37e   : > { %v831_v20 = vsel %vm829_vm4, %v828_v18, %v816_v19 }
 0x384   : > { %v824_v21 = vpop.permute.xlu1 %823 }
 0x385   : > { %v834_v22 = vsel %vm832_vm5, %v831_v20, %v824_v21 }
 0x386   : > { %837 = vst.msk [vmem:[%s383_s28 + $0x8] sm:$0xff] %vm835_vm6, %v834_v22 }
 0x387 PF: > { %s20_s13 = sadd.s32 1, %s968_s13  }
 0x388   : > { %p17_p4 = scmp.ge.s32.totalorder %s20_s13, 4  }
 0x38a   :  { %19 = sbr.rel (!%p17_p4) target bundleno = 1 (0x1), region = 93 }

// kernel: update_coor_forward.8
= control target key start
LH: loop header
LB: loop body
LE: loop exit
PB: predicated region body
PF: predicated region fallthrough
CT: control target
= control target key end

     0   :  { %s5149_s28 = smov 0   ;;  %s7417_s0 = inlined_call_operand.vmem [shape: f32[2,8,16], index: 0, kind: input, shape index: {}]   ;;  %s7418_s1 = inlined_call_operand.vmem [shape: f32[2,8,16], index: 1, kind: input, shape index: {}]   ;;  %s7419_s2 = inlined_call_operand.vmem [shape: f32[2,8,16], index: 2, kind: input, shape index: {}]   ;;  %s7420_s3 = inlined_call_operand.vmem [shape: f32[2,8,16], index: 3, kind: input, shape index: {}]   ;;  %s7421_s4 = inlined_call_operand.vmem [shape: f32[2,8,24], index: 4, kind: input, shape index: {}]   ;;  %s7422_s5 = inlined_call_operand.vmem [shape: f32[2,8,24], index: 5, kind: input, shape index: {}]   ;;  %s7423_s6 = inlined_call_operand.vmem [shape: f32[2,8,24], index: 6, kind: input, shape index: {}]   ;;  %s7424_s7 = inlined_call_operand.vmem [shape: f32[2,8,24], index: 7, kind: input, shape index: {}]   ;;  %s7425_s8 = inlined_call_operand.vmem [shape: bf16[2,8,8,40], index: 8, kind: input, shape index: {}]   ;;  %s7426_s9 = inlined_call_operand.vmem [shape: f32[2,8,3], index: 9, kind: input, shape index: {}, may-alias: {9,10}]   ;;  %s7427_s10 = inlined_call_operand.vmem [shape: f32[2,8,3], index: 10, kind: input, shape index: {}, may-alias: {9,10}]   ;;  %s7428_s11 = inlined_call_operand.vmem [shape: f32[2,1,8], index: 11, kind: input, shape index: {}]   ;;  %s7429_s12 = inlined_call_operand.vmem [shape: f32[2,8,1], index: 12, kind: input, shape index: {}]   ;;  %s7430_s13 = inlined_call_operand.vmem [shape: f32[24,24], index: 13, kind: input, shape index: {}]   ;;  %s7431_s14 = inlined_call_operand.vmem [shape: f32[1,24], index: 14, kind: input, shape index: {}]   ;;  %s7432_s15 = inlined_call_operand.vmem [shape: f32[24,2], index: 15, kind: input, shape index: {}]   ;;  %s7433_s16 = inlined_call_operand.<no memory space> [shape: f32[1,1], index: 16, kind: input, shape index: {}]   ;;  %s7434_s18 = inlined_call_operand.vmem [shape: f32[8,8], index: 18, kind: input, shape index: {}]   ;;  %s7435_s19 = inlined_call_operand.vmem [shape: f32[8,8], index: 19, kind: input, shape index: {}]   ;;  %s7436_s20 = inlined_call_operand.vmem [shape: f32[16,8], index: 20, kind: input, shape index: {}]   ;;  %s7437_s21 = inlined_call_operand.vmem [shape: f32[1,8], index: 21, kind: input, shape index: {}]   ;;  %s7438_s22 = inlined_call_operand.vmem [shape: f32[8,4], index: 22, kind: input, shape index: {}]   ;;  %s7439_s23 = inlined_call_operand.vmem [shape: f32[1,4], index: 23, kind: input, shape index: {}]   ;;  %s7440_s24 = inlined_call_operand.vmem [shape: f32[8,4], index: 24, kind: input, shape index: {}]   ;;  %s7441_s25 = inlined_call_operand.vmem [shape: f32[4,4], index: 25, kind: input, shape index: {}]   ;;  %s7442_s26 = inlined_call_operand.vmem [shape: f32[2,8,86], index: 26, kind: output, shape index: {0}]   ;;  %s7443_s27 = inlined_call_operand.vmem [shape: f32[2,8,8,20], index: 27, kind: output, shape index: {1}]   ;;  %s7444_s17 = inlined_call_operand.<no memory space> [shape: f32[1,1], index: 17, kind: input, shape index: {}]  }
   0x1   :  { %7486 = sst [smem:[#allocation27_spill]] %s7417_s0  ;;  %v33_v0 = vstv %s7433_s16  ;;  %v35_v1 = vstv %s7444_s17 }
   0x2   :  { %7487 = sst [smem:[#allocation28_spill]] %s7418_s1  ;;  %34 = vst [vmem:[#allocation2] sm:$0x1] %v33_v0 }
   0x3   :  { %7488 = sst [smem:[#allocation29_spill]] %s7419_s2  ;;  %36 = vst [vmem:[#allocation3] sm:$0x1] %v35_v1 }
   0x4   :  { %7489 = sst [smem:[#allocation30_spill]] %s7420_s3 }
   0x5   :  { %7490 = sst [smem:[#allocation31_spill]] %s7421_s4 }
   0x6   :  { %7491 = sst [smem:[#allocation32_spill]] %s7422_s5  ;;  %s5147_s5 = smov 0  }
   0x7   :  { %7492 = sst [smem:[#allocation33_spill]] %s7423_s6 }
   0x8   :  { %7493 = sst [smem:[#allocation34_spill]] %s7424_s7 }
   0x9   :  { %7494 = sst [smem:[#allocation35_spill]] %s7425_s8 }
   0xa   :  { %7495 = sst [smem:[#allocation36_spill]] %s7426_s9  ;;  %s5145_s9 = smov 0  }
   0xb   :  { %7496 = sst [smem:[#allocation37_spill]] %s7427_s10 }
   0xc   :  { %7497 = sst [smem:[#allocation38_spill]] %s7428_s11 }
   0xd LB: > { %s54_s16 = sadd.s32 1, %s4977_s5  ;;  %p4587_p0 = scmp.ge.s32.totalorder %s4981_s28, 1  ;;  %s4981_s28 = sphi %s5149_s28, %s42_s28   ;;  %s4977_s5 = sphi %s5147_s5, %s7649_s5   ;;  %s4973_s9 = sphi %s5145_s9, %s7648_s9  }
   0xe   : > { %p56_p1 = scmp.ge.s32.totalorder %s54_s16, 2  ;;  %p889_p2 = scmp.lt.s32.totalorder %s4981_s28, 3 }
  0x10   : > { %s7651_s16 = smov (%p56_p1, %s54_s16), 0  ;;  %p890_p3 = pnand %p4587_p0, %p889_p2 }
  0x11   : > { %7498 = sst [smem:[#allocation4_spill]] %s7651_s16 }
  0x12   : > { %893 = sbr.rel (%p890_p3) target bundleno = 2160 (0x870), region = 124 }
  0x17   : > { %p1032_p4 = scmp.lt.s32.totalorder %s4973_s9, 1  ;;  %s7499_s1 = sld [smem:[#allocation27_spill]]  ;;  %vm1275_vm0 = vcmask 64512   ;;  %vm7453_vm1 = vcmask 31744   ;;  %vm1482_vm6 = vcmask 1041409   ;;  %vm1484_vm7 = vcmask 1042434  }
  0x18   : > { %s7500_s3 = sld [smem:[#allocation28_spill]]  ;;  %s4985_s4 = smov 124   ;;  %vm1486_vm8 = vcmask 1043459   ;;  %vm7455_vm9 = vcmask 1044484   ;;  %vm7454_vm11 = vcmask 1045509   ;;  %vm7450_vm12 = vcmask 1046534  }
  0x19   : > { %s7653_s9 = smov (!%p1032_p4, %s4973_s9), 1  ;;  %s7501_s30 = sld [smem:[#allocation35_spill]]  ;;  %vm7449_vm13 = vcmask 1047559  }
  0x1a   : > { %s5166_s17 = sshll.u32 %s7653_s9, 3  ;;  %s4666_s0 = sshll.u32 %s7653_s9, 5 }
  0x1b   : > { %s4986_s8 = smov 116   ;;  %s4988_s10 = smov 4  }
  0x1c   : > { %s4989_s2 = smov 16   ;;  %s4991_s29 = smov 8  }
  0x1d   : > { %s1038_s6 = scalar_lea.vmem %s7499_s1, %s5166_s17  ;;  %s7504_s1 = sld [smem:[#allocation31_spill]] }
  0x1e   : > { %s1042_s7 = scalar_lea.vmem %s7500_s3, %s5166_s17  ;;  %v1134_v2 = vld [vmem:[%s1038_s6] sm:$0xff]  ;;  %s7505_s3 = sld [smem:[#allocation32_spill]] }
  0x1f   : > { %s5180_s16 = scalar_lea.vmem %s7501_s30, %s4666_s0  ;;  %v1135_v3 = vld [vmem:[%s1042_s7] sm:$0xff]  ;;  %v1163_v5 = vperm.slane %v1134_v2, 0  ;;  %v1157_v7 = vrot.slane %v1134_v2, 2  ;;  %v1156_v8 = vrot.slane %v1134_v2, 1  ;;  %v1158_v9 = vrot.slane %v1134_v2, 3  ;;  %s4983_s0 = smov 120  }
  0x20   : > { %v4669_v4 = vld [vmem:[%s5180_s16] sm:$0xff]   ;;  %v4684_v6 = vld [vmem:[%s5180_s16 + $0x8] sm:$0xff]   ;;  %v4685_v15 = vld [vmem:[%s5180_s16 + $0x10] sm:$0xff]   ;;  %v1159_v16 = vrot.slane %v1134_v2, 4  ;;  %v1161_v25 = vrot.slane %v1134_v2, 6  ;;  %v1160_v27 = vrot.slane %v1134_v2, 5 }
  0x21   : > { %v4670_v10 = vunpack.c.l.bf16 %v4669_v4  ;;  %v1179_v11 = vmul.f32 %v1163_v5, %v1135_v3  ;;  %v4674_v12 = vunpack.c.l.bf16 %v4684_v6  ;;  %v1165_v13 = vperm.slane %v1157_v7, 0  ;;  %v4686_v35 = vld [vmem:[%s5180_s16 + $0x18] sm:$0xff]   ;;  %s4984_s16 = smov 112   ;;  %s4987_s30 = smov 108  }
  0x22   : > { %v1164_v14 = vperm.slane %v1156_v8, 0  ;;  %v1166_v19 = vperm.slane %v1158_v9, 0  ;;  %v4678_v20 = vunpack.c.l.bf16 %v4685_v15  ;;  %v1167_v21 = vperm.slane %v1159_v16, 0 }
  0x23   : > { %v5185_v17 = vmul.f32 %v4670_v10, %v1179_v11  ;;  %v1181_v18 = vmul.f32 %v1165_v13, %v1135_v3  ;;  %v4671_v23 = vunpack.c.h.bf16 %v4669_v4  ;;  %v4675_v28 = vunpack.c.h.bf16 %v4684_v6  ;;  %s1057_s6 = scalar_lea.vmem %s7504_s1, %s5166_s17 }
  0x24   : > { %v1180_v24 = vmul.f32 %v1164_v14, %v1135_v3  ;;  %v1183_v26 = vmul.f32 %v1167_v21, %v1135_v3  ;;  %v1182_v29 = vmul.f32 %v1166_v19, %v1135_v3  ;;  %v1162_v30 = vrot.slane %v1134_v2, 7  ;;  %v5228_v52 = vld [vmem:[%s1057_s6] sm:$0xff]  ;;  %s1061_s7 = scalar_lea.vmem %s7505_s3, %s5166_s17  ;;  %s7506_s6 = sld [smem:[#allocation30_spill]] }
  0x25   : > { %1783 = vrot.lane.b32.xlu0 %v5185_v17, %s4983_s0  ;;  %v5189_v22 = vmul.f32 %v4674_v12, %v1181_v18  ;;  %v1168_v32 = vperm.slane %v1160_v27, 0  ;;  %v1169_v34 = vperm.slane %v1161_v25, 0  ;;  %v4679_v39 = vunpack.c.h.bf16 %v4685_v15  ;;  %v5238_v57 = vld [vmem:[%s1061_s7] sm:$0xff]  ;;  %s7510_s3 = sld [smem:[#allocation29_spill]] }
  0x26   : > { %v5193_v31 = vmul.f32 %v4678_v20, %v1183_v26  ;;  %v5195_v33 = vmul.f32 %v4671_v23, %v1180_v24  ;;  %v5200_v37 = vmul.f32 %v4675_v28, %v1182_v29  ;;  %v1170_v38 = vperm.slane %v1162_v30, 0 }
  0x27   : > { %1787 = vrot.lane.b32.xlu1 %v5189_v22, %s4983_s0  ;;  %v1184_v36 = vmul.f32 %v1168_v32, %v1135_v3  ;;  %v4682_v40 = vunpack.c.l.bf16 %v4686_v35  ;;  %v1185_v41 = vmul.f32 %v1169_v34, %v1135_v3  ;;  %v4683_v43 = vunpack.c.h.bf16 %v4686_v35 }
  0x28   : > { %1791 = vrot.lane.b32.xlu2 %v5193_v31, %s4983_s0  ;;  %v1186_v44 = vmul.f32 %v1170_v38, %v1135_v3  ;;  %v4741_v47 = vpack.i.bf16 %v4671_v23, %v4670_v10  ;;  %v4731_v48 = vpack.i.bf16 %v4679_v39, %v4678_v20  ;;  %v4746_v50 = vpack.i.bf16 %v4675_v28, %v4674_v12 }
  0x29   : > { %v5204_v42 = vmul.f32 %v4679_v39, %v1184_v36  ;;  %v5208_v45 = vmul.f32 %v4682_v40, %v1185_v41  ;;  %v4736_v49 = vpack.i.bf16 %v4683_v43, %v4682_v40  ;;  %v1204_v53 = vrot.slane %v5228_v52, 1 }
  0x2a   : > { %v5212_v46 = vmul.f32 %v4683_v43, %v1186_v44  ;;  %v1211_v55 = vperm.slane %v5228_v52, 0  ;;  %v1207_v5 = vrot.slane %v5228_v52, 4  ;;  %v1208_v6 = vrot.slane %v5228_v52, 5  ;;  %s5378_s11 = scalar_lea.vmem %s7506_s6, %s5166_s17 }
  0x2b   : > { %7502 = vst [vmem:[#allocation5_spill] sm:$0xff] %v5208_v45  ;;  %v1212_v56 = vperm.slane %v1204_v53, 0  ;;  %v1209_v8 = vrot.slane %v5228_v52, 6  ;;  %v1210_v15 = vrot.slane %v5228_v52, 7  ;;  %s1046_s7 = scalar_lea.vmem %s7510_s3, %s5166_s17  ;;  %s7512_s3 = sld [smem:[#allocation34_spill]] }
  0x2c   : > { %7503 = vst [vmem:[#allocation6_spill] sm:$0xff] %v5212_v46  ;;  %v1227_v58 = vmul.f32 %v1211_v55, %v5238_v57  ;;  %v1215_v10 = vperm.slane %v1207_v5, 0  ;;  %v1216_v11 = vperm.slane %v1208_v6, 0 }
  0x2d   : > { %1785 = vrot.lane.b32.xlu0 %v5195_v33, %s4983_s0  ;;  %v1228_v59 = vmul.f32 %v1212_v56, %v5238_v57  ;;  %v1217_v12 = vperm.slane %v1209_v8, 0  ;;  %v1218_v25 = vperm.slane %v1210_v15, 0 }
  0x2e   : > { %v1231_v13 = vmul.f32 %v1215_v10, %v5238_v57  ;;  %v1232_v14 = vmul.f32 %v1216_v11, %v5238_v57 }
  0x2f   : > { %1789 = vrot.lane.b32.xlu1 %v5200_v37, %s4983_s0  ;;  %v1233_v20 = vmul.f32 %v1217_v12, %v5238_v57  ;;  %v1234_v30 = vmul.f32 %v1218_v25, %v5238_v57 }
  0x30   : > { %1793 = vrot.lane.b32.xlu2 %v5204_v42, %s4983_s0 }
  0x35   : > { %1795 = vrot.lane.b32.xlu0 %v5208_v45, %s4983_s0 }
  0x37   : > { %1797 = vrot.lane.b32.xlu1 %v5212_v46, %s4983_s0 }
  0x38   : > { %4742 = vrot.lane.b32.xlu2 %v4741_v47, %s4984_s16 }
  0x3d   : > { %4732 = vrot.lane.b32.xlu0 %v4731_v48, %s4984_s16  ;;  %v1205_v48 = vrot.slane %v5228_v52, 2 }
  0x3f   : > { %4737 = vrot.lane.b32.xlu1 %v4736_v49, %s4984_s16  ;;  %v1213_v49 = vperm.slane %v1205_v48, 0  ;;  %v4751_v48 = vpack.i.bf16 %v5204_v42, %v5193_v31 }
  0x41   : > { %v1229_v55 = vmul.f32 %v1213_v49, %v5238_v57 }
  0x45   : > { %4747 = vrot.lane.b32.xlu0 %v4746_v50, %s4984_s16  ;;  %v1206_v50 = vrot.slane %v5228_v52, 3 }
  0x82   : > { %v5222_v51 = vpop.permute.xlu2 %1791 }
  0x83   : > { %v1819_v47 = vsel %vm1275_vm0, %v5222_v51, 0.0 }
  0x8a   : > { %v5231_v54 = vpop.permute.xlu2 %1793 }
  0x8b   : > { %v1822_v43 = vsel %vm1275_vm0, %v5231_v54, 0.0 }
  0x92   : > { %v4743_v60 = vpop.permute.xlu2 %4742 }
  0x93   : > { %v4745_v61 = vunpack.i.h.bf16 %v4743_v60  ;;  %v4744_v62 = vunpack.i.l.bf16 %v4743_v60 }
  0x95   : > { %v5242_v0 = vmul.f32 %v4745_v61, %v1228_v59  ;;  %v5244_v1 = vmul.f32 %v4744_v62, %v1227_v58  ;;  %v1214_v58 = vperm.slane %v1206_v50, 0 }
  0x97   : > { %v1784_v63 = vpop.permute.xlu0 %1783  ;;  %1839 = vrot.lane.b32.xlu1 %v5244_v1, %s4985_s4  ;;  %1841 = vrot.lane.b32.xlu0 %v5242_v0, %s4985_s4  ;;  %v1230_v54 = vmul.f32 %v1214_v58, %v5238_v57 }
  0x98   : > { %1887 = vrot.lane.b32.xlu2 %v5244_v1, %s4986_s8  ;;  %v1807_v38 = vsel %vm1275_vm0, %v1784_v63, 0.0 }
  0x99   : > { %v1788_v2 = vpop.permute.xlu1 %1787 }
  0x9a   : > { %v1813_v40 = vsel %vm1275_vm0, %v1788_v2, 0.0 }
  0x9f   : > { %v1786_v3 = vpop.permute.xlu0 %1785  ;;  %1889 = vrot.lane.b32.xlu1 %v5242_v0, %s4986_s8 }
  0xa0   : > { %v1810_v39 = vsel %vm1275_vm0, %v1786_v3, 0.0 }
  0xa1   : > { %v1790_v4 = vpop.permute.xlu1 %1789 }
  0xa2   : > { %v1816_v41 = vsel %vm1275_vm0, %v1790_v4, 0.0 }
  0xa7   : > { %v1796_v7 = vpop.permute.xlu0 %1795 }
  0xa8   : > { %v1825_v44 = vsel %vm1275_vm0, %v1796_v7, 0.0 }
  0xa9   : > { %v5257_v9 = vpop.permute.xlu1 %1797 }
  0xaa   : > { %v1828_v10 = vsel %vm1275_vm0, %v5257_v9, 0.0 }
  0xaf   : > { %v4733_v16 = vpop.permute.xlu0 %4732 }
  0xb0   : > { %v4735_v18 = vunpack.i.h.bf16 %v4733_v16  ;;  %v4734_v19 = vunpack.i.l.bf16 %v4733_v16 }
  0xb1   : > { %v4738_v21 = vpop.permute.xlu1 %4737 }
  0xb2   : > { %v5263_v23 = vmul.f32 %v4735_v18, %v1232_v14  ;;  %v5265_v24 = vmul.f32 %v4734_v19, %v1231_v13  ;;  %v4739_v26 = vunpack.i.l.bf16 %v4738_v21  ;;  %v4740_v32 = vunpack.i.h.bf16 %v4738_v21 }
  0xb4   : > { %v5267_v27 = vmul.f32 %v4739_v26, %v1233_v20  ;;  %v1604_v28 = vmul.f32 %v5263_v23, %v5263_v23  ;;  %v1603_v29 = vmul.f32 %v5265_v24, %v5265_v24  ;;  %v5282_v35 = vmul.f32 %v4740_v32, %v1234_v30 }
  0xb6   : > { %1625 = vrot.lane.b32.xlu0 %v1604_v28, %s4983_s0  ;;  %1623 = vrot.lane.b32.xlu1 %v1603_v29, %s4983_s0  ;;  %v5278_v34 = vmul.f32 %v5267_v27, %v5267_v27  ;;  %v5288_v36 = vmul.f32 %v5282_v35, %v5282_v35 }
  0xb7   : > { %v4748_v53 = vpop.permute.xlu0 %4747 }
  0xb8   : > { %1627 = vrot.lane.b32.xlu2 %v5278_v34, %s4983_s0  ;;  %v4749_v56 = vunpack.i.l.bf16 %v4748_v53  ;;  %v4750_v60 = vunpack.i.h.bf16 %v4748_v53 }
  0xba   : > { %v5308_v59 = vmul.f32 %v4749_v56, %v1229_v55  ;;  %v5313_v51 = vmul.f32 %v4750_v60, %v1230_v54 }
  0xbe   : > { %1657 = vrot.lane.b32.xlu0 %v1604_v28, %s4984_s16  ;;  %1655 = vrot.lane.b32.xlu1 %v1603_v29, %s4984_s16 }
  0xc0   : > { %1661 = vrot.lane.b32.xlu2 %v5288_v36, %s4984_s16 }
  0xc6   : > { %1659 = vrot.lane.b32.xlu0 %v5278_v34, %s4984_s16  ;;  %1629 = vrot.lane.b32.xlu1 %v5288_v36, %s4983_s0 }
  0xe9   : > { %1808 = vadd.xlane.f32.xlu2 %v1807_v38 }
  0xf0   : > { %1811 = vadd.xlane.f32.xlu0 %v1810_v39  ;;  %1814 = vadd.xlane.f32.xlu1 %v1813_v40 }
  0xf1   : > { %1817 = vadd.xlane.f32.xlu2 %v1816_v41 }
  0xf2   : > { %v1888_v19 = vpop.permute.xlu2 %1887 }
  0xf3   : > { %v1911_v9 = vsel %vm7453_vm1, %v1888_v19, 0.0 }
  0xf8   : > { %1823 = vadd.xlane.f32.xlu0 %v1822_v43  ;;  %1826 = vadd.xlane.f32.xlu1 %v1825_v44 }
  0xf9   : > { %1820 = vadd.xlane.f32.xlu2 %v1819_v47 }
 0x109   : > { %v5321_v52 = vpop.permute.xlu1 %1839  ;;  %v5329_v61 = vpop.permute.xlu0 %1841 }
 0x10c   : > { %1843 = vrot.lane.b32.xlu0 %v5308_v59, %s4985_s4 }
 0x111   : > { %1891 = vrot.lane.b32.xlu2 %v5308_v59, %s4986_s8  ;;  %1845 = vrot.lane.b32.xlu1 %v5313_v51, %s4985_s4  ;;  %v5327_v57 = vpop.permute.xlu1 %1889 }
 0x112   : > { %v5348_v44 = vpop.permute.xlu2 %1627 }
 0x114   : > { %1893 = vrot.lane.b32.xlu0 %v5313_v51, %s4986_s8 }
 0x119   : > { %1945 = vrot.lane.b32.xlu1 %v5242_v0, %s4987_s30 }
 0x11a   : > { %v5354_v47 = vpop.permute.xlu2 %1661 }
 0x11c   : > { %1901 = vrot.lane.b32.xlu0 %v5282_v35, %s4986_s8 }
 0x121   : > { %1895 = vrot.lane.b32.xlu1 %v5265_v24, %s4986_s8 }
 0x128   : > { %v1626_v62 = vpop.permute.xlu0 %1625  ;;  %v1624_v63 = vpop.permute.xlu1 %1623 }
 0x129   : > { %1849 = vrot.lane.b32.xlu1 %v5263_v23, %s4985_s4  ;;  %v1644_v2 = vadd.f32 %v1626_v62, %v1604_v28  ;;  %v1643_v3 = vadd.f32 %v1624_v63, %v1603_v29 }
 0x130   : > { %v1658_v4 = vpop.permute.xlu0 %1657  ;;  %v1656_v5 = vpop.permute.xlu1 %1655 }
 0x131   : > { %v1676_v6 = vadd.f32 %v1658_v4, %v1644_v2  ;;  %v1675_v7 = vadd.f32 %v1656_v5, %v1643_v3  ;;  %1949 = vrot.lane.b32.xlu1 %v5313_v51, %s4987_s30  ;;  %v1866_v2 = vsel %vm7453_vm1, %v5329_v61, 0.0  ;;  %v1137_v4 = vld [vmem:[%s5378_s11] sm:$0xff] }
 0x133   : > { %4829 = vrsqrt.f32 %v1676_v6  ;;  %vm1746_vm2 = vcmp.eq.f32.partialorder %v1676_v6, inf  ;;  %v1749_v30 = vand.u32 2147483648, %v1676_v6  ;;  %vm1734_vm3 = vcmp.eq.f32.partialorder %v1675_v7, inf }
 0x134   : > { %4831 = vrsqrt.f32 %v1675_v7  ;;  %v1737_v32 = vand.u32 2147483648, %v1675_v7  ;;  %vm1748_vm4 = vcmp.eq.f32.partialorder %v1676_v6, 0.0  ;;  %vm1736_vm5 = vcmp.eq.f32.partialorder %v1675_v7, 0.0 }
 0x138   : > { %v1660_v55 = vpop.permute.xlu0 %1659  ;;  %v1630_v58 = vpop.permute.xlu1 %1629 }
 0x139   : > { %v4830_v8 = vpop.eup %4829  ;;  %1899 = vrot.lane.b32.xlu1 %v5267_v27, %s4986_s8 }
 0x13a   : > { %v4832_v11 = vpop.eup %4831  ;;  %1829 = vadd.xlane.f32.xlu2 %v1828_v10  ;;  %v1740_v12 = vmul.f32 %v4830_v8, %v1676_v6  ;;  %v1472_v10 = vlaneseq }
 0x13b   : > { %v1728_v13 = vmul.f32 %v4832_v11, %v1675_v7 }
 0x13c   : > { %v1741_v14 = vmul.f32 %v4830_v8, %v1740_v12  ;;  %v5389_v12 = vand.u32 127, %v1472_v10 }
 0x13d   : > { %v1729_v15 = vmul.f32 %v4832_v11, %v1728_v13 }
 0x13e   : > { %v1742_v16 = vmul.f32 0.5, %v1741_v14 }
 0x13f   : > { %v1730_v18 = vmul.f32 0.5, %v1729_v15 }
 0x140   : > { %v1743_v20 = vsub.f32 1.5, %v1742_v16 }
 0x141   : > { %1853 = vrot.lane.b32.xlu1 %v5282_v35, %s4985_s4  ;;  %v1731_v21 = vsub.f32 1.5, %v1730_v18 }
 0x142   : > { %v1744_v25 = vmul.f32 %v4830_v8, %v1743_v20 }
 0x143   : > { %v1732_v26 = vmul.f32 %v4832_v11, %v1731_v21 }
 0x144   : > { %v1745_v28 = vmul.f32 %v1744_v25, %v1676_v6 }
 0x145   : > { %v1733_v29 = vmul.f32 %v1732_v26, %v1675_v7  ;;  %v1646_v26 = vadd.f32 %v1630_v58, %v5288_v36 }
 0x146   : > { %1912 = vadd.xlane.f32.xlu0 %v1911_v9  ;;  %v1747_v38 = vsel %vm1746_vm2, %v1676_v6, %v1745_v28 }
 0x147   : > { %v1735_v39 = vsel %vm1734_vm3, %v1675_v7, %v1733_v29  ;;  %v1750_v40 = vsel %vm1748_vm4, %v1749_v30, %v1747_v38  ;;  %v7445_v7 = vmov 0   ;;  %v1863_v38 = vsel %vm7453_vm1, %v5321_v52, 0.0 }
 0x148   : > { %v1738_v41 = vsel %vm1736_vm5, %v1737_v32, %v1735_v39  ;;  %4811 = vset.pattern.permute.xlu0 %v7445_v7  ;;  %4812 = vset.pattern.permute.xlu1 %v7445_v7  ;;  %v1645_v39 = vadd.f32 %v5348_v44, %v5278_v34  ;;  %v5408_v36 = vadd.f32 %v5354_v47, %v1646_v26  ;;  %vm1555_vm5 = vcmask 1043456  }
 0x149   : > { %1955 = vrot.lane.b32.xlu1 %v5267_v27, %s4987_s30  ;;  %v5346_v43 = vpack.i.bf16 %v1750_v40, %v1738_v41  ;;  %4813 = vset.pattern.permute.xlu2 %v7445_v7 }
 0x14a   : > { %4833 = vrsqrt.f32 %v5408_v36  ;;  %vm1770_vm15 = vcmp.eq.f32.partialorder %v5408_v36, inf  ;;  %vm1772_vm3 = vcmp.eq.f32.partialorder %v5408_v36, 0.0 }
 0x151   : > { %1957 = vrot.lane.b32.xlu1 %v5282_v35, %s4987_s30 }
 0x152   : > { %1943 = vrot.lane.b32.xlu2 %v5244_v1, %s4987_s30 }
 0x159   : > { %4752 = vrot.lane.b32.xlu1 %v4751_v48, %s4988_s10  ;;  %v5411_v48 = vadd.f32 %v1660_v55, %v1645_v39 }
 0x15a   : > { %1847 = vrot.lane.b32.xlu2 %v5265_v24, %s4985_s4 }
 0x15b   : > { %4835 = vrsqrt.f32 %v5411_v48  ;;  %vm1758_vm2 = vcmp.eq.f32.partialorder %v5411_v48, inf  ;;  %vm1760_vm4 = vcmp.eq.f32.partialorder %v5411_v48, 0.0 }
 0x15c   : > { %v1809_v49 = vpop.xlane.xlu2 %1808 }
 0x15d   : > { %v1831_v13 = vmul.f32 0.35355338, %v1809_v49 }
 0x15f   : > { %v2015_v16 = vperm.slane %v1831_v13, %v5389_v12 }
 0x162   : > { %1947 = vrot.lane.b32.xlu2 %v5308_v59, %s4987_s30 }
 0x163   : > { %v1812_v60 = vpop.xlane.xlu0 %1811  ;;  %v1815_v62 = vpop.xlane.xlu1 %1814 }
 0x164   : > { %v1818_v50 = vpop.xlane.xlu2 %1817  ;;  %v1832_v11 = vmul.f32 0.35355338, %v1812_v60  ;;  %v1833_v14 = vmul.f32 0.35355338, %v1815_v62 }
 0x165   : > { %v1834_v18 = vmul.f32 0.35355338, %v1818_v50 }
 0x166   : > { %v2016_v15 = vperm.slane %v1832_v11, %v5389_v12  ;;  %v2017_v19 = vperm.slane %v1833_v14, %v5389_v12 }
 0x167   : > { %v2018_v9 = vperm.slane %v1834_v18, %v5389_v12 }
 0x168   : > { %v2023_v25 = vsel %vm1482_vm6, %v2016_v15, %v2015_v16 }
 0x169   : > { %v2024_v30 = vsel %vm1484_vm7, %v2017_v19, %v2023_v25  ;;  %v4771_v25 = vpack.i.bf16 %v5212_v46, %v5208_v45 }
 0x16a   : > { %1897 = vrot.lane.b32.xlu2 %v5263_v23, %s4986_s8  ;;  %v2025_v49 = vsel %vm1486_vm8, %v2018_v9, %v2024_v30 }
 0x16b   : > { %v1824_v63 = vpop.xlane.xlu0 %1823  ;;  %v1827_v3 = vpop.xlane.xlu1 %1826 }
 0x16c   : > { %v1821_v53 = vpop.xlane.xlu2 %1820  ;;  %v1836_v40 = vmul.f32 0.35355338, %v1824_v63  ;;  %v1914_v63 = vsel %vm7453_vm1, %v5327_v57, 0.0 }
 0x16d   : > { %v1835_v20 = vmul.f32 0.35355338, %v1821_v53  ;;  %v1837_v53 = vmul.f32 0.35355338, %v1827_v3 }
 0x16e   : > { %v2020_v44 = vperm.slane %v1836_v40, %v5389_v12 }
 0x16f   : > { %v2019_v32 = vperm.slane %v1835_v20, %v5389_v12  ;;  %v2021_v62 = vperm.slane %v1837_v53, %v5389_v12  ;;  %v1761_v53 = vand.u32 2147483648, %v5411_v48 }
 0x171   : > { %v2026_v52 = vsel %vm7455_vm9, %v2019_v32, %v2025_v49  ;;  %v1773_v49 = vand.u32 2147483648, %v5408_v36 }
 0x172   : > { %1851 = vrot.lane.b32.xlu2 %v5267_v27, %s4985_s4  ;;  %s7507_s4 = sld [smem:[#allocation38_spill]]  ;;  %v2027_v60 = vsel %vm7454_vm11, %v2020_v44, %v2026_v52 }
 0x173   : > { %v2028_v3 = vsel %vm7450_vm12, %v2021_v62, %v2027_v60 }
 0x174   : > { %v1892_v56 = vpop.permute.xlu2 %1891 }
 0x175   : > { %v1917_v54 = vsel %vm7453_vm1, %v1892_v56, 0.0 }
 0x176   : > { %1918 = vadd.xlane.f32.xlu0 %v1917_v54 }
 0x17a   : > { %1951 = vrot.lane.b32.xlu2 %v5265_v24, %s4987_s30 }
 0x17e   : > { %v1844_v5 = vpop.permute.xlu0 %1843 }
 0x17f   : > { %v1869_v6 = vsel %vm7453_vm1, %v1844_v5, 0.0 }
 0x182   : > { %1953 = vrot.lane.b32.xlu2 %v5263_v23, %s4987_s30  ;;  %s1093_s30 = scalar_lea.vmem %s7507_s4, %s7653_s9 }
 0x183   : > { %1867 = vadd.xlane.f32.xlu1 %v1866_v2  ;;  %v1846_v61 = vpop.permute.xlu1 %1845  ;;  %v1152_v28 = vld [vmem:[%s1093_s30] sm:$0x1]  ;;  %s7513_s30 = sld [smem:[#allocation33_spill]] }
 0x184   : > { %v1872_v8 = vsel %vm7453_vm1, %v1846_v61, 0.0  ;;  %vm1153_vm10 = vcmp.gt.f32.partialorder %v1152_v28, 0.0 }
 0x185   : > { %v1461_v34 = vsel %vm1153_vm10, 1, %v7445_v7  ;;  %vm7452_vm10 = vcmask 97280  }
 0x186   : > { %v1894_v29 = vpop.permute.xlu0 %1893  ;;  %v1462_v54 = vperm.slane %v1461_v34, 0 }
 0x187   : > { %v1920_v41 = vsel %vm7453_vm1, %v1894_v29, 0.0 }
 0x188   : > { %vm5427_vm14 = vcmp.eq.s32.totalorder %v1462_v54, 1 }
 0x189   : > { %s1065_s1 = scalar_lea.vmem %s7513_s30, %s5166_s17 }
 0x18a   : > { %2080 = vrot.lane.b32.xlu2 %v1137_v4, %s4983_s0  ;;  %4762 = vrot.lane.b32.xlu0 %v5346_v43, %s4989_s2 }
 0x18b   : > { %1870 = vadd.xlane.f32.xlu1 %v1869_v6  ;;  %v1946_v55 = vpop.permute.xlu1 %1945  ;;  %v4834_v6 = vpop.eup %4833 }
 0x18c   : > { %v1970_v2 = vsel %vm7453_vm1, %v1946_v55, 0.0  ;;  %v1764_v57 = vmul.f32 %v4834_v6, %v5408_v36 }
 0x18e   : > { %v1765_v15 = vmul.f32 %v4834_v6, %v1764_v57 }
 0x190   : > { %v1766_v19 = vmul.f32 0.5, %v1765_v15 }
 0x192   : > { %v1767_v26 = vsub.f32 1.5, %v1766_v19 }
 0x193   : > { %1873 = vadd.xlane.f32.xlu1 %v1872_v8  ;;  %v4836_v8 = vpop.eup %4835  ;;  %v1896_v30 = vpop.permute.xlu1 %1895 }
 0x194   : > { %v1752_v13 = vmul.f32 %v4836_v8, %v5411_v48  ;;  %v1768_v29 = vmul.f32 %v4834_v6, %v1767_v26  ;;  %v1902_v6 = vpop.permute.xlu0 %1901  ;;  %v1923_v57 = vsel %vm7453_vm1, %v1896_v30, 0.0  ;;  %v1288_v26 = vsel %vm1275_vm0, %v5193_v31, 0.0 }
 0x195   : > { %v1291_v30 = vsel %vm1275_vm0, %v5204_v42, 0.0 }
 0x196   : > { %v1753_v18 = vmul.f32 %v4836_v8, %v1752_v13 }
 0x198   : > { %v1754_v20 = vmul.f32 0.5, %v1753_v18  ;;  %v1279_v18 = vsel %vm1275_vm0, %v5195_v33, 0.0 }
 0x19a   : > { %v1755_v9 = vsub.f32 1.5, %v1754_v20 }
 0x19c   : > { %v1756_v32 = vmul.f32 %v4836_v8, %v1755_v9  ;;  %v1932_v8 = vsel %vm7453_vm1, %v1902_v6, 0.0 }
 0x19e   : > { %v1757_v40 = vmul.f32 %v1756_v32, %v5411_v48  ;;  %v1297_v32 = vsel %vm1275_vm0, %v5212_v46, 0.0 }
 0x1ad   : > { %v1830_v21 = vpop.xlane.xlu2 %1829 }
 0x1ae   : > { %v1838_v50 = vmul.f32 0.35355338, %v1830_v21 }
 0x1b0   : > { %v2022_v58 = vperm.slane %v1838_v50, %v5389_v12  ;;  %v1759_v50 = vsel %vm1758_vm2, %v5411_v48, %v1757_v40  ;;  %vm2245_vm2 = vcmask 195584  }
 0x1b1   : > { %v1762_v44 = vsel %vm1760_vm4, %v1761_v53, %v1759_v50 }
 0x1b2   : > { %v2029_v5 = vsel %vm7449_vm13, %v2022_v58, %v2028_v3 }
 0x1b3   : > { %1864 = vadd.xlane.f32.xlu2 %v1863_v38  ;;  %v5434_v10 = vsel %vm5427_vm14, %v2029_v5, -3.4028235e+38  ;;  %v1769_v38 = vmul.f32 %v1768_v29, %v5408_v36 }
 0x1b4   : > { %1921 = vadd.xlane.f32.xlu0 %v1920_v41  ;;  %v2032_v11 = vsel %vm1275_vm0, %v5434_v10, -inf }
 0x1b5   : > { %v1944_v56 = vpop.permute.xlu2 %1943  ;;  %v1771_v41 = vsel %vm1770_vm15, %v5408_v36, %v1769_v38  ;;  %vm7451_vm15 = vcmask 162816  }
 0x1b6   : > { %v1967_v47 = vsel %vm7453_vm1, %v1944_v56, 0.0  ;;  %v1774_v52 = vsel %vm1772_vm3, %v1773_v49, %v1771_v41  ;;  %v1850_v56 = vpop.permute.xlu1 %1849 }
 0x1b7   : > { %1968 = vadd.xlane.f32.xlu1 %v1967_v47  ;;  %v4776_v47 = vpack.i.bf16 %v1774_v52, %v1762_v44  ;;  %v1276_v44 = vsel %vm1275_vm0, %v5185_v17, 0.0 }
 0x1bb   : > { %1915 = vadd.xlane.f32.xlu2 %v1914_v63  ;;  %v1878_v63 = vsel %vm7453_vm1, %v1850_v56, 0.0 }
 0x1bc   : > { %1971 = vadd.xlane.f32.xlu0 %v1970_v2 }
 0x1bd   : > { %v1848_v61 = vpop.permute.xlu2 %1847 }
 0x1be   : > { %v1875_v14 = vsel %vm7453_vm1, %v1848_v61, 0.0  ;;  %v1950_v58 = vpop.permute.xlu1 %1949 }
 0x1bf   : > { %v1976_v15 = vsel %vm7453_vm1, %v1950_v58, 0.0 }
 0x1c3   : > { %2033 = vmax.xlane.f32.xlu2 %v2032_v11 }
 0x1c4   : > { %1876 = vadd.xlane.f32.xlu0 %v1875_v14 }
 0x1c5   : > { %v1948_v16 = vpop.permute.xlu2 %1947 }
 0x1c6   : > { %v1973_v21 = vsel %vm7453_vm1, %v1948_v16, 0.0  ;;  %v1900_v60 = vpop.permute.xlu1 %1899  ;;  %v5476_v16 = vpop.xlane.xlu0 %1912 }
 0x1cc   : > { %1974 = vadd.xlane.f32.xlu0 %v1973_v21  ;;  %v1282_v21 = vsel %vm1275_vm0, %v5189_v22, 0.0 }
 0x1cd   : > { %v1898_v28 = vpop.permute.xlu2 %1897 }
 0x1ce   : > { %v1854_v2 = vpop.permute.xlu1 %1853  ;;  %v1926_v61 = vsel %vm7453_vm1, %v1898_v28, 0.0  ;;  %v1929_v28 = vsel %vm7453_vm1, %v1900_v60, 0.0  ;;  %v1294_v60 = vsel %vm1275_vm0, %v5208_v45, 0.0 }
 0x1d0   : > { %4772 = vrot.lane.b32.xlu1 %v4771_v25, %s4988_s10 }
 0x1d5   : > { %v1852_v39 = vpop.permute.xlu2 %1851 }
 0x1d6   : > { %v1956_v5 = vpop.permute.xlu1 %1955  ;;  %v1881_v19 = vsel %vm7453_vm1, %v1852_v39, 0.0  ;;  %v1884_v39 = vsel %vm7453_vm1, %v1854_v2, 0.0 }
 0x1d7   : > { %v1985_v13 = vsel %vm7453_vm1, %v1956_v5, 0.0 }
 0x1db   : > { %4757 = vrot.lane.b32.xlu2 %v5346_v43, %s4991_s29  ;;  %v5463_v43 = vld [vmem:[%s1046_s7] sm:$0xff]  ;;  %s5681_s7 = scalar_lea.vmem %s7512_s3, %s5166_s17 }
 0x1dd   : > { %v1952_v34 = vpop.permute.xlu2 %1951 }
 0x1de   : > { %v1979_v3 = vsel %vm7453_vm1, %v1952_v34, 0.0  ;;  %v1958_v11 = vpop.permute.xlu1 %1957 }
 0x1df   : > { %v1988_v14 = vsel %vm7453_vm1, %v1958_v11, 0.0 }
 0x1e0   : > { %4777 = vrot.lane.b32.xlu0 %v4776_v47, %s4989_s2 }
 0x1e3   : > { %4767 = vrot.lane.b32.xlu2 %v4776_v47, %s4991_s29 }
 0x1e5   : > { %v1954_v55 = vpop.permute.xlu2 %1953 }
 0x1e6   : > { %v5485_v25 = vpop.permute.xlu1 %4752  ;;  %v1982_v50 = vsel %vm7453_vm1, %v1954_v55, 0.0  ;;  %v1285_v55 = vsel %vm1275_vm0, %v5200_v37, 0.0 }
 0x1e9   : > { %v5481_v20 = vpop.xlane.xlu0 %1918 }
 0x1ed   : > { %v2081_v36 = vpop.permute.xlu2 %2080 }
 0x1ee   : > { %v2083_v54 = vsel %vm1275_vm0, %v2081_v36, %v5463_v43 }
 0x1ef   : > { %v2085_v48 = vpack.c.bf16 %v2083_v54, %v2083_v54 }
 0x1f1   : > { %v2090_v62 = vsel %vm1555_vm5, %v2085_v48, 0 }
 0x1f2   : > { %2099 = vmatpush.bf16.msra.mxu2 %v2090_v62 }
 0x1f6   : > { %v1868_v38 = vpop.xlane.xlu1 %1867 }
 0x1fa   : > { %1879 = vadd.xlane.f32.xlu1 %v1878_v63 }
 0x1fc   : > { %v5490_v9 = vpop.permute.xlu0 %4762 }
 0x1fe   : > { %v1871_v49 = vpop.xlane.xlu1 %1870 }
 0x202   : > { %1980 = vadd.xlane.f32.xlu1 %v1979_v3 }
 0x206   : > { %v1874_v47 = vpop.xlane.xlu1 %1873 }
 0x20a   : > { %1927 = vadd.xlane.f32.xlu0 %v1926_v61  ;;  %1933 = vadd.xlane.f32.xlu1 %v1932_v8 }
 0x20c   : > { %1924 = vadd.xlane.f32.xlu2 %v1923_v57 }
 0x212   : > { %1986 = vadd.xlane.f32.xlu0 %v1985_v13  ;;  %1989 = vadd.xlane.f32.xlu1 %v1988_v14 }
 0x214   : > { %1977 = vadd.xlane.f32.xlu2 %v1976_v15 }
 0x21a   : > { %1280 = vadd.xlane.f32.xlu0 %v1279_v18  ;;  %1283 = vadd.xlane.f32.xlu1 %v1282_v21 }
 0x21c   : > { %1882 = vadd.xlane.f32.xlu2 %v1881_v19  ;;  %v5523_v19 = vmul.f32 %v5244_v1, %v5244_v1 }
 0x222   : > { %1289 = vadd.xlane.f32.xlu0 %v1288_v26  ;;  %1292 = vadd.xlane.f32.xlu1 %v1291_v30  ;;  %v5537_v30 = vmul.f32 %v5242_v0, %v5242_v0 }
 0x224   : > { %1930 = vadd.xlane.f32.xlu2 %v1929_v28 }
 0x226   : > { %v5492_v29 = vpop.xlane.xlu2 %1864 }
 0x227   : > { %v5499_v40 = vpop.xlane.xlu0 %1921 }
 0x22a   : > { %1298 = vadd.xlane.f32.xlu0 %v1297_v32  ;;  %v5543_v32 = vmul.f32 %v5308_v59, %v5308_v59 }
 0x22c   : > { %1885 = vadd.xlane.f32.xlu2 %v1884_v39  ;;  %v5549_v39 = vmul.f32 %v5313_v51, %v5313_v51 }
 0x22e   : > { %v1916_v41 = vpop.xlane.xlu2 %1915 }
 0x22f   : > { %v1972_v53 = vpop.xlane.xlu0 %1971 }
 0x234   : > { %1983 = vadd.xlane.f32.xlu2 %v1982_v50 }
 0x236   : > { %v2034_v52 = vpop.xlane.xlu2 %2033 }
 0x237   : > { %v2035_v56 = vsub.f32 %v5434_v10, %v2034_v52  ;;  %v1877_v58 = vpop.xlane.xlu0 %1876  ;;  %v1969_v10 = vpop.xlane.xlu1 %1968 }
 0x239   : > { %v2036_v34 = vmul.f32 1.442695, %v2035_v56 }
 0x23b   : > { %4837 = vpow2.f32 %v2036_v34 }
 0x23c   : > { %1277 = vadd.xlane.f32.xlu2 %v1276_v44 }
 0x23e   : > { %v5505_v36 = vpop.permute.xlu2 %4757 }
 0x23f   : > { %v1975_v62 = vpop.xlane.xlu0 %1974 }
 0x241   : > { %v5507_v54 = vpop.eup %4837 }
 0x242   : > { %v2038_v48 = vsel %vm1275_vm0, %v5507_v54, 0.0  ;;  %v4773_v5 = vpop.permute.xlu1 %4772 }
 0x243   : > { %2039 = vadd.xlane.f32.xlu0 %v2038_v48  ;;  %v4775_v6 = vunpack.i.h.bf16 %v4773_v5  ;;  %v4774_v61 = vunpack.i.l.bf16 %v4773_v5 }
 0x244   : > { %1286 = vadd.xlane.f32.xlu2 %v1285_v55 }
 0x246   : > { %v4768_v63 = vpop.permute.xlu2 %4767 }
 0x247   : > { %v4770_v2 = vunpack.i.h.bf16 %v4768_v63  ;;  %v4769_v3 = vunpack.i.l.bf16 %v4768_v63  ;;  %v1936_v63 = vadd.f32 %v1916_v41, %v1868_v38 }
 0x249   : > { %v2218_v8 = vsel %vm1275_vm0, %v5212_v46, %v4770_v2  ;;  %v2217_v57 = vsel %vm1275_vm0, %v5208_v45, %v4769_v3  ;;  %v1937_v3 = vadd.f32 %v5481_v20, %v1871_v49 }
 0x24a   : > { %v2226_v15 = vsel %vm7452_vm10, %v2218_v8, %v4775_v6  ;;  %v2225_v18 = vsel %vm7452_vm10, %v2217_v57, %v4774_v61  ;;  %v1935_v6 = vadd.f32 %v5476_v16, %v5492_v29  ;;  %v1938_v61 = vadd.f32 %v5499_v40, %v1874_v47 }
 0x24b   : > { %v1992_v8 = vadd.f32 %v1972_v53, %v1936_v63  ;;  %v1993_v57 = vadd.f32 %v1975_v62, %v1937_v3 }
 0x24c   : > { %1295 = vadd.xlane.f32.xlu2 %v1294_v60 }
 0x24d   : > { %v2001_v7 = vmul.f32 0.28867513, %v1993_v57 }
 0x24f   : > { %v2053_v16 = vperm.slane %v2001_v7, %v5389_v12 }
 0x252   : > { %v4778_v11 = vpop.permute.xlu0 %4777 }
 0x253   : > { %v4780_v13 = vunpack.i.h.bf16 %v4778_v11  ;;  %v4779_v14 = vunpack.i.l.bf16 %v4778_v11  ;;  %v1991_v11 = vadd.f32 %v1969_v10, %v1935_v6  ;;  %v1116_v6 = vld [vmem:[%s7430_s13] sm:$0xff] }
 0x255   : > { %v5526_v21 = vsel %vm7451_vm15, %v2225_v18, %v4779_v14  ;;  %v5529_v26 = vsel %vm7451_vm15, %v2226_v15, %v4780_v13  ;;  %v2000_v18 = vmul.f32 0.28867513, %v1992_v8  ;;  %v1999_v46 = vmul.f32 0.28867513, %v1991_v11 }
 0x257   : > { %1615 = vrot.lane.b32.xlu0 %v5523_v19, %s4983_s0  ;;  %v2052_v49 = vperm.slane %v2000_v18, %v5389_v12  ;;  %v2051_v53 = vperm.slane %v1999_v46, %v5389_v12 }
 0x25f   : > { %1649 = vrot.lane.b32.xlu0 %v5537_v30, %s4984_s16 }
 0x267   : > { %1619 = vrot.lane.b32.xlu0 %v5543_v32, %s4983_s0 }
 0x26d   : > { %v1880_v56 = vpop.xlane.xlu1 %1879 }
 0x26f   : > { %1653 = vrot.lane.b32.xlu0 %v5549_v39, %s4984_s16 }
 0x275   : > { %v1981_v48 = vpop.xlane.xlu1 %1980 }
 0x27d   : > { %v1928_v52 = vpop.xlane.xlu0 %1927  ;;  %v1934_v5 = vpop.xlane.xlu1 %1933 }
 0x27e   : > { %v1940_v47 = vadd.f32 %v1928_v52, %v1880_v56 }
 0x27f   : > { %v1925_v50 = vpop.xlane.xlu2 %1924 }
 0x280   : > { %v1939_v14 = vadd.f32 %v1925_v50, %v1877_v58 }
 0x282   : > { %v1995_v20 = vadd.f32 %v1981_v48, %v1939_v14  ;;  %v1118_v48 = vld [vmem:[%s7430_s13 + $0x10] sm:$0xff] }
 0x283   : > { %v2241_v63 = vpack.c.bf16 %v1118_v48, %v1118_v48 }
 0x284   : > { %v2003_v62 = vmul.f32 0.28867513, %v1995_v20 }
 0x285   : > { %v1987_v55 = vpop.xlane.xlu0 %1986  ;;  %v1990_v29 = vpop.xlane.xlu1 %1989 }
 0x286   : > { %v2055_v56 = vperm.slane %v2003_v62, %v5389_v12 }
 0x287   : > { %v1978_v34 = vpop.xlane.xlu2 %1977 }
 0x288   : > { %v1994_v13 = vadd.f32 %v1978_v34, %v1938_v61  ;;  %v2059_v34 = vsel %vm1482_vm6, %v2052_v49, %v2051_v53  ;;  %v1117_v61 = vld [vmem:[%s7430_s13 + $0x8] sm:$0xff] }
 0x289   : > { %v5581_v11 = vpack.c.bf16 %v1117_v61, %v1116_v6 }
 0x28a   : > { %v2002_v38 = vmul.f32 0.28867513, %v1994_v13 }
 0x28c   : > { %v2054_v58 = vperm.slane %v2002_v38, %v5389_v12 }
 0x28d   : > { %v1281_v2 = vpop.xlane.xlu0 %1280  ;;  %v1284_v14 = vpop.xlane.xlu1 %1283 }
 0x28e   : > { %v1301_v20 = vmul.f32 0.35355338, %v1281_v2 }
 0x28f   : > { %v1883_v44 = vpop.xlane.xlu2 %1882 }
 0x290   : > { %v1475_v53 = vperm.slane %v1301_v20, %v5389_v12 }
 0x295   : > { %v1290_v45 = vpop.xlane.xlu0 %1289 }
 0x296   : > { %v1304_v62 = vmul.f32 0.35355338, %v1290_v45 }
 0x297   : > { %v1931_v60 = vpop.xlane.xlu2 %1930 }
 0x298   : > { %v1941_v28 = vadd.f32 %v1931_v60, %v1883_v44  ;;  %v2060_v60 = vsel %vm1484_vm7, %v2053_v16, %v2059_v34  ;;  %v1293_v34 = vpop.xlane.xlu1 %1292 }
 0x29a   : > { %v1997_v40 = vadd.f32 %v1987_v55, %v1941_v28  ;;  %v2061_v28 = vsel %vm1486_vm8, %v2054_v58, %v2060_v60  ;;  %v5569_v55 = vsel %vm1555_vm5, %v2241_v63, 0  ;;  %v1305_v60 = vmul.f32 0.35355338, %v1293_v34 }
 0x29b   : > { %4687 = vmatpush.bf16.msrb.mxu2 %v5569_v55  ;;  %v2062_v57 = vsel %vm7455_vm9, %v2055_v56, %v2061_v28 }
 0x29c   : > { %v2005_v7 = vmul.f32 0.28867513, %v1997_v40  ;;  %v1302_v40 = vmul.f32 0.35355338, %v1284_v14  ;;  %v1479_v45 = vperm.slane %v1305_v60, %v5389_v12  ;;  %v4760_v14 = vunpack.i.h.bf16 %v5505_v36 }
 0x29e   : > { %v2057_v8 = vperm.slane %v2005_v7, %v5389_v12  ;;  %v1476_v2 = vperm.slane %v1302_v40, %v5389_v12  ;;  %v1478_v7 = vperm.slane %v1304_v62, %v5389_v12  ;;  %v1125_v40 = vld [vmem:[%s7434_s18] sm:$0xff]  ;;  %v4764_v62 = vunpack.i.l.bf16 %v5490_v9 }
 0x29f   : > { %v1886_v15 = vpop.xlane.xlu2 %1885  ;;  %4688 = vmatpush.bf16.msrb.mxu2 %v5581_v11 }
 0x2a0   : > { %v1942_v41 = vadd.f32 %v1934_v5, %v1886_v15  ;;  %v1299_v5 = vpop.xlane.xlu0 %1298 }
 0x2a2   : > { %v1998_v10 = vadd.f32 %v1990_v29, %v1942_v41 }
 0x2a4   : > { %v2006_v46 = vmul.f32 0.28867513, %v1998_v10 }
 0x2a6   : > { %v2058_v13 = vperm.slane %v2006_v46, %v5389_v12  ;;  %v1307_v46 = vmul.f32 0.35355338, %v1299_v5  ;;  %v4759_v5 = vunpack.i.l.bf16 %v5505_v36  ;;  %v4754_v36 = vunpack.i.l.bf16 %v5485_v25 }
 0x2a7   : > { %v1984_v50 = vpop.xlane.xlu2 %1983 }
 0x2a8   : > { %v1996_v44 = vadd.f32 %v1984_v50, %v1940_v47  ;;  %v2215_v20 = vsel %vm1275_vm0, %v5193_v31, %v4759_v5 }
 0x2aa   : > { %v2004_v52 = vmul.f32 0.28867513, %v1996_v44 }
 0x2ac   : > { %v2056_v3 = vperm.slane %v2004_v52, %v5389_v12 }
 0x2ae   : > { %v2063_v15 = vsel %vm7454_vm11, %v2056_v3, %v2062_v57  ;;  %v1481_v57 = vperm.slane %v1307_v46, %v5389_v12 }
 0x2af   : > { %v1278_v18 = vpop.xlane.xlu2 %1277  ;;  %v2064_v38 = vsel %vm7450_vm12, %v2057_v8, %v2063_v15 }
 0x2b0   : > { %v2065_v41 = vsel %vm7449_vm13, %v2058_v13, %v2064_v38  ;;  %v1300_v49 = vmul.f32 0.35355338, %v1278_v18 }
 0x2b1   : > { %v5590_v16 = vsel %vm5427_vm14, %v2065_v41, -3.4028235e+38  ;;  %v2216_v41 = vsel %vm1275_vm0, %v5204_v42, %v4760_v14 }
 0x2b2   : > { %v2068_v29 = vsel %vm1275_vm0, %v5590_v16, -inf  ;;  %v1474_v47 = vperm.slane %v1300_v49, %v5389_v12 }
 0x2b3   : > { %2069 = vmax.xlane.f32.xlu1 %v2068_v29  ;;  %v4755_v29 = vunpack.i.h.bf16 %v5485_v25 }
 0x2b4   : > { %v1483_v44 = vsel %vm1482_vm6, %v1475_v53, %v1474_v47  ;;  %v2993_v53 = vpack.c.bf16 %v1125_v40, %v1125_v40  ;;  %v2223_v47 = vsel %vm7452_vm10, %v2215_v20, %v4754_v36 }
 0x2b5   : > { %v1485_v63 = vsel %vm1484_vm7, %v1476_v2, %v1483_v44  ;;  %v2232_v25 = vsel %vm7451_vm15, %v2223_v47, %v4764_v62  ;;  %v5654_v44 = vpack.c.bf16 %v5242_v0, %v5244_v1 }
 0x2b6   : > { %v2040_v58 = vpop.xlane.xlu0 %2039  ;;  %v5630_v2 = vsel %vm1555_vm5, %v2993_v53, 0 }
 0x2b7   : > { %4839 = vrcp.f32 %v2040_v58  ;;  %v1287_v10 = vpop.xlane.xlu2 %1286  ;;  %v2224_v58 = vsel %vm7452_vm10, %v2216_v41, %v4755_v29 }
 0x2b8   : > { %v1303_v50 = vmul.f32 0.35355338, %v1287_v10  ;;  %v4765_v10 = vunpack.i.h.bf16 %v5490_v9  ;;  %v7511_v9 = vpack.c.bf16 %v5529_v26, %v5526_v21  ;;  %v5666_v21 = vpack.c.bf16 %v5263_v23, %v5265_v24 }
 0x2b9   : > { %v5672_v26 = vpack.c.bf16 %v5282_v35, %v5267_v27 }
 0x2ba   : > { %v1477_v48 = vperm.slane %v1303_v50, %v5389_v12  ;;  %v2233_v50 = vsel %vm7451_vm15, %v2224_v58, %v4765_v10 }
 0x2bb   : > { %v2238_v34 = vpack.c.bf16 %v2233_v50, %v2232_v25 }
 0x2bc   : > { %v1487_v52 = vsel %vm1486_vm8, %v1477_v48, %v1485_v63  ;;  %v5660_v48 = vpack.c.bf16 %v5313_v51, %v5308_v59 }
 0x2bd   : > { %v4840_v28 = vpop.eup %4839  ;;  %v1489_v8 = vsel %vm7455_vm9, %v1478_v7, %v1487_v52 }
 0x2be   : > { %v2042_v56 = vmul.f32 %v4840_v28, %v5507_v54  ;;  %v1491_v15 = vsel %vm7454_vm11, %v1479_v45, %v1489_v8  ;;  %v1141_v28 = vld [vmem:[%s5681_s7] sm:$0xff] }
 0x2bf   : > { %v1296_v3 = vpop.xlane.xlu2 %1295 }
 0x2c0   : > { %v1306_v6 = vmul.f32 0.35355338, %v1296_v3  ;;  %v2084_v61 = vpack.c.bf16 %v2042_v56, %v2042_v56 }
 0x2c2   : > { %v1480_v13 = vperm.slane %v1306_v6, %v5389_v12  ;;  %4606 = vmatmul.msk.bf16.vlgmr.msra.gmra.mxu2 %vm1275_vm0, %v2084_v61 }
 0x2c3   : > { %3016 = vmatpush.bf16.msra.mxu2 %v5630_v2 }
 0x2c4   : > { %v1493_v54 = vsel %vm7450_vm12, %v1480_v13, %v1491_v15 }
 0x2c5   : > { %v1495_v18 = vsel %vm7449_vm13, %v1481_v57, %v1493_v54 }
 0x2c6   : > { %v1497_v38 = vsel %vm5427_vm14, %v1495_v18, -3.4028235e+38 }
 0x2c7   : > { %v1498_v49 = vsel %vm1275_vm0, %v1497_v38, -inf }
 0x2c8   : > { %1499 = vmax.xlane.f32.xlu2 %v1498_v49 }
 0x2c9   : > { %v1616_v56 = vpop.permute.xlu0 %1615 }
 0x2ca   : > { %v1639_v13 = vadd.f32 %v1616_v56, %v5523_v19 }
 0x2cc   : > { %1617 = vrot.lane.b32.xlu1 %v5537_v30, %s4983_s0 }
 0x2d1   : > { %v1650_v3 = vpop.permute.xlu0 %1649 }
 0x2d2   : > { %4610 = vmatmul.msk.bf16.vlgmr.msrb.gmra.mxu2 %vm2245_vm2, %v2238_v34 }
 0x2d4   : > { %1621 = vrot.lane.b32.xlu1 %v5549_v39, %s4983_s0 }
 0x2d9   : > { %v1620_v18 = vpop.permute.xlu0 %1619 }
 0x2dc   : > { %1347 = vrot.lane.b32.xlu1 %v5313_v51, %s4983_s0 }
 0x2e0   : > { %1647 = vrot.lane.b32.xlu2 %v5523_v19, %s4984_s16 }
 0x2e1   : > { %v1654_v50 = vpop.permute.xlu0 %1653 }
 0x2e2   : > { %4611 = vmatmul.msk.bf16.gmra.mxu2 %vm2245_vm2, %v7511_v9 }
 0x2e4   : > { %1403 = vrot.lane.b32.xlu1 %v5313_v51, %s4984_s16 }
 0x2e8   : > { %1651 = vrot.lane.b32.xlu2 %v5543_v32, %s4984_s16 }
 0x2f0   : > { %2106 = vrot.lane.b32.xlu2 %v1141_v28, %s4986_s8  ;;  %s4994_s8 = smov 32  }
 0x2f2   : > { %4616 = vmatmul.msk.bf16.vlgmr.msra.gmra.mxu2 %vm1275_vm0, %v5654_v44 }
 0x302   : > { %4617 = vmatmul.msk.bf16.gmra.mxu2 %vm1275_vm0, %v5660_v48 }
 0x312   : > { %4618 = vmatmul.msk.bf16.gmra.mxu2 %vm1275_vm0, %v5666_v21 }
 0x322   : > { %4619 = vmatmul.msk.bf16.gmra.mxu2 %vm1275_vm0, %v5672_v26 }
 0x326   : > { %v2070_v60 = vpop.xlane.xlu1 %2069 }
 0x327   : > { %v2071_v7 = vsub.f32 %v5590_v16, %v2070_v60 }
 0x329   : > { %v2072_v63 = vmul.f32 1.442695, %v2071_v7 }
 0x32b   : > { %4841 = vpow2.f32 %v2072_v63 }
 0x331   : > { %v5685_v46 = vpop.eup %4841 }
 0x332   : > { %v2074_v52 = vsel %vm1275_vm0, %v5685_v46, 0.0 }
 0x333   : > { %2075 = vadd.xlane.f32.xlu1 %v2074_v52 }
 0x33b   : > { %v1500_v45 = vpop.xlane.xlu2 %1499 }
 0x33c   : > { %v1501_v16 = vsub.f32 %v1497_v38, %v1500_v45 }
 0x33e   : > { %v1502_v6 = vmul.f32 1.442695, %v1501_v16  ;;  %v1618_v61 = vpop.permute.xlu1 %1617 }
 0x33f   : > { %v1640_v8 = vadd.f32 %v1618_v61, %v5537_v30  ;;  %v1641_v30 = vadd.f32 %v1620_v18, %v5543_v32 }
 0x340   : > { %4843 = vpow2.f32 %v1502_v6 }
 0x341   : > { %v1672_v57 = vadd.f32 %v1650_v3, %v1640_v8 }
 0x343   : > { %4845 = vrsqrt.f32 %v1672_v57  ;;  %v1648_v14 = vpop.permute.xlu2 %1647  ;;  %vm1698_vm3 = vcmp.eq.f32.partialorder %v1672_v57, inf  ;;  %v1701_v3 = vand.u32 2147483648, %v1672_v57  ;;  %vm1700_vm12 = vcmp.eq.f32.partialorder %v1672_v57, 0.0 }
 0x344   : > { %v1671_v5 = vadd.f32 %v1648_v14, %v1639_v13 }
 0x345   : > { %v5691_v15 = vpop.f32.mrf.mxu2 }
 0x346   : > { %v5693_v54 = vpop.eup %4843  ;;  %4847 = vrsqrt.f32 %v1671_v5  ;;  %v1622_v49 = vpop.permute.xlu1 %1621  ;;  %vm1686_vm4 = vcmp.eq.f32.partialorder %v1671_v5, inf  ;;  %vm1688_vm13 = vcmp.eq.f32.partialorder %v1671_v5, 0.0 }
 0x347   : > { %v1504_v38 = vsel %vm1275_vm0, %v5693_v54, 0.0  ;;  %v1642_v58 = vadd.f32 %v1622_v49, %v5549_v39  ;;  %v1689_v39 = vand.u32 2147483648, %v1671_v5 }
 0x348   : > { %1505 = vadd.xlane.f32.xlu0 %v1504_v38 }
 0x349   : > { %v4846_v41 = vpop.eup %4845  ;;  %v1674_v9 = vadd.f32 %v1654_v50, %v1642_v58 }
 0x34a   : > { %v1692_v20 = vmul.f32 %v4846_v41, %v1672_v57 }
 0x34b   : > { %v1652_v29 = vpop.permute.xlu2 %1651 }
 0x34c   : > { %v4848_v19 = vpop.eup %4847  ;;  %v1673_v36 = vadd.f32 %v1652_v29, %v1641_v30  ;;  %v1693_v40 = vmul.f32 %v4846_v41, %v1692_v20 }
 0x34d   : > { %v2103_v53 = vpop.f32.mrf.mxu2  ;;  %v1680_v47 = vmul.f32 %v4848_v19, %v1671_v5 }
 0x34e   : > { %4849 = vrsqrt.f32 %v1673_v36  ;;  %v1694_v10 = vmul.f32 0.5, %v1693_v40  ;;  %v1713_v20 = vand.u32 2147483648, %v1673_v36  ;;  %v4791_v53 = vpack.i.bf16 %v5195_v33, %v5185_v17 }
 0x34f   : > { %v1681_v62 = vmul.f32 %v4848_v19, %v1680_v47  ;;  %4851 = vrsqrt.f32 %v1674_v9 }
 0x350   : > { %v1695_v25 = vsub.f32 1.5, %v1694_v10 }
 0x351   : > { %v1682_v34 = vmul.f32 0.5, %v1681_v62  ;;  %v1725_v62 = vand.u32 2147483648, %v1674_v9 }
 0x352   : > { %v1696_v60 = vmul.f32 %v4846_v41, %v1695_v25 }
 0x353   : > { %v1683_v7 = vsub.f32 1.5, %v1682_v34  ;;  %v5741_v34 = vld [vmem:[%s1065_s1] sm:$0xff] }
 0x354   : > { %v4850_v32 = vpop.eup %4849  ;;  %v1697_v63 = vmul.f32 %v1696_v60, %v1672_v57 }
 0x355   : > { %v1684_v28 = vmul.f32 %v4848_v19, %v1683_v7  ;;  %v1704_v52 = vmul.f32 %v4850_v32, %v1673_v36  ;;  %v4852_v41 = vpop.eup %4851 }
 0x356   : > { %v1699_v45 = vsel %vm1698_vm3, %v1672_v57, %v1697_v63  ;;  %v1716_v30 = vmul.f32 %v4852_v41, %v1674_v9  ;;  %vm1722_vm3 = vcmp.eq.f32.partialorder %v1674_v9, inf  ;;  %v1348_v63 = vpop.permute.xlu1 %1347 }
 0x357   : > { %v1685_v56 = vmul.f32 %v1684_v28, %v1671_v5  ;;  %v1705_v16 = vmul.f32 %v4850_v32, %v1704_v52  ;;  %v5701_v13 = vsel %vm1700_vm12, %v1701_v3, %v1699_v45  ;;  %vm1712_vm12 = vcmp.eq.f32.partialorder %v1673_v36, 0.0  ;;  %v1122_v28 = vld [vmem:[%s7432_s15 + $0x10] sm:$0xff]  ;;  %v1120_v45 = vld [vmem:[%s7432_s15] sm:$0xff] }
 0x358   : > { %v1717_v19 = vmul.f32 %v4852_v41, %v1716_v30  ;;  %v2319_v52 = vpack.c.bf16 %v1122_v28, %v1122_v28 }
 0x359   : > { %v1687_v6 = vsel %vm1686_vm4, %v1671_v5, %v1685_v56  ;;  %v1706_v61 = vmul.f32 0.5, %v1705_v16  ;;  %vm1724_vm4 = vcmp.eq.f32.partialorder %v1674_v9, 0.0  ;;  %v1121_v16 = vld [vmem:[%s7432_s15 + $0x8] sm:$0xff] }
 0x35a   : > { %v5699_v8 = vsel %vm1688_vm13, %v1689_v39, %v1687_v6  ;;  %vm1710_vm13 = vcmp.eq.f32.partialorder %v1673_v36, inf  ;;  %v1718_v40 = vmul.f32 0.5, %v1717_v19  ;;  %v5754_v56 = vsel %vm1555_vm5, %v2319_v52, 0  ;;  %v2280_v6 = vpop.f32.mrf.mxu2 }
 0x35b   : > { %v4781_v14 = vpack.i.bf16 %v5699_v8, %v5463_v43  ;;  %v1707_v18 = vsub.f32 1.5, %v1706_v61  ;;  %v4796_v38 = vpack.i.bf16 %v5701_v13, %v5699_v8  ;;  %v5767_v3 = vpack.c.bf16 %v1121_v16, %v1120_v45 }
 0x35c   : > { %1399 = vrot.lane.b32.xlu0 %v5242_v0, %s4984_s16  ;;  %v1719_v47 = vsub.f32 1.5, %v1718_v40 }
 0x35d   : > { %4782 = vrot.lane.b32.xlu2 %v4781_v14, %s4991_s29  ;;  %v1708_v5 = vmul.f32 %v4850_v32, %v1707_v18  ;;  %v1312_v14 = vsel %vm7453_vm1, %v5242_v0, 0.0 }
 0x35e   : > { %v5765_v39 = vpop.permute.xlu1 %1403 }
 0x35f   : > { %v1709_v57 = vmul.f32 %v1708_v5, %v1673_v36  ;;  %v1315_v5 = vsel %vm7453_vm1, %v5308_v59, 0.0 }
 0x361   : > { %v1711_v49 = vsel %vm1710_vm13, %v1673_v36, %v1709_v57  ;;  %v1720_v36 = vmul.f32 %v4852_v41, %v1719_v47 }
 0x362   : > { %v1714_v29 = vsel %vm1712_vm12, %v1713_v20, %v1711_v49  ;;  %v2282_v41 = vpop.f32.mrf.mxu2  ;;  %v5787_v20 = vld [vmem:[%s7431_s14] ss:$0 sm:$0xff] }
 0x363   : > { %v4786_v43 = vpack.i.bf16 %v1714_v29, %v5701_v13  ;;  %v1721_v58 = vmul.f32 %v1720_v36, %v1674_v9  ;;  %v2283_v8 = vadd.f32 %v5787_v20, %v2282_v41 }
 0x364   : > { %1353 = vrot.lane.b32.xlu0 %v5267_v27, %s4983_s0 }
 0x365   : > { %1341 = vrot.lane.b32.xlu2 %v5244_v1, %s4983_s0  ;;  %4787 = vrot.lane.b32.xlu1 %v4786_v43, %s4991_s29  ;;  %v1723_v10 = vsel %vm1722_vm3, %v1674_v9, %v1721_v58  ;;  %v2107_v9 = vpop.permute.xlu2 %2106  ;;  %vm2295_vm13 = vcmp.ge.f32.partialorder %v2283_v8, 0.0  ;;  %v4957_v43 = vld [vmem:[%s5378_s11] sm:$0xff] }
 0x366   : > { %v1726_v25 = vsel %vm1724_vm4, %v1725_v62, %v1723_v10  ;;  %v2109_v60 = vsel %vm7452_vm10, %v2107_v9, %v5741_v34 }
 0x367   : > { %v4806_v50 = vpack.i.bf16 %v1726_v25, %v1714_v29  ;;  %v2111_v7 = vpack.c.bf16 %v2109_v60, %v2109_v60  ;;  %v2303_v29 = vmul.f32 0.01, %v2283_v8 }
 0x369   : > { %v2116_v32 = vsel %vm1555_vm5, %v2111_v7, 0  ;;  %v2311_v36 = vsel %vm2295_vm13, %v2283_v8, %v2303_v29  ;;  %vm7514_vm13 = vcmask 1046534  }
 0x36a   : > { %2125 = vmatpush.bf16.msra.mxu3 %v2116_v32 }
 0x36c   : > { %1355 = vrot.lane.b32.xlu0 %v5282_v35, %s4983_s0 }
 0x36d   : > { %1343 = vrot.lane.b32.xlu2 %v5242_v0, %s4983_s0  ;;  %4792 = vrot.lane.b32.xlu1 %v4791_v53, %s4988_s10  ;;  %v4801_v0 = vpack.i.bf16 %v5200_v37, %v5189_v22 }
 0x36e   : > { %4689 = vmatpush.bf16.msrb.mxu3 %v5754_v56 }
 0x372   : > { %4690 = vmatpush.bf16.msrb.mxu3 %v5767_v3 }
 0x374   : > { %1409 = vrot.lane.b32.xlu0 %v5267_v27, %s4984_s16 }
 0x375   : > { %1345 = vrot.lane.b32.xlu2 %v5308_v59, %s4983_s0  ;;  %1411 = vrot.lane.b32.xlu1 %v5282_v35, %s4984_s16 }
 0x37c   : > { %2145 = vrot.lane.b32.xlu0 %v1726_v25, %s4991_s29 }
 0x37d   : > { %1397 = vrot.lane.b32.xlu2 %v5244_v1, %s4984_s16  ;;  %4807 = vrot.lane.b32.xlu1 %v4806_v50, %s4989_s2 }
 0x384   : > { %3042 = vrot.lane.b32.xlu0 %v5654_v44, %s4983_s0 }
 0x385   : > { %1349 = vrot.lane.b32.xlu2 %v5265_v24, %s4983_s0 }
 0x38d   : > { %1401 = vrot.lane.b32.xlu2 %v5308_v59, %s4984_s16  ;;  %v1374_v59 = vsel %vm7453_vm1, %v1348_v63, 0.0 }
 0x395   : > { %1351 = vrot.lane.b32.xlu2 %v5263_v23, %s4983_s0 }
 0x39d   : > { %1405 = vrot.lane.b32.xlu2 %v5265_v24, %s4984_s16 }
 0x3a5   : > { %1407 = vrot.lane.b32.xlu2 %v5263_v23, %s4984_s16 }
 0x3a6   : > { %v2076_v61 = vpop.xlane.xlu1 %2075 }
 0x3a7   : > { %4853 = vrcp.f32 %v2076_v61  ;;  %1313 = vadd.xlane.f32.xlu1 %v1312_v14 }
 0x3ad   : > { %v4854_v18 = vpop.eup %4853  ;;  %4797 = vrot.lane.b32.xlu2 %v4796_v38, %s4989_s2  ;;  %v2285_v38 = vpop.f32.mrf.mxu2 }
 0x3ae   : > { %v2078_v57 = vmul.f32 %v4854_v18, %v5685_v46  ;;  %v2281_v46 = vadd.f32 %v5787_v20, %v2280_v6  ;;  %v2286_v28 = vadd.f32 %v5787_v20, %v2285_v38 }
 0x3af   : > { %1316 = vadd.xlane.f32.xlu1 %v1315_v5  ;;  %v1309_v5 = vsel %vm7453_vm1, %v5244_v1, 0.0  ;;  %v1318_v1 = vsel %vm7453_vm1, %v5313_v51, 0.0  ;;  %v1327_v51 = vsel %vm7453_vm1, %v5267_v27, 0.0 }
 0x3b0   : > { %v2110_v30 = vpack.c.bf16 %v2078_v57, %v2078_v57  ;;  %v2302_v40 = vmul.f32 0.01, %v2281_v46  ;;  %vm2294_vm12 = vcmp.ge.f32.partialorder %v2281_v46, 0.0  ;;  %v2304_v45 = vmul.f32 0.01, %v2286_v28 }
 0x3b1   : > { %vm2296_vm4 = vcmp.ge.f32.partialorder %v2286_v28, 0.0 }
 0x3b2   : > { %4607 = vmatmul.msk.bf16.vlgmr.msra.gmra.mxu3 %vm1275_vm0, %v2110_v30  ;;  %v2310_v10 = vsel %vm2294_vm12, %v2281_v46, %v2302_v40  ;;  %vm7515_vm12 = vcmask 1047559  }
 0x3b3   : > { %3069 = vmatpush.bf16.msra.mxu3 %v5630_v2  ;;  %v2316_v25 = vpack.c.bf16 %v2311_v36, %v2310_v10  ;;  %v1330_v10 = vsel %vm7453_vm1, %v5282_v35, 0.0 }
 0x3b5   : > { %4802 = vrot.lane.b32.xlu2 %v4801_v0, %s4988_s10  ;;  %v2287_v60 = vpop.f32.mrf.mxu2  ;;  %s4992_s10 = smov 12  }
 0x3b6   : > { %v2288_v32 = vadd.f32 %v5787_v20, %v2287_v60  ;;  %v1324_v60 = vsel %vm7453_vm1, %v5263_v23, 0.0 }
 0x3b7   : > { %v5794_v13 = vpop.permute.xlu2 %4782  ;;  %1375 = vadd.xlane.f32.xlu1 %v1374_v59 }
 0x3b8   : > { %v4784_v49 = vunpack.i.l.bf16 %v5794_v13  ;;  %vm2297_vm3 = vcmp.ge.f32.partialorder %v2288_v32, 0.0 }
 0x3ba   : > { %v1549_v19 = vsel %vm1275_vm0, %v4957_v43, %v4784_v49 }
 0x3bb   : > { %v1506_v53 = vpop.xlane.xlu0 %1505  ;;  %v1551_v47 = vpack.c.bf16 %v1549_v19, %v1549_v19 }
 0x3bc   : > { %4855 = vrcp.f32 %v1506_v53 }
 0x3bd   : > { %v1557_v58 = vsel %vm1555_vm5, %v1551_v47, 0 }
 0x3be   : > { %1566 = vmatpush.bf16.msra.mxu0 %v1557_v58 }
 0x3bf   : > { %v1342_v62 = vpop.permute.xlu2 %1341 }
 0x3c0   : > { %v1365_v50 = vsel %vm7453_vm1, %v1342_v62, 0.0  ;;  %v4785_v62 = vunpack.i.h.bf16 %v5794_v13 }
 0x3c1   : > { %1366 = vadd.xlane.f32.xlu0 %v1365_v50 }
 0x3c2   : > { %2267 = vmatpush.bf16.msrb.mxu0 %v5569_v55  ;;  %v4856_v9 = vpop.eup %4855  ;;  %4614 = vmatmul.msk.bf16.vlgmr.msrb.gmra.mxu3 %vm2245_vm2, %v2316_v25  ;;  %v2305_v55 = vmul.f32 0.01, %v2288_v32  ;;  %v2211_v27 = vsel %vm1275_vm0, %v5185_v17, %v4785_v62 }
 0x3c3   : > { %v1508_v7 = vmul.f32 %v4856_v9, %v5693_v54  ;;  %v2312_v54 = vsel %vm2296_vm4, %v2286_v28, %v2304_v45 }
 0x3c4   : > { %v2313_v16 = vsel %vm2297_vm3, %v2288_v32, %v2305_v55 }
 0x3c5   : > { %v1550_v63 = vpack.c.bf16 %v1508_v7, %v1508_v7  ;;  %v2317_v14 = vpack.c.bf16 %v2313_v16, %v2312_v54 }
 0x3c6   : > { %2268 = vmatpush.bf16.msrb.mxu0 %v5581_v11 }
 0x3c7   : > { %v1344_v52 = vpop.permute.xlu2 %1343  ;;  %4604 = vmatmul.msk.bf16.vlgmr.msra.gmra.mxu0 %vm1275_vm0, %v1550_v63 }
 0x3c8   : > { %v1368_v0 = vsel %vm7453_vm1, %v1344_v52, 0.0 }
 0x3ca   : > { %3118 = vmatpush.bf16.msra.mxu0 %v5630_v2 }
 0x3ce   : > { %v1400_v6 = vpop.permute.xlu0 %1399 }
 0x3cf   : > { %v1346_v61 = vpop.permute.xlu2 %1345 }
 0x3d0   : > { %3091 = vrot.lane.b32.xlu1 %v5654_v44, %s4984_s16  ;;  %v1371_v11 = vsel %vm7453_vm1, %v1346_v61, 0.0  ;;  %v1321_v44 = vsel %vm7453_vm1, %v5265_v24, 0.0  ;;  %v1424_v24 = vsel %vm7453_vm1, %v1400_v6, 0.0  ;;  %v1430_v6 = vsel %vm7453_vm1, %v5765_v39, 0.0 }
 0x3d1   : > { %1372 = vadd.xlane.f32.xlu0 %v1371_v11 }
 0x3d2   : > { %4615 = vmatmul.msk.bf16.gmra.mxu3 %vm2245_vm2, %v2317_v14 }
 0x3d6   : > { %v1354_v18 = vpop.permute.xlu0 %1353 }
 0x3d7   : > { %v1398_v41 = vpop.permute.xlu2 %1397  ;;  %v4788_v43 = vpop.permute.xlu1 %4787  ;;  %v1383_v53 = vsel %vm7453_vm1, %v1354_v18, 0.0 }
 0x3d8   : > { %v1421_v2 = vsel %vm7453_vm1, %v1398_v41, 0.0  ;;  %v4789_v25 = vunpack.i.l.bf16 %v4788_v43  ;;  %v4790_v54 = vunpack.i.h.bf16 %v4788_v43 }
 0x3d9   : > { %1422 = vadd.xlane.f32.xlu0 %v1421_v2 }
 0x3da   : > { %v2212_v32 = vsel %vm1275_vm0, %v5195_v33, %v4789_v25  ;;  %v2213_v2 = vsel %vm1275_vm0, %v5189_v22, %v4790_v54 }
 0x3de   : > { %1310 = vadd.xlane.f32.xlu2 %v1309_v5  ;;  %v5816_v57 = vpop.permute.xlu0 %1355 }
 0x3df   : > { %v1350_v30 = vpop.permute.xlu2 %1349  ;;  %v4793_v36 = vpop.permute.xlu1 %4792 }
 0x3e0   : > { %v1377_v47 = vsel %vm7453_vm1, %v1350_v30, 0.0  ;;  %v4795_v50 = vunpack.i.h.bf16 %v4793_v36  ;;  %v4794_v9 = vunpack.i.l.bf16 %v4793_v36 }
 0x3e1   : > { %1322 = vadd.xlane.f32.xlu0 %v1321_v44 }
 0x3e2   : > { %v2219_v13 = vsel %vm7452_vm10, %v2211_v27, %v4794_v9  ;;  %v2220_v52 = vsel %vm7452_vm10, %v2212_v32, %v4795_v50 }
 0x3e6   : > { %1369 = vadd.xlane.f32.xlu2 %v1368_v0  ;;  %v5821_v8 = vpop.permute.xlu0 %1409 }
 0x3e7   : > { %v1402_v59 = vpop.permute.xlu2 %1401  ;;  %v1412_v55 = vpop.permute.xlu1 %1411 }
 0x3e8   : > { %v1427_v46 = vsel %vm7453_vm1, %v1402_v59, 0.0  ;;  %v1442_v11 = vsel %vm7453_vm1, %v1412_v55, 0.0 }
 0x3e9   : > { %1428 = vadd.xlane.f32.xlu0 %v1427_v46 }
 0x3ee   : > { %1319 = vadd.xlane.f32.xlu2 %v1318_v1  ;;  %v2146_v38 = vpop.permute.xlu0 %2145 }
 0x3ef   : > { %v1352_v49 = vpop.permute.xlu2 %1351  ;;  %v4808_v41 = vpop.permute.xlu1 %4807  ;;  %v2214_v39 = vsel %vm1275_vm0, %v5200_v37, %v2146_v38  ;;  %v1439_v38 = vsel %vm7453_vm1, %v5821_v8, 0.0  ;;  %v4825_v8 = vld [vmem:[#allocation2] ss:$0 sm:$0xff] }
 0x3f0   : > { %v1380_v29 = vsel %vm7453_vm1, %v1352_v49, 0.0  ;;  %v4810_v0 = vunpack.i.h.bf16 %v4808_v41  ;;  %v4809_v59 = vunpack.i.l.bf16 %v4808_v41 }
 0x3f1   : > { %1381 = vadd.xlane.f32.xlu0 %v1380_v29  ;;  %v1386_v29 = vsel %vm7453_vm1, %v5816_v57, 0.0 }
 0x3f6   : > { %1425 = vadd.xlane.f32.xlu2 %v1424_v24  ;;  %v3043_v19 = vpop.permute.xlu0 %3042 }
 0x3f7   : > { %v1406_v40 = vpop.permute.xlu2 %1405  ;;  %4620 = vmatmul.msk.bf16.vlgmr.msra.gmra.mxu3 %vm1275_vm0, %v3043_v19 }
 0x3f8   : > { %v1433_v5 = vsel %vm7453_vm1, %v1406_v40, 0.0 }
 0x3f9   : > { %1384 = vadd.xlane.f32.xlu0 %v1383_v53 }
 0x3fa   : > { %1328 = vadd.xlane.f32.xlu1 %v1327_v51 }
 0x3fe   : > { %1378 = vadd.xlane.f32.xlu2 %v1377_v47 }
 0x3ff   : > { %v1408_v58 = vpop.permute.xlu2 %1407 }
 0x400   : > { %v1436_v35 = vsel %vm7453_vm1, %v1408_v58, 0.0 }
 0x401   : > { %1331 = vadd.xlane.f32.xlu0 %v1330_v10 }
 0x406   : > { %1325 = vadd.xlane.f32.xlu2 %v1324_v60 }
 0x407   : > { %v4798_v7 = vpop.permute.xlu2 %4797 }
 0x408   : > { %v4800_v63 = vunpack.i.h.bf16 %v4798_v7  ;;  %v4799_v28 = vunpack.i.l.bf16 %v4798_v7 }
 0x409   : > { %1437 = vadd.xlane.f32.xlu0 %v1436_v35 }
 0x40a   : > { %v2228_v23 = vsel %vm7451_vm15, %v2219_v13, %v4799_v28  ;;  %v2229_v45 = vsel %vm7451_vm15, %v2220_v52, %v4800_v63 }
 0x40b   : > { %v2236_v16 = vpack.c.bf16 %v2229_v45, %v2228_v23 }
 0x40d   : > { %4608 = vmatmul.msk.bf16.vlgmr.msrb.gmra.mxu0 %vm2245_vm2, %v2236_v16 }
 0x40e   : > { %1431 = vadd.xlane.f32.xlu2 %v1430_v6 }
 0x40f   : > { %v4803_v61 = vpop.permute.xlu2 %4802 }
 0x410   : > { %v4805_v14 = vunpack.i.h.bf16 %v4803_v61  ;;  %v4804_v18 = vunpack.i.l.bf16 %v4803_v61 }
 0x411   : > { %1443 = vadd.xlane.f32.xlu0 %v1442_v11 }
 0x412   : > { %v2221_v30 = vsel %vm7452_vm10, %v2213_v2, %v4804_v18  ;;  %v2222_v44 = vsel %vm7452_vm10, %v2214_v39, %v4805_v14 }
 0x413   : > { %3046 = vrot.lane.b32.xlu1 %v5666_v21, %s4983_s0  ;;  %v2230_v46 = vsel %vm7451_vm15, %v2221_v30, %v4809_v59  ;;  %v2231_v1 = vsel %vm7451_vm15, %v2222_v44, %v4810_v0 }
 0x414   : > { %v2237_v49 = vpack.c.bf16 %v2231_v1, %v2230_v46 }
 0x416   : > { %1434 = vadd.xlane.f32.xlu2 %v1433_v5 }
 0x41a   : > { %v1314_v24 = vpop.xlane.xlu1 %1313 }
 0x41d   : > { %4609 = vmatmul.msk.bf16.gmra.mxu0 %vm2245_vm2, %v2237_v49 }
 0x41e   : > { %1387 = vadd.xlane.f32.xlu2 %v1386_v29 }
 0x422   : > { %v1317_v43 = vpop.xlane.xlu1 %1316 }
 0x425   : > { %3093 = vrot.lane.b32.xlu0 %v5660_v48, %s4984_s16 }
 0x426   : > { %1440 = vadd.xlane.f32.xlu2 %v1439_v38 }
 0x42a   : > { %v1376_v57 = vpop.xlane.xlu1 %1375 }
 0x42d   : > { %3095 = vrot.lane.b32.xlu0 %v5666_v21, %s4984_s16 }
 0x434   : > { %v1367_v40 = vpop.xlane.xlu0 %1366 }
 0x435   : > { %v5871_v19 = vpop.f32.mrf.mxu3  ;;  %3097 = vrot.lane.b32.xlu0 %v5672_v26, %s4984_s16 }
 0x43d   : > { %v2129_v53 = vpop.f32.mrf.mxu3  ;;  %1573 = vrot.lane.b32.xlu0 %v5741_v34, %s4992_s10 }
 0x43e   : > { %3044 = vrot.lane.b32.xlu2 %v5660_v48, %s4983_s0 }
 0x442   : > { %v3092_v51 = vpop.permute.xlu1 %3091 }
 0x443   : > { %4624 = vmatmul.msk.bf16.vlgmr.msra.gmra.mxu0 %vm1275_vm0, %v3092_v51 }
 0x444   : > { %v5880_v21 = vpop.f32.mrf.mxu0  ;;  %v1373_v47 = vpop.xlane.xlu0 %1372 }
 0x445   : > { %v1391_v36 = vadd.f32 %v1373_v47, %v1317_v43  ;;  %2323 = vperm.xlu0 %4811, %v4825_v8   ;;  %v5891_v29 = vpop.f32.mrf.mxu3 }
 0x446   : > { %3048 = vrot.lane.b32.xlu2 %v5672_v26, %s4983_s0  ;;  %s7517_s0 = sld [smem:[#allocation36_spill]] }
 0x44c   : > { %v1570_v58 = vpop.f32.mrf.mxu0  ;;  %v1423_v10 = vpop.xlane.xlu0 %1422  ;;  %s1086_s16 = scalar_lea.vmem %s7517_s0, %s5166_s17  ;;  %s1097_s0 = scalar_lea.vmem %s7429_s12, %s5166_s17 }
 0x451   : > { %v1311_v62 = vpop.xlane.xlu2 %1310 }
 0x452   : > { %v1389_v25 = vadd.f32 %v1367_v40, %v1311_v62 }
 0x454   : > { %v1323_v34 = vpop.xlane.xlu0 %1322  ;;  %v1445_v60 = vadd.f32 %v1423_v10, %v1389_v25  ;;  %v5897_v25 = vpop.f32.mrf.mxu3 }
 0x456   : > { %v1453_v28 = vmul.f32 0.28867513, %v1445_v60 }
 0x458   : > { %v1517_v55 = vperm.slane %v1453_v28, %v5389_v12 }
 0x459   : > { %v1370_v50 = vpop.xlane.xlu2 %1369 }
 0x45a   : > { %v1390_v32 = vadd.f32 %v1370_v50, %v1314_v24 }
 0x45c   : > { %v1429_v9 = vpop.xlane.xlu0 %1428 }
 0x45d   : > { %v1447_v27 = vadd.f32 %v1429_v9, %v1391_v36 }
 0x45f   : > { %v1455_v13 = vmul.f32 0.28867513, %v1447_v27 }
 0x461   : > { %v1320_v48 = vpop.xlane.xlu2 %1319  ;;  %v1519_v23 = vperm.slane %v1455_v13, %v5389_v12 }
 0x462   : > { %v1392_v14 = vadd.f32 %v1376_v57, %v1320_v48 }
 0x464   : > { %v1382_v7 = vpop.xlane.xlu0 %1381 }
 0x469   : > { %v1426_v63 = vpop.xlane.xlu2 %1425 }
 0x46a   : > { %v1446_v35 = vadd.f32 %v1426_v63, %v1390_v32 }
 0x46c   : > { %v1454_v52 = vmul.f32 0.28867513, %v1446_v35  ;;  %v1385_v16 = vpop.xlane.xlu0 %1384  ;;  %v1132_v35 = vld [vmem:[%s7440_s24] sm:$0xff] }
 0x46d   : > { %v1329_v43 = vpop.xlane.xlu1 %1328  ;;  %v3478_v13 = vpack.c.bf16 %v1132_v35, %v1132_v35 }
 0x46e   : > { %v1518_v26 = vperm.slane %v1454_v52, %v5389_v12  ;;  %v1395_v8 = vadd.f32 %v1385_v16, %v1329_v43 }
 0x470   : > { %v1525_v45 = vsel %vm1482_vm6, %v1518_v26, %v1517_v55  ;;  %v5919_v55 = vsel %vm1555_vm5, %v3478_v13, 0  ;;  %v5921_v26 = vpop.f32.mrf.mxu3 }
 0x471   : > { %v1379_v6 = vpop.xlane.xlu2 %1378  ;;  %v1526_v61 = vsel %vm1484_vm7, %v1519_v23, %v1525_v45  ;;  %3501 = vmatpush.bf16.msrb.mxu0 %v5919_v55  ;;  %v3018_v23 = vpop.f32.mrf.mxu2 }
 0x472   : > { %v1393_v0 = vadd.f32 %v1379_v6, %v1323_v34 }
 0x474   : > { %v1332_v11 = vpop.xlane.xlu0 %1331 }
 0x478   : > { %v5927_v16 = vpop.f32.mrf.mxu3 }
 0x479   : > { %v1326_v54 = vpop.xlane.xlu2 %1325 }
 0x47a   : > { %v1394_v1 = vadd.f32 %v1382_v7, %v1326_v54 }
 0x47c   : > { %v1438_v39 = vpop.xlane.xlu0 %1437 }
 0x47d   : > { %v1450_v57 = vadd.f32 %v1438_v39, %v1394_v1 }
 0x47f   : > { %v1458_v47 = vmul.f32 0.28867513, %v1450_v57 }
 0x481   : > { %v1432_v18 = vpop.xlane.xlu2 %1431  ;;  %v1522_v9 = vperm.slane %v1458_v47, %v5389_v12 }
 0x482   : > { %v1448_v41 = vadd.f32 %v1432_v18, %v1392_v14  ;;  %v1126_v18 = vld [vmem:[%s7435_s19] sm:$0xff] }
 0x484   : > { %v1456_v2 = vmul.f32 0.28867513, %v1448_v41  ;;  %v1444_v59 = vpop.xlane.xlu0 %1443  ;;  %v3280_v41 = vpack.c.bf16 %v1126_v18, %v1126_v18 }
 0x485   : > { %v3047_v6 = vpop.permute.xlu1 %3046 }
 0x486   : > { %v1520_v5 = vperm.slane %v1456_v2, %v5389_v12  ;;  %v3340_v2 = vsel %vm1555_vm5, %v3280_v41, 0 }
 0x487   : > { %3349 = vmatpush.bf16.msrb.mxu2 %v3340_v2 }
 0x488   : > { %v1527_v30 = vsel %vm1486_vm8, %v1520_v5, %v1526_v61  ;;  %v3020_v61 = vpop.f32.mrf.mxu2  ;;  %v3140_v5 = vmul.f32 %v3018_v23, %v3018_v23 }
 0x489   : > { %v1435_v44 = vpop.xlane.xlu2 %1434  ;;  %v3141_v43 = vmul.f32 %v3020_v61, %v3020_v61 }
 0x48a   : > { %v1449_v46 = vadd.f32 %v1435_v44, %v1393_v0  ;;  %v5895_v58 = vpop.f32.mrf.mxu0 }
 0x48b   : > { %3607 = vmatpush.bf16.msra.mxu2 %v5919_v55 }
 0x48c   : > { %v1457_v24 = vmul.f32 0.28867513, %v1449_v46 }
 0x48e   : > { %v1521_v51 = vperm.slane %v1457_v24, %v5389_v12  ;;  %v3474_v24 = vpack.c.bf16 %v3020_v61, %v3018_v23 }
 0x490   : > { %v1528_v34 = vsel %vm7455_vm9, %v1521_v51, %v1527_v30  ;;  %v5944_v44 = vpop.f32.mrf.mxu2 }
 0x491   : > { %v1388_v49 = vpop.xlane.xlu2 %1387  ;;  %v1529_v27 = vsel %vm7454_vm11, %v1522_v9, %v1528_v34 }
 0x492   : > { %v1396_v38 = vadd.f32 %v1388_v49, %v1332_v11  ;;  %v5916_v52 = vpop.f32.mrf.mxu0  ;;  %v5930_v11 = vpop.f32.mrf.mxu3 }
 0x493   : > { %v3148_v39 = vmul.f32 %v5930_v11, %v5930_v11 }
 0x494   : > { %v1452_v40 = vadd.f32 %v1444_v59, %v1396_v38 }
 0x495   : > { %v3156_v0 = vadd.f32 %v3148_v39, %v3140_v5 }
 0x496   : > { %v1460_v62 = vmul.f32 0.28867513, %v1452_v40 }
 0x497   : > { %v3094_v53 = vpop.permute.xlu0 %3093 }
 0x498   : > { %4625 = vmatmul.msk.bf16.gmra.mxu0 %vm1275_vm0, %v3094_v53  ;;  %v1524_v60 = vperm.slane %v1460_v62, %v5389_v12  ;;  %v3025_v51 = vpop.f32.mrf.mxu2 }
 0x499   : > { %v1441_v36 = vpop.xlane.xlu2 %1440 }
 0x49a   : > { %v1451_v10 = vadd.f32 %v1441_v36, %v1395_v8  ;;  %v5925_v45 = vpop.f32.mrf.mxu0  ;;  %v5948_v1 = vpop.f32.mrf.mxu3 }
 0x49b   : > { %v3149_v38 = vmul.f32 %v5948_v1, %v5948_v1 }
 0x49c   : > { %v1459_v50 = vmul.f32 0.28867513, %v1451_v10 }
 0x49d   : > { %v3157_v40 = vadd.f32 %v3149_v38, %v3141_v43 }
 0x49e   : > { %v1523_v48 = vperm.slane %v1459_v50, %v5389_v12 }
 0x49f   : > { %v3096_v4 = vpop.permute.xlu0 %3095 }
 0x4a0   : > { %v1530_v7 = vsel %vm7514_vm13, %v1523_v48, %v1529_v27  ;;  %v3028_v48 = vpop.f32.mrf.mxu2 }
 0x4a1   : > { %v3045_v32 = vpop.permute.xlu2 %3044  ;;  %v1531_v63 = vsel %vm7515_vm12, %v1524_v60, %v1530_v7  ;;  %v3475_v60 = vpack.c.bf16 %v3025_v51, %v5944_v44 }
 0x4a2   : > { %4621 = vmatmul.msk.bf16.gmra.mxu3 %vm1275_vm0, %v3045_v32  ;;  %v5909_v28 = vsel %vm5427_vm14, %v1531_v63, -3.4028235e+38  ;;  %v5932_v14 = vpop.f32.mrf.mxu0 }
 0x4a3   : > { %v1534_v12 = vsel %vm1275_vm0, %v5909_v28, -inf }
 0x4a4   : > { %1535 = vmax.xlane.f32.xlu2 %v1534_v12 }
 0x4a7   : > { %v3098_v54 = vpop.permute.xlu0 %3097 }
 0x4a8   : > { %4626 = vmatmul.msk.bf16.gmra.mxu0 %vm1275_vm0, %v3096_v4  ;;  %v5960_v23 = vpop.f32.mrf.mxu2 }
 0x4a9   : > { %v3049_v59 = vpop.permute.xlu2 %3048  ;;  %v3476_v39 = vpack.c.bf16 %v5960_v23, %v3028_v48 }
 0x4b0   : > { %v5965_v5 = vpop.f32.mrf.mxu2 }
 0x4b2   : > { %4622 = vmatmul.msk.bf16.gmra.mxu3 %vm1275_vm0, %v3047_v6 }
 0x4b8   : > { %4627 = vmatmul.msk.bf16.gmra.mxu0 %vm1275_vm0, %v3098_v54 }
 0x4c0   : > { %v5942_v30 = vpop.f32.mrf.mxu0 }
 0x4c1   : > { %v3164_v46 = vmul.f32 %v5942_v30, %v5942_v30 }
 0x4c2   : > { %4623 = vmatmul.msk.bf16.gmra.mxu3 %vm1275_vm0, %v3049_v59 }
 0x4c3   : > { %v3172_v49 = vadd.f32 %v3164_v46, %v3156_v0  ;;  %v5967_v0 = vpop.f32.mrf.mxu2 }
 0x4c4   : > { %v3477_v59 = vpack.c.bf16 %v5967_v0, %v5965_v5 }
 0x4c5   : > { %4857 = vrsqrt.f32 %v3172_v49  ;;  %vm3187_vm14 = vcmp.eq.f32.partialorder %v3172_v49, inf  ;;  %v3190_v6 = vand.u32 2147483648, %v3172_v49  ;;  %vm3189_vm4 = vcmp.eq.f32.partialorder %v3172_v49, 0.0 }
 0x4c8   : > { %v5953_v57 = vpop.f32.mrf.mxu0  ;;  %4640 = vmatmul.msk.bf16.vlgmr.msrb.gmra.mxu0 %vm1275_vm0, %v3474_v24 }
 0x4c9   : > { %v3165_v53 = vmul.f32 %v5953_v57, %v5953_v57 }
 0x4cb   : > { %v4858_v8 = vpop.eup %4857  ;;  %v3173_v47 = vadd.f32 %v3165_v53, %v3157_v40 }
 0x4cc   : > { %v3181_v36 = vmul.f32 %v4858_v8, %v3172_v49 }
 0x4cd   : > { %4859 = vrsqrt.f32 %v3173_v47  ;;  %vm3199_vm3 = vcmp.eq.f32.partialorder %v3173_v47, inf  ;;  %v3202_v61 = vand.u32 2147483648, %v3173_v47  ;;  %vm3201_vm13 = vcmp.eq.f32.partialorder %v3173_v47, 0.0 }
 0x4ce   : > { %v3182_v10 = vmul.f32 %v4858_v8, %v3181_v36 }
 0x4d0   : > { %v3183_v62 = vmul.f32 0.5, %v3182_v10 }
 0x4d2   : > { %v3184_v34 = vsub.f32 1.5, %v3183_v62 }
 0x4d3   : > { %v4860_v50 = vpop.eup %4859 }
 0x4d4   : > { %v3193_v9 = vmul.f32 %v4860_v50, %v3173_v47  ;;  %v3185_v27 = vmul.f32 %v4858_v8, %v3184_v34 }
 0x4d6   : > { %v3194_v7 = vmul.f32 %v4860_v50, %v3193_v9  ;;  %v3186_v63 = vmul.f32 %v3185_v27, %v3172_v49  ;;  %v3143_v27 = vmul.f32 %v3025_v51, %v3025_v51 }
 0x4d8   : > { %4641 = vmatmul.msk.bf16.gmra.mxu0 %vm1275_vm0, %v3475_v60  ;;  %v3195_v32 = vmul.f32 0.5, %v3194_v7  ;;  %v3188_v13 = vsel %vm3187_vm14, %v3172_v49, %v3186_v63 }
 0x4d9   : > { %v3191_v18 = vsel %vm3189_vm4, %v3190_v6, %v3188_v13 }
 0x4da   : > { %v3196_v35 = vsub.f32 1.5, %v3195_v32 }
 0x4dc   : > { %v3197_v12 = vmul.f32 %v4860_v50, %v3196_v35 }
 0x4de   : > { %v3198_v4 = vmul.f32 %v3197_v12, %v3173_v47 }
 0x4e0   : > { %v3200_v54 = vsel %vm3199_vm3, %v3173_v47, %v3198_v4 }
 0x4e1   : > { %v3203_v41 = vsel %vm3201_vm13, %v3202_v61, %v3200_v54  ;;  %v3144_v54 = vmul.f32 %v3028_v48, %v3028_v48 }
 0x4e2   : > { %v3276_v2 = vpack.c.bf16 %v3203_v41, %v3191_v18 }
 0x4e4   : > { %4632 = vmatmul.msk.bf16.vlgmr.msrb.gmra.mxu2 %vm1275_vm0, %v3276_v2 }
 0x4e8   : > { %4642 = vmatmul.msk.bf16.gmra.mxu0 %vm1275_vm0, %v3476_v39 }
 0x4f8   : > { %4643 = vmatmul.msk.bf16.gmra.mxu0 %vm1275_vm0, %v3477_v59 }
 0x515   : > { %v5972_v46 = vpop.f32.mrf.mxu0 }
 0x516   : > { %v3166_v62 = vmul.f32 %v5972_v46, %v5972_v46 }
 0x517   : > { %v1536_v49 = vpop.xlane.xlu2 %1535 }
 0x518   : > { %v1537_v38 = vsub.f32 %v5909_v28, %v1536_v49  ;;  %v3142_v28 = vmul.f32 %v5944_v44, %v5944_v44 }
 0x51a   : > { %v1538_v24 = vmul.f32 1.442695, %v1537_v38 }
 0x51c   : > { %4861 = vpow2.f32 %v1538_v24 }
 0x51d   : > { %v5975_v43 = vpop.f32.mrf.mxu0 }
 0x51e   : > { %v3585_v40 = vpack.c.bf16 %v5975_v43, %v5972_v46  ;;  %v3167_v63 = vmul.f32 %v5975_v43, %v5975_v43 }
 0x522   : > { %v5979_v53 = vpop.eup %4861 }
 0x523   : > { %v1540_v8 = vsel %vm1275_vm0, %v5979_v53, 0.0 }
 0x524   : > { %1541 = vadd.xlane.f32.xlu1 %v1540_v8 }
 0x525   : > { %v5983_v47 = vpop.f32.mrf.mxu3  ;;  %v5985_v36 = vpop.f32.mrf.mxu0 }
 0x526   : > { %v3150_v10 = vmul.f32 %v5983_v47, %v5983_v47  ;;  %v3168_v2 = vmul.f32 %v5985_v36, %v5985_v36 }
 0x528   : > { %v3158_v34 = vadd.f32 %v3150_v10, %v3142_v28 }
 0x52a   : > { %v5993_v50 = vadd.f32 %v3166_v62, %v3158_v34  ;;  %v3145_v62 = vmul.f32 %v5960_v23, %v5960_v23 }
 0x52c   : > { %4863 = vrsqrt.f32 %v5993_v50  ;;  %vm3211_vm12 = vcmp.eq.f32.partialorder %v5993_v50, inf  ;;  %vm3213_vm3 = vcmp.eq.f32.partialorder %v5993_v50, 0.0 }
 0x52d   : > { %v5996_v9 = vpop.f32.mrf.mxu3  ;;  %v5998_v60 = vpop.f32.mrf.mxu0 }
 0x52e   : > { %v3151_v7 = vmul.f32 %v5996_v9, %v5996_v9  ;;  %v3586_v32 = vpack.c.bf16 %v5998_v60, %v5985_v36  ;;  %v2271_v36 = vadd.f32 %v5787_v20, %v5895_v58  ;;  %v2278_v58 = vadd.f32 %v5787_v20, %v5932_v14  ;;  %v1150_v14 = vld [vmem:[%s1086_s16] sm:$0xff]  ;;  %s4998_s16 = smov 83  }
 0x530   : > { %v3159_v35 = vadd.f32 %v3151_v7, %v3143_v27 }
 0x532   : > { %v4864_v12 = vpop.eup %4863  ;;  %v3175_v13 = vadd.f32 %v3167_v63, %v3159_v35  ;;  %v3169_v35 = vmul.f32 %v5998_v60, %v5998_v60 }
 0x533   : > { %v3205_v4 = vmul.f32 %v4864_v12, %v5993_v50 }
 0x534   : > { %4865 = vrsqrt.f32 %v3175_v13  ;;  %vm3223_vm14 = vcmp.eq.f32.partialorder %v3175_v13, inf  ;;  %vm3225_vm4 = vcmp.eq.f32.partialorder %v3175_v13, 0.0 }
 0x535   : > { %v6009_v6 = vpop.f32.mrf.mxu3  ;;  %v6011_v51 = vpop.f32.mrf.mxu0  ;;  %v3206_v61 = vmul.f32 %v4864_v12, %v3205_v4 }
 0x536   : > { %v3152_v18 = vmul.f32 %v6009_v6, %v6009_v6 }
 0x537   : > { %v3207_v41 = vmul.f32 0.5, %v3206_v61 }
 0x538   : > { %v3160_v39 = vadd.f32 %v3152_v18, %v3144_v54 }
 0x539   : > { %v3208_v59 = vsub.f32 1.5, %v3207_v41 }
 0x53a   : > { %v4866_v49 = vpop.eup %4865  ;;  %v6017_v38 = vadd.f32 %v3168_v2, %v3160_v39  ;;  %v3146_v2 = vmul.f32 %v5965_v5, %v5965_v5  ;;  %v3170_v5 = vmul.f32 %v6011_v51, %v6011_v51 }
 0x53b   : > { %v3217_v24 = vmul.f32 %v4866_v49, %v3175_v13  ;;  %v3209_v48 = vmul.f32 %v4864_v12, %v3208_v59 }
 0x53c   : > { %4867 = vrsqrt.f32 %v6017_v38  ;;  %vm3235_vm13 = vcmp.eq.f32.partialorder %v6017_v38, inf }
 0x53d   : > { %v6020_v8 = vpop.f32.mrf.mxu3  ;;  %v6022_v28 = vpop.f32.mrf.mxu0  ;;  %v3218_v10 = vmul.f32 %v4866_v49, %v3217_v24  ;;  %v3210_v12 = vmul.f32 %v3209_v48, %v5993_v50 }
 0x53e   : > { %v3153_v34 = vmul.f32 %v6020_v8, %v6020_v8 }
 0x53f   : > { %v3219_v63 = vmul.f32 0.5, %v3218_v10  ;;  %v3212_v59 = vsel %vm3211_vm12, %v5993_v50, %v3210_v12 }
 0x540   : > { %v3161_v4 = vadd.f32 %v3153_v34, %v3145_v62  ;;  %v3214_v62 = vand.u32 2147483648, %v5993_v50 }
 0x541   : > { %v3220_v61 = vsub.f32 1.5, %v3219_v63 }
 0x542   : > { %v4868_v54 = vpop.eup %4867  ;;  %v3177_v18 = vadd.f32 %v3169_v35, %v3161_v4  ;;  %v3215_v4 = vsel %vm3213_vm3, %v3214_v62, %v3212_v59 }
 0x543   : > { %v3221_v23 = vmul.f32 %v4866_v49, %v3220_v61  ;;  %v3229_v41 = vmul.f32 %v4868_v54, %v6017_v38  ;;  %v3226_v49 = vand.u32 2147483648, %v3175_v13 }
 0x544   : > { %4869 = vrsqrt.f32 %v3177_v18  ;;  %vm3247_vm12 = vcmp.eq.f32.partialorder %v3177_v18, inf  ;;  %vm3249_vm3 = vcmp.eq.f32.partialorder %v3177_v18, 0.0 }
 0x545   : > { %v6039_v39 = vpop.f32.mrf.mxu3  ;;  %v3222_v24 = vmul.f32 %v3221_v23, %v3175_v13  ;;  %v3230_v10 = vmul.f32 %v4868_v54, %v3229_v41 }
 0x546   : > { %v3154_v48 = vmul.f32 %v6039_v39, %v6039_v39 }
 0x547   : > { %v3224_v34 = vsel %vm3223_vm14, %v3175_v13, %v3222_v24  ;;  %v3231_v63 = vmul.f32 0.5, %v3230_v10  ;;  %v3147_v13 = vmul.f32 %v5967_v0, %v5967_v0  ;;  %v3171_v10 = vmul.f32 %v6022_v28, %v6022_v28 }
 0x548   : > { %v3162_v35 = vadd.f32 %v3154_v48, %v3146_v2  ;;  %v3227_v12 = vsel %vm3225_vm4, %v3226_v49, %v3224_v34  ;;  %vm3237_vm14 = vcmp.eq.f32.partialorder %v6017_v38, 0.0 }
 0x549   : > { %v3277_v61 = vpack.c.bf16 %v3227_v12, %v3215_v4  ;;  %v3232_v23 = vsub.f32 1.5, %v3231_v63  ;;  %v3238_v4 = vand.u32 2147483648, %v6017_v38  ;;  %v3250_v12 = vand.u32 2147483648, %v3177_v18 }
 0x54a   : > { %v4870_v41 = vpop.eup %4869  ;;  %v3178_v27 = vadd.f32 %v3170_v5, %v3162_v35 }
 0x54b   : > { %4633 = vmatmul.msk.bf16.gmra.mxu2 %vm1275_vm0, %v3277_v61  ;;  %v3241_v44 = vmul.f32 %v4870_v41, %v3177_v18  ;;  %v3233_v50 = vmul.f32 %v4868_v54, %v3232_v23 }
 0x54c   : > { %4871 = vrsqrt.f32 %v3178_v27  ;;  %vm3259_vm4 = vcmp.eq.f32.partialorder %v3178_v27, inf }
 0x54d   : > { %v6049_v7 = vpop.f32.mrf.mxu3  ;;  %v3242_v24 = vmul.f32 %v4870_v41, %v3241_v44  ;;  %v3234_v62 = vmul.f32 %v3233_v50, %v6017_v38 }
 0x54e   : > { %v3155_v2 = vmul.f32 %v6049_v7, %v6049_v7 }
 0x54f   : > { %v3243_v59 = vmul.f32 0.5, %v3242_v24  ;;  %v3236_v0 = vsel %vm3235_vm13, %v6017_v38, %v3234_v62 }
 0x550   : > { %v3163_v48 = vadd.f32 %v3155_v2, %v3147_v13  ;;  %v3239_v50 = vsel %vm3237_vm14, %v3238_v4, %v3236_v0 }
 0x551   : > { %v3244_v49 = vsub.f32 1.5, %v3243_v59 }
 0x552   : > { %v4872_v34 = vpop.eup %4871  ;;  %v3179_v63 = vadd.f32 %v3171_v10, %v3163_v48 }
 0x553   : > { %v3245_v5 = vmul.f32 %v4870_v41, %v3244_v49  ;;  %v3253_v35 = vmul.f32 %v4872_v34, %v3178_v27 }
 0x554   : > { %4873 = vrsqrt.f32 %v3179_v63  ;;  %vm3271_vm13 = vcmp.eq.f32.partialorder %v3179_v63, inf  ;;  %v3274_v0 = vand.u32 2147483648, %v3179_v63  ;;  %vm3273_vm14 = vcmp.eq.f32.partialorder %v3179_v63, 0.0 }
 0x555   : > { %v3246_v44 = vmul.f32 %v3245_v5, %v3177_v18  ;;  %v3254_v54 = vmul.f32 %v4872_v34, %v3253_v35 }
 0x557   : > { %v3248_v61 = vsel %vm3247_vm12, %v3177_v18, %v3246_v44  ;;  %v3255_v23 = vmul.f32 0.5, %v3254_v54  ;;  %v3262_v18 = vand.u32 2147483648, %v3178_v27  ;;  %vm3261_vm12 = vcmp.eq.f32.partialorder %v3178_v27, 0.0 }
 0x558   : > { %v3251_v24 = vsel %vm3249_vm3, %v3250_v12, %v3248_v61 }
 0x559   : > { %v3278_v41 = vpack.c.bf16 %v3251_v24, %v3239_v50  ;;  %v3256_v13 = vsub.f32 1.5, %v3255_v23  ;;  %v4958_v23 = vld [vmem:[%s5681_s7] sm:$0xff]  ;;  %v3584_v24 = vpack.c.bf16 %v5953_v57, %v5942_v30  ;;  %s7518_s7 = sld [smem:[#allocation37_spill]] }
 0x55a   : > { %v4874_v2 = vpop.eup %4873  ;;  %v1127_v30 = vld [vmem:[%s7436_s20] sm:$0xff] }
 0x55b   : > { %4634 = vmatmul.msk.bf16.gmra.mxu2 %vm1275_vm0, %v3278_v41  ;;  %v3265_v59 = vmul.f32 %v4874_v2, %v3179_v63  ;;  %v3257_v10 = vmul.f32 %v4872_v34, %v3256_v13  ;;  %v1574_v34 = vpop.permute.xlu0 %1573 }
 0x55c   : > { %v1577_v50 = vsel %vm7452_vm10, %v4958_v23, %v1574_v34  ;;  %v2374_v23 = vrot.slane %v1150_v14, 4 }
 0x55d   : > { %v3266_v48 = vmul.f32 %v4874_v2, %v3265_v59  ;;  %v3258_v49 = vmul.f32 %v3257_v10, %v3178_v27  ;;  %v1579_v41 = vpack.c.bf16 %v1577_v50, %v1577_v50  ;;  %v3282_v50 = vpack.c.bf16 %v5200_v37, %v5189_v22 }
 0x55f   : > { %v3267_v62 = vmul.f32 0.5, %v3266_v48  ;;  %v3260_v38 = vsel %vm3259_vm4, %v3178_v27, %v3258_v49  ;;  %v1584_v13 = vsel %vm1555_vm5, %v1579_v41, 0  ;;  %vm2290_vm4 = vcmp.ge.f32.partialorder %v2271_v36, 0.0  ;;  %s1090_s4 = scalar_lea.vmem %s7518_s7, %s5166_s17  ;;  %s4995_s7 = smov 56  }
 0x560   : > { %v3263_v4 = vsel %vm3261_vm12, %v3262_v18, %v3260_v38  ;;  %1593 = vmatpush.bf16.msra.mxu1 %v1584_v13  ;;  %v2382_v13 = vperm.slane %v2374_v23, 0 }
 0x561   : > { %v3268_v5 = vsub.f32 1.5, %v3267_v62 }
 0x563   : > { %v3269_v35 = vmul.f32 %v4874_v2, %v3268_v5  ;;  %v1151_v5 = vld [vmem:[%s1090_s4] sm:$0xff]  ;;  %s4996_s4 = smov 44  }
 0x564   : > { %2347 = vmatpush.bf16.msrb.mxu1 %v5754_v56  ;;  %v1128_v56 = vld [vmem:[%s7436_s20 + $0x8] sm:$0xff] }
 0x565   : > { %v3270_v44 = vmul.f32 %v3269_v35, %v3179_v63  ;;  %v3285_v46 = vpack.c.bf16 %v1128_v56, %v1127_v30  ;;  %v6136_v56 = vsub.f32 %v2382_v13, %v1151_v5 }
 0x567   : > { %v3272_v54 = vsel %vm3271_vm13, %v3179_v63, %v3270_v44  ;;  %v2298_v63 = vmul.f32 0.01, %v2271_v36  ;;  %vm2293_vm13 = vcmp.ge.f32.partialorder %v2278_v58, 0.0  ;;  %v2406_v22 = vmul.f32 %v6136_v56, %v6136_v56 }
 0x568   : > { %v3275_v12 = vsel %vm3273_vm14, %v3274_v0, %v3272_v54  ;;  %2348 = vmatpush.bf16.msrb.mxu1 %v5767_v3  ;;  %vm2972_vm14 = vcmask 130048   ;;  %v2373_v54 = vrot.slane %v1150_v14, 3 }
 0x569   : > { %v3279_v61 = vpack.c.bf16 %v3275_v12, %v3263_v4  ;;  %v2306_v2 = vsel %vm2290_vm4, %v2271_v36, %v2298_v63  ;;  %v2378_v4 = vperm.slane %v1150_v14, 0  ;;  %v3283_v63 = vpack.c.bf16 %v5204_v42, %v5193_v31  ;;  %v1130_v31 = vld [vmem:[%s7438_s22] sm:$0xff] }
 0x56a   : > { %v2381_v12 = vperm.slane %v2373_v54, 0  ;;  %v7519_v42 = vld [vmem:[#allocation5_spill] sm:$0xff] }
 0x56b   : > { %4635 = vmatmul.msk.bf16.gmra.mxu2 %vm1275_vm0, %v3279_v61  ;;  %v6124_v61 = vsub.f32 %v2378_v4, %v1151_v5  ;;  %v7523_v4 = vmov 0  }
 0x56c   : > { %v6126_v34 = vsub.f32 %v2381_v12, %v1151_v5 }
 0x56e   : > { %v2405_v41 = vmul.f32 %v6126_v34, %v6126_v34 }
 0x57b   : > { %4648 = vmatmul.msk.bf16.vlgmr.msra.gmra.mxu2 %vm1275_vm0, %v3584_v24  ;;  %v2402_v24 = vmul.f32 %v6124_v61, %v6124_v61 }
 0x58b   : > { %4649 = vmatmul.msk.bf16.gmra.mxu2 %vm1275_vm0, %v3585_v40  ;;  %v2273_v40 = vadd.f32 %v5787_v20, %v5916_v52  ;;  %v2276_v52 = vadd.f32 %v5787_v20, %v5925_v45  ;;  %v2372_v20 = vrot.slane %v1150_v14, 2  ;;  %v2371_v45 = vrot.slane %v1150_v14, 1 }
 0x58d   : > { %v2299_v60 = vmul.f32 0.01, %v2273_v40  ;;  %vm2291_vm3 = vcmp.ge.f32.partialorder %v2273_v40, 0.0  ;;  %vm2292_vm12 = vcmp.ge.f32.partialorder %v2276_v52, 0.0  ;;  %v2380_v49 = vperm.slane %v2372_v20, 0 }
 0x58e   : > { %v2379_v35 = vperm.slane %v2371_v45, 0  ;;  %v3531_v20 = vpack.c.bf16 %v5948_v1, %v5930_v11  ;;  %v4993_v45 = vmov 1   ;;  %v6180_v1 = vpop.permute.xlu0 %2323 }
 0x58f   : > { %v6114_v38 = vsub.f32 %v2380_v49, %v1151_v5  ;;  %4814 = vset.pattern.permute.xlu0 %v4993_v45  ;;  %v1154_v49 = vld [vmem:[%s1097_s0] sm:$0xff]  ;;  %s4997_s0 = smov 80  }
 0x590   : > { %v6116_v44 = vsub.f32 %v2379_v35, %v1151_v5  ;;  %v7521_v35 = vpack.c.bf16 %v5996_v9, %v5983_v47  ;;  %v3534_v9 = vpack.c.bf16 %v6049_v7, %v6039_v39  ;;  %v2361_v7 = vadd.f32 %v5891_v29, %v6180_v1 }
 0x597   : > { %v1542_v27 = vpop.xlane.xlu1 %1541 }
 0x598   : > { %4875 = vrcp.f32 %v1542_v27 }
 0x59b   : > { %4650 = vmatmul.msk.bf16.gmra.mxu2 %vm1275_vm0, %v3586_v32  ;;  %v7516_v32 = vpack.c.bf16 %v6022_v28, %v6011_v51  ;;  %v2301_v51 = vmul.f32 0.01, %v2278_v58  ;;  %v2300_v28 = vmul.f32 0.01, %v2276_v52 }
 0x59d   : > { %v2309_v10 = vsel %vm2293_vm13, %v2278_v58, %v2301_v51  ;;  %v2308_v48 = vsel %vm2292_vm12, %v2276_v52, %v2300_v28 }
 0x59e   : > { %v4876_v3 = vpop.eup %4875  ;;  %v2315_v62 = vpack.c.bf16 %v2309_v10, %v2308_v48  ;;  %v7520_v10 = vld [vmem:[#allocation6_spill] sm:$0xff] }
 0x59f   : > { %v1544_v57 = vmul.f32 %v4876_v3, %v5979_v53  ;;  %v2307_v53 = vsel %vm2291_vm3, %v2273_v40, %v2299_v60  ;;  %vm2410_vm3 = vcmask 23552   ;;  %v2376_v3 = vrot.slane %v1150_v14, 6 }
 0x5a0   : > { %v2314_v59 = vpack.c.bf16 %v2307_v53, %v2306_v2  ;;  %v2411_v27 = vsel %vm2410_vm3, %v2402_v24, 0.0  ;;  %v2420_v30 = vsel %vm2410_vm3, %v2405_v41, 0.0  ;;  %v2423_v37 = vsel %vm2410_vm3, %v2406_v22, 0.0 }
 0x5a1   : > { %v1578_v43 = vpack.c.bf16 %v1544_v57, %v1544_v57  ;;  %2412 = vadd.xlane.f32.xlu0 %v2411_v27  ;;  %v2384_v57 = vperm.slane %v2376_v3, 0  ;;  %v3284_v48 = vpack.c.bf16 %v7520_v10, %v7519_v42  ;;  %v6206_v27 = vadd.f32 %v5921_v26, %v6180_v1  ;;  %v6218_v26 = vld [vmem:[%s7437_s21] ss:$0 sm:$0xff] }
 0x5a3   : > { %4605 = vmatmul.msk.bf16.vlgmr.msra.gmra.mxu1 %vm1275_vm0, %v1578_v43  ;;  %v2375_v43 = vrot.slane %v1150_v14, 5 }
 0x5a4   : > { %3305 = vmatpush.bf16.msra.mxu1 %v3285_v46  ;;  %v6142_v46 = vsub.f32 %v2384_v57, %v1151_v5 }
 0x5a5   : > { %v2383_v36 = vperm.slane %v2375_v43, 0 }
 0x5a6   : > { %v2408_v40 = vmul.f32 %v6142_v46, %v6142_v46 }
 0x5a8   : > { %v2429_v60 = vsel %vm2410_vm3, %v2408_v40, 0.0 }
 0x5ab   : > { %4651 = vmatmul.msk.bf16.gmra.mxu2 %vm1275_vm0, %v7516_v32  ;;  %v6147_v32 = vsub.f32 %v2383_v36, %v1151_v5 }
 0x5ad   : > { %v2407_v53 = vmul.f32 %v6147_v32, %v6147_v32 }
 0x5af   : > { %v2426_v2 = vsel %vm2410_vm3, %v2407_v53, 0.0 }
 0x5b3   : > { %4612 = vmatmul.msk.bf16.vlgmr.msrb.gmra.mxu1 %vm2245_vm2, %v2314_v59  ;;  %v2377_v59 = vrot.slane %v1150_v14, 7  ;;  %v4826_v14 = vld [vmem:[#allocation3] ss:$0 sm:$0xff] }
 0x5b4   : > { %3554 = vmatpush.bf16.msrb.mxu1 %v5919_v55  ;;  %v3281_v55 = vpack.c.bf16 %v5195_v33, %v5185_v17  ;;  %v2404_v17 = vmul.f32 %v6114_v38, %v6114_v38  ;;  %v2403_v33 = vmul.f32 %v6116_v44, %v6116_v44 }
 0x5b5   : > { %v2385_v58 = vperm.slane %v2377_v59, 0 }
 0x5b6   : > { %v2417_v18 = vsel %vm2410_vm3, %v2404_v17, 0.0  ;;  %v2414_v0 = vsel %vm2410_vm3, %v2403_v33, 0.0 }
 0x5b7   : > { %2418 = vadd.xlane.f32.xlu1 %v2417_v18  ;;  %2415 = vadd.xlane.f32.xlu2 %v2414_v0  ;;  %v6155_v52 = vsub.f32 %v2385_v58, %v1151_v5  ;;  %v7522_v18 = vpack.c.bf16 %v6020_v8, %v6009_v6  ;;  %v3351_v6 = vpop.f32.mrf.mxu2 }
 0x5b9   : > { %v2409_v51 = vmul.f32 %v6155_v52, %v6155_v52 }
 0x5bb   : > { %v2432_v28 = vsel %vm2410_vm3, %v2409_v51, 0.0 }
 0x5bf   : > { %2421 = vadd.xlane.f32.xlu2 %v2420_v30  ;;  %2424 = vadd.xlane.f32.xlu1 %v2423_v37  ;;  %v3353_v39 = vpop.f32.mrf.mxu2 }
 0x5c3   : > { %4613 = vmatmul.msk.bf16.gmra.mxu1 %vm2245_vm2, %v2315_v62  ;;  %v3386_v62 = vpack.c.bf16 %v1130_v31, %v1130_v31 }
 0x5c7   : > { %2430 = vadd.xlane.f32.xlu1 %v2429_v60  ;;  %2427 = vadd.xlane.f32.xlu2 %v2426_v2 }
 0x5cf   : > { %2433 = vadd.xlane.f32.xlu2 %v2432_v28 }
 0x5d3   : > { %4628 = vmatmul.msk.bf16.vlgmr.msra.gmra.mxu1 %vm2972_vm14, %v3281_v55  ;;  %v3403_v55 = vsel %vm1555_vm5, %v3386_v62, 0 }
 0x5d4   : > { %3412 = vmatpush.bf16.msrb.mxu3 %v3403_v55 }
 0x5e0   : > { %2686 = vperm.xlu1 %4812, %v4826_v14  }
 0x5e3   : > { %4629 = vmatmul.msk.bf16.gmra.mxu1 %vm2972_vm14, %v3282_v50  ;;  %v2363_v50 = vadd.f32 %v5897_v25, %v6180_v1  ;;  %v3356_v25 = vpop.f32.mrf.mxu2 }
 0x5e7   : > { %2699 = vperm.xlu2 %4813, %v1154_v49  }
 0x5e8   : > { %4816 = vset.pattern.permute.xlu1 %v4993_v45 }
 0x5eb   : > { %v3358_v51 = vpop.f32.mrf.mxu2 }
 0x5ef   : > { %4818 = vset.pattern.permute.xlu2 %v4993_v45 }
 0x5f3   : > { %4630 = vmatmul.msk.bf16.gmra.mxu1 %vm2972_vm14, %v3283_v63 }
 0x603   : > { %4631 = vmatmul.msk.bf16.gmra.mxu1 %vm2972_vm14, %v3284_v48 }
 0x613   : > { %4644 = vmatmul.msk.bf16.vlgmr.msrb.gmra.mxu1 %vm1275_vm0, %v3531_v20 }
 0x614   : > { %v6209_v29 = vpop.xlane.xlu0 %2412 }
 0x615   : > { %vm2442_vm4 = vcmp.eq.f32.partialorder %v6209_v29, inf  ;;  %vm2444_vm15 = vcmp.eq.f32.partialorder %v6209_v29, 0.0 }
 0x620   : > { %v6174_v5 = vpop.f32.mrf.mxu1 }
 0x623   : > { %4645 = vmatmul.msk.bf16.gmra.mxu1 %vm1275_vm0, %v7521_v35 }
 0x628   : > { %v1597_v11 = vpop.f32.mrf.mxu1 }
 0x62a   : > { %v6200_v24 = vpop.xlane.xlu2 %2415  ;;  %v6202_v13 = vpop.xlane.xlu1 %2418 }
 0x62b   : > { %4877 = vrsqrt.f32 %v6202_v13  ;;  %vm2466_vm5 = vcmp.eq.f32.partialorder %v6202_v13, inf  ;;  %vm2468_vm12 = vcmp.eq.f32.partialorder %v6202_v13, 0.0  ;;  %vm2454_vm10 = vcmp.eq.f32.partialorder %v6200_v24, inf }
 0x62c   : > { %4879 = vrsqrt.f32 %v6209_v29  ;;  %vm2456_vm1 = vcmp.eq.f32.partialorder %v6200_v24, 0.0 }
 0x630   : > { %v2350_v17 = vpop.f32.mrf.mxu1 }
 0x631   : > { %v2351_v33 = vadd.f32 %v2350_v17, %v6180_v1  ;;  %v4878_v57 = vpop.eup %4877 }
 0x632   : > { %v6213_v30 = vpop.xlane.xlu2 %2421  ;;  %v4880_v36 = vpop.eup %4879  ;;  %v2460_v59 = vmul.f32 %v4878_v57, %v6202_v13 }
 0x633   : > { %4646 = vmatmul.msk.bf16.gmra.mxu1 %vm1275_vm0, %v7522_v18  ;;  %2815 = vperm.xlu0 %4814, %v2351_v33   ;;  %4881 = vrsqrt.f32 %v6213_v30  ;;  %v2436_v53 = vmul.f32 %v4880_v36, %v6209_v29  ;;  %v3361_v18 = vpop.f32.mrf.mxu2  ;;  %vm2478_vm13 = vcmp.eq.f32.partialorder %v6213_v30, inf }
 0x634   : > { %4883 = vrsqrt.f32 %v6200_v24  ;;  %v2461_v10 = vmul.f32 %v4878_v57, %v2460_v59 }
 0x635   : > { %v2437_v31 = vmul.f32 %v4880_v36, %v2436_v53 }
 0x636   : > { %v2462_v14 = vmul.f32 0.5, %v2461_v10 }
 0x637   : > { %v2438_v62 = vmul.f32 0.5, %v2437_v31 }
 0x638   : > { %v2352_v0 = vpop.f32.mrf.mxu1 }
 0x639   : > { %v2353_v54 = vadd.f32 %v2352_v0, %v6180_v1  ;;  %v4882_v60 = vpop.eup %4881  ;;  %v2439_v11 = vsub.f32 1.5, %v2438_v62 }
 0x63a   : > { %v4884_v2 = vpop.eup %4883  ;;  %v2472_v58 = vmul.f32 %v4882_v60, %v6213_v30 }
 0x63b   : > { %2819 = vperm.xlu1 %4816, %v2353_v54   ;;  %4815 = vset.pattern.permute.xlu0 %v7523_v4  ;;  %v2448_v42 = vmul.f32 %v4884_v2, %v6200_v24  ;;  %v3363_v53 = vpop.f32.mrf.mxu2 }
 0x63c   : > { %2712 = vperm.xlu0 %4815, %v2351_v33   ;;  %v2473_v48 = vmul.f32 %v4882_v60, %v2472_v58  ;;  %v2469_v58 = vand.u32 2147483648, %v6202_v13 }
 0x63d   : > { %v2449_v55 = vmul.f32 %v4884_v2, %v2448_v42 }
 0x63e   : > { %v2474_v20 = vmul.f32 0.5, %v2473_v48 }
 0x63f   : > { %v2450_v33 = vmul.f32 0.5, %v2449_v55 }
 0x640   : > { %v2355_v47 = vpop.f32.mrf.mxu1  ;;  %v2475_v0 = vsub.f32 1.5, %v2474_v20 }
 0x641   : > { %v2356_v12 = vadd.f32 %v2355_v47, %v6180_v1 }
 0x643   : > { %4647 = vmatmul.msk.bf16.gmra.mxu1 %vm1275_vm0, %v3534_v9  ;;  %2823 = vperm.xlu2 %4818, %v2356_v12   ;;  %v2368_v9 = vadd.f32 %v5927_v16, %v6180_v1 }
 0x644   : > { %4817 = vset.pattern.permute.xlu1 %v7523_v4  ;;  %2717 = vperm.xlu0 %4815, %v2353_v54   ;;  %v6247_v54 = vpop.xlane.xlu1 %2424 }
 0x645   : > { %2722 = vperm.xlu1 %4817, %v2356_v12   ;;  %v2440_v12 = vmul.f32 %v4880_v36, %v2439_v11 }
 0x648   : > { %v2357_v8 = vpop.f32.mrf.mxu1 }
 0x649   : > { %v2358_v23 = vadd.f32 %v2357_v8, %v6180_v1  ;;  %v2451_v8 = vsub.f32 1.5, %v2450_v33 }
 0x64b   : > { %4819 = vset.pattern.permute.xlu2 %v7523_v4  ;;  %v2452_v1 = vmul.f32 %v4884_v2, %v2451_v8 }
 0x64c   : > { %2727 = vperm.xlu2 %4819, %v2358_v23   ;;  %2737 = vperm.xlu0 %4815, %v2363_v50   ;;  %v6272_v36 = vpop.xlane.xlu1 %2430 }
 0x64d   : > { %2732 = vperm.xlu1 %4817, %v2361_v7  }
 0x650   : > { %v3307_v41 = vpop.f32.mrf.mxu1 }
 0x651   : > { %v3352_v22 = vadd.f32 %v3351_v6, %v3307_v41 }
 0x653   : > { %v6223_v43 = vadd.f32 %v6218_v26, %v3352_v22 }
 0x654   : > { %4820 = vset.pattern.permute.xlu2 %v4993_v45  ;;  %4823 = vset.pattern.permute.xlu0 %v4993_v45 }
 0x655   : > { %4821 = vset.pattern.permute.xlu1 %v4993_v45  ;;  %2827 = vperm.xlu2 %4820, %v2358_v23   ;;  %7524 = vst [vmem:[#allocation5_spill] sm:$0xff] %v6223_v43  ;;  %v6244_v45 = vpop.xlane.xlu2 %2427 }
 0x656   : > { %2831 = vperm.xlu1 %4821, %v2361_v7   ;;  %2839 = vperm.xlu0 %4823, %v6206_v27   ;;  %4885 = vrsqrt.f32 %v6244_v45  ;;  %v2476_v7 = vmul.f32 %v4882_v60, %v2475_v0  ;;  %v2445_v60 = vand.u32 2147483648, %v6209_v29 }
 0x657   : > { %4887 = vrsqrt.f32 %v6247_v54 }
 0x658   : > { %v3309_v37 = vpop.f32.mrf.mxu1 }
 0x659   : > { %v3354_v3 = vadd.f32 %v3353_v39, %v3309_v37 }
 0x65b   : > { %v6226_v40 = vadd.f32 %v6218_v26, %v3354_v3  ;;  %v2477_v3 = vmul.f32 %v2476_v7, %v6213_v30  ;;  %v3366_v7 = vpop.f32.mrf.mxu2 }
 0x65c   : > { %v4886_v6 = vpop.eup %4885 }
 0x65d   : > { %7525 = vst [vmem:[#allocation6_spill] sm:$0xff] %v6226_v40  ;;  %v3382_v63 = vpack.c.bf16 %v6226_v40, %v6223_v43  ;;  %2911 = vrot.lane.b32.xlu2 %v5691_v15, %s4991_s29  ;;  %v2496_v39 = vmul.f32 %v4886_v6, %v6244_v45  ;;  %v4888_v16 = vpop.eup %4887  ;;  %v2479_v42 = vsel %vm2478_vm13, %v6213_v30, %v2477_v3  ;;  %v2493_v3 = vand.u32 2147483648, %v6247_v54 }
 0x65e   : > { %2835 = vperm.xlu1 %4821, %v2363_v50   ;;  %2922 = vrot.lane.b32.xlu0 %v6174_v5, %s4994_s8 }
 0x65f   : > { %4636 = vmatmul.msk.bf16.vlgmr.msrb.gmra.mxu3 %vm1275_vm0, %v3382_v63  ;;  %4822 = vset.pattern.permute.xlu2 %v7523_v4  ;;  %v2497_v22 = vmul.f32 %v4886_v6, %v2496_v39 }
 0x660   : > { %v3312_v28 = vpop.f32.mrf.mxu1 }
 0x661   : > { %v3357_v49 = vadd.f32 %v3356_v25, %v3312_v28  ;;  %v2441_v25 = vmul.f32 %v2440_v12, %v6209_v29  ;;  %v2498_v63 = vmul.f32 0.5, %v2497_v22  ;;  %v2481_v28 = vand.u32 2147483648, %v6213_v30 }
 0x663   : > { %v6250_v4 = vadd.f32 %v6218_v26, %v3357_v49  ;;  %v2443_v2 = vsel %vm2442_vm4, %v6209_v29, %v2441_v25  ;;  %vm2480_vm4 = vcmp.eq.f32.partialorder %v6213_v30, 0.0  ;;  %v2499_v62 = vsub.f32 1.5, %v2498_v63 }
 0x664   : > { %v2446_v48 = vsel %vm2444_vm15, %v2445_v60, %v2443_v2  ;;  %v2482_v30 = vsel %vm2480_vm4, %v2481_v28, %v2479_v42  ;;  %v2505_v63 = vand.u32 2147483648, %v6244_v45  ;;  %vm2504_vm4 = vcmp.eq.f32.partialorder %v6244_v45, 0.0 }
 0x665   : > { %2918 = vrot.lane.b32.xlu2 %v5691_v15, %s4989_s2  ;;  %v2463_v15 = vsub.f32 1.5, %v2462_v14  ;;  %7526 = vst [vmem:[#allocation7_spill] sm:$0xff] %v6250_v4  ;;  %v2457_v14 = vand.u32 2147483648, %v6200_v24  ;;  %vm2531_vm15 = vcmp.eq.f32.partialorder %v2446_v48, 0.0  ;;  %v2539_v33 = vadd.f32 1e+08, %v2446_v48 }
 0x666   : > { %2915 = vrot.lane.b32.xlu1 %v5880_v21, %s4991_s29  ;;  %2932 = vrot.lane.b32.xlu0 %v5871_v19, %s4995_s7  ;;  %v2500_v12 = vmul.f32 %v4886_v6, %v2499_v62  ;;  %v2542_v25 = vadd.f32 1e+08, %v2482_v30  ;;  %vm2534_vm13 = vcmp.eq.f32.partialorder %v2482_v30, 0.0  ;;  %s1104_s7 = scalar_lea.vmem %s7442_s26, %s5166_s17  ;;  %s4667_s17 = sshll.u32 %s7653_s9, 6 }
 0x667   : > { %v2464_v50 = vmul.f32 %v4878_v57, %v2463_v15  ;;  %v2484_v57 = vmul.f32 %v4888_v16, %v6247_v54 }
 0x668   : > { %v3314_v35 = vpop.f32.mrf.mxu1  ;;  %v2501_v6 = vmul.f32 %v2500_v12, %v6244_v45  ;;  %v2550_v2 = vsel %vm2534_vm13, %v2542_v25, %v2482_v30 }
 0x669   : > { %v3359_v17 = vadd.f32 %v3358_v51, %v3314_v35  ;;  %v2465_v37 = vmul.f32 %v2464_v50, %v6202_v13  ;;  %v2485_v59 = vmul.f32 %v4888_v16, %v2484_v57  ;;  %v2453_v51 = vmul.f32 %v2452_v1, %v6200_v24 }
 0x66a   : > { %v6331_v42 = vmax.f32 %v2550_v2, 1e-08 }
 0x66b   : > { %v6253_v47 = vadd.f32 %v6218_v26, %v3359_v17  ;;  %v2467_v31 = vsel %vm2466_vm5, %v6202_v13, %v2465_v37  ;;  %v2486_v29 = vmul.f32 0.5, %v2485_v59 }
 0x66c   : > { %v2470_v11 = vsel %vm2468_vm12, %v2469_v58, %v2467_v31  ;;  %vm2502_vm12 = vcmp.eq.f32.partialorder %v6244_v45, inf }
 0x66d   : > { %7527 = vst [vmem:[#allocation8_spill] sm:$0xff] %v6253_v47  ;;  %2742 = vperm.xlu2 %4822, %v6206_v27   ;;  %v3383_v23 = vpack.c.bf16 %v6253_v47, %v6250_v4  ;;  %v6266_v27 = vpop.xlane.xlu2 %2433  ;;  %v2487_v49 = vsub.f32 1.5, %v2486_v29  ;;  %vm2533_vm5 = vcmp.eq.f32.partialorder %v2470_v11, 0.0  ;;  %v2541_v8 = vadd.f32 1e+08, %v2470_v11 }
 0x66e   : > { %2843 = vperm.xlu1 %4821, %v2368_v9   ;;  %4889 = vrsqrt.f32 %v6266_v27  ;;  %v2503_v59 = vsel %vm2502_vm12, %v6244_v45, %v2501_v6  ;;  %vm2516_vm12 = vcmp.eq.f32.partialorder %v6272_v36, 0.0  ;;  %v2529_v25 = vand.u32 2147483648, %v6266_v27 }
 0x66f   : > { %4637 = vmatmul.msk.bf16.gmra.mxu3 %vm1275_vm0, %v3383_v23  ;;  %4891 = vrsqrt.f32 %v6272_v36  ;;  %v2506_v29 = vsel %vm2504_vm4, %v2505_v63, %v2503_v59  ;;  %vm2528_vm4 = vcmp.eq.f32.partialorder %v6266_v27, 0.0 }
 0x670   : > { %v3317_v41 = vpop.f32.mrf.mxu1  ;;  %vm2536_vm13 = vcmp.eq.f32.partialorder %v2506_v29, 0.0 }
 0x671   : > { %v3362_v10 = vadd.f32 %v3361_v18, %v3317_v41  ;;  %v2488_v18 = vmul.f32 %v4888_v16, %v2487_v49  ;;  %v2547_v41 = vsel %vm2531_vm15, %v2539_v33, %v2446_v48  ;;  %v2544_v49 = vadd.f32 1e+08, %v2506_v29 }
 0x672   : > { %v6320_v37 = vmax.f32 %v2547_v41, 1e-08 }
 0x673   : > { %v6301_v0 = vadd.f32 %v6218_v26, %v3362_v10  ;;  %v2489_v22 = vmul.f32 %v2488_v18, %v6247_v54  ;;  %v2517_v18 = vand.u32 2147483648, %v6272_v36 }
 0x674   : > { %v6290_v55 = vpop.eup %4889  ;;  %4893 = vrcp.f32 %v6320_v37 }
 0x675   : > { %2747 = vperm.xlu2 %4822, %v2368_v9   ;;  %v4892_v35 = vpop.eup %4891  ;;  %7528 = vst [vmem:[#allocation9_spill] sm:$0xff] %v6301_v0  ;;  %v2520_v13 = vmul.f32 %v6290_v55, %v6266_v27 }
 0x676   : > { %2926 = vrot.lane.b32.xlu1 %v5871_v19, %s4996_s4  ;;  %v2455_v19 = vsel %vm2454_vm10, %v6200_v24, %v2453_v51  ;;  %v2508_v15 = vmul.f32 %v4892_v35, %v6272_v36  ;;  %vm2490_vm10 = vcmp.eq.f32.partialorder %v6247_v54, inf  ;;  %v2549_v24 = vsel %vm2533_vm5, %v2541_v8, %v2470_v11 }
 0x677   : > { %v2458_v39 = vsel %vm2456_vm1, %v2457_v14, %v2455_v19  ;;  %vm2492_vm1 = vcmp.eq.f32.partialorder %v6247_v54, 0.0  ;;  %v6328_v51 = vmax.f32 %v2549_v24, 1e-08 }
 0x678   : > { %v3319_v20 = vpop.f32.mrf.mxu1  ;;  %v2509_v50 = vmul.f32 %v4892_v35, %v2508_v15  ;;  %v2540_v60 = vadd.f32 1e+08, %v2458_v39  ;;  %vm2532_vm15 = vcmp.eq.f32.partialorder %v2458_v39, 0.0 }
 0x679   : > { %v3364_v17 = vadd.f32 %v3363_v53, %v3319_v20  ;;  %v2491_v53 = vsel %vm2490_vm10, %v6247_v54, %v2489_v22  ;;  %v3368_v54 = vpop.f32.mrf.mxu2  ;;  %4895 = vrcp.f32 %v6328_v51  ;;  %vm2514_vm10 = vcmp.eq.f32.partialorder %v6272_v36, inf }
 0x67a   : > { %v2510_v16 = vmul.f32 0.5, %v2509_v50  ;;  %v2494_v31 = vsel %vm2492_vm1, %v2493_v3, %v2491_v53  ;;  %v2548_v10 = vsel %vm2532_vm15, %v2540_v60, %v2458_v39  ;;  %4897 = vrcp.f32 %v6331_v42  ;;  %v6339_v19 = vpop.eup %4893 }
 0x67b   : > { %v6304_v9 = vadd.f32 %v6218_v26, %v3364_v17  ;;  %v2543_v20 = vadd.f32 1e+08, %v2494_v31  ;;  %vm2535_vm5 = vcmp.eq.f32.partialorder %v2494_v31, 0.0  ;;  %vm2526_vm1 = vcmp.eq.f32.partialorder %v6266_v27, inf }
 0x67c   : > { %v2511_v57 = vsub.f32 1.5, %v2510_v16  ;;  %v6373_v16 = vpop.permute.xlu2 %2699 }
 0x67d   : > { %7529 = vst [vmem:[#allocation10_spill] sm:$0xff] %v6304_v9  ;;  %2929 = vrot.lane.b32.xlu2 %v6174_v5, %s4996_s4  ;;  %v3384_v23 = vpack.c.bf16 %v6304_v9, %v6301_v0  ;;  %v2521_v5 = vmul.f32 %v6290_v55, %v2520_v13  ;;  %v2551_v15 = vsel %vm2535_vm5, %v2543_v20, %v2494_v31  ;;  %vm2568_vm5 = vweird.f32 %v6320_v37  ;;  %s7346_s4 = scalar_lea.vmem %s7443_s27, %s4667_s17 }
 0x67e   : > { %v2512_v28 = vmul.f32 %v4892_v35, %v2511_v57  ;;  %v6336_v35 = vmax.f32 %v2548_v10, 1e-08  ;;  %v2552_v13 = vsel %vm2536_vm13, %v2544_v49, %v2506_v29  ;;  %v6358_v50 = vmax.f32 %v2551_v15, 1e-08 }
 0x67f   : > { %4638 = vmatmul.msk.bf16.gmra.mxu3 %vm1275_vm0, %v3384_v23  ;;  %v2522_v58 = vmul.f32 0.5, %v2521_v5  ;;  %v6353_v23 = vpop.eup %4895  ;;  %v2572_v10 = vand.u32 2147483647, %v6320_v37 }
 0x680   : > { %v3322_v1 = vpop.f32.mrf.mxu1  ;;  %v2513_v45 = vmul.f32 %v2512_v28, %v6272_v36  ;;  %4899 = vrcp.f32 %v6336_v35  ;;  %v6362_v39 = vpop.eup %4897  ;;  %v2594_v41 = vmul.f32 %v6353_v23, %v6328_v51 }
 0x681   : > { %v3367_v48 = vadd.f32 %v3366_v7, %v3322_v1  ;;  %v2523_v62 = vsub.f32 1.5, %v2522_v58  ;;  %4901 = vrcp.f32 %v6358_v50  ;;  %v2609_v24 = vmul.f32 %v6362_v39, %v6331_v42 }
 0x682   : > { %v2515_v12 = vsel %vm2514_vm10, %v6272_v36, %v2513_v45  ;;  %v6364_v36 = vmax.f32 %v2552_v13, 1e-08  ;;  %v2595_v3 = vsub.f32 1.0, %v2594_v41  ;;  %vm2569_vm10 = vweird.f32 %v6339_v19 }
 0x683   : > { %v6342_v30 = vadd.f32 %v6218_v26, %v3367_v48  ;;  %v2524_v33 = vmul.f32 %v6290_v55, %v2523_v62  ;;  %v2518_v7 = vsel %vm2516_vm12, %v2517_v18, %v2515_v12  ;;  %v2574_v48 = vand.u32 2147483648, %v6320_v37 }
 0x684   : > { %v2545_v22 = vadd.f32 1e+08, %v2518_v7  ;;  %vm2537_vm15 = vcmp.eq.f32.partialorder %v2518_v7, 0.0  ;;  %4903 = vrcp.f32 %v6364_v36  ;;  %v2596_v28 = vmul.f32 %v6353_v23, %v2595_v3 }
 0x685   : > { %7530 = vst [vmem:[#allocation11_spill] sm:$0xff] %v6342_v30  ;;  %v2525_v55 = vmul.f32 %v2524_v33, %v6266_v27  ;;  %vm2598_vm12 = vweird.f32 %v6328_v51  ;;  %v2575_v13 = vor.u32 1.1754944e-38, %v2574_v48  ;;  %v2619_v41 = vand.u32 2147483648, %v6331_v42 }
 0x686   : > { %v6375_v1 = vpop.eup %4899  ;;  %v2553_v60 = vsel %vm2537_vm15, %v2545_v22, %v2518_v7  ;;  %v2597_v18 = vadd.f32 %v6353_v23, %v2596_v28  ;;  %vm6415_vm15 = vcmp.eq.f32.partialorder %v2572_v10, 8.507059e+37  ;;  %v2587_v22 = vand.u32 2147483647, %v6336_v35 }
 0x687   : > { %v2527_v5 = vsel %vm2526_vm1, %v6266_v27, %v2525_v55  ;;  %v2579_v53 = vmul.f32 %v6375_v1, %v6336_v35  ;;  %v2610_v27 = vsub.f32 1.0, %v2609_v24  ;;  %v6385_v2 = vpop.eup %4901  ;;  %v6387_v58 = vmax.f32 %v2553_v60, 1e-08  ;;  %vm6396_vm1 = vmor %vm2568_vm5, %vm2569_vm10 }
 0x688   : > { %v3324_v14 = vpop.f32.mrf.mxu1  ;;  %v2530_v57 = vsel %vm2528_vm4, %v2529_v25, %v2527_v5  ;;  %vm2599_vm4 = vweird.f32 %v6353_v23  ;;  %v2624_v45 = vmul.f32 %v6385_v2, %v6358_v50  ;;  %vm2613_vm5 = vweird.f32 %v6331_v42 }
 0x689   : > { %v3369_v11 = vadd.f32 %v3368_v54, %v3324_v14  ;;  %v2546_v59 = vadd.f32 1e+08, %v2530_v57  ;;  %vm2538_vm13 = vcmp.eq.f32.partialorder %v2530_v57, 0.0  ;;  %v2580_v54 = vsub.f32 1.0, %v2579_v53 }
 0x68a   : > { %v6390_v31 = vpop.eup %4903  ;;  %v2602_v14 = vand.u32 2147483647, %v6328_v51  ;;  %v2611_v20 = vmul.f32 %v6362_v39, %v2610_v27  ;;  %4905 = vrcp.f32 %v6387_v58  ;;  %vm2614_vm10 = vweird.f32 %v6362_v39 }
 0x68b   : > { %v6345_v17 = vadd.f32 %v6218_v26, %v3369_v11  ;;  %v2564_v26 = vmul.f32 %v6339_v19, %v6320_v37  ;;  %v2554_v49 = vsel %vm2538_vm13, %v2546_v59, %v2530_v57  ;;  %v2604_v37 = vand.u32 2147483648, %v6328_v51  ;;  %vm6429_vm13 = vmor %vm2598_vm12, %vm2599_vm4  ;;  %v6465_v59 = vpop.permute.xlu1 %2686 }
 0x68c   : > { %v2639_v33 = vmul.f32 %v6390_v31, %v6364_v36  ;;  %v6423_v55 = vmax.f32 %v2554_v49, 1e-08  ;;  %v2612_v7 = vadd.f32 %v6362_v39, %v2611_v20  ;;  %v2625_v25 = vsub.f32 1.0, %v2624_v45  ;;  %vm6438_vm9 = vmor %vm2613_vm5, %vm2614_vm10 }
 0x68d   : > { %7531 = vst [vmem:[#allocation12_spill] sm:$0xff] %v6345_v17  ;;  %v3385_v8 = vpack.c.bf16 %v6345_v17, %v6342_v30  ;;  %v2565_v6 = vsub.f32 1.0, %v2564_v26  ;;  %v2581_v26 = vmul.f32 %v6375_v1, %v2580_v54  ;;  %vm2584_vm11 = vweird.f32 %v6375_v1 }
 0x68e   : > { %v2589_v51 = vand.u32 2147483648, %v6336_v35  ;;  %vm6448_vm12 = vcmp.eq.f32.partialorder %v2602_v14, 8.507059e+37  ;;  %v2605_v57 = vor.u32 1.1754944e-38, %v2604_v37  ;;  %4907 = vrcp.f32 %v6423_v55 }
 0x68f   : > { %4639 = vmatmul.msk.bf16.gmra.mxu3 %vm1275_vm0, %v3385_v8  ;;  %v2566_v63 = vmul.f32 %v6339_v19, %v2565_v6  ;;  %v2617_v8 = vand.u32 2147483647, %v6331_v42  ;;  %v2640_v6 = vsub.f32 1.0, %v2639_v33  ;;  %v2601_v42 = vsel %vm6429_vm13, %v6353_v23, %v2597_v18 }
 0x690   : > { %v6443_v24 = vpop.eup %4905  ;;  %v2582_v60 = vadd.f32 %v6375_v1, %v2581_v26  ;;  %v2626_v23 = vmul.f32 %v6385_v2, %v2625_v25  ;;  %v2590_v54 = vor.u32 1.1754944e-38, %v2589_v51  ;;  %vm2629_vm10 = vweird.f32 %v6385_v2 }
 0x691   : > { %v2567_v29 = vadd.f32 %v6339_v19, %v2566_v63  ;;  %vm6455_vm4 = vcmp.eq.f32.partialorder %v2617_v8, 8.507059e+37  ;;  %v2641_v48 = vmul.f32 %v6390_v31, %v2640_v6  ;;  %v2654_v14 = vmul.f32 %v6443_v24, %v6387_v58 }
 0x692   : > { %v2634_v20 = vand.u32 2147483648, %v6358_v50  ;;  %vm2644_vm13 = vweird.f32 %v6390_v31  ;;  %v2627_v49 = vadd.f32 %v6385_v2, %v2626_v23  ;;  %v2632_v37 = vand.u32 2147483647, %v6358_v50 }
 0x693   : > { %v2571_v15 = vsel %vm6396_vm1, %v6339_v19, %v2567_v29  ;;  %vm2583_vm1 = vweird.f32 %v6336_v35  ;;  %v2620_v35 = vor.u32 1.1754944e-38, %v2619_v41  ;;  %v2616_v29 = vsel %vm6438_vm9, %v6362_v39, %v2612_v7 }
 0x694   : > { %v2576_v63 = vsel %vm6415_vm15, %v2575_v13, %v2571_v15  ;;  %vm6459_vm5 = vmor %vm2583_vm1, %vm2584_vm11  ;;  %vm6472_vm15 = vcmp.eq.f32.partialorder %v2587_v22, 8.507059e+37  ;;  %vm2628_vm11 = vweird.f32 %v6358_v50  ;;  %vm2643_vm9 = vweird.f32 %v6364_v36  ;;  %v6509_v19 = vpop.eup %4907 }
 0x695   : > { %v2586_v39 = vsel %vm6459_vm5, %v6375_v1, %v2582_v60  ;;  %v2621_v45 = vsel %vm6455_vm4, %v2620_v35, %v2616_v29  ;;  %v2649_v33 = vand.u32 2147483648, %v6364_v36  ;;  %v2606_v18 = vsel %vm6448_vm12, %v2605_v57, %v2601_v42  ;;  %vm6496_vm1 = vmor %vm2628_vm11, %vm2629_vm10 }
 0x696   : > { %v2642_v15 = vadd.f32 %v6390_v31, %v2641_v48  ;;  %v2647_v12 = vand.u32 2147483647, %v6364_v36  ;;  %v2577_v13 = vmul.f32 %v2576_v63, %v6124_v61  ;;  %v2591_v8 = vsel %vm6472_vm15, %v2590_v54, %v2586_v39  ;;  %vm6505_vm4 = vmor %vm2643_vm9, %vm2644_vm13 }
 0x697   : > { %v2655_v26 = vsub.f32 1.0, %v2654_v14  ;;  %v2622_v7 = vmul.f32 %v2621_v45, %v6126_v34  ;;  %v2635_v41 = vor.u32 1.1754944e-38, %v2634_v20  ;;  %v2607_v25 = vmul.f32 %v2606_v18, %v6114_v38  ;;  %v1133_v34 = vld [vmem:[%s7441_s25] sm:$0xf] }
 0x698   : > { %v2631_v36 = vsel %vm6496_vm1, %v6385_v2, %v2627_v49  ;;  %vm2633_vm12 = vcmp.eq.f32.partialorder %v2632_v37, 8.507059e+37  ;;  %v2650_v61 = vor.u32 1.1754944e-38, %v2649_v33  ;;  %v2592_v22 = vmul.f32 %v2591_v8, %v6116_v44 }
 0x699   : > { %v2646_v5 = vsel %vm6505_vm4, %v6390_v31, %v2642_v15  ;;  %vm2648_vm5 = vcmp.eq.f32.partialorder %v2647_v12, 8.507059e+37  ;;  %vm3678_vm15 = vcmask 1041408   ;;  %v2689_v38 = vmul.f32 %v6465_v59, %v2577_v13 }
 0x69a   : > { %v3665_v2 = vpack.c.bf16 %v1133_v34, %v1133_v34  ;;  %v2656_v42 = vmul.f32 %v6443_v24, %v2655_v26  ;;  %v2669_v44 = vmul.f32 %v6509_v19, %v6423_v55  ;;  %v2692_v3 = vmul.f32 %v6465_v59, %v2622_v7 }
 0x69b   : > { %v2636_v31 = vsel %vm2633_vm12, %v2635_v41, %v2631_v36  ;;  %v2651_v60 = vsel %vm2648_vm5, %v2650_v61, %v2646_v5  ;;  %vm2658_vm11 = vweird.f32 %v6387_v58  ;;  %vm2659_vm10 = vweird.f32 %v6443_v24 }
 0x69c   : > { %v3680_v63 = vsel %vm3678_vm15, %v3665_v2, 0  ;;  %v2691_v53 = vmul.f32 %v6465_v59, %v2607_v25  ;;  %v2690_v35 = vmul.f32 %v6465_v59, %v2592_v22  ;;  %v2664_v27 = vand.u32 2147483648, %v6387_v58  ;;  %vm6547_vm9 = vmor %vm2658_vm11, %vm2659_vm10 }
 0x69d   : > { %v6407_v11 = vpop.permute.xlu2 %2823  ;;  %3689 = vmatpush.bf16.msra.mxu3 %v3680_v63  ;;  %3734 = vmatpush.bf16.msra.mxu0 %v3680_v63  ;;  %v2702_v23 = vmul.f32 %v6373_v16, %v2689_v38  ;;  %v2657_v29 = vadd.f32 %v6443_v24, %v2656_v42  ;;  %v2662_v10 = vand.u32 2147483647, %v6387_v58  ;;  %v2670_v48 = vsub.f32 1.0, %v2669_v44 }
 0x69e   : > { %3779 = vmatpush.bf16.msra.mxu1 %v3680_v63  ;;  %v6541_v54 = vmul.f32 %v6373_v16, %v2692_v3  ;;  %v2637_v14 = vmul.f32 %v2636_v31, %v6136_v56  ;;  %v2652_v39 = vmul.f32 %v2651_v60, %v6147_v32  ;;  %v2703_v49 = vmul.f32 %v6373_v16, %v2690_v35 }
 0x69f   : > { %v2665_v37 = vor.u32 1.1754944e-38, %v2664_v27  ;;  %v2704_v33 = vmul.f32 %v6373_v16, %v2691_v53  ;;  %v2661_v1 = vsel %vm6547_vm9, %v6443_v24, %v2657_v29  ;;  %vm2663_vm13 = vcmp.eq.f32.partialorder %v2662_v10, 8.507059e+37 }
 0x6a0   : > { %v2671_v56 = vmul.f32 %v6509_v19, %v2670_v48  ;;  %v2693_v13 = vmul.f32 %v6465_v59, %v2637_v14  ;;  %v2694_v8 = vmul.f32 %v6465_v59, %v2652_v39  ;;  %vm2673_vm1 = vweird.f32 %v6423_v55 }
 0x6a1   : > { %vm2674_vm4 = vweird.f32 %v6509_v19  ;;  %v2666_v7 = vsel %vm2663_vm13, %v2665_v37, %v2661_v1  ;;  %v2677_v61 = vand.u32 2147483647, %v6423_v55  ;;  %vm7556_vm15 = vcmask 1044484  }
 0x6a2   : > { %v2672_v36 = vadd.f32 %v6509_v19, %v2671_v56  ;;  %v6572_v5 = vmul.f32 %v6373_v16, %v2694_v8  ;;  %vm6574_vm12 = vmor %vm2673_vm1, %vm2674_vm4  ;;  %v2667_v2 = vmul.f32 %v2666_v7, %v6142_v46  ;;  %vm7557_vm11 = vcmask 1045509  }
 0x6a3   : > { %vm2678_vm5 = vcmp.eq.f32.partialorder %v2677_v61, 8.507059e+37  ;;  %vm7558_vm10 = vcmask 1046534   ;;  %vm7559_vm9 = vcmask 1047559  }
 0x6a4   : > { %v2695_v10 = vmul.f32 %v6465_v59, %v2667_v2 }
 0x6a5   : > { %v6467_v28 = vpop.permute.xlu0 %2815 }
 0x6a6   : > { %v6477_v62 = vpop.permute.xlu2 %2727  ;;  %v2846_v1 = vmul.f32 %v6467_v28, %v2702_v23  ;;  %v2708_v56 = vmul.f32 %v6373_v16, %v2695_v10 }
 0x6a7   : > { %v2753_v32 = vmul.f32 %v6477_v62, %v6541_v54  ;;  %v2679_v62 = vand.u32 2147483648, %v6423_v55  ;;  %v2676_v55 = vsel %vm6574_vm12, %v6509_v19, %v2672_v36  ;;  %v2848_v19 = vmul.f32 %v6407_v11, %v2704_v33 }
 0x6a9   : > { %v2779_v38 = vsel %vm2410_vm3, %v2753_v32, 0.0  ;;  %v2680_v3 = vor.u32 1.1754944e-38, %v2679_v62 }
 0x6aa   : > { %v2780_v60 = vrot.slane %v2779_v38, 4 }
 0x6ab   : > { %v2681_v14 = vsel %vm2678_vm5, %v2680_v3, %v2676_v55 }
 0x6ac   : > { %v2682_v32 = vmul.f32 %v2681_v14, %v6155_v52 }
 0x6ad   : > { %v6517_v6 = vpop.permute.xlu1 %2819 }
 0x6ae   : > { %v2713_v51 = vpop.permute.xlu0 %2712  ;;  %v2696_v52 = vmul.f32 %v6465_v59, %v2682_v32 }
 0x6af   : > { %v6530_v57 = vpop.permute.xlu2 %2827  ;;  %v2750_v45 = vmul.f32 %v2713_v51, %v2702_v23  ;;  %v2706_v51 = vmul.f32 %v6373_v16, %v2693_v13 }
 0x6b0   : > { %v2849_v28 = vmul.f32 %v6530_v57, %v6541_v54  ;;  %v6604_v3 = vmul.f32 %v6373_v16, %v2696_v52 }
 0x6b1   : > { %v2758_v50 = vsel %vm2410_vm3, %v2750_v45, 0.0  ;;  %v2781_v45 = vadd.f32 %v2780_v60, %v2779_v38 }
 0x6b2   : > { %v2759_v22 = vrot.slane %v2758_v50, 4  ;;  %v2875_v57 = vsel %vm2410_vm3, %v2849_v28, 0.0 }
 0x6b4   : > { %v2760_v63 = vadd.f32 %v2759_v22, %v2758_v50 }
 0x6b6   : > { %v2718_v18 = vpop.permute.xlu0 %2717  ;;  %v2761_v37 = vrot.slane %v2760_v63, 2 }
 0x6b7   : > { %v2723_v58 = vpop.permute.xlu1 %2722  ;;  %v2751_v15 = vmul.f32 %v2718_v18, %v2703_v49  ;;  %v6559_v12 = vpop.permute.xlu2 %2911 }
 0x6b8   : > { %v2752_v26 = vmul.f32 %v2723_v58, %v2704_v33  ;;  %v2847_v58 = vmul.f32 %v6517_v6, %v2703_v49  ;;  %v2762_v7 = vadd.f32 %v2761_v37, %v2760_v63  ;;  %v2854_v33 = vsel %vm2410_vm3, %v2846_v1, 0.0 }
 0x6b9   : > { %v2765_v24 = vsel %vm2410_vm3, %v2751_v15, 0.0  ;;  %v2855_v34 = vrot.slane %v2854_v33, 4 }
 0x6ba   : > { %v2772_v41 = vsel %vm2410_vm3, %v2752_v26, 0.0  ;;  %v2766_v25 = vrot.slane %v2765_v24, 4  ;;  %v2868_v26 = vsel %vm2410_vm3, %v2848_v19, 0.0  ;;  %v2861_v6 = vsel %vm2410_vm3, %v2847_v58, 0.0 }
 0x6bb   : > { %v2773_v42 = vrot.slane %v2772_v41, 4  ;;  %v2869_v36 = vrot.slane %v2868_v26, 4  ;;  %v2763_v2 = vrot.slane %v2762_v7, 1 }
 0x6bc   : > { %v2767_v44 = vadd.f32 %v2766_v25, %v2765_v24  ;;  %v2782_v24 = vrot.slane %v2781_v45, 2 }
 0x6bd   : > { %v2774_v46 = vadd.f32 %v2773_v42, %v2772_v41  ;;  %v2870_v63 = vadd.f32 %v2869_v36, %v2868_v26  ;;  %v2764_v10 = vadd.f32 %v2763_v2, %v2762_v7 }
 0x6be   : > { %v2738_v31 = vpop.permute.xlu0 %2737  ;;  %v2768_v48 = vrot.slane %v2767_v44, 2  ;;  %v2783_v38 = vadd.f32 %v2782_v24, %v2781_v45 }
 0x6bf   : > { %v2733_v53 = vpop.permute.xlu1 %2732  ;;  %v2755_v35 = vmul.f32 %v2738_v31, %v6572_v5  ;;  %v6585_v27 = vpop.permute.xlu2 %2918  ;;  %v2775_v15 = vrot.slane %v2774_v46, 2 }
 0x6c0   : > { %v2754_v29 = vmul.f32 %v2733_v53, %v2706_v51  ;;  %v2769_v13 = vadd.f32 %v2768_v48, %v2767_v44  ;;  %v2862_v44 = vrot.slane %v2861_v6, 4 }
 0x6c1   : > { %v2793_v20 = vsel %vm2410_vm3, %v2755_v35, 0.0  ;;  %v2776_v49 = vadd.f32 %v2775_v15, %v2774_v46  ;;  %v2856_v35 = vadd.f32 %v2855_v34, %v2854_v33 }
 0x6c2   : > { %v2786_v39 = vsel %vm2410_vm3, %v2754_v29, 0.0  ;;  %v2794_v8 = vrot.slane %v2793_v20, 4  ;;  %v2770_v41 = vrot.slane %v2769_v13, 1  ;;  %v2784_v29 = vrot.slane %v2783_v38, 1 }
 0x6c3   : > { %v2787_v18 = vrot.slane %v2786_v39, 4  ;;  %v2777_v59 = vrot.slane %v2776_v49, 1 }
 0x6c4   : > { %v2795_v25 = vadd.f32 %v2794_v8, %v2793_v20  ;;  %v2771_v31 = vadd.f32 %v2770_v41, %v2769_v13  ;;  %v2876_v20 = vrot.slane %v2875_v57, 4  ;;  %v2857_v8 = vrot.slane %v2856_v35, 2 }
 0x6c5   : > { %v2788_v50 = vadd.f32 %v2787_v18, %v2786_v39  ;;  %v2863_v39 = vadd.f32 %v2862_v44, %v2861_v6  ;;  %v2778_v45 = vadd.f32 %v2777_v59, %v2776_v49  ;;  %v2785_v33 = vadd.f32 %v2784_v29, %v2783_v38 }
 0x6c6   : > { %v2796_v55 = vrot.slane %v2795_v25, 2  ;;  %v2943_v37 = vsel %vm1482_vm6, %v2771_v31, %v2764_v10  ;;  %v2877_v52 = vadd.f32 %v2876_v20, %v2875_v57  ;;  %v2858_v41 = vadd.f32 %v2857_v8, %v2856_v35 }
 0x6c7   : > { %v2743_v11 = vpop.permute.xlu2 %2742  ;;  %v2789_v61 = vrot.slane %v2788_v50, 2  ;;  %v2864_v7 = vrot.slane %v2863_v39, 2  ;;  %v2944_v28 = vsel %vm1484_vm7, %v2778_v45, %v2943_v37 }
 0x6c8   : > { %v2756_v23 = vmul.f32 %v2743_v11, %v2708_v56  ;;  %v2832_v62 = vpop.permute.xlu1 %2831  ;;  %v2840_v48 = vpop.permute.xlu0 %2839  ;;  %v2797_v18 = vadd.f32 %v2796_v55, %v2795_v25  ;;  %v2945_v2 = vsel %vm1486_vm8, %v2785_v33, %v2944_v28  ;;  %v2878_v59 = vrot.slane %v2877_v52, 2 }
 0x6c9   : > { %v2850_v54 = vmul.f32 %v2832_v62, %v2706_v51  ;;  %v2790_v53 = vadd.f32 %v2789_v61, %v2788_v50  ;;  %v2852_v15 = vmul.f32 %v2840_v48, %v2708_v56  ;;  %v2871_v56 = vrot.slane %v2870_v63, 2 }
 0x6ca   : > { %v2800_v22 = vsel %vm2410_vm3, %v2756_v23, 0.0  ;;  %v2798_v23 = vrot.slane %v2797_v18, 1  ;;  %v2865_v61 = vadd.f32 %v2864_v7, %v2863_v39  ;;  %v2879_v39 = vadd.f32 %v2878_v59, %v2877_v52 }
 0x6cb   : > { %v2801_v42 = vrot.slane %v2800_v22, 4  ;;  %v2882_v19 = vsel %vm2410_vm3, %v2850_v54, 0.0  ;;  %v2791_v32 = vrot.slane %v2790_v53, 1  ;;  %v2896_v49 = vsel %vm2410_vm3, %v2852_v15, 0.0 }
 0x6cc   : > { %v2883_v50 = vrot.slane %v2882_v19, 4  ;;  %v2897_v44 = vrot.slane %v2896_v49, 4  ;;  %v2872_v29 = vadd.f32 %v2871_v56, %v2870_v63  ;;  %v3503_v56 = vpop.f32.mrf.mxu0 }
 0x6cd   : > { %v2802_v60 = vadd.f32 %v2801_v42, %v2800_v22  ;;  %v2792_v6 = vadd.f32 %v2791_v32, %v2790_v53  ;;  %v2971_v22 = vsel %vm1275_vm0, %v5880_v21, %v6559_v12  ;;  %v2799_v42 = vadd.f32 %v2798_v23, %v2797_v18 }
 0x6ce   : > { %v2884_v25 = vadd.f32 %v2883_v50, %v2882_v19  ;;  %v2866_v21 = vrot.slane %v2865_v61, 1  ;;  %v2898_v10 = vadd.f32 %v2897_v44, %v2896_v49  ;;  %v2873_v63 = vrot.slane %v2872_v29, 1 }
 0x6cf   : > { %v2803_v46 = vrot.slane %v2802_v60, 2  ;;  %v2748_v14 = vpop.permute.xlu2 %2747 }
 0x6d0   : > { %v2757_v51 = vmul.f32 %v2748_v14, %v6604_v3  ;;  %v2836_v16 = vpop.permute.xlu1 %2835  ;;  %v2885_v53 = vrot.slane %v2884_v25, 2  ;;  %v2859_v14 = vrot.slane %v2858_v41, 1  ;;  %v2899_v18 = vrot.slane %v2898_v10, 2 }
 0x6d1   : > { %v2851_v1 = vmul.f32 %v2836_v16, %v6572_v5  ;;  %v2804_v58 = vadd.f32 %v2803_v46, %v2802_v60  ;;  %v2946_v60 = vsel %vm7556_vm15, %v2792_v6, %v2945_v2  ;;  %v2867_v16 = vadd.f32 %v2866_v21, %v2865_v61 }
 0x6d2   : > { %v2807_v13 = vsel %vm2410_vm3, %v2757_v51, 0.0  ;;  %v2947_v48 = vsel %vm7557_vm11, %v2799_v42, %v2946_v60  ;;  %v2886_v19 = vadd.f32 %v2885_v53, %v2884_v25  ;;  %v2860_v32 = vadd.f32 %v2859_v14, %v2858_v41  ;;  %v3609_v41 = vpop.f32.mrf.mxu2 }
 0x6d3   : > { %v2808_v26 = vrot.slane %v2807_v13, 4  ;;  %v2889_v24 = vsel %vm2410_vm3, %v2851_v1, 0.0  ;;  %v2805_v5 = vrot.slane %v2804_v58, 1  ;;  %v2900_v33 = vadd.f32 %v2899_v18, %v2898_v10 }
 0x6d4   : > { %v2890_v11 = vrot.slane %v2889_v24, 4 }
 0x6d5   : > { %v2809_v62 = vadd.f32 %v2808_v26, %v2807_v13  ;;  %v2806_v31 = vadd.f32 %v2805_v5, %v2804_v58  ;;  %v2880_v58 = vrot.slane %v2879_v39, 1  ;;  %v2887_v13 = vrot.slane %v2886_v19, 1 }
 0x6d6   : > { %v2891_v34 = vadd.f32 %v2890_v11, %v2889_v24  ;;  %v2961_v26 = vsel %vm1482_vm6, %v2867_v16, %v2860_v32  ;;  %v2874_v11 = vadd.f32 %v2873_v63, %v2872_v29  ;;  %v2901_v25 = vrot.slane %v2900_v33, 1  ;;  %vm7560_vm6 = vmmov %vm7556_vm15 }
 0x6d7   : > { %v2810_v36 = vrot.slane %v2809_v62, 2  ;;  %v2948_v20 = vsel %vm7558_vm10, %v2806_v31, %v2947_v48  ;;  %v2881_v23 = vadd.f32 %v2880_v58, %v2879_v39 }
 0x6d8   : > { %v2916_v38 = vpop.permute.xlu1 %2915  ;;  %v2892_v12 = vrot.slane %v2891_v34, 2  ;;  %v2962_v52 = vsel %vm1484_vm7, %v2874_v11, %v2961_v26  ;;  %vm7562_vm7 = vmmov %vm7558_vm10 }
 0x6d9   : > { %v2811_v57 = vadd.f32 %v2810_v36, %v2809_v62  ;;  %v2973_v54 = vsel %vm2972_vm14, %v2971_v22, %v2916_v38  ;;  %v3556_v36 = vpop.f32.mrf.mxu1  ;;  %v2963_v61 = vsel %vm1486_vm8, %v2881_v23, %v2962_v52  ;;  %vm7564_vm8 = vcmask 31744  }
 0x6da   : > { %v6621_v55 = vsel %vm2245_vm2, %v2973_v54, %v6585_v27  ;;  %v6630_v27 = vld [vmem:[%s7439_s23] ss:$0 sm:$0xff]  ;;  %v2893_v45 = vadd.f32 %v2892_v12, %v2891_v34  ;;  %vm7561_vm2 = vmmov %vm7557_vm11  ;;  %v3505_v12 = vpop.f32.mrf.mxu0  ;;  %v3611_v29 = vpop.f32.mrf.mxu2 }
 0x6db   : > { %v2812_v35 = vrot.slane %v2811_v57, 1  ;;  %vm7565_vm13 = vmmov %vm7564_vm8 }
 0x6dc   : > { %v2894_v24 = vrot.slane %v2893_v45, 1  ;;  %vm7566_vm1 = vmmov %vm7564_vm8 }
 0x6dd   : > { %v2813_v46 = vadd.f32 %v2812_v35, %v2811_v57  ;;  %v2902_v57 = vadd.f32 %v2901_v25, %v2900_v33  ;;  %vm7569_vm4 = vmmov %vm7566_vm1 }
 0x6de   : > { %v2895_v5 = vadd.f32 %v2894_v24, %v2893_v45  ;;  %vm7570_vm12 = vmmov %vm7566_vm1 }
 0x6df   : > { %v2949_v51 = vsel %vm7559_vm9, %v2813_v46, %v2948_v20  ;;  %vm7571_vm5 = vmmov %vm7566_vm1 }
 0x6e0   : > { %v2844_v37 = vpop.permute.xlu1 %2843  ;;  %2950 = vrot.lane.b32.xlu0 %v2949_v51, %s4997_s0  ;;  %vm7574_vm15 = vmmov %vm7566_vm1 }
 0x6e1   : > { %v2853_v1 = vmul.f32 %v2844_v37, %v6604_v3  ;;  %v2888_v3 = vadd.f32 %v2887_v13, %v2886_v19  ;;  %v3558_v48 = vpop.f32.mrf.mxu1  ;;  %vm7575_vm11 = vmmov %vm7566_vm1 }
 0x6e2   : > { %v3414_v15 = vpop.f32.mrf.mxu3  ;;  %v3508_v37 = vpop.f32.mrf.mxu0  ;;  %vm7576_vm10 = vmmov %vm7566_vm1 }
 0x6e3   : > { %v2903_v8 = vsel %vm2410_vm3, %v2853_v1, 0.0  ;;  %v3415_v50 = vadd.f32 %v6630_v27, %v3414_v15  ;;  %v2964_v2 = vsel %vm7560_vm6, %v2888_v3, %v2963_v61  ;;  %vm7563_vm3 = vmmov %vm7559_vm9  ;;  %v3614_v63 = vpop.f32.mrf.mxu2 }
 0x6e4   : > { %v2904_v7 = vrot.slane %v2903_v8, 4  ;;  %v2965_v44 = vsel %vm7561_vm2, %v2895_v5, %v2964_v2  ;;  %vm7580_vm9 = vmmov %vm7566_vm1 }
 0x6e5   : > { %v3434_v28 = vsub.f32 0.0, %v3415_v50  ;;  %v2966_v60 = vsel %vm7562_vm7, %v2902_v57, %v2965_v44  ;;  %vm7581_vm6 = vmmov %vm7566_vm1  ;;  %vm2975_vm7 = vcmask 261120  }
 0x6e6   : > { %v2905_v62 = vadd.f32 %v2904_v7, %v2903_v8  ;;  %vm7582_vm2 = vmmov %vm7566_vm1 }
 0x6e7   : > { %v3442_v6 = vmul.f32 1.442695, %v3434_v28 }
 0x6e8   : > { %v2906_v49 = vrot.slane %v2905_v62, 2 }
 0x6e9   : > { %4909 = vpow2.f32 %v3442_v6  ;;  %v3561_v1 = vpop.f32.mrf.mxu1 }
 0x6ea   : > { %v2907_v22 = vadd.f32 %v2906_v49, %v2905_v62  ;;  %v3416_v34 = vpop.f32.mrf.mxu3  ;;  %v3510_v5 = vpop.f32.mrf.mxu0 }
 0x6eb   : > { %v3417_v38 = vadd.f32 %v6630_v27, %v3416_v34  ;;  %v3616_v49 = vpop.f32.mrf.mxu2 }
 0x6ec   : > { %v2908_v42 = vrot.slane %v2907_v22, 1 }
 0x6ed   : > { %v3435_v54 = vsub.f32 0.0, %v3417_v38 }
 0x6ee   : > { %v2909_v59 = vadd.f32 %v2908_v42, %v2907_v22 }
 0x6ef   : > { %v3444_v31 = vmul.f32 1.442695, %v3435_v54  ;;  %v4910_v53 = vpop.eup %4909 }
 0x6f0   : > { %v2967_v35 = vsel %vm7563_vm3, %v2909_v59, %v2966_v60  ;;  %v3458_v10 = vadd.f32 1.0, %v4910_v53  ;;  %vm2977_vm3 = vcmask 359424  }
 0x6f1   : > { %4911 = vpow2.f32 %v3444_v31  ;;  %2968 = vrot.lane.b32.xlu0 %v2967_v35, %s4998_s16 }
 0x6f2   : > { %v3419_v21 = vpop.f32.mrf.mxu3  ;;  %4913 = vrcp.f32 %v3458_v10  ;;  %v3513_v59 = vpop.f32.mrf.mxu0 }
 0x6f3   : > { %v3420_v46 = vadd.f32 %v6630_v27, %v3419_v21  ;;  %v3619_v31 = vpop.f32.mrf.mxu2 }
 0x6f5   : > { %v3436_v14 = vsub.f32 0.0, %v3420_v46 }
 0x6f7   : > { %v4912_v39 = vpop.eup %4911  ;;  %v3446_v20 = vmul.f32 1.442695, %v3436_v14 }
 0x6f8   : > { %v3459_v19 = vadd.f32 1.0, %v4912_v39  ;;  %v4914_v45 = vpop.eup %4913 }
 0x6f9   : > { %4915 = vpow2.f32 %v3446_v20  ;;  %v6645_v13 = vmul.f32 %v4914_v45, %v3503_v56  ;;  %v6647_v8 = vmul.f32 %v4914_v45, %v3556_v36  ;;  %v6649_v50 = vmul.f32 %v4914_v45, %v3609_v41  ;;  %v3563_v41 = vpop.f32.mrf.mxu1 }
 0x6fa   : > { %4917 = vrcp.f32 %v3459_v19  ;;  %v3421_v51 = vpop.f32.mrf.mxu3  ;;  %v3515_v45 = vpop.f32.mrf.mxu0 }
 0x6fb   : > { %v3422_v16 = vadd.f32 %v6630_v27, %v3421_v51 }
 0x6fd   : > { %v3437_v18 = vsub.f32 0.0, %v3422_v16 }
 0x6ff   : > { %v4916_v32 = vpop.eup %4915  ;;  %v3448_v58 = vmul.f32 1.442695, %v3437_v18 }
 0x700   : > { %v4918_v15 = vpop.eup %4917  ;;  %v3460_v11 = vadd.f32 1.0, %v4916_v32 }
 0x701   : > { %v6651_v26 = vmul.f32 %v4918_v15, %v3505_v12  ;;  %v6653_v24 = vmul.f32 %v4918_v15, %v3558_v48  ;;  %v6655_v7 = vmul.f32 %v4918_v15, %v3611_v29  ;;  %4919 = vpow2.f32 %v3448_v58  ;;  %v3566_v21 = vpop.f32.mrf.mxu1 }
 0x702   : > { %v3424_v33 = vpop.f32.mrf.mxu3  ;;  %4921 = vrcp.f32 %v3460_v11 }
 0x703   : > { %v3425_v28 = vadd.f32 %v6630_v27, %v3424_v33  ;;  %v3661_v23 = vpack.c.bf16 %v6651_v26, %v6645_v13  ;;  %v3711_v62 = vpack.c.bf16 %v6653_v24, %v6647_v8  ;;  %v3756_v52 = vpack.c.bf16 %v6655_v7, %v6649_v50 }
 0x704   : > { %v6805_v9 = vmul.f32 0.01, %v6655_v7 }
 0x705   : > { %v3438_v3 = vsub.f32 0.0, %v3425_v28  ;;  %4652 = vmatmul.msk.bf16.vlgmr.msra.gmra.mxu3 %vm7564_vm8, %v3661_v23  ;;  %4656 = vmatmul.msk.bf16.vlgmr.msra.gmra.mxu0 %vm7565_vm13, %v3711_v62  ;;  %vm2979_vm8 = vcmask 457728   ;;  %vm2981_vm13 = vcmask 556032  }
 0x706   : > { %4660 = vmatmul.msk.bf16.vlgmr.msra.gmra.mxu1 %vm7566_vm1, %v3756_v52  ;;  %vm2983_vm1 = vcmask 654336   ;;  %7583 = vst [vmem:[#allocation20_spill] sm:$0xff] %v6805_v9 }
 0x707   : > { %v4920_v6 = vpop.eup %4919  ;;  %v3450_v56 = vmul.f32 1.442695, %v3438_v3 }
 0x708   : > { %v3461_v25 = vadd.f32 1.0, %v4920_v6  ;;  %v4922_v22 = vpop.eup %4921 }
 0x709   : > { %4923 = vpow2.f32 %v3450_v56  ;;  %v6668_v44 = vmul.f32 %v4922_v22, %v3508_v37  ;;  %v6670_v57 = vmul.f32 %v4922_v22, %v3561_v1  ;;  %v6672_v54 = vmul.f32 %v4922_v22, %v3614_v63  ;;  %v3621_v63 = vpop.f32.mrf.mxu2  ;;  %v3568_v18 = vpop.f32.mrf.mxu1 }
 0x70a   : > { %4925 = vrcp.f32 %v3461_v25  ;;  %v3426_v36 = vpop.f32.mrf.mxu3  ;;  %v3518_v56 = vpop.f32.mrf.mxu0 }
 0x70b   : > { %v3427_v61 = vadd.f32 %v6630_v27, %v3426_v36  ;;  %v6802_v30 = vmul.f32 0.01, %v6668_v44 }
 0x70d   : > { %v3439_v34 = vsub.f32 0.0, %v3427_v61 }
 0x70f   : > { %v4924_v38 = vpop.eup %4923  ;;  %v3452_v2 = vmul.f32 1.442695, %v3439_v34 }
 0x710   : > { %v4926_v42 = vpop.eup %4925  ;;  %v3462_v12 = vadd.f32 1.0, %v4924_v38 }
 0x711   : > { %4927 = vpow2.f32 %v3452_v2  ;;  %v6674_v60 = vmul.f32 %v4926_v42, %v3510_v5  ;;  %v6676_v53 = vmul.f32 %v4926_v42, %v3563_v41  ;;  %v6678_v35 = vmul.f32 %v4926_v42, %v3616_v49  ;;  %v3624_v41 = vpop.f32.mrf.mxu2  ;;  %v3571_v25 = vpop.f32.mrf.mxu1 }
 0x712   : > { %v3429_v29 = vpop.f32.mrf.mxu3  ;;  %4929 = vrcp.f32 %v3462_v12  ;;  %v3520_v34 = vpop.f32.mrf.mxu0 }
 0x713   : > { %7567 = vst [vmem:[#allocation13_spill] sm:$0xff] %v6676_v53  ;;  %v3430_v10 = vadd.f32 %v6630_v27, %v3429_v29  ;;  %v3662_v46 = vpack.c.bf16 %v6674_v60, %v6668_v44  ;;  %v3712_v48 = vpack.c.bf16 %v6676_v53, %v6670_v57  ;;  %v3757_v14 = vpack.c.bf16 %v6678_v35, %v6672_v54 }
 0x714   : > { %7568 = vst [vmem:[#allocation14_spill] sm:$0xff] %v6678_v35 }
 0x715   : > { %v3440_v39 = vsub.f32 0.0, %v3430_v10  ;;  %4653 = vmatmul.msk.bf16.gmra.mxu3 %vm7569_vm4, %v3662_v46  ;;  %4657 = vmatmul.msk.bf16.gmra.mxu0 %vm7570_vm12, %v3712_v48  ;;  %vm2985_vm4 = vcmask 678912   ;;  %vm2987_vm12 = vcmask 703488  }
 0x716   : > { %4661 = vmatmul.msk.bf16.gmra.mxu1 %vm7571_vm5, %v3757_v14 }
 0x717   : > { %v4928_v20 = vpop.eup %4927  ;;  %v3454_v19 = vmul.f32 1.442695, %v3440_v39  ;;  %v2923_v39 = vpop.permute.xlu0 %2922 }
 0x718   : > { %v3463_v51 = vadd.f32 1.0, %v4928_v20  ;;  %v4930_v1 = vpop.eup %4929 }
 0x719   : > { %4931 = vpow2.f32 %v3454_v19  ;;  %v6691_v33 = vmul.f32 %v4930_v1, %v3513_v59  ;;  %v6693_v28 = vmul.f32 %v4930_v1, %v3566_v21  ;;  %v6695_v23 = vmul.f32 %v4930_v1, %v3619_v31  ;;  %v3626_v2 = vpop.f32.mrf.mxu2  ;;  %v3573_v42 = vpop.f32.mrf.mxu1 }
 0x71a   : > { %4933 = vrcp.f32 %v3463_v51  ;;  %v3431_v16 = vpop.f32.mrf.mxu3  ;;  %v2927_v19 = vpop.permute.xlu1 %2926  ;;  %v2976_v51 = vsel %vm2975_vm7, %v6621_v55, %v2923_v39 }
 0x71b   : > { %v3432_v37 = vadd.f32 %v6630_v27, %v3431_v16  ;;  %7572 = vst [vmem:[#allocation15_spill] sm:$0xff] %v6693_v28 }
 0x71c   : > { %7573 = vst [vmem:[#allocation16_spill] sm:$0xff] %v6695_v23 }
 0x71d   : > { %v3441_v32 = vsub.f32 0.0, %v3432_v37  ;;  %v2930_v37 = vpop.permute.xlu2 %2929 }
 0x71f   : > { %v4932_v58 = vpop.eup %4931  ;;  %v3456_v15 = vmul.f32 1.442695, %v3441_v32  ;;  %v2933_v20 = vpop.permute.xlu0 %2932 }
 0x720   : > { %v4934_v11 = vpop.eup %4933  ;;  %v3464_v27 = vadd.f32 1.0, %v4932_v58 }
 0x721   : > { %4935 = vpow2.f32 %v3456_v15  ;;  %v6697_v62 = vmul.f32 %v4934_v11, %v3515_v45  ;;  %v6699_v52 = vmul.f32 %v4934_v11, %v3568_v18  ;;  %v6701_v3 = vmul.f32 %v4934_v11, %v3621_v63 }
 0x722   : > { %4937 = vrcp.f32 %v3464_v27  ;;  %v2978_v45 = vsel %vm2977_vm3, %v2976_v51, %v2927_v19  ;;  %v6766_v19 = vmul.f32 0.01, %v6645_v13 }
 0x723   : > { %v3663_v6 = vpack.c.bf16 %v6697_v62, %v6691_v33  ;;  %v3713_v5 = vpack.c.bf16 %v6699_v52, %v6693_v28  ;;  %v3758_v49 = vpack.c.bf16 %v6701_v3, %v6695_v23  ;;  %v2980_v63 = vsel %vm2979_vm8, %v2978_v45, %v2930_v37 }
 0x724   : > { %v2982_v18 = vsel %vm2981_vm13, %v2980_v63, %v2933_v20  ;;  %v6773_v63 = vmul.f32 0.01, %v6647_v8 }
 0x725   : > { %4654 = vmatmul.msk.bf16.gmra.mxu3 %vm7574_vm15, %v3663_v6  ;;  %4658 = vmatmul.msk.bf16.gmra.mxu0 %vm7575_vm11, %v3713_v5 }
 0x726   : > { %4662 = vmatmul.msk.bf16.gmra.mxu1 %vm7576_vm10, %v3758_v49 }
 0x727   : > { %v4936_v36 = vpop.eup %4935 }
 0x728   : > { %v3465_v61 = vadd.f32 1.0, %v4936_v36  ;;  %v4938_v22 = vpop.eup %4937 }
 0x729   : > { %v6712_v59 = vmul.f32 %v4938_v22, %v3518_v56  ;;  %v6714_v31 = vmul.f32 %v4938_v22, %v3571_v25  ;;  %v6720_v29 = vmul.f32 %v4938_v22, %v3624_v41 }
 0x72a   : > { %4939 = vrcp.f32 %v3465_v61 }
 0x730   : > { %v4940_v38 = vpop.eup %4939 }
 0x731   : > { %v6716_v21 = vmul.f32 %v4940_v38, %v3520_v34  ;;  %v6718_v12 = vmul.f32 %v4940_v38, %v3573_v42  ;;  %v6722_v10 = vmul.f32 %v4940_v38, %v3626_v2 }
 0x733   : > { %7577 = vst [vmem:[#allocation17_spill] sm:$0xff] %v6716_v21  ;;  %v3664_v46 = vpack.c.bf16 %v6716_v21, %v6712_v59  ;;  %v3714_v48 = vpack.c.bf16 %v6718_v12, %v6714_v31  ;;  %v3759_v14 = vpack.c.bf16 %v6722_v10, %v6720_v29 }
 0x734   : > { %7578 = vst [vmem:[#allocation18_spill] sm:$0xff] %v6718_v12 }
 0x735   : > { %7579 = vst [vmem:[#allocation19_spill] sm:$0xff] %v6722_v10  ;;  %4655 = vmatmul.msk.bf16.gmra.mxu3 %vm7580_vm9, %v3664_v46  ;;  %4659 = vmatmul.msk.bf16.gmra.mxu0 %vm7581_vm6, %v3714_v48 }
 0x736   : > { %4663 = vmatmul.msk.bf16.gmra.mxu1 %vm7582_vm2, %v3759_v14 }
 0x752   : > { %v2951_v16 = vpop.permute.xlu0 %2950 }
 0x753   : > { %v2984_v1 = vsel %vm2983_vm1, %v2982_v18, %v2951_v16 }
 0x763   : > { %v2969_v32 = vpop.permute.xlu0 %2968 }
 0x764   : > { %v2986_v58 = vsel %vm2985_vm4, %v2984_v1, %v2969_v32  ;;  %v6780_v32 = vmul.f32 0.01, %v6651_v26 }
 0x765   : > { %2988 = vst.msk [vmem:[%s1104_s7] sm:$0xff] %vm2987_vm12, %v2986_v58  ;;  %v6783_v58 = vmul.f32 0.01, %v6649_v50 }
 0x782   : > { %v6738_v15 = vpop.f32.mrf.mxu0 }
 0x783   : > { %v6740_v55 = vpop.f32.mrf.mxu1  ;;  %v3849_v27 = vmul.f32 %v6738_v15, %v6738_v15  ;;  %v3809_v14 = vmul.f32 %v6738_v15, %v6647_v8 }
 0x784   : > { %v3865_v49 = vmul.f32 %v6740_v55, %v6740_v55 }
 0x788   : > { %v3691_v11 = vpop.f32.mrf.mxu3 }
 0x789   : > { %v3841_v6 = vmul.f32 %v3691_v11, %v3691_v11  ;;  %v3801_v2 = vmul.f32 %v3691_v11, %v6645_v13 }
 0x78a   : > { %v6744_v5 = vpop.f32.mrf.mxu0 }
 0x78b   : > { %v3857_v56 = vadd.f32 %v3849_v27, %v3841_v6  ;;  %v6748_v41 = vpop.f32.mrf.mxu1  ;;  %v3850_v22 = vmul.f32 %v6744_v5, %v6744_v5  ;;  %v3817_v51 = vadd.f32 %v3809_v14, %v3801_v2  ;;  %v3825_v27 = vmul.f32 %v6740_v55, %v6649_v50 }
 0x78c   : > { %v3866_v42 = vmul.f32 %v6748_v41, %v6748_v41  ;;  %v3810_v14 = vmul.f32 %v6744_v5, %v6653_v24 }
 0x78d   : > { %v3873_v25 = vadd.f32 %v3865_v49, %v3857_v56  ;;  %v6789_v49 = vmul.f32 0.01, %v6653_v24  ;;  %v6795_v2 = vadd.f32 %v3825_v27, %v3817_v51  ;;  %v6808_v51 = vmul.f32 0.01, %v6670_v57 }
 0x78f   : > { %v3889_v36 = vadd.f32 1e-08, %v3873_v25  ;;  %7584 = vst [vmem:[#allocation21_spill] sm:$0xff] %v6808_v51  ;;  %vm4033_vm9 = vcmp.ge.f32.partialorder %v6795_v2, 0.0 }
 0x790   : > { %v6750_v61 = vpop.f32.mrf.mxu3 }
 0x791   : > { %4941 = vrcp.f32 %v3889_v36  ;;  %v3842_v34 = vmul.f32 %v6750_v61, %v6750_v61  ;;  %v3908_v56 = vand.u32 2147483648, %v3889_v36  ;;  %v3802_v25 = vmul.f32 %v6750_v61, %v6651_v26 }
 0x792   : > { %v6756_v38 = vpop.f32.mrf.mxu0  ;;  %vm3902_vm15 = vweird.f32 %v3889_v36 }
 0x793   : > { %v3858_v46 = vadd.f32 %v3850_v22, %v3842_v34  ;;  %v6761_v48 = vpop.f32.mrf.mxu1  ;;  %v3851_v18 = vmul.f32 %v6756_v38, %v6756_v38  ;;  %v3818_v27 = vadd.f32 %v3810_v14, %v3802_v25 }
 0x794   : > { %v3867_v22 = vmul.f32 %v6761_v48, %v6761_v48 }
 0x795   : > { %v3874_v39 = vadd.f32 %v3866_v42, %v3858_v46  ;;  %v3906_v46 = vand.u32 2147483647, %v3889_v36 }
 0x797   : > { %v4942_v20 = vpop.eup %4941  ;;  %v6768_v45 = vadd.f32 1e-08, %v3874_v39  ;;  %vm3907_vm10 = vcmp.eq.f32.partialorder %v3906_v46, 8.507059e+37 }
 0x798   : > { %v3898_v16 = vmul.f32 %v4942_v20, %v3889_v36  ;;  %v6770_v37 = vpop.f32.mrf.mxu3  ;;  %vm3903_vm5 = vweird.f32 %v4942_v20 }
 0x799   : > { %v3843_v1 = vmul.f32 %v6770_v37, %v6770_v37  ;;  %4943 = vrcp.f32 %v6768_v45  ;;  %vm3904_vm11 = vmor %vm3902_vm15, %vm3903_vm5  ;;  %v3803_v4 = vmul.f32 %v6770_v37, %v6668_v44  ;;  %vm3917_vm2 = vweird.f32 %v6768_v45 }
 0x79a   : > { %v3899_v6 = vsub.f32 1.0, %v3898_v16  ;;  %v6799_v16 = vpop.f32.mrf.mxu0 }
 0x79b   : > { %v3859_v34 = vadd.f32 %v3851_v18, %v3843_v1  ;;  %v6811_v18 = vmul.f32 0.01, %v6672_v54  ;;  %v3909_v1 = vor.u32 1.1754944e-38, %v3908_v56  ;;  %v3826_v56 = vmul.f32 %v6748_v41, %v6655_v7 }
 0x79c   : > { %v3900_v42 = vmul.f32 %v4942_v20, %v3899_v6 }
 0x79d   : > { %v3875_v39 = vadd.f32 %v3867_v22, %v3859_v34  ;;  %7585 = vst [vmem:[#allocation22_spill] sm:$0xff] %v6811_v18  ;;  %v6815_v22 = vpop.f32.mrf.mxu1  ;;  %v6818_v34 = vmul.f32 0.01, %v6674_v60  ;;  %v6839_v46 = vadd.f32 %v3826_v56, %v3818_v27  ;;  %v3852_v18 = vmul.f32 %v6799_v16, %v6799_v16 }
 0x79e   : > { %v3901_v17 = vadd.f32 %v4942_v20, %v3900_v42  ;;  %v3881_v42 = vmul.f32 %v6795_v2, %v3691_v11  ;;  %v6835_v11 = vmul.f32 0.01, %v6676_v53  ;;  %v3828_v9 = vmul.f32 %v6815_v22, %v6678_v35 }
 0x79f   : > { %v6813_v6 = vadd.f32 1e-08, %v3875_v39  ;;  %7586 = vst [vmem:[#allocation23_spill] sm:$0xff] %v6818_v34  ;;  %v4944_v47 = vpop.eup %4943  ;;  %v3811_v39 = vmul.f32 %v6756_v38, %v6670_v57  ;;  %vm4034_vm1 = vcmp.ge.f32.partialorder %v6839_v46, 0.0 }
 0x7a0   : > { %v3905_v36 = vsel %vm3904_vm11, %v4942_v20, %v3901_v17  ;;  %v6823_v0 = vpop.f32.mrf.mxu3  ;;  %v3913_v25 = vmul.f32 %v4944_v47, %v6768_v45  ;;  %v6832_v17 = vmul.f32 0.01, %v6691_v33  ;;  %7588 = vst [vmem:[#allocation25_spill] sm:$0xff] %v6835_v11  ;;  %v4065_v20 = vmul.f32 %v6795_v2, %v6738_v15 }
 0x7a1   : > { %v3910_v43 = vsel %vm3907_vm10, %v3909_v1, %v3905_v36  ;;  %4945 = vrcp.f32 %v6813_v6  ;;  %v6842_v36 = vmul.f32 0.01, %v6693_v28  ;;  %v3819_v40 = vadd.f32 %v3811_v39, %v3803_v4 }
 0x7a2   : > { %v3911_v14 = vmul.f32 %v3910_v43, %v3881_v42  ;;  %7587 = vst [vmem:[#allocation24_spill] sm:$0xff] %v6832_v17  ;;  %v3914_v1 = vsub.f32 1.0, %v3913_v25  ;;  %v4121_v42 = vmul.f32 %v6795_v2, %v6740_v55  ;;  %v3844_v10 = vmul.f32 %v6823_v0, %v6823_v0  ;;  %v6864_v12 = vpop.f32.mrf.mxu0 }
 0x7a3   : > { %7589 = vst [vmem:[#allocation26_spill] sm:$0xff] %v6842_v36  ;;  %v3921_v17 = vand.u32 2147483647, %v6768_v45  ;;  %v3827_v15 = vmul.f32 %v6761_v48, %v6672_v54  ;;  %vm3918_vm6 = vweird.f32 %v4944_v47  ;;  %v3868_v4 = vmul.f32 %v6815_v22, %v6815_v22 }
 0x7a4   : > { %v3915_v11 = vmul.f32 %v4944_v47, %v3914_v1  ;;  %v4017_v27 = vsub.f32 %v6645_v13, %v3911_v14  ;;  %v3860_v55 = vadd.f32 %v3852_v18, %v3844_v10  ;;  %v3882_v25 = vmul.f32 %v6839_v46, %v6750_v61  ;;  %vm6873_vm7 = vmor %vm3917_vm2, %vm3918_vm6 }
 0x7a5   : > { %v3923_v1 = vand.u32 2147483648, %v6768_v45  ;;  %v4066_v36 = vmul.f32 %v6839_v46, %v6744_v5  ;;  %v6867_v14 = vadd.f32 %v3827_v15, %v3819_v40  ;;  %vm6877_vm3 = vcmp.eq.f32.partialorder %v3921_v17, 8.507059e+37  ;;  %v6887_v15 = vpop.f32.mrf.mxu1 }
 0x7a6   : > { %v3916_v39 = vadd.f32 %v4944_v47, %v3915_v11  ;;  %v3876_v18 = vadd.f32 %v3868_v4, %v3860_v55  ;;  %v4122_v5 = vmul.f32 %v6839_v46, %v6748_v41  ;;  %v3812_v40 = vmul.f32 %v6799_v16, %v6676_v53 }
 0x7a7   : > { %v6857_v56 = vpop.eup %4945  ;;  %v3804_v45 = vmul.f32 %v6823_v0, %v6674_v60  ;;  %v4041_v17 = vsel %vm4033_vm9, %v6645_v13, %v4017_v27  ;;  %v6896_v21 = vmul.f32 %v4065_v20, %v3910_v43  ;;  %v3924_v41 = vor.u32 1.1754944e-38, %v3923_v1 }
 0x7a8   : > { %v3928_v10 = vmul.f32 %v6857_v56, %v6813_v6  ;;  %v6871_v51 = vpop.f32.mrf.mxu3  ;;  %v3920_v4 = vsel %vm6873_vm7, %v4944_v47, %v3916_v39  ;;  %v6891_v34 = vadd.f32 1e-08, %v3876_v18  ;;  %v6904_v61 = vmul.f32 %v6867_v14, %v6770_v37 }
 0x7a9   : > { %v3845_v53 = vmul.f32 %v6871_v51, %v6871_v51  ;;  %v3853_v13 = vmul.f32 %v6864_v12, %v6864_v12  ;;  %v6910_v20 = vmul.f32 %v4121_v42, %v3910_v43  ;;  %v3925_v27 = vsel %vm6877_vm3, %v3924_v41, %v3920_v4 }
 0x7aa   : > { %v3929_v55 = vsub.f32 1.0, %v3928_v10  ;;  %4947 = vrcp.f32 %v6891_v34  ;;  %v3936_v39 = vand.u32 2147483647, %v6813_v6  ;;  %v4049_v1 = vmul.f32 0.99, %v4041_v17 }
 0x7ab   : > { %v3938_v10 = vand.u32 2147483648, %v6813_v6  ;;  %v3820_v18 = vadd.f32 %v3812_v40, %v3804_v45  ;;  %v3869_v37 = vmul.f32 %v6887_v15, %v6887_v15  ;;  %v4081_v35 = vsub.f32 %v6647_v8, %v6896_v21 }
 0x7ac   : > { %v3930_v47 = vmul.f32 %v6857_v56, %v3929_v55  ;;  %v3861_v55 = vadd.f32 %v3853_v13, %v3845_v53  ;;  %vm3932_vm8 = vweird.f32 %v6813_v6  ;;  %v4067_v43 = vmul.f32 %v6867_v14, %v6756_v38 }
 0x7ad   : > { %v4123_v42 = vmul.f32 %v6867_v14, %v6761_v48  ;;  %v3926_v11 = vmul.f32 %v3925_v27, %v3882_v25  ;;  %vm3933_vm13 = vweird.f32 %v6857_v56  ;;  %vm6932_vm4 = vcmp.eq.f32.partialorder %v3936_v39, 8.507059e+37  ;;  %v6938_v48 = vpop.f32.mrf.mxu0 }
 0x7ae   : > { %v3931_v4 = vadd.f32 %v6857_v56, %v3930_v47  ;;  %v3877_v40 = vadd.f32 %v3869_v37, %v3861_v55  ;;  %v3805_v38 = vmul.f32 %v6871_v51, %v6691_v33  ;;  %v4057_v25 = vadd.f32 %v4049_v1, %v6766_v19  ;;  %vm6955_vm12 = vmor %vm3932_vm8, %vm3933_vm13 }
 0x7af   : > { %v3939_v41 = vor.u32 1.1754944e-38, %v3938_v10  ;;  %v6943_v47 = vadd.f32 %v3828_v9, %v3820_v18  ;;  %v3813_v13 = vmul.f32 %v6864_v12, %v6693_v28  ;;  %v6949_v37 = vmul.f32 %v4066_v36, %v3925_v27  ;;  %v6965_v10 = vpop.f32.mrf.mxu1 }
 0x7b0   : > { %v6927_v45 = vpop.f32.mrf.mxu3  ;;  %v6941_v17 = vpop.eup %4947  ;;  %v3829_v19 = vmul.f32 %v6887_v15, %v6695_v23  ;;  %v6963_v1 = vadd.f32 1e-08, %v3877_v40  ;;  %4185 = vrot.lane.b32.xlu1 %v4057_v25, %s4991_s29  ;;  %v4018_v36 = vsub.f32 %v6651_v26, %v3926_v11  ;;  %v6969_v18 = vmul.f32 %v4122_v5, %v3925_v27 }
 0x7b1   : > { %v3846_v39 = vmul.f32 %v6927_v45, %v6927_v45  ;;  %v3943_v9 = vmul.f32 %v6941_v17, %v6891_v34  ;;  %v3935_v6 = vsel %vm6955_vm12, %v6857_v56, %v3931_v4  ;;  %v3854_v53 = vmul.f32 %v6938_v48, %v6938_v48 }
 0x7b2   : > { %v3953_v23 = vand.u32 2147483648, %v6891_v34  ;;  %v3821_v40 = vadd.f32 %v3813_v13, %v3805_v38  ;;  %4949 = vrcp.f32 %v6963_v1  ;;  %v6980_v25 = vmul.f32 %v6943_v47, %v6823_v0 }
 0x7b3   : > { %v3944_v28 = vsub.f32 1.0, %v3943_v9  ;;  %v3951_v5 = vand.u32 2147483647, %v6891_v34  ;;  %v3870_v27 = vmul.f32 %v6965_v10, %v6965_v10  ;;  %v3862_v11 = vadd.f32 %v3854_v53, %v3846_v39 }
 0x7b4   : > { %v3940_v56 = vsel %vm6932_vm4, %v3939_v41, %v3935_v6  ;;  %vm3947_vm5 = vweird.f32 %v6891_v34  ;;  %v6990_v4 = vmul.f32 %v6943_v47, %v6799_v16  ;;  %v6994_v38 = vmul.f32 %v6943_v47, %v6815_v22 }
 0x7b5   : > { %v4082_v0 = vsub.f32 %v6653_v24, %v6949_v37  ;;  %v4138_v13 = vsub.f32 %v6655_v7, %v6969_v18  ;;  %v3945_v53 = vmul.f32 %v6941_v17, %v3944_v28  ;;  %v3878_v21 = vadd.f32 %v3870_v27, %v3862_v11  ;;  %v7043_v27 = vpop.f32.mrf.mxu0 }
 0x7b6   : > { %v3954_v41 = vor.u32 1.1754944e-38, %v3953_v23  ;;  %v7001_v39 = vadd.f32 %v3829_v19, %v3821_v40  ;;  %v4042_v16 = vsel %vm4034_vm1, %v6651_v26, %v4018_v36  ;;  %v4097_v22 = vsel %vm4033_vm9, %v6647_v8, %v4081_v35 }
 0x7b7   : > { %v3941_v55 = vmul.f32 %v3940_v56, %v6904_v61  ;;  %vm7010_vm15 = vcmp.eq.f32.partialorder %v3951_v5, 8.507059e+37  ;;  %v3814_v28 = vmul.f32 %v6938_v48, %v6699_v52  ;;  %v3806_v23 = vmul.f32 %v6927_v45, %v6697_v62 }
 0x7b8   : > { %v7018_v9 = vadd.f32 1e-08, %v3878_v21  ;;  %v7020_v19 = vpop.eup %4949  ;;  %v7022_v26 = vmul.f32 %v4067_v43, %v3940_v56  ;;  %v7024_v36 = vmul.f32 %v4123_v42, %v3940_v56  ;;  %v4050_v8 = vmul.f32 0.99, %v4042_v16  ;;  %v7045_v11 = vpop.f32.mrf.mxu3 }
 0x7b9   : > { %v4105_v35 = vmul.f32 0.99, %v4097_v22  ;;  %vm4035_vm11 = vcmp.ge.f32.partialorder %v6867_v14, 0.0  ;;  %v3946_v61 = vadd.f32 %v6941_v17, %v3945_v53  ;;  %vm3948_vm10 = vweird.f32 %v6941_v17 }
 0x7ba   : > { %v3958_v6 = vmul.f32 %v7020_v19, %v6963_v1  ;;  %4951 = vrcp.f32 %v7018_v9  ;;  %v7034_v40 = vmul.f32 %v7001_v39, %v6871_v51  ;;  %v3966_v43 = vand.u32 2147483647, %v6963_v1  ;;  %vm7057_vm6 = vmor %vm3947_vm5, %vm3948_vm10 }
 0x7bb   : > { %v7039_v42 = vmul.f32 %v7001_v39, %v6864_v12  ;;  %v3830_v5 = vmul.f32 %v6965_v10, %v6701_v3  ;;  %v4019_v56 = vsub.f32 %v6668_v44, %v3941_v55  ;;  %v3822_v21 = vadd.f32 %v3814_v28, %v3806_v23  ;;  %v7065_v28 = vpop.f32.mrf.mxu1 }
 0x7bc   : > { %v3959_v53 = vsub.f32 1.0, %v3958_v6  ;;  %v4058_v51 = vadd.f32 %v4050_v8, %v6780_v32  ;;  %v4083_v16 = vsub.f32 %v6670_v57, %v7022_v26  ;;  %v7063_v55 = vmul.f32 %v7001_v39, %v6887_v15 }
 0x7bd   : > { %v4113_v32 = vadd.f32 %v4105_v35, %v6773_v63  ;;  %v3950_v23 = vsel %vm7057_vm6, %v6941_v17, %v3946_v61  ;;  %vm3962_vm2 = vweird.f32 %v6963_v1  ;;  %v3968_v34 = vand.u32 2147483648, %v6963_v1 }
 0x7be   : > { %v3960_v8 = vmul.f32 %v7020_v19, %v3959_v53  ;;  %4187 = vrot.lane.b32.xlu2 %v4058_v51, %s4991_s29  ;;  %vm7075_vm7 = vcmp.eq.f32.partialorder %v3966_v43, 8.507059e+37  ;;  %v3815_v15 = vmul.f32 %v7043_v27, %v6714_v31  ;;  %v3855_v63 = vmul.f32 %v7043_v27, %v7043_v27 }
 0x7bf   : > { %4217 = vrot.lane.b32.xlu1 %v4113_v32, %s4992_s10  ;;  %v3847_v17 = vmul.f32 %v7045_v11, %v7045_v11  ;;  %vm3963_vm3 = vweird.f32 %v7020_v19  ;;  %v7090_v43 = vadd.f32 %v3830_v5, %v3822_v21  ;;  %v3831_v53 = vmul.f32 %v7065_v28, %v6720_v29 }
 0x7c0   : > { %v7086_v35 = vpop.eup %4951  ;;  %v3961_v61 = vadd.f32 %v7020_v19, %v3960_v8  ;;  %v3955_v51 = vsel %vm7010_vm15, %v3954_v41, %v3950_v23  ;;  %v3871_v32 = vmul.f32 %v7065_v28, %v7065_v28  ;;  %v3807_v8 = vmul.f32 %v7045_v11, %v6712_v59  ;;  %vm7116_vm8 = vmor %vm3962_vm2, %vm3963_vm3  ;;  %v7607_v23 = vld [vmem:[#allocation13_spill] sm:$0xff] }
 0x7c1   : > { %v3973_v22 = vmul.f32 %v7086_v35, %v7018_v9  ;;  %v3863_v12 = vadd.f32 %v3855_v63, %v3847_v17  ;;  %v4098_v5 = vsel %vm4034_vm1, %v6653_v24, %v4082_v0  ;;  %v7604_v21 = vsub.f32 %v6649_v50, %v6910_v20 }
 0x7c2   : > { %v4043_v37 = vsel %vm4035_vm11, %v6668_v44, %v4019_v56  ;;  %v3969_v63 = vor.u32 1.1754944e-38, %v3968_v34  ;;  %v4106_v0 = vmul.f32 0.99, %v4098_v5  ;;  %v3956_v20 = vmul.f32 %v3955_v51, %v6980_v25 }
 0x7c3   : > { %v4153_v41 = vsel %vm4033_vm9, %v6649_v50, %v7604_v21  ;;  %v3974_v17 = vsub.f32 1.0, %v3973_v22  ;;  %v3879_v24 = vadd.f32 %v3871_v32, %v3863_v12  ;;  %v3965_v50 = vsel %vm7116_vm8, %v7020_v19, %v3961_v61  ;;  %v7129_v21 = vpop.f32.mrf.mxu0  ;;  %v7132_v22 = vpop.f32.mrf.mxu3 }
 0x7c4   : > { %v3886_v2 = vmul.f32 %v7090_v43, %v6927_v45  ;;  %v4161_v44 = vmul.f32 0.99, %v4153_v41  ;;  %v4114_v34 = vadd.f32 %v4106_v0, %v6789_v49  ;;  %v4051_v12 = vmul.f32 0.99, %v4043_v37  ;;  %v7142_v49 = vpop.f32.mrf.mxu1  ;;  %v7610_v0 = vld [vmem:[#allocation14_spill] sm:$0xff] }
 0x7c5   : > { %v3975_v1 = vmul.f32 %v7086_v35, %v3974_v17  ;;  %v7127_v56 = vadd.f32 1e-08, %v3879_v24  ;;  %v4076_v25 = vmul.f32 %v6990_v4, %v3955_v51  ;;  %v3983_v32 = vand.u32 2147483648, %v7018_v9 }
 0x7c6   : > { %v3823_v19 = vadd.f32 %v3815_v15, %v3807_v8  ;;  %v4169_v61 = vadd.f32 %v4161_v44, %v6783_v58  ;;  %v3970_v45 = vsel %vm7075_vm7, %v3969_v63, %v3965_v50  ;;  %vm3978_vm9 = vweird.f32 %v7086_v35  ;;  %4219 = vrot.lane.b32.xlu2 %v4114_v34, %s4992_s10  ;;  %v7611_v50 = vld [vmem:[#allocation20_spill] sm:$0xff] }
 0x7c7   : > { %v3976_v5 = vadd.f32 %v7086_v35, %v3975_v1  ;;  %4953 = vrcp.f32 %v7127_v56  ;;  %v4020_v4 = vsub.f32 %v6674_v60, %v3956_v20  ;;  %v3856_v15 = vmul.f32 %v7129_v21, %v7129_v21 }
 0x7c8   : > { %4249 = vrot.lane.b32.xlu1 %v4169_v61, %s4989_s2  ;;  %v4059_v58 = vadd.f32 %v4051_v12, %v6802_v30  ;;  %v3848_v6 = vmul.f32 %v7132_v22, %v7132_v22  ;;  %v7153_v8 = vmul.f32 %v6994_v38, %v3955_v51  ;;  %vm3977_vm13 = vweird.f32 %v7018_v9  ;;  %v7612_v12 = vld [vmem:[#allocation15_spill] sm:$0xff]  ;;  %v7613_v61 = vld [vmem:[#allocation17_spill] sm:$0xff] }
 0x7c9   : > { %v3981_v41 = vand.u32 2147483647, %v7018_v9  ;;  %v4154_v37 = vsel %vm4034_vm1, %v6655_v7, %v4138_v13  ;;  %v4084_v63 = vsub.f32 %v7607_v23, %v4076_v25  ;;  %v3971_v30 = vmul.f32 %v3970_v45, %v7034_v40  ;;  %vm7167_vm4 = vmor %vm3977_vm13, %vm3978_vm9 }
 0x7ca   : > { %v3872_v9 = vmul.f32 %v7142_v49, %v7142_v49  ;;  %4189 = vrot.lane.b32.xlu0 %v4059_v58, %s4991_s29  ;;  %v3864_v18 = vadd.f32 %v3856_v15, %v3848_v6  ;;  %v4077_v51 = vmul.f32 %v7039_v42, %v3970_v45  ;;  %v3980_v7 = vsel %vm7167_vm4, %v7086_v35, %v3976_v5  ;;  %v7614_v15 = vld [vmem:[#allocation23_spill] sm:$0xff]  ;;  %v7615_v6 = vld [vmem:[#allocation21_spill] sm:$0xff] }
 0x7cb   : > { %v4162_v46 = vmul.f32 0.99, %v4154_v37  ;;  %vm4036_vm1 = vcmp.ge.f32.partialorder %v6943_v47, 0.0  ;;  %v3984_v13 = vor.u32 1.1754944e-38, %v3983_v32  ;;  %v4099_v42 = vsel %vm4035_vm11, %v6670_v57, %v4083_v16  ;;  %v7623_v47 = vld [vmem:[#allocation26_spill] sm:$0xff] }
 0x7cc   : > { %v3880_v40 = vadd.f32 %v3872_v9, %v3864_v18  ;;  %v4044_v17 = vsel %vm4036_vm1, %v6674_v60, %v4020_v4  ;;  %v4140_v35 = vsub.f32 %v7610_v0, %v7153_v8  ;;  %vm3982_vm12 = vcmp.eq.f32.partialorder %v3981_v41, 8.507059e+37 }
 0x7cd   : > { %v4954_v24 = vpop.eup %4953  ;;  %v7190_v20 = vadd.f32 %v3831_v53, %v3823_v19  ;;  %v4170_v44 = vadd.f32 %v4162_v46, %v7611_v50  ;;  %v4021_v1 = vsub.f32 %v6691_v33, %v3971_v30  ;;  %v7194_v34 = vsel %vm3982_vm12, %v3984_v13, %v3980_v7  ;;  %v7618_v13 = vld [vmem:[#allocation24_spill] sm:$0xff] }
 0x7ce   : > { %v3988_v60 = vmul.f32 %v4954_v24, %v7127_v56  ;;  %v7197_v26 = vadd.f32 1e-08, %v3880_v40  ;;  %v4085_v25 = vsub.f32 %v7612_v12, %v4077_v51  ;;  %v3996_v57 = vand.u32 2147483647, %v7127_v56 }
 0x7cf   : > { %4251 = vrot.lane.b32.xlu2 %v4170_v44, %s4989_s2  ;;  %v4052_v16 = vmul.f32 0.99, %v4044_v17  ;;  %v4107_v32 = vmul.f32 0.99, %v4099_v42  ;;  %v3998_v19 = vand.u32 2147483648, %v7127_v56  ;;  %v3808_v5 = vmul.f32 %v7132_v22, %v7613_v61 }
 0x7d0   : > { %v3989_v53 = vsub.f32 1.0, %v3988_v60  ;;  %4955 = vrcp.f32 %v7197_v26  ;;  %v3986_v4 = vmul.f32 %v7194_v34, %v3886_v2  ;;  %vm4037_vm5 = vcmp.ge.f32.partialorder %v7001_v39, 0.0  ;;  %v7616_v2 = vld [vmem:[#allocation18_spill] sm:$0xff] }
 0x7d1   : > { %v4060_v58 = vadd.f32 %v4052_v16, %v7614_v15  ;;  %v4115_v8 = vadd.f32 %v4107_v32, %v7615_v6  ;;  %vm3993_vm15 = vweird.f32 %v4954_v24  ;;  %v4045_v37 = vsel %vm4037_vm5, %v6691_v33, %v4021_v1  ;;  %v7620_v1 = vld [vmem:[#allocation16_spill] sm:$0xff] }
 0x7d2   : > { %v3990_v41 = vmul.f32 %v4954_v24, %v3989_v53  ;;  %v4100_v30 = vsel %vm4036_vm1, %v7607_v23, %v4084_v63  ;;  %v3887_v38 = vmul.f32 %v7190_v20, %v7045_v11  ;;  %v3816_v9 = vmul.f32 %v7129_v21, %v7616_v2 }
 0x7d3   : > { %4191 = vrot.lane.b32.xlu1 %v4060_v58, %s4991_s29  ;;  %4221 = vrot.lane.b32.xlu0 %v4115_v8, %s4992_s10  ;;  %v4053_v18 = vmul.f32 0.99, %v4045_v37  ;;  %v7617_v51 = vsub.f32 %v6672_v54, %v7024_v36  ;;  %v4133_v23 = vmul.f32 %v7063_v55, %v3970_v45  ;;  %vm3992_vm10 = vweird.f32 %v7127_v56  ;;  %v7619_v56 = vld [vmem:[#allocation19_spill] sm:$0xff] }
 0x7d4   : > { %v3991_v63 = vadd.f32 %v4954_v24, %v3990_v41  ;;  %v4108_v11 = vmul.f32 0.99, %v4100_v30  ;;  %v4022_v7 = vsub.f32 %v6697_v62, %v3986_v4  ;;  %vm3994_vm6 = vmor %vm3992_vm10, %vm3993_vm15  ;;  %v3999_v46 = vor.u32 1.1754944e-38, %v3998_v19 }
 0x7d5   : > { %v4155_v33 = vsel %vm4035_vm11, %v6672_v54, %v7617_v51  ;;  %v4061_v40 = vadd.f32 %v4053_v18, %v7618_v13  ;;  %vm3997_vm2 = vcmp.eq.f32.partialorder %v3996_v57, 8.507059e+37  ;;  %v3824_v36 = vadd.f32 %v3816_v9, %v3808_v5  ;;  %v7621_v57 = vld [vmem:[#allocation25_spill] sm:$0xff] }
 0x7d6   : > { %v4163_v17 = vmul.f32 0.99, %v4155_v33  ;;  %v4956_v42 = vpop.eup %4955  ;;  %v3995_v50 = vsel %vm3994_vm6, %v4954_v24, %v3991_v63  ;;  %v4101_v54 = vsel %vm4037_vm5, %v7612_v12, %v4085_v25  ;;  %v4070_v14 = vmul.f32 %v7090_v43, %v6938_v48  ;;  %v7622_v25 = vld [vmem:[#allocation22_spill] sm:$0xff] }
 0x7d7   : > { %v7237_v55 = vsel %vm3997_vm2, %v3999_v46, %v3995_v50  ;;  %v3832_v45 = vmul.f32 %v7142_v49, %v7619_v56  ;;  %v4003_v44 = vmul.f32 %v4956_v42, %v7197_v26  ;;  %4193 = vrot.lane.b32.xlu2 %v4061_v40, %s4991_s29  ;;  %v4141_v24 = vsub.f32 %v7620_v1, %v4133_v23 }
 0x7d8   : > { %v4001_v60 = vmul.f32 %v7237_v55, %v3887_v38  ;;  %v4116_v16 = vadd.f32 %v4108_v11, %v7621_v57  ;;  %vm4038_vm11 = vcmp.ge.f32.partialorder %v7090_v43, 0.0  ;;  %v4171_v48 = vadd.f32 %v4163_v17, %v7622_v25 }
 0x7d9   : > { %v4004_v12 = vsub.f32 1.0, %v4003_v44  ;;  %v4109_v32 = vmul.f32 0.99, %v4101_v54  ;;  %v4046_v53 = vsel %vm4038_vm11, %v6697_v62, %v4022_v7  ;;  %v4078_v19 = vmul.f32 %v4070_v14, %v7194_v34 }
 0x7da   : > { %v7252_v5 = vadd.f32 %v3832_v45, %v3824_v36  ;;  %v4013_v4 = vand.u32 2147483648, %v7197_v26  ;;  %v4156_v15 = vsel %vm4036_vm1, %v7610_v0, %v4140_v35  ;;  %vm4008_vm7 = vweird.f32 %v4956_v42 }
 0x7db   : > { %v4005_v58 = vmul.f32 %v4956_v42, %v4004_v12  ;;  %v4011_v6 = vand.u32 2147483647, %v7197_v26  ;;  %4223 = vrot.lane.b32.xlu1 %v4116_v16, %s4992_s10  ;;  %4253 = vrot.lane.b32.xlu0 %v4171_v48, %s4989_s2  ;;  %v4054_v8 = vmul.f32 0.99, %v4046_v53  ;;  %v4023_v41 = vsub.f32 %v6712_v59, %v4001_v60 }
 0x7dc   : > { %v4148_v37 = vmul.f32 0.01, %v7610_v0  ;;  %v4030_v30 = vmul.f32 0.01, %v6697_v62  ;;  %vm4007_vm3 = vweird.f32 %v7197_v26  ;;  %v4117_v35 = vadd.f32 %v4109_v32, %v7623_v47 }
 0x7dd   : > { %v4006_v38 = vadd.f32 %v4956_v42, %v4005_v58  ;;  %v4164_v9 = vmul.f32 0.99, %v4156_v15  ;;  %v4086_v18 = vsub.f32 %v6699_v52, %v4078_v19  ;;  %v3888_v51 = vmul.f32 %v7252_v5, %v7132_v22  ;;  %vm4009_vm8 = vmor %vm4007_vm3, %vm4008_vm7 }
 0x7de   : > { %v4014_v33 = vor.u32 1.1754944e-38, %v4013_v4  ;;  %v4157_v23 = vsel %vm4037_vm5, %v7620_v1, %v4141_v24  ;;  %vm4012_vm9 = vcmp.eq.f32.partialorder %v4011_v6, 8.507059e+37  ;;  %v4062_v62 = vadd.f32 %v4054_v8, %v4030_v30 }
 0x7df   : > { %v4010_v0 = vsel %vm4009_vm8, %v4956_v42, %v4006_v38  ;;  %4225 = vrot.lane.b32.xlu2 %v4117_v35, %s4992_s10  ;;  %vm4039_vm13 = vcmp.ge.f32.partialorder %v7190_v20, 0.0  ;;  %v4126_v26 = vmul.f32 %v7090_v43, %v6965_v10  ;;  %v4071_v63 = vmul.f32 %v7190_v20, %v7043_v27 }
 0x7e0   : > { %v4015_v22 = vsel %vm4012_vm9, %v4014_v33, %v4010_v0  ;;  %v4047_v11 = vsel %vm4039_vm13, %v6712_v59, %v4023_v41  ;;  %v4172_v7 = vadd.f32 %v4164_v9, %v4148_v37  ;;  %v4165_v46 = vmul.f32 0.99, %v4157_v23 }
 0x7e1   : > { %v4016_v39 = vmul.f32 %v4015_v22, %v3888_v51  ;;  %v4134_v13 = vmul.f32 %v4126_v26, %v7194_v34  ;;  %v4079_v40 = vmul.f32 %v4071_v63, %v7237_v55  ;;  %v4102_v17 = vsel %vm4038_vm11, %v6699_v52, %v4086_v18  ;;  %v7624_v51 = vld [vmem:[#allocation6_spill] sm:$0xff] }
 0x7e2   : > { %v4149_v27 = vmul.f32 0.01, %v7620_v1  ;;  %v4055_v42 = vmul.f32 0.99, %v4047_v11  ;;  %v4072_v50 = vmul.f32 %v7252_v5, %v7129_v21  ;;  %vm4040_vm4 = vcmp.ge.f32.partialorder %v7252_v5, 0.0 }
 0x7e3   : > { %v4024_v10 = vsub.f32 %v7613_v61, %v4016_v39  ;;  %4255 = vrot.lane.b32.xlu1 %v4172_v7, %s4989_s2  ;;  %4195 = vrot.lane.b32.xlu0 %v4062_v62, %s4991_s29  ;;  %v4031_v36 = vmul.f32 0.01, %v6712_v59  ;;  %v4110_v54 = vmul.f32 0.99, %v4102_v17  ;;  %v4142_v45 = vsub.f32 %v6701_v3, %v4134_v13  ;;  %v7629_v17 = vld [vmem:[#allocation9_spill] sm:$0xff] }
 0x7e4   : > { %v4173_v34 = vadd.f32 %v4165_v46, %v4149_v27  ;;  %v4087_v44 = vsub.f32 %v6714_v31, %v4079_v40  ;;  %v4080_v24 = vmul.f32 %v4072_v50, %v4015_v22  ;;  %v4094_v21 = vmul.f32 0.01, %v6699_v52 }
 0x7e5   : > { %v4048_v14 = vsel %vm4040_vm4, %v7613_v61, %v4024_v10  ;;  %v4063_v1 = vadd.f32 %v4055_v42, %v4031_v36  ;;  %v4127_v57 = vmul.f32 %v7190_v20, %v7065_v28  ;;  %v4032_v16 = vmul.f32 0.01, %v7613_v61 }
 0x7e6   : > { %v4056_v60 = vmul.f32 0.99, %v4048_v14  ;;  %v4118_v59 = vadd.f32 %v4110_v54, %v4094_v21  ;;  %v4088_v25 = vsub.f32 %v7616_v2, %v4080_v24  ;;  %v4103_v48 = vsel %vm4039_vm13, %v6714_v31, %v4087_v44  ;;  %v7633_v24 = vld [vmem:[#allocation7_spill] sm:$0xff] }
 0x7e7   : > { %4257 = vrot.lane.b32.xlu2 %v4173_v34, %s4989_s2  ;;  %v4135_v12 = vmul.f32 %v4127_v57, %v7237_v55  ;;  %v4158_v32 = vsel %vm4038_vm11, %v6701_v3, %v4142_v45  ;;  %v4128_v28 = vmul.f32 %v7252_v5, %v7142_v49  ;;  %v4111_v61 = vmul.f32 0.99, %v4103_v48  ;;  %v7635_v48 = vld [vmem:[#allocation8_spill] sm:$0xff] }
 0x7e8   : > { %v4064_v52 = vadd.f32 %v4056_v60, %v4032_v16  ;;  %v4166_v55 = vmul.f32 0.99, %v4158_v32  ;;  %v4104_v4 = vsel %vm4040_vm4, %v7616_v2, %v4088_v25  ;;  %v4095_v43 = vmul.f32 0.01, %v6714_v31 }
 0x7e9   : > { %v4143_v53 = vsub.f32 %v6720_v29, %v4135_v12  ;;  %v4136_v19 = vmul.f32 %v4128_v28, %v4015_v22  ;;  %v4150_v15 = vmul.f32 0.01, %v6701_v3  ;;  %v4112_v8 = vmul.f32 0.99, %v4104_v4  ;;  %v7627_v22 = vld [vmem:[#allocation5_spill] sm:$0xff] }
 0x7ea   : > { %v4119_v58 = vadd.f32 %v4111_v61, %v4095_v43  ;;  %v4096_v37 = vmul.f32 0.01, %v7616_v2  ;;  %v4151_v38 = vmul.f32 0.01, %v6720_v29  ;;  %v4152_v35 = vmul.f32 0.01, %v7619_v56 }
 0x7eb   : > { %4197 = vrot.lane.b32.xlu1 %v4063_v1, %s4991_s29  ;;  %4227 = vrot.lane.b32.xlu0 %v4118_v59, %s4992_s10  ;;  %v4174_v6 = vadd.f32 %v4166_v55, %v4150_v15  ;;  %v4144_v49 = vsub.f32 %v7619_v56, %v4136_v19  ;;  %v4159_v41 = vsel %vm4039_vm13, %v6720_v29, %v4143_v53  ;;  %v3646_v33 = vmul.f32 0.01, %v7624_v51  ;;  %v7637_v61 = vld [vmem:[#allocation12_spill] sm:$0xff] }
 0x7ec   : > { %v4120_v30 = vadd.f32 %v4112_v8, %v4096_v37  ;;  %v4167_v31 = vmul.f32 0.99, %v4159_v41  ;;  %vm3638_vm1 = vcmp.ge.f32.partialorder %v7624_v51, 0.0  ;;  %vm7625_vm12 = vcmask 97280  }
 0x7ed   : > { %v4160_v3 = vsel %vm4040_vm4, %v7619_v56, %v4144_v49  ;;  %v3654_v5 = vsel %vm3638_vm1, %v7624_v51, %v3646_v33  ;;  %vm7626_vm5 = vcmask 162816   ;;  %v3645_v11 = vmul.f32 0.01, %v7627_v22  ;;  %vm7628_vm10 = vmmov %vm7625_vm12 }
 0x7ee   : > { %v4175_v47 = vadd.f32 %v4167_v31, %v4151_v38  ;;  %v4168_v20 = vmul.f32 0.99, %v4160_v3  ;;  %vm3637_vm15 = vcmp.ge.f32.partialorder %v7627_v22, 0.0  ;;  %v3649_v10 = vmul.f32 0.01, %v7629_v17  ;;  %vm7630_vm2 = vmmov %vm7626_vm5  ;;  %v7642_v31 = vld [vmem:[#allocation10_spill] sm:$0xff] }
 0x7ef   : > { %4199 = vrot.lane.b32.xlu2 %v4064_v52, %s4991_s29  ;;  %v3653_v39 = vsel %vm3637_vm15, %v7627_v22, %v3645_v11  ;;  %vm3641_vm6 = vcmp.ge.f32.partialorder %v7629_v17, 0.0  ;;  %vm7631_vm11 = vmmov %vm7628_vm10  ;;  %v3647_v1 = vmul.f32 0.01, %v7633_v24  ;;  %vm3639_vm3 = vcmp.ge.f32.partialorder %v7633_v24, 0.0 }
 0x7f0   : > { %v4176_v9 = vadd.f32 %v4168_v20, %v4152_v35  ;;  %v3657_v50 = vsel %vm3641_vm6, %v7629_v17, %v3649_v10  ;;  %vm7632_vm7 = vmmov %vm7630_vm2  ;;  %v3648_v32 = vmul.f32 0.01, %v7635_v48  ;;  %vm3640_vm13 = vcmp.ge.f32.partialorder %v7635_v48, 0.0 }
 0x7f1   : > { %v3655_v60 = vsel %vm3639_vm3, %v7633_v24, %v3647_v1  ;;  %vm7634_vm8 = vmmov %vm7628_vm10  ;;  %v3652_v55 = vmul.f32 0.01, %v7637_v61  ;;  %vm3644_vm4 = vcmp.ge.f32.partialorder %v7637_v61, 0.0  ;;  %v3650_v3 = vmul.f32 0.01, %v7642_v31 }
 0x7f2   : > { %vm7636_vm9 = vmmov %vm7630_vm2  ;;  %v3656_v28 = vsel %vm3640_vm13, %v7635_v48, %v3648_v32 }
 0x7f3   : > { %4229 = vrot.lane.b32.xlu1 %v4119_v58, %s4992_s10  ;;  %4259 = vrot.lane.b32.xlu0 %v4174_v6, %s4989_s2  ;;  %vm7638_vm1 = vmmov %vm7634_vm8  ;;  %v3660_v58 = vsel %vm3644_vm4, %v7637_v61, %v3652_v55 }
 0x7f4   : > { %vm7641_vm15 = vmmov %vm7630_vm2 }
 0x7f5   : > { %vm7643_vm6 = vmmov %vm7638_vm1 }
 0x7f6   : > { %vm7646_vm3 = vmmov %vm7630_vm2 }
 0x7f7   : > { %4231 = vrot.lane.b32.xlu2 %v4120_v30, %s4992_s10 }
 0x7fb   : > { %4261 = vrot.lane.b32.xlu1 %v4175_v47, %s4989_s2 }
 0x7ff   : > { %4263 = vrot.lane.b32.xlu2 %v4176_v9, %s4989_s2 }
 0x818   : > { %v4188_v2 = vpop.permute.xlu2 %4187 }
 0x819   : > { %v4274_v29 = vsel %vm1275_vm0, %v3654_v5, %v4188_v2 }
 0x820   : > { %v4220_v18 = vpop.permute.xlu2 %4219 }
 0x821   : > { %v4282_v56 = vsel %vm7625_vm12, %v4274_v29, %v4220_v18  ;;  %vm7639_vm12 = vmmov %vm7630_vm2  ;;  %v7644_v18 = vld [vmem:[#allocation11_spill] sm:$0xff] }
 0x822   : > { %v4186_v23 = vpop.permute.xlu1 %4185  ;;  %v3651_v51 = vmul.f32 0.01, %v7644_v18 }
 0x823   : > { %v4273_v7 = vsel %vm1275_vm0, %v3653_v39, %v4186_v23 }
 0x829   : > { %v4252_v0 = vpop.permute.xlu2 %4251 }
 0x82a   : > { %v4290_v62 = vsel %vm2972_vm14, %v4282_v56, %v4252_v0 }
 0x82b   : > { %4298 = vst.msk [vmem:[%s7346_s4 + $0x8] sm:$0xff] %vm7626_vm5, %v4290_v62  ;;  %vm7640_vm5 = vmmov %vm7638_vm1 }
 0x831   : > { %v4194_v26 = vpop.permute.xlu2 %4193  ;;  %v4218_v63 = vpop.permute.xlu1 %4217 }
 0x832   : > { %v4281_v13 = vsel %vm7628_vm10, %v4273_v7, %v4218_v63  ;;  %v4277_v34 = vsel %vm1275_vm0, %v3657_v50, %v4194_v26  ;;  %vm3642_vm10 = vcmp.ge.f32.partialorder %v7642_v31, 0.0 }
 0x833   : > { %v3658_v38 = vsel %vm3642_vm10, %v7642_v31, %v3650_v3 }
 0x839   : > { %v4226_v46 = vpop.permute.xlu2 %4225 }
 0x83a   : > { %v4250_v40 = vpop.permute.xlu1 %4249  ;;  %v4285_v36 = vsel %vm7631_vm11, %v4277_v34, %v4226_v46  ;;  %vm3643_vm11 = vcmp.ge.f32.partialorder %v7644_v18, 0.0 }
 0x83b   : > { %v4289_v27 = vsel %vm2972_vm14, %v4281_v13, %v4250_v40  ;;  %v3659_v33 = vsel %vm3643_vm11, %v7644_v18, %v3651_v51 }
 0x83c   : > { %4297 = vst.msk [vmem:[%s7346_s4] sm:$0xff] %vm7630_vm2, %v4289_v27  ;;  %v4190_v42 = vpop.permute.xlu0 %4189 }
 0x83d   : > { %v4275_v57 = vsel %vm1275_vm0, %v3655_v60, %v4190_v42 }
 0x841   : > { %v4258_v54 = vpop.permute.xlu2 %4257 }
 0x842   : > { %v4293_v14 = vsel %vm2972_vm14, %v4285_v36, %v4258_v54 }
 0x843   : > { %4301 = vst.msk [vmem:[%s7346_s4 + $0x20] sm:$0xff] %vm7632_vm7, %v4293_v14  ;;  %vm7645_vm7 = vmmov %vm7638_vm1 }
 0x845   : > { %v4192_v45 = vpop.permute.xlu1 %4191  ;;  %v4222_v44 = vpop.permute.xlu0 %4221 }
 0x846   : > { %v4283_v59 = vsel %vm7634_vm8, %v4275_v57, %v4222_v44  ;;  %v4276_v53 = vsel %vm1275_vm0, %v3656_v28, %v4192_v45 }
 0x849   : > { %v4200_v21 = vpop.permute.xlu2 %4199 }
 0x84a   : > { %v4280_v6 = vsel %vm1275_vm0, %v3660_v58, %v4200_v21 }
 0x84d   : > { %v4224_v16 = vpop.permute.xlu1 %4223  ;;  %v4254_v12 = vpop.permute.xlu0 %4253 }
 0x84e   : > { %v4291_v25 = vsel %vm2972_vm14, %v4283_v59, %v4254_v12  ;;  %v4284_v19 = vsel %vm7638_vm1, %v4276_v53, %v4224_v16 }
 0x84f   : > { %4299 = vst.msk [vmem:[%s7346_s4 + $0x10] sm:$0xff] %vm7636_vm9, %v4291_v25 }
 0x851   : > { %v4232_v52 = vpop.permute.xlu2 %4231 }
 0x852   : > { %v4288_v8 = vsel %vm7640_vm5, %v4280_v6, %v4232_v52 }
 0x855   : > { %v4256_v4 = vpop.permute.xlu1 %4255  ;;  %v4196_v43 = vpop.permute.xlu0 %4195 }
 0x856   : > { %v4292_v15 = vsel %vm2972_vm14, %v4284_v19, %v4256_v4  ;;  %v4278_v47 = vsel %vm1275_vm0, %v3658_v38, %v4196_v43 }
 0x857   : > { %4300 = vst.msk [vmem:[%s7346_s4 + $0x18] sm:$0xff] %vm7639_vm12, %v4292_v15 }
 0x859   : > { %v4264_v49 = vpop.permute.xlu2 %4263 }
 0x85a   : > { %v4296_v41 = vsel %vm2972_vm14, %v4288_v8, %v4264_v49 }
 0x85b   : > { %4304 = vst.msk [vmem:[%s7346_s4 + $0x38] sm:$0xff] %vm7641_vm15, %v4296_v41 }
 0x85d   : > { %v4198_v37 = vpop.permute.xlu1 %4197  ;;  %v4228_v30 = vpop.permute.xlu0 %4227 }
 0x85e   : > { %v4286_v20 = vsel %vm7643_vm6, %v4278_v47, %v4228_v30  ;;  %v4279_v5 = vsel %vm1275_vm0, %v3659_v33, %v4198_v37 }
 0x865   : > { %v4230_v35 = vpop.permute.xlu1 %4229  ;;  %v4260_v9 = vpop.permute.xlu0 %4259 }
 0x866   : > { %v4294_v2 = vsel %vm2972_vm14, %v4286_v20, %v4260_v9  ;;  %v4287_v23 = vsel %vm7645_vm7, %v4279_v5, %v4230_v35 }
 0x867   : > { %4302 = vst.msk [vmem:[%s7346_s4 + $0x28] sm:$0xff] %vm7630_vm2, %v4294_v2 }
 0x86d   : > { %v4262_v29 = vpop.permute.xlu1 %4261 }
 0x86e   : > { %v4295_v56 = vsel %vm2972_vm14, %v4287_v23, %v4262_v29 }
 0x86f   : > { %4303 = vst.msk [vmem:[%s7346_s4 + $0x30] sm:$0xff] %vm7646_vm3, %v4295_v56 }
 0x870 PF: > { %s42_s28 = sadd.s32 1, %s4981_s28   ;;  %s7647_s2 = sld [smem:[#allocation4_spill]] }
 0x871   : > { %p39_p5 = scmp.ge.s32.totalorder %s42_s28, 4   ;;  %s7648_s9 = smov %s4977_s5 }
 0x873   :  { %41 = sbr.rel (!%p39_p5) target bundleno = 13 (0xd), region = 202 }
 0x876   : > { %s7649_s5 = smov %s7647_s2 }

// kernel: update_coor_forward.11
= control target key start
LH: loop header
LB: loop body
LE: loop exit
PB: predicated region body
PF: predicated region fallthrough
CT: control target
= control target key end

     0   :  { %vm55_vm0 = vcmask 1043456   ;;  %s522_s19 = smov 112   ;;  %vm51_vm1 = vcmask 64512   ;;  %s523_s20 = smov 120   ;;  %vm150_vm2 = vcmask 130048   ;;  %s718_s1 = inlined_call_operand.vmem [shape: f32[16,24], index: 1, kind: input, shape index: {}]   ;;  %s719_s2 = inlined_call_operand.vmem [shape: f32[8,8], index: 2, kind: input, shape index: {}]   ;;  %s720_s4 = inlined_call_operand.vmem [shape: f32[16,16], index: 4, kind: input, shape index: {}]   ;;  %s721_s8 = inlined_call_operand.vmem [shape: f32[8,8], index: 8, kind: input, shape index: {}]   ;;  %s722_s0 = inlined_call_operand.vmem [shape: f32[16,16], index: 0, kind: input, shape index: {}]   ;;  %s723_s3 = inlined_call_operand.vmem [shape: f32[8,16], index: 3, kind: input, shape index: {}]   ;;  %s724_s5 = inlined_call_operand.vmem [shape: f32[1,16], index: 5, kind: input, shape index: {}]   ;;  %s725_s7 = inlined_call_operand.vmem [shape: f32[1,8], index: 7, kind: input, shape index: {}]   ;;  %s726_s6 = inlined_call_operand.vmem [shape: f32[16,8], index: 6, kind: input, shape index: {}]   ;;  %s727_s9 = inlined_call_operand.vmem [shape: f32[8,8], index: 9, kind: input, shape index: {}]   ;;  %s728_s10 = inlined_call_operand.vmem [shape: f32[16,40], index: 10, kind: output, shape index: {}]  }
   0x1   :  { %v38_v0 = vld [vmem:[%s718_s1] sm:$0xff]  ;;  %v39_v1 = vld [vmem:[%s718_s1 + $0x8] sm:$0xff] }
   0x2   :  { %v40_v2 = vld [vmem:[%s719_s2] sm:$0xff]  ;;  %v49_v3 = vpack.c.bf16 %v39_v1, %v38_v0  ;;  %v43_v7 = vld [vmem:[%s720_s4 + $0x8] sm:$0xff] }
   0x3   :  { %v50_v4 = vpack.c.bf16 %v40_v2, %v40_v2  ;;  %v42_v6 = vld [vmem:[%s720_s4] sm:$0xff]  ;;  %v37_v12 = vld [vmem:[%s722_s0 + $0x8] sm:$0xff] }
   0x4   :  { %93 = vrot.lane.b32.xlu0 %v49_v3, %s522_s19  ;;  %v48_v8 = vld [vmem:[%s721_s8] sm:$0xff]  ;;  %v149_v9 = vpack.c.bf16 %v43_v7, %v42_v6  ;;  %v46_v61 = vld [vmem:[%s726_s6 + $0x8] sm:$0xff] }
   0x5   :  { %v57_v5 = vsel %vm55_vm0, %v50_v4, 0  ;;  %v226_v10 = vpack.c.bf16 %v48_v8, %v48_v8  ;;  %v36_v11 = vld [vmem:[%s722_s0] sm:$0xff] }
   0x6   :  { %66 = vmatpush.bf16.msra.mxu0 %v57_v5  ;;  %105 = vmatpush.bf16.msra.mxu2 %v57_v5  ;;  %v148_v13 = vpack.c.bf16 %v37_v12, %v36_v11  ;;  %v41_v20 = vld [vmem:[%s723_s3] sm:$0xff] }
   0x7   :  { %86 = vmatpush.bf16.msra.mxu1 %v57_v5  ;;  %161 = vmatpush.bf16.msra.mxu3 %v149_v9  ;;  %v231_v14 = vsel %vm55_vm0, %v226_v10, 0  ;;  %v147_v21 = vpack.c.bf16 %v41_v20, %v41_v20  ;;  %v45_v60 = vld [vmem:[%s726_s6] sm:$0xff] }
   0x8   :  { %v194_v62 = vpack.c.bf16 %v46_v61, %v45_v60  ;;  %v504_v2 = vld [vmem:[%s724_s5] ss:$0 sm:$0xff]  ;;  %s524_s5 = smov 32  }
   0x9   :  { %487 = vmatmul.msk.bf16.vlgmr.msra.gmra.mxu0 %vm51_vm1, %v49_v3  ;;  %v172_v22 = vsel %vm55_vm0, %v147_v21, 0  ;;  %v505_v9 = vld [vmem:[%s725_s7] ss:$0 sm:$0xff]  ;;  %s525_s7 = smov 24  }
   0xa   :  { %240 = vmatpush.bf16.msrb.mxu2 %v231_v14  ;;  %490 = vmatmul.msk.bf16.vlgmr.msra.gmra.mxu3 %vm150_vm2, %v148_v13  ;;  %v295_v10 = vld [vmem:[%s727_s9] sm:$0xff]  ;;  %s526_s9 = smov 16  }
   0xb   :  { %260 = vmatpush.bf16.msrb.mxu3 %v231_v14  ;;  %181 = vmatpush.bf16.msrb.mxu0 %v172_v22  ;;  %v297_v11 = vpack.c.bf16 %v295_v10, %v295_v10 }
   0xc   :  { %74 = vrot.lane.b32.xlu0 %v49_v3, %s523_s20  ;;  %208 = vmatpush.bf16.msrb.mxu1 %v194_v62 }
   0xd   :  { %v302_v13 = vsel %vm55_vm0, %v297_v11, 0 }
   0xf   :  { %280 = vmatpush.bf16.msra.mxu0 %v231_v14  ;;  %347 = vmatpush.bf16.msra.mxu3 %v302_v13 }
  0x76   :  { %v94_v15 = vpop.permute.xlu0 %93 }
  0x77   :  { %489 = vmatmul.msk.bf16.vlgmr.msra.gmra.mxu2 %vm51_vm1, %v94_v15 }
  0x78   :  { %329 = vmatpush.bf16.msra.mxu2 %v302_v13 }
  0x7e   :  { %v75_v16 = vpop.permute.xlu0 %74 }
  0x7f   :  { %488 = vmatmul.msk.bf16.vlgmr.msra.gmra.mxu1 %vm51_vm1, %v75_v16 }
  0x80   :  { %311 = vmatpush.bf16.msra.mxu1 %v302_v13 }
  0x86   :  { %v68_v17 = vpop.f32.mrf.mxu0 }
  0x87   :  { %v112_v24 = vmul.f32 %v68_v17, %v68_v17 }
  0x8d   :  { %v163_v63 = vpop.f32.mrf.mxu3 }
  0x8e   :  { %v70_v18 = vpop.f32.mrf.mxu0 }
  0x8f   :  { %v225_v19 = vpack.c.bf16 %v70_v18, %v68_v17  ;;  %v113_v32 = vmul.f32 %v70_v18, %v70_v18 }
  0x91   :  { %493 = vmatmul.msk.bf16.vlgmr.msrb.gmra.mxu2 %vm51_vm1, %v225_v19 }
  0x95   :  { %v165_v3 = vpop.f32.mrf.mxu3 }
  0xfa   :  { %v107_v23 = vpop.f32.mrf.mxu2 }
  0xfb   :  { %v118_v27 = vmul.f32 %v107_v23, %v107_v23 }
  0xfc   :  { %v88_v25 = vpop.f32.mrf.mxu1 }
  0xfd   :  { %v114_v26 = vmul.f32 %v88_v25, %v88_v25 }
  0xff   :  { %v116_v28 = vadd.f32 %v114_v26, %v112_v24 }
 0x101   :  { %v120_v29 = vadd.f32 %v118_v27, %v116_v28 }
 0x102   :  { %v109_v30 = vpop.f32.mrf.mxu2 }
 0x103   :  { %506 = vrsqrt.f32 %v120_v29  ;;  %v119_v35 = vmul.f32 %v109_v30, %v109_v30  ;;  %vm129_vm3 = vcmp.eq.f32.partialorder %v120_v29, inf  ;;  %v132_v53 = vand.u32 2147483648, %v120_v29 }
 0x104   :  { %v90_v31 = vpop.f32.mrf.mxu1  ;;  %vm131_vm5 = vcmp.eq.f32.partialorder %v120_v29, 0.0  ;;  %v269_v59 = vpack.c.bf16 %v109_v30, %v107_v23 }
 0x105   :  { %v115_v33 = vmul.f32 %v90_v31, %v90_v31  ;;  %v249_v34 = vpack.c.bf16 %v90_v31, %v88_v25 }
 0x107   :  { %v117_v36 = vadd.f32 %v115_v33, %v113_v32  ;;  %494 = vmatmul.msk.bf16.vlgmr.msrb.gmra.mxu3 %vm51_vm1, %v249_v34 }
 0x109   :  { %v507_v37 = vpop.eup %506  ;;  %v121_v38 = vadd.f32 %v119_v35, %v117_v36 }
 0x10a   :  { %v123_v39 = vmul.f32 %v507_v37, %v120_v29 }
 0x10b   :  { %508 = vrsqrt.f32 %v121_v38  ;;  %vm141_vm4 = vcmp.eq.f32.partialorder %v121_v38, inf  ;;  %v144_v54 = vand.u32 2147483648, %v121_v38  ;;  %vm143_vm6 = vcmp.eq.f32.partialorder %v121_v38, 0.0 }
 0x10c   :  { %v124_v40 = vmul.f32 %v507_v37, %v123_v39 }
 0x10e   :  { %v125_v41 = vmul.f32 0.5, %v124_v40 }
 0x110   :  { %v126_v42 = vsub.f32 1.5, %v125_v41 }
 0x111   :  { %v509_v43 = vpop.eup %508 }
 0x112   :  { %v135_v44 = vmul.f32 %v509_v43, %v121_v38  ;;  %v127_v45 = vmul.f32 %v507_v37, %v126_v42 }
 0x114   :  { %v136_v46 = vmul.f32 %v509_v43, %v135_v44  ;;  %v128_v48 = vmul.f32 %v127_v45, %v120_v29  ;;  %v242_v23 = vpop.f32.mrf.mxu2 }
 0x116   :  { %v137_v47 = vmul.f32 0.5, %v136_v46  ;;  %v130_v51 = vsel %vm129_vm3, %v120_v29, %v128_v48  ;;  %vm474_vm3 = vcmask 195584  }
 0x117   :  { %v133_v56 = vsel %vm131_vm5, %v132_v53, %v130_v51  ;;  %vm480_vm5 = vcmask 326656  }
 0x118   :  { %v138_v49 = vsub.f32 1.5, %v137_v47 }
 0x11a   :  { %v139_v50 = vmul.f32 %v509_v43, %v138_v49 }
 0x11c   :  { %v140_v52 = vmul.f32 %v139_v50, %v121_v38  ;;  %v244_v29 = vpop.f32.mrf.mxu2 }
 0x11e   :  { %v142_v55 = vsel %vm141_vm4, %v121_v38, %v140_v52  ;;  %vm477_vm4 = vcmask 261120  }
 0x11f   :  { %v145_v57 = vsel %vm143_vm6, %v144_v54, %v142_v55 }
 0x120   :  { %v146_v58 = vpack.c.bf16 %v145_v57, %v133_v56 }
 0x122   :  { %491 = vmatmul.msk.bf16.vlgmr.msrb.gmra.mxu0 %vm51_vm1, %v146_v58 }
 0x132   :  { %495 = vmatmul.msk.bf16.vlgmr.msra.gmra.mxu0 %vm51_vm1, %v269_v59 }
 0x18a   :  { %v262_v24 = vpop.f32.mrf.mxu3 }
 0x192   :  { %v264_v31 = vpop.f32.mrf.mxu3 }
 0x19f   :  { %v183_v0 = vpop.f32.mrf.mxu0 }
 0x1a0   :  { %v184_v1 = vadd.f32 %v183_v0, %v163_v63 }
 0x1a2   :  { %v629_v6 = vadd.f32 %v504_v2, %v184_v1 }
 0x1a7   :  { %v185_v4 = vpop.f32.mrf.mxu0 }
 0x1a8   :  { %v186_v5 = vadd.f32 %v185_v4, %v165_v3 }
 0x1aa   :  { %v631_v7 = vadd.f32 %v504_v2, %v186_v5 }
 0x1ac   :  { %v193_v8 = vpack.c.bf16 %v631_v7, %v629_v6  ;;  %vm290_vm6 = vcmp.ge.f32.partialorder %v631_v7, 0.0 }
 0x1ae   :  { %492 = vmatmul.msk.bf16.vlgmr.msrb.gmra.mxu1 %vm150_vm2, %v193_v8 }
 0x1af   :  { %v282_v25 = vpop.f32.mrf.mxu0 }
 0x1b7   :  { %v284_v32 = vpop.f32.mrf.mxu0 }
 0x22b   :  { %v210_v12 = vpop.f32.mrf.mxu1 }
 0x22c   :  { %v211_v14 = vadd.f32 %v505_v9, %v210_v12 }
 0x22e   :  { %v215_v15 = vsub.f32 0.0, %v211_v14 }
 0x230   :  { %v217_v16 = vmul.f32 1.442695, %v215_v15 }
 0x232   :  { %510 = vpow2.f32 %v217_v16 }
 0x233   :  { %v212_v17 = vpop.f32.mrf.mxu1 }
 0x234   :  { %v213_v18 = vadd.f32 %v505_v9, %v212_v17 }
 0x236   :  { %v216_v19 = vsub.f32 0.0, %v213_v18 }
 0x238   :  { %v219_v20 = vmul.f32 1.442695, %v216_v19  ;;  %v511_v21 = vpop.eup %510 }
 0x239   :  { %v221_v22 = vadd.f32 1.0, %v511_v21 }
 0x23a   :  { %512 = vpow2.f32 %v219_v20 }
 0x23b   :  { %514 = vrcp.f32 %v221_v22 }
 0x240   :  { %v513_v26 = vpop.eup %512 }
 0x241   :  { %v222_v27 = vadd.f32 1.0, %v513_v26  ;;  %v515_v28 = vpop.eup %514 }
 0x242   :  { %v643_v33 = vmul.f32 %v515_v28, %v242_v23  ;;  %v645_v34 = vmul.f32 %v515_v28, %v262_v24  ;;  %v647_v35 = vmul.f32 %v515_v28, %v282_v25 }
 0x243   :  { %516 = vrcp.f32 %v222_v27 }
 0x244   :  { %v440_v23 = vmul.f32 0.01, %v647_v35  ;;  %v426_v27 = vmul.f32 0.01, %v645_v34 }
 0x249   :  { %v517_v30 = vpop.eup %516 }
 0x24a   :  { %v649_v36 = vmul.f32 %v517_v30, %v244_v29  ;;  %v651_v37 = vmul.f32 %v517_v30, %v264_v31  ;;  %v653_v38 = vmul.f32 %v517_v30, %v284_v32  ;;  %v410_v30 = vmul.f32 0.01, %v643_v33 }
 0x24c   :  { %v296_v39 = vpack.c.bf16 %v649_v36, %v643_v33  ;;  %v318_v40 = vpack.c.bf16 %v651_v37, %v645_v34  ;;  %v336_v41 = vpack.c.bf16 %v653_v38, %v647_v35 }
 0x24e   :  { %496 = vmatmul.msk.bf16.vlgmr.msra.gmra.mxu1 %vm51_vm1, %v296_v39  ;;  %497 = vmatmul.msk.bf16.vlgmr.msra.gmra.mxu2 %vm51_vm1, %v318_v40 }
 0x24f   :  { %498 = vmatmul.msk.bf16.vlgmr.msra.gmra.mxu3 %vm51_vm1, %v336_v41  ;;  %vm289_vm1 = vcmp.ge.f32.partialorder %v629_v6, 0.0 }
 0x2cb   :  { %v313_v42 = vpop.f32.mrf.mxu1 }
 0x2cc   :  { %v364_v44 = vmul.f32 %v313_v42, %v313_v42  ;;  %v354_v59 = vmul.f32 %v313_v42, %v643_v33 }
 0x2d1   :  { %v331_v43 = vpop.f32.mrf.mxu2 }
 0x2d2   :  { %v366_v45 = vmul.f32 %v331_v43, %v331_v43  ;;  %v349_v46 = vpop.f32.mrf.mxu3  ;;  %v356_v56 = vmul.f32 %v331_v43, %v645_v34 }
 0x2d3   :  { %v370_v48 = vmul.f32 %v349_v46, %v349_v46  ;;  %v315_v51 = vpop.f32.mrf.mxu1  ;;  %v360_v1 = vmul.f32 %v349_v46, %v647_v35 }
 0x2d4   :  { %v368_v47 = vadd.f32 %v366_v45, %v364_v44  ;;  %v365_v54 = vmul.f32 %v315_v51, %v315_v51  ;;  %v358_v62 = vadd.f32 %v356_v56, %v354_v59  ;;  %v355_v8 = vmul.f32 %v315_v51, %v649_v36 }
 0x2d6   :  { %v372_v49 = vadd.f32 %v370_v48, %v368_v47  ;;  %v362_v4 = vadd.f32 %v360_v1, %v358_v62  ;;  %v411_v1 = vmul.f32 0.01, %v649_v36 }
 0x2d8   :  { %v376_v50 = vadd.f32 1e-08, %v372_v49  ;;  %v374_v13 = vmul.f32 %v362_v4, %v313_v42  ;;  %v420_v18 = vmul.f32 %v362_v4, %v331_v43  ;;  %v434_v19 = vmul.f32 %v362_v4, %v349_v46 }
 0x2d9   :  { %v664_v52 = vpop.f32.mrf.mxu2  ;;  %vm412_vm12 = vcmp.ge.f32.partialorder %v362_v4, 0.0 }
 0x2da   :  { %518 = vrcp.f32 %v376_v50  ;;  %v666_v53 = vpop.f32.mrf.mxu3  ;;  %v367_v55 = vmul.f32 %v664_v52, %v664_v52  ;;  %v357_v2 = vmul.f32 %v664_v52, %v651_v37  ;;  %v389_v5 = vand.u32 2147483648, %v376_v50 }
 0x2db   :  { %v371_v58 = vmul.f32 %v666_v53, %v666_v53  ;;  %v387_v10 = vand.u32 2147483647, %v376_v50  ;;  %vm383_vm8 = vweird.f32 %v376_v50  ;;  %v361_v15 = vmul.f32 %v666_v53, %v653_v38 }
 0x2dc   :  { %v369_v57 = vadd.f32 %v367_v55, %v365_v54  ;;  %v359_v11 = vadd.f32 %v357_v2, %v355_v8  ;;  %v390_v14 = vor.u32 1.1754944e-38, %v389_v5 }
 0x2dd   :  { %vm388_vm10 = vcmp.eq.f32.partialorder %v387_v10, 8.507059e+37 }
 0x2de   :  { %v373_v60 = vadd.f32 %v371_v58, %v369_v57  ;;  %v363_v21 = vadd.f32 %v361_v15, %v359_v11  ;;  %v291_v11 = vmul.f32 0.01, %v629_v6 }
 0x2e0   :  { %v519_v61 = vpop.eup %518  ;;  %v377_v0 = vadd.f32 1e-08, %v373_v60  ;;  %v375_v41 = vmul.f32 %v363_v21, %v315_v51  ;;  %v421_v54 = vmul.f32 %v363_v21, %v664_v52  ;;  %v435_v51 = vmul.f32 %v363_v21, %v666_v53 }
 0x2e1   :  { %v379_v63 = vmul.f32 %v519_v61, %v376_v50  ;;  %vm384_vm7 = vweird.f32 %v519_v61  ;;  %vm413_vm0 = vcmp.ge.f32.partialorder %v363_v21, 0.0 }
 0x2e2   :  { %520 = vrcp.f32 %v377_v0  ;;  %vm385_vm9 = vmor %vm383_vm8, %vm384_vm7  ;;  %v402_v29 = vand.u32 2147483647, %v377_v0  ;;  %v404_v32 = vand.u32 2147483648, %v377_v0  ;;  %vm398_vm13 = vweird.f32 %v377_v0 }
 0x2e3   :  { %v380_v3 = vsub.f32 1.0, %v379_v63 }
 0x2e4   :  { %vm403_vm15 = vcmp.eq.f32.partialorder %v402_v29, 8.507059e+37  ;;  %v405_v50 = vor.u32 1.1754944e-38, %v404_v32 }
 0x2e5   :  { %v381_v9 = vmul.f32 %v519_v61, %v380_v3 }
 0x2e7   :  { %v382_v12 = vadd.f32 %v519_v61, %v381_v9  ;;  %v441_v9 = vmul.f32 0.01, %v653_v38 }
 0x2e8   :  { %v521_v16 = vpop.eup %520 }
 0x2e9   :  { %v386_v17 = vsel %vm385_vm9, %v519_v61, %v382_v12  ;;  %v394_v22 = vmul.f32 %v521_v16, %v377_v0  ;;  %vm399_vm11 = vweird.f32 %v521_v16  ;;  %v427_v61 = vmul.f32 0.01, %v651_v37 }
 0x2ea   :  { %v391_v20 = vsel %vm388_vm10, %v390_v14, %v386_v17  ;;  %vm400_vm14 = vmor %vm398_vm13, %vm399_vm11 }
 0x2eb   :  { %v392_v24 = vmul.f32 %v391_v20, %v374_v13  ;;  %v422_v25 = vmul.f32 %v420_v18, %v391_v20  ;;  %v436_v26 = vmul.f32 %v434_v19, %v391_v20  ;;  %v395_v28 = vsub.f32 1.0, %v394_v22 }
 0x2ed   :  { %v438_v31 = vsub.f32 %v647_v35, %v436_v26  ;;  %v424_v39 = vsub.f32 %v645_v34, %v422_v25  ;;  %v408_v40 = vsub.f32 %v643_v33, %v392_v24  ;;  %v396_v42 = vmul.f32 %v521_v16, %v395_v28 }
 0x2ef   :  { %v442_v43 = vsel %vm412_vm12, %v647_v35, %v438_v31  ;;  %v428_v44 = vsel %vm412_vm12, %v645_v34, %v424_v39  ;;  %v414_v45 = vsel %vm412_vm12, %v643_v33, %v408_v40  ;;  %v397_v46 = vadd.f32 %v521_v16, %v396_v42 }
 0x2f0   :  { %v444_v47 = vmul.f32 0.99, %v442_v43  ;;  %v430_v48 = vmul.f32 0.99, %v428_v44  ;;  %v416_v49 = vmul.f32 0.99, %v414_v45 }
 0x2f1   :  { %v401_v55 = vsel %vm400_vm14, %v521_v16, %v397_v46  ;;  %v292_v16 = vmul.f32 0.01, %v631_v7 }
 0x2f2   :  { %v446_v56 = vadd.f32 %v444_v47, %v440_v23  ;;  %v432_v57 = vadd.f32 %v430_v48, %v426_v27  ;;  %v418_v58 = vadd.f32 %v416_v49, %v410_v30  ;;  %v406_v35 = vsel %vm403_vm15, %v405_v50, %v401_v55 }
 0x2f3   :  { %v407_v59 = vmul.f32 %v406_v35, %v375_v41  ;;  %v423_v34 = vmul.f32 %v421_v54, %v406_v35  ;;  %v437_v60 = vmul.f32 %v435_v51, %v406_v35 }
 0x2f4   :  { %466 = vrot.lane.b32.xlu0 %v446_v56, %s524_s5  ;;  %458 = vrot.lane.b32.xlu2 %v432_v57, %s525_s7 }
 0x2f5   :  { %450 = vrot.lane.b32.xlu1 %v418_v58, %s526_s9  ;;  %v409_v33 = vsub.f32 %v649_v36, %v407_v59  ;;  %v425_v52 = vsub.f32 %v651_v37, %v423_v34  ;;  %v439_v53 = vsub.f32 %v653_v38, %v437_v60 }
 0x2f7   :  { %v429_v62 = vsel %vm413_vm0, %v651_v37, %v425_v52  ;;  %v415_v63 = vsel %vm413_vm0, %v649_v36, %v409_v33  ;;  %v443_v5 = vsel %vm413_vm0, %v653_v38, %v439_v53  ;;  %v293_v37 = vsel %vm289_vm1, %v629_v6, %v291_v11 }
 0x2f8   :  { %v431_v0 = vmul.f32 0.99, %v429_v62  ;;  %v417_v2 = vmul.f32 0.99, %v415_v63  ;;  %v445_v8 = vmul.f32 0.99, %v443_v5  ;;  %v294_v6 = vsel %vm290_vm6, %v631_v7, %v292_v16 }
 0x2fa   :  { %v433_v3 = vadd.f32 %v431_v0, %v427_v61  ;;  %v419_v4 = vadd.f32 %v417_v2, %v411_v1  ;;  %v447_v10 = vadd.f32 %v445_v8, %v441_v9 }
 0x2fc   :  { %460 = vrot.lane.b32.xlu2 %v433_v3, %s525_s7 }
 0x2fd   :  { %452 = vrot.lane.b32.xlu1 %v419_v4, %s526_s9 }
 0x305   :  { %468 = vrot.lane.b32.xlu1 %v447_v10, %s524_s5 }
 0x34e   :  { %v459_v12 = vpop.permute.xlu2 %458 }
 0x356   :  { %v461_v19 = vpop.permute.xlu2 %460 }
 0x366   :  { %v467_v14 = vpop.permute.xlu0 %466 }
 0x367   :  { %v451_v36 = vpop.permute.xlu1 %450 }
 0x368   :  { %v472_v13 = vsel %vm150_vm2, %v293_v37, %v451_v36 }
 0x369   :  { %v475_v15 = vsel %vm474_vm3, %v472_v13, %v459_v12 }
 0x36a   :  { %v478_v38 = vsel %vm477_vm4, %v475_v15, %v467_v14 }
 0x36b   :  { %481 = vst.msk [vmem:[%s728_s10] sm:$0xff] %vm480_vm5, %v478_v38 }
 0x36f   :  { %v453_v17 = vpop.permute.xlu1 %452 }
 0x370   :  { %v473_v18 = vsel %vm150_vm2, %v294_v6, %v453_v17 }
 0x371   :  { %v476_v20 = vsel %vm474_vm3, %v473_v18, %v461_v19 }
 0x377   :  { %v469_v21 = vpop.permute.xlu1 %468 }
 0x378   :  { %v479_v22 = vsel %vm477_vm4, %v476_v20, %v469_v21 }
 0x379   :  { %482 = vst.msk [vmem:[%s728_s10 + $0x8] sm:$0xff] %vm480_vm5, %v479_v22 }

</bundles_post_ra>
